<compile_context>
chip_gen: v5e
topology: v5e:2x2
jax: 0.10.0
libtpu: 0.0.40
codegen_flags: <defaults>
</compile_context>

<pallas_src>
import functools

import jax
import jax.numpy as jnp
from jax import lax
from jax.experimental import pallas as pl
from jax.experimental.pallas import tpu as pltpu


# ----------------------------------------------------------------------------
# Fused kernel: upsample x2 + conv2x2(+bias) + concat-pad + 2x(conv3x3+BN+ReLU)
# ----------------------------------------------------------------------------
def _upsample_block_kernel(
    x_ref,      # (1, Cin*H, W)      VMEM  input image, channels folded into M
    res_ref,    # (1, Cres, HO, WO)  VMEM  residual (skip connection)
    awt_ref,    # (W, 2W)            VMEM  width interpolation matrix A_w^T
    ahb_ref,    # (Cin*2H, Cin*H)    VMEM  block-diagonal height interpolation
    upw_ref,    # (Cout*Cin*4,)      SMEM  Conv2d(k=2) weights, flattened
    upb_ref,    # (Cout,)            SMEM  Conv2d(k=2) bias
    w1_ref,     # (Cout*Cin1*9,)     SMEM  ConvBlock stage-1 3x3 weights
    s1_ref,     # (Cout,)            SMEM  folded BN1 scale
    t1_ref,     # (Cout,)            SMEM  folded BN1 shift
    w2_ref,     # (Cout*Cout*9,)     SMEM  ConvBlock stage-2 3x3 weights
    s2_ref,     # (Cout,)            SMEM  folded BN2 scale
    t2_ref,     # (Cout,)            SMEM  folded BN2 shift
    o_ref,      # (1, Cout, HO, WO)  VMEM  output
    zbuf,       # (Cin1, HO+2, WO+2) VMEM scratch: concat input + pad=1 halo
    z1buf,      # (Cout, HO+2, WO+2) VMEM scratch: stage-1 act + pad=1 halo
    *, cin,
):
    f32 = jnp.float32
    _, cin_h, w = x_ref.shape
    h = cin_h // cin
    _, cres, HO, WO = res_ref.shape
    _, cout, _, _ = o_ref.shape
    cin1 = zbuf.shape[0]                  # = Cres + Cout
    hu, wu = 2 * h, 2 * w                 # bilinear x2 output
    hy, wy = hu - 1, wu - 1               # Conv2d(k=2, valid) output

    # --- 1) bilinear x2 upsample: two channel-batched MXU matmuls ------------
    # DEFAULT matmul precision (bf16 MXU passes) -- plenty for interpolation
    # and 3-6x fewer passes than Precision.HIGHEST.
    xw = jnp.dot(x_ref[0], awt_ref[...], preferred_element_type=f32)  # (Cin*H, 2W)
    u = jnp.dot(ahb_ref[...], xw, preferred_element_type=f32)         # (Cin*2H, 2W)

    # --- 2) Conv2d(kernel=2, stride=1) + bias ---------------------------------
    # Channel counts are tiny, so this stays a VPU broadcast-MAC; the 4 shifted
    # windows of each upsampled channel are sliced once and reused for all Cout.
    # TODO(synk): per-tap MXU matmuls with VMEM-resident weights for large Cin/Cout.
    ys = [jnp.full((hy, wy), upb_ref[co], dtype=f32) for co in range(cout)]
    for ci in range(cin):
        uc = u[ci * hu:(ci + 1) * hu, :]
        for kh in range(2):
            for kw in range(2):
                win = uc[kh:kh + hy, kw:kw + wy]
                for co in range(cout):
                    wgt = upw_ref[((co * cin + ci) * 2 + kh) * 2 + kw]
                    ys[co] = ys[co] + wgt * win

    # --- 3) concat-pad into a zeroed VMEM scratch -----------------------------
    # zbuf holds [residual channels, padded upsample channels] with a 1-pixel
    # zero halo: it is simultaneously the module's F.pad + torch.cat and the
    # first 3x3 conv's padding=1 -- no XLA-side pad/concat HBM passes.
    h_diff = HO - hy
    top = h_diff // 2
    left = h_diff // 2   # module quirk: F.pad uses h_diff//2 for the LEFT W pad
    zbuf[...] = jnp.zeros_like(zbuf)
    for ci in range(cres):
        zbuf[ci, 1:1 + HO, 1:1 + WO] = res_ref[0, ci].astype(f32)
    for co in range(cout):
        zbuf[cres + co, 1 + top:1 + top + hy, 1 + left:1 + left + wy] = ys[co]

    # --- 4) ConvBlock stage 1: 3x3 conv (no bias) + folded BN + ReLU ----------
    # TODO(synk): BatchNorm runs in inference mode (running stats folded into
    # per-channel scale/shift); training-mode batch statistics are not computed.
    acc1 = [jnp.zeros((HO, WO), f32) for _ in range(cout)]
    for ci in range(cin1):
        plane = zbuf[ci]                                    # (HO+2, WO+2)
        cols = [plane[:, kw:kw + WO] for kw in range(3)]    # kw shifts, hoisted
        for kh in range(3):
            wins = [cols[kw][kh:kh + HO, :] for kw in range(3)]
            for co in range(cout):
                base = (co * cin1 + ci) * 9 + kh * 3
                a = acc1[co]
                for kw in range(3):
                    a = a + w1_ref[base + kw] * wins[kw]
                acc1[co] = a
    z1buf[...] = jnp.zeros_like(z1buf)
    for co in range(cout):
        z1buf[co, 1:1 + HO, 1:1 + WO] = jnp.maximum(
            acc1[co] * s1_ref[co] + t1_ref[co], 0.0)

    # --- 5) ConvBlock stage 2: 3x3 conv (no bias) + folded BN + ReLU ----------
    acc2 = [jnp.zeros((HO, WO), f32) for _ in range(cout)]
    for ci in range(cout):
        plane = z1buf[ci]
        cols = [plane[:, kw:kw + WO] for kw in range(3)]
        for kh in range(3):
            wins = [cols[kw][kh:kh + HO, :] for kw in range(3)]
            for co in range(cout):
                base = (co * cout + ci) * 9 + kh * 3
                a = acc2[co]
                for kw in range(3):
                    a = a + w2_ref[base + kw] * wins[kw]
                acc2[co] = a
    for co in range(cout):
        o_ref[0, co] = jnp.maximum(
            acc2[co] * s2_ref[co] + t2_ref[co], 0.0).astype(o_ref.dtype)


# ----------------------------------------------------------------------------
# Wrapper
# ----------------------------------------------------------------------------
def _bilinear_matrix(n_in, n_out):
    """(n_out, n_in) interpolation matrix for bilinear, align_corners=True."""
    if n_in == 1:
        return jnp.ones((n_out, 1), jnp.float32)
    src = jnp.arange(n_out, dtype=jnp.float32) * (n_in - 1) / (n_out - 1)
    lo = jnp.clip(jnp.floor(src), 0, n_in - 2).astype(jnp.int32)
    frac = src - lo.astype(jnp.float32)
    rows = jnp.arange(n_out)
    m = jnp.zeros((n_out, n_in), jnp.float32)
    m = m.at[rows, lo].add(1.0 - frac)
    m = m.at[rows, lo + 1].add(frac)
    return m


def upsample_forward(inputs, residual, params, eps=1e-5):
    """Pallas implementation of UpSample.forward(inputs, residual_inputs)."""
    n, cin, h, w = inputs.shape
    _, cres, HO, WO = residual.shape
    cout = params["up_w"].shape[0]
    cin1 = cres + cout
    hu, wu = 2 * h, 2 * w
    hy, wy = hu - 1, wu - 1
    h_diff, w_diff = HO - hy, WO - wy
    # torch.cat requires the padded upsample to match the residual spatially.
    assert h_diff // 2 + hy + (h_diff - h_diff // 2) == HO
    assert h_diff // 2 + wy + (w_diff - w_diff // 2) == WO
    assert params["w1"].shape[1] == cin1 and params["w1"].shape[0] == cout

    # Constant interpolation operators (built once per call, tiny).
    a_wt = _bilinear_matrix(w, wu).T                                   # (W, 2W)
    a_hb = jnp.kron(jnp.eye(cin, dtype=jnp.float32),
                    _bilinear_matrix(h, hu))                 # (Cin*2H, Cin*H)

    # Fold BatchNorm (inference) into per-channel scale/shift.
    s1 = (params["g1"] / jnp.sqrt(params["v1"] + eps)).astype(jnp.float32)
    t1 = (params["b1"] - params["m1"] * s1).astype(jnp.float32)
    s2 = (params["g2"] / jnp.sqrt(params["v2"] + eps)).astype(jnp.float32)
    t2 = (params["b2"] - params["m2"] * s2).astype(jnp.float32)

    upw = params["up_w"].reshape(-1).astype(jnp.float32)
    upb = params["up_b"].astype(jnp.float32)
    w1 = params["w1"].reshape(-1).astype(jnp.float32)
    w2 = params["w2"].reshape(-1).astype(jnp.float32)

    # Fold channels into the matmul M dim on the host side (free reshape).
    x2 = inputs.reshape(n, cin * h, w)

    flops_per_img = (2 * (cin * h) * w * wu            # width-pass matmul
                     + 2 * (cin * hu) * (cin * h) * wu  # height-pass matmul
                     + 2 * cout * cin * 4 * hy * wy     # conv 2x2
                     + 2 * cout * cin1 * 9 * HO * WO    # conv_block stage 1
                     + 2 * cout * cout * 9 * HO * WO)   # conv_block stage 2
    bytes_accessed = 4 * (inputs.size + residual.size + n * cout * HO * WO
                          + a_wt.size + a_hb.size + upw.size + upb.size
                          + w1.size + w2.size + 4 * cout)

    kernel = functools.partial(_upsample_block_kernel, cin=cin)

    return pl.pallas_call(
        kernel,
        out_shape=jax.ShapeDtypeStruct((n, cout, HO, WO), inputs.dtype),
        grid_spec=pltpu.PrefetchScalarGridSpec(
            num_scalar_prefetch=0,
            grid=(n,),
            in_specs=[
                pl.BlockSpec((1, cin * h, w), lambda i: (i, 0, 0)),
                pl.BlockSpec((1, cres, HO, WO), lambda i: (i, 0, 0, 0)),
                pl.BlockSpec((w, wu), lambda i: (0, 0)),
                pl.BlockSpec((cin * hu, cin * h), lambda i: (0, 0)),
                pl.BlockSpec(memory_space=pltpu.MemorySpace.SMEM),
                pl.BlockSpec(memory_space=pltpu.MemorySpace.SMEM),
                pl.BlockSpec(memory_space=pltpu.MemorySpace.SMEM),
                pl.BlockSpec(memory_space=pltpu.MemorySpace.SMEM),
                pl.BlockSpec(memory_space=pltpu.MemorySpace.SMEM),
                pl.BlockSpec(memory_space=pltpu.MemorySpace.SMEM),
                pl.BlockSpec(memory_space=pltpu.MemorySpace.SMEM),
                pl.BlockSpec(memory_space=pltpu.MemorySpace.SMEM),
            ],
            out_specs=pl.BlockSpec((1, cout, HO, WO), lambda i: (i, 0, 0, 0)),
            scratch_shapes=[
                pltpu.VMEM((cin1, HO + 2, WO + 2), jnp.float32),
                pltpu.VMEM((cout, HO + 2, WO + 2), jnp.float32),
            ],
        ),
        compiler_params=pltpu.CompilerParams(
            dimension_semantics=("parallel",),
            vmem_limit_bytes=32 * 1024 * 1024,
        ),
        cost_estimate=pl.CostEstimate(flops=int(n * flops_per_img),
                                      transcendentals=0,
                                      bytes_accessed=int(bytes_accessed)),
    )(x2, residual, a_wt, a_hb, upw, upb, w1, s1, t1, w2, s2, t2)


# ----------------------------------------------------------------------------
# Pure-JAX reference (independent formulation) + demo
# ----------------------------------------------------------------------------
def _reference_forward(inputs, residual, params, eps=1e-5):
    n, c, h, w = inputs.shape
    ho, wo = 2 * h, 2 * w

    def coords(n_in, n_out):
        src = jnp.arange(n_out, dtype=jnp.float32) * (n_in - 1) / (n_out - 1)
        lo = jnp.clip(jnp.floor(src), 0, n_in - 2).astype(jnp.int32)
        return lo, src - lo.astype(jnp.float32)

    hlo, hfr = coords(h, ho)
    wlo, wfr = coords(w, wo)
    xh = (inputs[:, :, hlo, :] * (1.0 - hfr)[None, None, :, None]
          + inputs[:, :, hlo + 1, :] * hfr[None, None, :, None])
    u = (xh[:, :, :, wlo] * (1.0 - wfr)[None, None, None, :]
         + xh[:, :, :, wlo + 1] * wfr[None, None, None, :])

    conv = functools.partial(lax.conv_general_dilated, window_strides=(1, 1),
                             dimension_numbers=("NCHW", "OIHW", "NCHW"),
                             precision=lax.Precision.HIGHEST)
    y = conv(u, params["up_w"], padding="VALID") + params["up_b"][None, :, None, None]

    h_diff = residual.shape[2] - y.shape[2]
    w_diff = residual.shape[3] - y.shape[3]
    y = jnp.pad(y, ((0, 0), (0, 0),
                    (h_diff // 2, h_diff - h_diff // 2),
                    (h_diff // 2, w_diff - w_diff // 2)))
    z = jnp.concatenate([residual, y], axis=1)

    def block(x, w_, g, b, m, v):
        c_ = conv(x, w_, padding=((1, 1), (1, 1)))
        c_ = ((c_ - m[None, :, None, None]) * (g / jnp.sqrt(v + eps))[None, :, None, None]
              + b[None, :, None, None])
        return jnp.maximum(c_, 0.0)

    z = block(z, params["w1"], params["g1"], params["b1"], params["m1"], params["v1"])
    z = block(z, params["w2"], params["g2"], params["b2"], params["m2"], params["v2"])
    return z


if __name__ == "__main__":
    in_channels, out_channels = 4, 2
    n, h, w = 2, 16, 16

    key = jax.random.PRNGKey(0)
    keys = jax.random.split(key, 12)

    inputs = jax.random.normal(keys[0], (n, in_channels, h, w), jnp.float32)
    residual = jax.random.normal(keys[1], (n, out_channels, 2 * h, 2 * w), jnp.float32)

    def uniform(k, shape, fan_in):
        bound = 1.0 / (fan_in ** 0.5)
        return jax.random.uniform(k, shape, jnp.float32, -bound, bound)

    params = dict(
        # upsample_step[1]: Conv2d(in_ch, out_ch, kernel=2, stride=1, bias=True)
        up_w=uniform(keys[2], (out_channels, in_channels, 2, 2), in_channels * 4),
        up_b=uniform(keys[3], (out_channels,), in_channels * 4),
        # conv_block conv1: Conv2d(in_ch, out_ch, 3, padding=1, bias=False) + BN
        w1=uniform(keys[4], (out_channels, in_channels, 3, 3), in_channels * 9),
        g1=jax.random.uniform(keys[5], (out_channels,), jnp.float32, 0.5, 1.5),
        b1=0.1 * jax.random.normal(keys[6], (out_channels,), jnp.float32),
        m1=0.1 * jax.random.normal(keys[7], (out_channels,), jnp.float32),
        v1=jax.random.uniform(keys[8], (out_channels,), jnp.float32, 0.5, 1.5),
        # conv_block conv2: Conv2d(out_ch, out_ch, 3, padding=1, bias=False) + BN
        w2=uniform(keys[9], (out_channels, out_channels, 3, 3), out_channels * 9),
        g2=jax.random.uniform(keys[10], (out_channels,), jnp.float32, 0.5, 1.5),
        b2=jnp.zeros((out_channels,), jnp.float32),
        m2=jnp.zeros((out_channels,), jnp.float32),
        v2=jnp.ones((out_channels,), jnp.float32),
    )

    out = jax.jit(upsample_forward)(inputs, residual, params)
    out = jax.block_until_ready(out)

    ref = _reference_forward(inputs, residual, params)
    assert out.shape == (n, out_channels, 2 * h, 2 * w), out.shape
    # Tolerance sized for DEFAULT-precision (bf16-input) MXU passes in the
    # bilinear-upsample matmuls, as recommended by the perf review; the rest of
    # the pipeline is exact f32 VPU arithmetic.
    err = float(jnp.max(jnp.abs(out - ref)))
    assert jnp.allclose(out, ref, atol=3e-2, rtol=3e-2), err

    print("KERNEL_OK")
</pallas_src>

<mosaic_0001>
module attributes {stable_mosaic.version = 11 : i64} {
  func.func @_upsample_block_kernel(%arg0: i32, %arg1: memref<1x64x16xf32, #tpu.memory_space<vmem>>, %arg2: memref<1x2x32x32xf32, #tpu.memory_space<vmem>>, %arg3: memref<16x32xf32, #tpu.memory_space<vmem>>, %arg4: memref<128x64xf32, #tpu.memory_space<vmem>>, %arg5: memref<32xf32, #tpu.memory_space<smem>>, %arg6: memref<2xf32, #tpu.memory_space<smem>>, %arg7: memref<72xf32, #tpu.memory_space<smem>>, %arg8: memref<2xf32, #tpu.memory_space<smem>>, %arg9: memref<2xf32, #tpu.memory_space<smem>>, %arg10: memref<36xf32, #tpu.memory_space<smem>>, %arg11: memref<2xf32, #tpu.memory_space<smem>>, %arg12: memref<2xf32, #tpu.memory_space<smem>>, %arg13: memref<1x2x32x32xf32, #tpu.memory_space<vmem>>, %arg14: memref<4x34x34xf32, #tpu.memory_space<vmem>>, %arg15: memref<2x34x34xf32, #tpu.memory_space<vmem>>) attributes {dimension_semantics = [#tpu.dimension_semantics<parallel>], iteration_bounds = array<i64: 2>, scalar_prefetch = 0 : i64, scratch_operands = 2 : i64, tpu.core_type = #tpu.core_type<tc>, window_params = [{transform_indices = @transform_0, window_bounds = array<i64: 1, 64, 16>}, {transform_indices = @transform_1, window_bounds = array<i64: 1, 2, 32, 32>}, {pipeline_mode = #tpu.pipeline_mode<synchronous>, transform_indices = @transform_2, window_bounds = array<i64: 16, 32>}, {pipeline_mode = #tpu.pipeline_mode<synchronous>, transform_indices = @transform_3, window_bounds = array<i64: 128, 64>}, {transform_indices = @transform_4, window_bounds = array<i64: 32>}, {transform_indices = @transform_5, window_bounds = array<i64: 2>}, {transform_indices = @transform_6, window_bounds = array<i64: 72>}, {transform_indices = @transform_7, window_bounds = array<i64: 2>}, {transform_indices = @transform_8, window_bounds = array<i64: 2>}, {transform_indices = @transform_9, window_bounds = array<i64: 36>}, {transform_indices = @transform_10, window_bounds = array<i64: 2>}, {transform_indices = @transform_11, window_bounds = array<i64: 2>}, {transform_indices = @transform_12, window_bounds = array<i64: 1, 2, 32, 32>}]} {
    %c0 = arith.constant 0 : index
    %c0_0 = arith.constant 0 : index
    %c0_1 = arith.constant 0 : index
    %0 = vector.load %arg1[%c0, %c0_0, %c0_1] : memref<1x64x16xf32, #tpu.memory_space<vmem>>, vector<1x64x16xf32>
    %1 = vector.shape_cast %0 : vector<1x64x16xf32> to vector<64x16xf32>
    %c0_2 = arith.constant 0 : index
    %c0_3 = arith.constant 0 : index
    %2 = vector.load %arg3[%c0_2, %c0_3] : memref<16x32xf32, #tpu.memory_space<vmem>>, vector<16x32xf32>
    %cst = arith.constant dense<0.000000e+00> : vector<64x32xf32>
    %3 = tpu.matmul %1, %2, %cst {dimension_numbers = #tpu.dot_dimension_numbers<[1], [0], [0], [1], [0, 0, 1, 1], [], []>} : vector<64x16xf32>, vector<16x32xf32>, vector<64x32xf32> -> vector<64x32xf32>
    %c0_4 = arith.constant 0 : index
    %c0_5 = arith.constant 0 : index
    %4 = vector.load %arg4[%c0_4, %c0_5] : memref<128x64xf32, #tpu.memory_space<vmem>>, vector<128x64xf32>
    %cst_6 = arith.constant dense<0.000000e+00> : vector<128x32xf32>
    %5 = tpu.matmul %4, %3, %cst_6 {dimension_numbers = #tpu.dot_dimension_numbers<[1], [0], [0], [1], [0, 0, 1, 1], [], []>} : vector<128x64xf32>, vector<64x32xf32>, vector<128x32xf32> -> vector<128x32xf32>
    %c0_7 = arith.constant 0 : index
    %6 = memref.load %arg6[%c0_7] : memref<2xf32, #tpu.memory_space<smem>>
    %7 = vector.broadcast %6 : f32 to vector<31x31xf32>
    %c1 = arith.constant 1 : index
    %8 = memref.load %arg6[%c1] : memref<2xf32, #tpu.memory_space<smem>>
    %9 = vector.broadcast %8 : f32 to vector<31x31xf32>
    %10 = vector.extract_strided_slice %5 {offsets = [0, 0], sizes = [32, 32], strides = [1, 1]} : vector<128x32xf32> to vector<32x32xf32>
    %11 = vector.extract_strided_slice %10 {offsets = [0, 0], sizes = [31, 31], strides = [1, 1]} : vector<32x32xf32> to vector<31x31xf32>
    %c0_8 = arith.constant 0 : index
    %12 = memref.load %arg5[%c0_8] : memref<32xf32, #tpu.memory_space<smem>>
    %13 = vector.broadcast %12 : f32 to vector<31x31xf32>
    %14 = arith.mulf %13, %11 : vector<31x31xf32>
    %15 = arith.addf %7, %14 : vector<31x31xf32>
    %c16 = arith.constant 16 : index
    %16 = memref.load %arg5[%c16] : memref<32xf32, #tpu.memory_space<smem>>
    %17 = vector.broadcast %16 : f32 to vector<31x31xf32>
    %18 = arith.mulf %17, %11 : vector<31x31xf32>
    %19 = arith.addf %9, %18 : vector<31x31xf32>
    %20 = vector.extract_strided_slice %10 {offsets = [0, 1], sizes = [31, 31], strides = [1, 1]} : vector<32x32xf32> to vector<31x31xf32>
    %c1_9 = arith.constant 1 : index
    %21 = memref.load %arg5[%c1_9] : memref<32xf32, #tpu.memory_space<smem>>
    %22 = vector.broadcast %21 : f32 to vector<31x31xf32>
    %23 = arith.mulf %22, %20 : vector<31x31xf32>
    %24 = arith.addf %15, %23 : vector<31x31xf32>
    %c17 = arith.constant 17 : index
    %25 = memref.load %arg5[%c17] : memref<32xf32, #tpu.memory_space<smem>>
    %26 = vector.broadcast %25 : f32 to vector<31x31xf32>
    %27 = arith.mulf %26, %20 : vector<31x31xf32>
    %28 = arith.addf %19, %27 : vector<31x31xf32>
    %29 = vector.extract_strided_slice %10 {offsets = [1, 0], sizes = [31, 31], strides = [1, 1]} : vector<32x32xf32> to vector<31x31xf32>
    %c2 = arith.constant 2 : index
    %30 = memref.load %arg5[%c2] : memref<32xf32, #tpu.memory_space<smem>>
    %31 = vector.broadcast %30 : f32 to vector<31x31xf32>
    %32 = arith.mulf %31, %29 : vector<31x31xf32>
    %33 = arith.addf %24, %32 : vector<31x31xf32>
    %c18 = arith.constant 18 : index
    %34 = memref.load %arg5[%c18] : memref<32xf32, #tpu.memory_space<smem>>
    %35 = vector.broadcast %34 : f32 to vector<31x31xf32>
    %36 = arith.mulf %35, %29 : vector<31x31xf32>
    %37 = arith.addf %28, %36 : vector<31x31xf32>
    %38 = vector.extract_strided_slice %10 {offsets = [1, 1], sizes = [31, 31], strides = [1, 1]} : vector<32x32xf32> to vector<31x31xf32>
    %c3 = arith.constant 3 : index
    %39 = memref.load %arg5[%c3] : memref<32xf32, #tpu.memory_space<smem>>
    %40 = vector.broadcast %39 : f32 to vector<31x31xf32>
    %41 = arith.mulf %40, %38 : vector<31x31xf32>
    %42 = arith.addf %33, %41 : vector<31x31xf32>
    %c19 = arith.constant 19 : index
    %43 = memref.load %arg5[%c19] : memref<32xf32, #tpu.memory_space<smem>>
    %44 = vector.broadcast %43 : f32 to vector<31x31xf32>
    %45 = arith.mulf %44, %38 : vector<31x31xf32>
    %46 = arith.addf %37, %45 : vector<31x31xf32>
    %47 = vector.extract_strided_slice %5 {offsets = [32, 0], sizes = [32, 32], strides = [1, 1]} : vector<128x32xf32> to vector<32x32xf32>
    %48 = vector.extract_strided_slice %47 {offsets = [0, 0], sizes = [31, 31], strides = [1, 1]} : vector<32x32xf32> to vector<31x31xf32>
    %c4 = arith.constant 4 : index
    %49 = memref.load %arg5[%c4] : memref<32xf32, #tpu.memory_space<smem>>
    %50 = vector.broadcast %49 : f32 to vector<31x31xf32>
    %51 = arith.mulf %50, %48 : vector<31x31xf32>
    %52 = arith.addf %42, %51 : vector<31x31xf32>
    %c20 = arith.constant 20 : index
    %53 = memref.load %arg5[%c20] : memref<32xf32, #tpu.memory_space<smem>>
    %54 = vector.broadcast %53 : f32 to vector<31x31xf32>
    %55 = arith.mulf %54, %48 : vector<31x31xf32>
    %56 = arith.addf %46, %55 : vector<31x31xf32>
    %57 = vector.extract_strided_slice %47 {offsets = [0, 1], sizes = [31, 31], strides = [1, 1]} : vector<32x32xf32> to vector<31x31xf32>
    %c5 = arith.constant 5 : index
    %58 = memref.load %arg5[%c5] : memref<32xf32, #tpu.memory_space<smem>>
    %59 = vector.broadcast %58 : f32 to vector<31x31xf32>
    %60 = arith.mulf %59, %57 : vector<31x31xf32>
    %61 = arith.addf %52, %60 : vector<31x31xf32>
    %c21 = arith.constant 21 : index
    %62 = memref.load %arg5[%c21] : memref<32xf32, #tpu.memory_space<smem>>
    %63 = vector.broadcast %62 : f32 to vector<31x31xf32>
    %64 = arith.mulf %63, %57 : vector<31x31xf32>
    %65 = arith.addf %56, %64 : vector<31x31xf32>
    %66 = vector.extract_strided_slice %47 {offsets = [1, 0], sizes = [31, 31], strides = [1, 1]} : vector<32x32xf32> to vector<31x31xf32>
    %c6 = arith.constant 6 : index
    %67 = memref.load %arg5[%c6] : memref<32xf32, #tpu.memory_space<smem>>
    %68 = vector.broadcast %67 : f32 to vector<31x31xf32>
    %69 = arith.mulf %68, %66 : vector<31x31xf32>
    %70 = arith.addf %61, %69 : vector<31x31xf32>
    %c22 = arith.constant 22 : index
    %71 = memref.load %arg5[%c22] : memref<32xf32, #tpu.memory_space<smem>>
    %72 = vector.broadcast %71 : f32 to vector<31x31xf32>
    %73 = arith.mulf %72, %66 : vector<31x31xf32>
    %74 = arith.addf %65, %73 : vector<31x31xf32>
    %75 = vector.extract_strided_slice %47 {offsets = [1, 1], sizes = [31, 31], strides = [1, 1]} : vector<32x32xf32> to vector<31x31xf32>
    %c7 = arith.constant 7 : index
    %76 = memref.load %arg5[%c7] : memref<32xf32, #tpu.memory_space<smem>>
    %77 = vector.broadcast %76 : f32 to vector<31x31xf32>
    %78 = arith.mulf %77, %75 : vector<31x31xf32>
    %79 = arith.addf %70, %78 : vector<31x31xf32>
    %c23 = arith.constant 23 : index
    %80 = memref.load %arg5[%c23] : memref<32xf32, #tpu.memory_space<smem>>
    %81 = vector.broadcast %80 : f32 to vector<31x31xf32>
    %82 = arith.mulf %81, %75 : vector<31x31xf32>
    %83 = arith.addf %74, %82 : vector<31x31xf32>
    %84 = vector.extract_strided_slice %5 {offsets = [64, 0], sizes = [32, 32], strides = [1, 1]} : vector<128x32xf32> to vector<32x32xf32>
    %85 = vector.extract_strided_slice %84 {offsets = [0, 0], sizes = [31, 31], strides = [1, 1]} : vector<32x32xf32> to vector<31x31xf32>
    %c8 = arith.constant 8 : index
    %86 = memref.load %arg5[%c8] : memref<32xf32, #tpu.memory_space<smem>>
    %87 = vector.broadcast %86 : f32 to vector<31x31xf32>
    %88 = arith.mulf %87, %85 : vector<31x31xf32>
    %89 = arith.addf %79, %88 : vector<31x31xf32>
    %c24 = arith.constant 24 : index
    %90 = memref.load %arg5[%c24] : memref<32xf32, #tpu.memory_space<smem>>
    %91 = vector.broadcast %90 : f32 to vector<31x31xf32>
    %92 = arith.mulf %91, %85 : vector<31x31xf32>
    %93 = arith.addf %83, %92 : vector<31x31xf32>
    %94 = vector.extract_strided_slice %84 {offsets = [0, 1], sizes = [31, 31], strides = [1, 1]} : vector<32x32xf32> to vector<31x31xf32>
    %c9 = arith.constant 9 : index
    %95 = memref.load %arg5[%c9] : memref<32xf32, #tpu.memory_space<smem>>
    %96 = vector.broadcast %95 : f32 to vector<31x31xf32>
    %97 = arith.mulf %96, %94 : vector<31x31xf32>
    %98 = arith.addf %89, %97 : vector<31x31xf32>
    %c25 = arith.constant 25 : index
    %99 = memref.load %arg5[%c25] : memref<32xf32, #tpu.memory_space<smem>>
    %100 = vector.broadcast %99 : f32 to vector<31x31xf32>
    %101 = arith.mulf %100, %94 : vector<31x31xf32>
    %102 = arith.addf %93, %101 : vector<31x31xf32>
    %103 = vector.extract_strided_slice %84 {offsets = [1, 0], sizes = [31, 31], strides = [1, 1]} : vector<32x32xf32> to vector<31x31xf32>
    %c10 = arith.constant 10 : index
    %104 = memref.load %arg5[%c10] : memref<32xf32, #tpu.memory_space<smem>>
    %105 = vector.broadcast %104 : f32 to vector<31x31xf32>
    %106 = arith.mulf %105, %103 : vector<31x31xf32>
    %107 = arith.addf %98, %106 : vector<31x31xf32>
    %c26 = arith.constant 26 : index
    %108 = memref.load %arg5[%c26] : memref<32xf32, #tpu.memory_space<smem>>
    %109 = vector.broadcast %108 : f32 to vector<31x31xf32>
    %110 = arith.mulf %109, %103 : vector<31x31xf32>
    %111 = arith.addf %102, %110 : vector<31x31xf32>
    %112 = vector.extract_strided_slice %84 {offsets = [1, 1], sizes = [31, 31], strides = [1, 1]} : vector<32x32xf32> to vector<31x31xf32>
    %c11 = arith.constant 11 : index
    %113 = memref.load %arg5[%c11] : memref<32xf32, #tpu.memory_space<smem>>
    %114 = vector.broadcast %113 : f32 to vector<31x31xf32>
    %115 = arith.mulf %114, %112 : vector<31x31xf32>
    %116 = arith.addf %107, %115 : vector<31x31xf32>
    %c27 = arith.constant 27 : index
    %117 = memref.load %arg5[%c27] : memref<32xf32, #tpu.memory_space<smem>>
    %118 = vector.broadcast %117 : f32 to vector<31x31xf32>
    %119 = arith.mulf %118, %112 : vector<31x31xf32>
    %120 = arith.addf %111, %119 : vector<31x31xf32>
    %121 = vector.extract_strided_slice %5 {offsets = [96, 0], sizes = [32, 32], strides = [1, 1]} : vector<128x32xf32> to vector<32x32xf32>
    %122 = vector.extract_strided_slice %121 {offsets = [0, 0], sizes = [31, 31], strides = [1, 1]} : vector<32x32xf32> to vector<31x31xf32>
    %c12 = arith.constant 12 : index
    %123 = memref.load %arg5[%c12] : memref<32xf32, #tpu.memory_space<smem>>
    %124 = vector.broadcast %123 : f32 to vector<31x31xf32>
    %125 = arith.mulf %124, %122 : vector<31x31xf32>
    %126 = arith.addf %116, %125 : vector<31x31xf32>
    %c28 = arith.constant 28 : index
    %127 = memref.load %arg5[%c28] : memref<32xf32, #tpu.memory_space<smem>>
    %128 = vector.broadcast %127 : f32 to vector<31x31xf32>
    %129 = arith.mulf %128, %122 : vector<31x31xf32>
    %130 = arith.addf %120, %129 : vector<31x31xf32>
    %131 = vector.extract_strided_slice %121 {offsets = [0, 1], sizes = [31, 31], strides = [1, 1]} : vector<32x32xf32> to vector<31x31xf32>
    %c13 = arith.constant 13 : index
    %132 = memref.load %arg5[%c13] : memref<32xf32, #tpu.memory_space<smem>>
    %133 = vector.broadcast %132 : f32 to vector<31x31xf32>
    %134 = arith.mulf %133, %131 : vector<31x31xf32>
    %135 = arith.addf %126, %134 : vector<31x31xf32>
    %c29 = arith.constant 29 : index
    %136 = memref.load %arg5[%c29] : memref<32xf32, #tpu.memory_space<smem>>
    %137 = vector.broadcast %136 : f32 to vector<31x31xf32>
    %138 = arith.mulf %137, %131 : vector<31x31xf32>
    %139 = arith.addf %130, %138 : vector<31x31xf32>
    %140 = vector.extract_strided_slice %121 {offsets = [1, 0], sizes = [31, 31], strides = [1, 1]} : vector<32x32xf32> to vector<31x31xf32>
    %c14 = arith.constant 14 : index
    %141 = memref.load %arg5[%c14] : memref<32xf32, #tpu.memory_space<smem>>
    %142 = vector.broadcast %141 : f32 to vector<31x31xf32>
    %143 = arith.mulf %142, %140 : vector<31x31xf32>
    %144 = arith.addf %135, %143 : vector<31x31xf32>
    %c30 = arith.constant 30 : index
    %145 = memref.load %arg5[%c30] : memref<32xf32, #tpu.memory_space<smem>>
    %146 = vector.broadcast %145 : f32 to vector<31x31xf32>
    %147 = arith.mulf %146, %140 : vector<31x31xf32>
    %148 = arith.addf %139, %147 : vector<31x31xf32>
    %149 = vector.extract_strided_slice %121 {offsets = [1, 1], sizes = [31, 31], strides = [1, 1]} : vector<32x32xf32> to vector<31x31xf32>
    %c15 = arith.constant 15 : index
    %150 = memref.load %arg5[%c15] : memref<32xf32, #tpu.memory_space<smem>>
    %151 = vector.broadcast %150 : f32 to vector<31x31xf32>
    %152 = arith.mulf %151, %149 : vector<31x31xf32>
    %153 = arith.addf %144, %152 : vector<31x31xf32>
    %c31 = arith.constant 31 : index
    %154 = memref.load %arg5[%c31] : memref<32xf32, #tpu.memory_space<smem>>
    %155 = vector.broadcast %154 : f32 to vector<31x31xf32>
    %156 = arith.mulf %155, %149 : vector<31x31xf32>
    %157 = arith.addf %148, %156 : vector<31x31xf32>
    %cst_10 = arith.constant 0.000000e+00 : f32
    %158 = vector.broadcast %cst_10 : f32 to vector<4x34x34xf32>
    %c0_11 = arith.constant 0 : index
    %c0_12 = arith.constant 0 : index
    %c0_13 = arith.constant 0 : index
    %159 = vector.load %arg14[%c0_11, %c0_12, %c0_13] : memref<4x34x34xf32, #tpu.memory_space<vmem>>, vector<4x34x34xf32>
    tpu.vector_store %arg14[%c0_11, %c0_12, %c0_13], %158 {strides = array<i32>} : memref<4x34x34xf32, #tpu.memory_space<vmem>>, vector<4x34x34xf32>,
    %c0_14 = arith.constant 0 : index
    %c0_15 = arith.constant 0 : index
    %c0_16 = arith.constant 0 : index
    %c0_17 = arith.constant 0 : index
    %160 = vector.load %arg2[%c0_14, %c0_15, %c0_16, %c0_17] : memref<1x2x32x32xf32, #tpu.memory_space<vmem>>, vector<1x1x32x32xf32>
    %161 = vector.shape_cast %160 : vector<1x1x32x32xf32> to vector<32x32xf32>
    %c0_18 = arith.constant 0 : index
    %c1_19 = arith.constant 1 : index
    %c1_20 = arith.constant 1 : index
    %162 = vector.load %arg14[%c0_18, %c1_19, %c1_20] : memref<4x34x34xf32, #tpu.memory_space<vmem>>, vector<1x32x32xf32>
    %163 = vector.shape_cast %162 : vector<1x32x32xf32> to vector<32x32xf32>
    %164 = vector.shape_cast %161 : vector<32x32xf32> to vector<1x32x32xf32>
    tpu.vector_store %arg14[%c0_18, %c1_19, %c1_20], %164 {strides = array<i32>} : memref<4x34x34xf32, #tpu.memory_space<vmem>>, vector<1x32x32xf32>,
    %c0_21 = arith.constant 0 : index
    %c1_22 = arith.constant 1 : index
    %c0_23 = arith.constant 0 : index
    %c0_24 = arith.constant 0 : index
    %165 = vector.load %arg2[%c0_21, %c1_22, %c0_23, %c0_24] : memref<1x2x32x32xf32, #tpu.memory_space<vmem>>, vector<1x1x32x32xf32>
    %166 = vector.shape_cast %165 : vector<1x1x32x32xf32> to vector<32x32xf32>
    %c1_25 = arith.constant 1 : index
    %c1_26 = arith.constant 1 : index
    %c1_27 = arith.constant 1 : index
    %167 = vector.load %arg14[%c1_25, %c1_26, %c1_27] : memref<4x34x34xf32, #tpu.memory_space<vmem>>, vector<1x32x32xf32>
    %168 = vector.shape_cast %167 : vector<1x32x32xf32> to vector<32x32xf32>
    %169 = vector.shape_cast %166 : vector<32x32xf32> to vector<1x32x32xf32>
    tpu.vector_store %arg14[%c1_25, %c1_26, %c1_27], %169 {strides = array<i32>} : memref<4x34x34xf32, #tpu.memory_space<vmem>>, vector<1x32x32xf32>,
    %c2_28 = arith.constant 2 : index
    %c1_29 = arith.constant 1 : index
    %c1_30 = arith.constant 1 : index
    %170 = vector.load %arg14[%c2_28, %c1_29, %c1_30] : memref<4x34x34xf32, #tpu.memory_space<vmem>>, vector<1x31x31xf32>
    %171 = vector.shape_cast %170 : vector<1x31x31xf32> to vector<31x31xf32>
    %172 = vector.shape_cast %153 : vector<31x31xf32> to vector<1x31x31xf32>
    tpu.vector_store %arg14[%c2_28, %c1_29, %c1_30], %172 {strides = array<i32>} : memref<4x34x34xf32, #tpu.memory_space<vmem>>, vector<1x31x31xf32>,
    %c3_31 = arith.constant 3 : index
    %c1_32 = arith.constant 1 : index
    %c1_33 = arith.constant 1 : index
    %173 = vector.load %arg14[%c3_31, %c1_32, %c1_33] : memref<4x34x34xf32, #tpu.memory_space<vmem>>, vector<1x31x31xf32>
    %174 = vector.shape_cast %173 : vector<1x31x31xf32> to vector<31x31xf32>
    %175 = vector.shape_cast %157 : vector<31x31xf32> to vector<1x31x31xf32>
    tpu.vector_store %arg14[%c3_31, %c1_32, %c1_33], %175 {strides = array<i32>} : memref<4x34x34xf32, #tpu.memory_space<vmem>>, vector<1x31x31xf32>,
    %cst_34 = arith.constant 0.000000e+00 : f32
    %176 = vector.broadcast %cst_34 : f32 to vector<32x32xf32>
    %cst_35 = arith.constant 0.000000e+00 : f32
    %177 = vector.broadcast %cst_35 : f32 to vector<32x32xf32>
    %c0_36 = arith.constant 0 : index
    %c0_37 = arith.constant 0 : index
    %c0_38 = arith.constant 0 : index
    %178 = vector.load %arg14[%c0_36, %c0_37, %c0_38] : memref<4x34x34xf32, #tpu.memory_space<vmem>>, vector<1x34x34xf32>
    %179 = vector.shape_cast %178 : vector<1x34x34xf32> to vector<34x34xf32>
    %180 = vector.extract_strided_slice %179 {offsets = [0, 0], sizes = [34, 32], strides = [1, 1]} : vector<34x34xf32> to vector<34x32xf32>
    %181 = vector.extract_strided_slice %179 {offsets = [0, 1], sizes = [34, 32], strides = [1, 1]} : vector<34x34xf32> to vector<34x32xf32>
    %182 = vector.extract_strided_slice %179 {offsets = [0, 2], sizes = [34, 32], strides = [1, 1]} : vector<34x34xf32> to vector<34x32xf32>
    %183 = vector.extract_strided_slice %180 {offsets = [0, 0], sizes = [32, 32], strides = [1, 1]} : vector<34x32xf32> to vector<32x32xf32>
    %184 = vector.extract_strided_slice %181 {offsets = [0, 0], sizes = [32, 32], strides = [1, 1]} : vector<34x32xf32> to vector<32x32xf32>
    %185 = vector.extract_strided_slice %182 {offsets = [0, 0], sizes = [32, 32], strides = [1, 1]} : vector<34x32xf32> to vector<32x32xf32>
    %c0_39 = arith.constant 0 : index
    %186 = memref.load %arg7[%c0_39] : memref<72xf32, #tpu.memory_space<smem>>
    %187 = vector.broadcast %186 : f32 to vector<32x32xf32>
    %188 = arith.mulf %187, %183 : vector<32x32xf32>
    %189 = arith.addf %176, %188 : vector<32x32xf32>
    %c1_40 = arith.constant 1 : index
    %190 = memref.load %arg7[%c1_40] : memref<72xf32, #tpu.memory_space<smem>>
    %191 = vector.broadcast %190 : f32 to vector<32x32xf32>
    %192 = arith.mulf %191, %184 : vector<32x32xf32>
    %193 = arith.addf %189, %192 : vector<32x32xf32>
    %c2_41 = arith.constant 2 : index
    %194 = memref.load %arg7[%c2_41] : memref<72xf32, #tpu.memory_space<smem>>
    %195 = vector.broadcast %194 : f32 to vector<32x32xf32>
    %196 = arith.mulf %195, %185 : vector<32x32xf32>
    %197 = arith.addf %193, %196 : vector<32x32xf32>
    %c36 = arith.constant 36 : index
    %198 = memref.load %arg7[%c36] : memref<72xf32, #tpu.memory_space<smem>>
    %199 = vector.broadcast %198 : f32 to vector<32x32xf32>
    %200 = arith.mulf %199, %183 : vector<32x32xf32>
    %201 = arith.addf %177, %200 : vector<32x32xf32>
    %c37 = arith.constant 37 : index
    %202 = memref.load %arg7[%c37] : memref<72xf32, #tpu.memory_space<smem>>
    %203 = vector.broadcast %202 : f32 to vector<32x32xf32>
    %204 = arith.mulf %203, %184 : vector<32x32xf32>
    %205 = arith.addf %201, %204 : vector<32x32xf32>
    %c38 = arith.constant 38 : index
    %206 = memref.load %arg7[%c38] : memref<72xf32, #tpu.memory_space<smem>>
    %207 = vector.broadcast %206 : f32 to vector<32x32xf32>
    %208 = arith.mulf %207, %185 : vector<32x32xf32>
    %209 = arith.addf %205, %208 : vector<32x32xf32>
    %210 = vector.extract_strided_slice %180 {offsets = [1, 0], sizes = [32, 32], strides = [1, 1]} : vector<34x32xf32> to vector<32x32xf32>
    %211 = vector.extract_strided_slice %181 {offsets = [1, 0], sizes = [32, 32], strides = [1, 1]} : vector<34x32xf32> to vector<32x32xf32>
    %212 = vector.extract_strided_slice %182 {offsets = [1, 0], sizes = [32, 32], strides = [1, 1]} : vector<34x32xf32> to vector<32x32xf32>
    %c3_42 = arith.constant 3 : index
    %213 = memref.load %arg7[%c3_42] : memref<72xf32, #tpu.memory_space<smem>>
    %214 = vector.broadcast %213 : f32 to vector<32x32xf32>
    %215 = arith.mulf %214, %210 : vector<32x32xf32>
    %216 = arith.addf %197, %215 : vector<32x32xf32>
    %c4_43 = arith.constant 4 : index
    %217 = memref.load %arg7[%c4_43] : memref<72xf32, #tpu.memory_space<smem>>
    %218 = vector.broadcast %217 : f32 to vector<32x32xf32>
    %219 = arith.mulf %218, %211 : vector<32x32xf32>
    %220 = arith.addf %216, %219 : vector<32x32xf32>
    %c5_44 = arith.constant 5 : index
    %221 = memref.load %arg7[%c5_44] : memref<72xf32, #tpu.memory_space<smem>>
    %222 = vector.broadcast %221 : f32 to vector<32x32xf32>
    %223 = arith.mulf %222, %212 : vector<32x32xf32>
    %224 = arith.addf %220, %223 : vector<32x32xf32>
    %c39 = arith.constant 39 : index
    %225 = memref.load %arg7[%c39] : memref<72xf32, #tpu.memory_space<smem>>
    %226 = vector.broadcast %225 : f32 to vector<32x32xf32>
    %227 = arith.mulf %226, %210 : vector<32x32xf32>
    %228 = arith.addf %209, %227 : vector<32x32xf32>
    %c40 = arith.constant 40 : index
    %229 = memref.load %arg7[%c40] : memref<72xf32, #tpu.memory_space<smem>>
    %230 = vector.broadcast %229 : f32 to vector<32x32xf32>
    %231 = arith.mulf %230, %211 : vector<32x32xf32>
    %232 = arith.addf %228, %231 : vector<32x32xf32>
    %c41 = arith.constant 41 : index
    %233 = memref.load %arg7[%c41] : memref<72xf32, #tpu.memory_space<smem>>
    %234 = vector.broadcast %233 : f32 to vector<32x32xf32>
    %235 = arith.mulf %234, %212 : vector<32x32xf32>
    %236 = arith.addf %232, %235 : vector<32x32xf32>
    %237 = vector.extract_strided_slice %180 {offsets = [2, 0], sizes = [32, 32], strides = [1, 1]} : vector<34x32xf32> to vector<32x32xf32>
    %238 = vector.extract_strided_slice %181 {offsets = [2, 0], sizes = [32, 32], strides = [1, 1]} : vector<34x32xf32> to vector<32x32xf32>
    %239 = vector.extract_strided_slice %182 {offsets = [2, 0], sizes = [32, 32], strides = [1, 1]} : vector<34x32xf32> to vector<32x32xf32>
    %c6_45 = arith.constant 6 : index
    %240 = memref.load %arg7[%c6_45] : memref<72xf32, #tpu.memory_space<smem>>
    %241 = vector.broadcast %240 : f32 to vector<32x32xf32>
    %242 = arith.mulf %241, %237 : vector<32x32xf32>
    %243 = arith.addf %224, %242 : vector<32x32xf32>
    %c7_46 = arith.constant 7 : index
    %244 = memref.load %arg7[%c7_46] : memref<72xf32, #tpu.memory_space<smem>>
    %245 = vector.broadcast %244 : f32 to vector<32x32xf32>
    %246 = arith.mulf %245, %238 : vector<32x32xf32>
    %247 = arith.addf %243, %246 : vector<32x32xf32>
    %c8_47 = arith.constant 8 : index
    %248 = memref.load %arg7[%c8_47] : memref<72xf32, #tpu.memory_space<smem>>
    %249 = vector.broadcast %248 : f32 to vector<32x32xf32>
    %250 = arith.mulf %249, %239 : vector<32x32xf32>
    %251 = arith.addf %247, %250 : vector<32x32xf32>
    %c42 = arith.constant 42 : index
    %252 = memref.load %arg7[%c42] : memref<72xf32, #tpu.memory_space<smem>>
    %253 = vector.broadcast %252 : f32 to vector<32x32xf32>
    %254 = arith.mulf %253, %237 : vector<32x32xf32>
    %255 = arith.addf %236, %254 : vector<32x32xf32>
    %c43 = arith.constant 43 : index
    %256 = memref.load %arg7[%c43] : memref<72xf32, #tpu.memory_space<smem>>
    %257 = vector.broadcast %256 : f32 to vector<32x32xf32>
    %258 = arith.mulf %257, %238 : vector<32x32xf32>
    %259 = arith.addf %255, %258 : vector<32x32xf32>
    %c44 = arith.constant 44 : index
    %260 = memref.load %arg7[%c44] : memref<72xf32, #tpu.memory_space<smem>>
    %261 = vector.broadcast %260 : f32 to vector<32x32xf32>
    %262 = arith.mulf %261, %239 : vector<32x32xf32>
    %263 = arith.addf %259, %262 : vector<32x32xf32>
    %c1_48 = arith.constant 1 : index
    %c0_49 = arith.constant 0 : index
    %c0_50 = arith.constant 0 : index
    %264 = vector.load %arg14[%c1_48, %c0_49, %c0_50] : memref<4x34x34xf32, #tpu.memory_space<vmem>>, vector<1x34x34xf32>
    %265 = vector.shape_cast %264 : vector<1x34x34xf32> to vector<34x34xf32>
    %266 = vector.extract_strided_slice %265 {offsets = [0, 0], sizes = [34, 32], strides = [1, 1]} : vector<34x34xf32> to vector<34x32xf32>
    %267 = vector.extract_strided_slice %265 {offsets = [0, 1], sizes = [34, 32], strides = [1, 1]} : vector<34x34xf32> to vector<34x32xf32>
    %268 = vector.extract_strided_slice %265 {offsets = [0, 2], sizes = [34, 32], strides = [1, 1]} : vector<34x34xf32> to vector<34x32xf32>
    %269 = vector.extract_strided_slice %266 {offsets = [0, 0], sizes = [32, 32], strides = [1, 1]} : vector<34x32xf32> to vector<32x32xf32>
    %270 = vector.extract_strided_slice %267 {offsets = [0, 0], sizes = [32, 32], strides = [1, 1]} : vector<34x32xf32> to vector<32x32xf32>
    %271 = vector.extract_strided_slice %268 {offsets = [0, 0], sizes = [32, 32], strides = [1, 1]} : vector<34x32xf32> to vector<32x32xf32>
    %c9_51 = arith.constant 9 : index
    %272 = memref.load %arg7[%c9_51] : memref<72xf32, #tpu.memory_space<smem>>
    %273 = vector.broadcast %272 : f32 to vector<32x32xf32>
    %274 = arith.mulf %273, %269 : vector<32x32xf32>
    %275 = arith.addf %251, %274 : vector<32x32xf32>
    %c10_52 = arith.constant 10 : index
    %276 = memref.load %arg7[%c10_52] : memref<72xf32, #tpu.memory_space<smem>>
    %277 = vector.broadcast %276 : f32 to vector<32x32xf32>
    %278 = arith.mulf %277, %270 : vector<32x32xf32>
    %279 = arith.addf %275, %278 : vector<32x32xf32>
    %c11_53 = arith.constant 11 : index
    %280 = memref.load %arg7[%c11_53] : memref<72xf32, #tpu.memory_space<smem>>
    %281 = vector.broadcast %280 : f32 to vector<32x32xf32>
    %282 = arith.mulf %281, %271 : vector<32x32xf32>
    %283 = arith.addf %279, %282 : vector<32x32xf32>
    %c45 = arith.constant 45 : index
    %284 = memref.load %arg7[%c45] : memref<72xf32, #tpu.memory_space<smem>>
    %285 = vector.broadcast %284 : f32 to vector<32x32xf32>
    %286 = arith.mulf %285, %269 : vector<32x32xf32>
    %287 = arith.addf %263, %286 : vector<32x32xf32>
    %c46 = arith.constant 46 : index
    %288 = memref.load %arg7[%c46] : memref<72xf32, #tpu.memory_space<smem>>
    %289 = vector.broadcast %288 : f32 to vector<32x32xf32>
    %290 = arith.mulf %289, %270 : vector<32x32xf32>
    %291 = arith.addf %287, %290 : vector<32x32xf32>
    %c47 = arith.constant 47 : index
    %292 = memref.load %arg7[%c47] : memref<72xf32, #tpu.memory_space<smem>>
    %293 = vector.broadcast %292 : f32 to vector<32x32xf32>
    %294 = arith.mulf %293, %271 : vector<32x32xf32>
    %295 = arith.addf %291, %294 : vector<32x32xf32>
    %296 = vector.extract_strided_slice %266 {offsets = [1, 0], sizes = [32, 32], strides = [1, 1]} : vector<34x32xf32> to vector<32x32xf32>
    %297 = vector.extract_strided_slice %267 {offsets = [1, 0], sizes = [32, 32], strides = [1, 1]} : vector<34x32xf32> to vector<32x32xf32>
    %298 = vector.extract_strided_slice %268 {offsets = [1, 0], sizes = [32, 32], strides = [1, 1]} : vector<34x32xf32> to vector<32x32xf32>
    %c12_54 = arith.constant 12 : index
    %299 = memref.load %arg7[%c12_54] : memref<72xf32, #tpu.memory_space<smem>>
    %300 = vector.broadcast %299 : f32 to vector<32x32xf32>
    %301 = arith.mulf %300, %296 : vector<32x32xf32>
    %302 = arith.addf %283, %301 : vector<32x32xf32>
    %c13_55 = arith.constant 13 : index
    %303 = memref.load %arg7[%c13_55] : memref<72xf32, #tpu.memory_space<smem>>
    %304 = vector.broadcast %303 : f32 to vector<32x32xf32>
    %305 = arith.mulf %304, %297 : vector<32x32xf32>
    %306 = arith.addf %302, %305 : vector<32x32xf32>
    %c14_56 = arith.constant 14 : index
    %307 = memref.load %arg7[%c14_56] : memref<72xf32, #tpu.memory_space<smem>>
    %308 = vector.broadcast %307 : f32 to vector<32x32xf32>
    %309 = arith.mulf %308, %298 : vector<32x32xf32>
    %310 = arith.addf %306, %309 : vector<32x32xf32>
    %c48 = arith.constant 48 : index
    %311 = memref.load %arg7[%c48] : memref<72xf32, #tpu.memory_space<smem>>
    %312 = vector.broadcast %311 : f32 to vector<32x32xf32>
    %313 = arith.mulf %312, %296 : vector<32x32xf32>
    %314 = arith.addf %295, %313 : vector<32x32xf32>
    %c49 = arith.constant 49 : index
    %315 = memref.load %arg7[%c49] : memref<72xf32, #tpu.memory_space<smem>>
    %316 = vector.broadcast %315 : f32 to vector<32x32xf32>
    %317 = arith.mulf %316, %297 : vector<32x32xf32>
    %318 = arith.addf %314, %317 : vector<32x32xf32>
    %c50 = arith.constant 50 : index
    %319 = memref.load %arg7[%c50] : memref<72xf32, #tpu.memory_space<smem>>
    %320 = vector.broadcast %319 : f32 to vector<32x32xf32>
    %321 = arith.mulf %320, %298 : vector<32x32xf32>
    %322 = arith.addf %318, %321 : vector<32x32xf32>
    %323 = vector.extract_strided_slice %266 {offsets = [2, 0], sizes = [32, 32], strides = [1, 1]} : vector<34x32xf32> to vector<32x32xf32>
    %324 = vector.extract_strided_slice %267 {offsets = [2, 0], sizes = [32, 32], strides = [1, 1]} : vector<34x32xf32> to vector<32x32xf32>
    %325 = vector.extract_strided_slice %268 {offsets = [2, 0], sizes = [32, 32], strides = [1, 1]} : vector<34x32xf32> to vector<32x32xf32>
    %c15_57 = arith.constant 15 : index
    %326 = memref.load %arg7[%c15_57] : memref<72xf32, #tpu.memory_space<smem>>
    %327 = vector.broadcast %326 : f32 to vector<32x32xf32>
    %328 = arith.mulf %327, %323 : vector<32x32xf32>
    %329 = arith.addf %310, %328 : vector<32x32xf32>
    %c16_58 = arith.constant 16 : index
    %330 = memref.load %arg7[%c16_58] : memref<72xf32, #tpu.memory_space<smem>>
    %331 = vector.broadcast %330 : f32 to vector<32x32xf32>
    %332 = arith.mulf %331, %324 : vector<32x32xf32>
    %333 = arith.addf %329, %332 : vector<32x32xf32>
    %c17_59 = arith.constant 17 : index
    %334 = memref.load %arg7[%c17_59] : memref<72xf32, #tpu.memory_space<smem>>
    %335 = vector.broadcast %334 : f32 to vector<32x32xf32>
    %336 = arith.mulf %335, %325 : vector<32x32xf32>
    %337 = arith.addf %333, %336 : vector<32x32xf32>
    %c51 = arith.constant 51 : index
    %338 = memref.load %arg7[%c51] : memref<72xf32, #tpu.memory_space<smem>>
    %339 = vector.broadcast %338 : f32 to vector<32x32xf32>
    %340 = arith.mulf %339, %323 : vector<32x32xf32>
    %341 = arith.addf %322, %340 : vector<32x32xf32>
    %c52 = arith.constant 52 : index
    %342 = memref.load %arg7[%c52] : memref<72xf32, #tpu.memory_space<smem>>
    %343 = vector.broadcast %342 : f32 to vector<32x32xf32>
    %344 = arith.mulf %343, %324 : vector<32x32xf32>
    %345 = arith.addf %341, %344 : vector<32x32xf32>
    %c53 = arith.constant 53 : index
    %346 = memref.load %arg7[%c53] : memref<72xf32, #tpu.memory_space<smem>>
    %347 = vector.broadcast %346 : f32 to vector<32x32xf32>
    %348 = arith.mulf %347, %325 : vector<32x32xf32>
    %349 = arith.addf %345, %348 : vector<32x32xf32>
    %c2_60 = arith.constant 2 : index
    %c0_61 = arith.constant 0 : index
    %c0_62 = arith.constant 0 : index
    %350 = vector.load %arg14[%c2_60, %c0_61, %c0_62] : memref<4x34x34xf32, #tpu.memory_space<vmem>>, vector<1x34x34xf32>
    %351 = vector.shape_cast %350 : vector<1x34x34xf32> to vector<34x34xf32>
    %352 = vector.extract_strided_slice %351 {offsets = [0, 0], sizes = [34, 32], strides = [1, 1]} : vector<34x34xf32> to vector<34x32xf32>
    %353 = vector.extract_strided_slice %351 {offsets = [0, 1], sizes = [34, 32], strides = [1, 1]} : vector<34x34xf32> to vector<34x32xf32>
    %354 = vector.extract_strided_slice %351 {offsets = [0, 2], sizes = [34, 32], strides = [1, 1]} : vector<34x34xf32> to vector<34x32xf32>
    %355 = vector.extract_strided_slice %352 {offsets = [0, 0], sizes = [32, 32], strides = [1, 1]} : vector<34x32xf32> to vector<32x32xf32>
    %356 = vector.extract_strided_slice %353 {offsets = [0, 0], sizes = [32, 32], strides = [1, 1]} : vector<34x32xf32> to vector<32x32xf32>
    %357 = vector.extract_strided_slice %354 {offsets = [0, 0], sizes = [32, 32], strides = [1, 1]} : vector<34x32xf32> to vector<32x32xf32>
    %c18_63 = arith.constant 18 : index
    %358 = memref.load %arg7[%c18_63] : memref<72xf32, #tpu.memory_space<smem>>
    %359 = vector.broadcast %358 : f32 to vector<32x32xf32>
    %360 = arith.mulf %359, %355 : vector<32x32xf32>
    %361 = arith.addf %337, %360 : vector<32x32xf32>
    %c19_64 = arith.constant 19 : index
    %362 = memref.load %arg7[%c19_64] : memref<72xf32, #tpu.memory_space<smem>>
    %363 = vector.broadcast %362 : f32 to vector<32x32xf32>
    %364 = arith.mulf %363, %356 : vector<32x32xf32>
    %365 = arith.addf %361, %364 : vector<32x32xf32>
    %c20_65 = arith.constant 20 : index
    %366 = memref.load %arg7[%c20_65] : memref<72xf32, #tpu.memory_space<smem>>
    %367 = vector.broadcast %366 : f32 to vector<32x32xf32>
    %368 = arith.mulf %367, %357 : vector<32x32xf32>
    %369 = arith.addf %365, %368 : vector<32x32xf32>
    %c54 = arith.constant 54 : index
    %370 = memref.load %arg7[%c54] : memref<72xf32, #tpu.memory_space<smem>>
    %371 = vector.broadcast %370 : f32 to vector<32x32xf32>
    %372 = arith.mulf %371, %355 : vector<32x32xf32>
    %373 = arith.addf %349, %372 : vector<32x32xf32>
    %c55 = arith.constant 55 : index
    %374 = memref.load %arg7[%c55] : memref<72xf32, #tpu.memory_space<smem>>
    %375 = vector.broadcast %374 : f32 to vector<32x32xf32>
    %376 = arith.mulf %375, %356 : vector<32x32xf32>
    %377 = arith.addf %373, %376 : vector<32x32xf32>
    %c56 = arith.constant 56 : index
    %378 = memref.load %arg7[%c56] : memref<72xf32, #tpu.memory_space<smem>>
    %379 = vector.broadcast %378 : f32 to vector<32x32xf32>
    %380 = arith.mulf %379, %357 : vector<32x32xf32>
    %381 = arith.addf %377, %380 : vector<32x32xf32>
    %382 = vector.extract_strided_slice %352 {offsets = [1, 0], sizes = [32, 32], strides = [1, 1]} : vector<34x32xf32> to vector<32x32xf32>
    %383 = vector.extract_strided_slice %353 {offsets = [1, 0], sizes = [32, 32], strides = [1, 1]} : vector<34x32xf32> to vector<32x32xf32>
    %384 = vector.extract_strided_slice %354 {offsets = [1, 0], sizes = [32, 32], strides = [1, 1]} : vector<34x32xf32> to vector<32x32xf32>
    %c21_66 = arith.constant 21 : index
    %385 = memref.load %arg7[%c21_66] : memref<72xf32, #tpu.memory_space<smem>>
    %386 = vector.broadcast %385 : f32 to vector<32x32xf32>
    %387 = arith.mulf %386, %382 : vector<32x32xf32>
    %388 = arith.addf %369, %387 : vector<32x32xf32>
    %c22_67 = arith.constant 22 : index
    %389 = memref.load %arg7[%c22_67] : memref<72xf32, #tpu.memory_space<smem>>
    %390 = vector.broadcast %389 : f32 to vector<32x32xf32>
    %391 = arith.mulf %390, %383 : vector<32x32xf32>
    %392 = arith.addf %388, %391 : vector<32x32xf32>
    %c23_68 = arith.constant 23 : index
    %393 = memref.load %arg7[%c23_68] : memref<72xf32, #tpu.memory_space<smem>>
    %394 = vector.broadcast %393 : f32 to vector<32x32xf32>
    %395 = arith.mulf %394, %384 : vector<32x32xf32>
    %396 = arith.addf %392, %395 : vector<32x32xf32>
    %c57 = arith.constant 57 : index
    %397 = memref.load %arg7[%c57] : memref<72xf32, #tpu.memory_space<smem>>
    %398 = vector.broadcast %397 : f32 to vector<32x32xf32>
    %399 = arith.mulf %398, %382 : vector<32x32xf32>
    %400 = arith.addf %381, %399 : vector<32x32xf32>
    %c58 = arith.constant 58 : index
    %401 = memref.load %arg7[%c58] : memref<72xf32, #tpu.memory_space<smem>>
    %402 = vector.broadcast %401 : f32 to vector<32x32xf32>
    %403 = arith.mulf %402, %383 : vector<32x32xf32>
    %404 = arith.addf %400, %403 : vector<32x32xf32>
    %c59 = arith.constant 59 : index
    %405 = memref.load %arg7[%c59] : memref<72xf32, #tpu.memory_space<smem>>
    %406 = vector.broadcast %405 : f32 to vector<32x32xf32>
    %407 = arith.mulf %406, %384 : vector<32x32xf32>
    %408 = arith.addf %404, %407 : vector<32x32xf32>
    %409 = vector.extract_strided_slice %352 {offsets = [2, 0], sizes = [32, 32], strides = [1, 1]} : vector<34x32xf32> to vector<32x32xf32>
    %410 = vector.extract_strided_slice %353 {offsets = [2, 0], sizes = [32, 32], strides = [1, 1]} : vector<34x32xf32> to vector<32x32xf32>
    %411 = vector.extract_strided_slice %354 {offsets = [2, 0], sizes = [32, 32], strides = [1, 1]} : vector<34x32xf32> to vector<32x32xf32>
    %c24_69 = arith.constant 24 : index
    %412 = memref.load %arg7[%c24_69] : memref<72xf32, #tpu.memory_space<smem>>
    %413 = vector.broadcast %412 : f32 to vector<32x32xf32>
    %414 = arith.mulf %413, %409 : vector<32x32xf32>
    %415 = arith.addf %396, %414 : vector<32x32xf32>
    %c25_70 = arith.constant 25 : index
    %416 = memref.load %arg7[%c25_70] : memref<72xf32, #tpu.memory_space<smem>>
    %417 = vector.broadcast %416 : f32 to vector<32x32xf32>
    %418 = arith.mulf %417, %410 : vector<32x32xf32>
    %419 = arith.addf %415, %418 : vector<32x32xf32>
    %c26_71 = arith.constant 26 : index
    %420 = memref.load %arg7[%c26_71] : memref<72xf32, #tpu.memory_space<smem>>
    %421 = vector.broadcast %420 : f32 to vector<32x32xf32>
    %422 = arith.mulf %421, %411 : vector<32x32xf32>
    %423 = arith.addf %419, %422 : vector<32x32xf32>
    %c60 = arith.constant 60 : index
    %424 = memref.load %arg7[%c60] : memref<72xf32, #tpu.memory_space<smem>>
    %425 = vector.broadcast %424 : f32 to vector<32x32xf32>
    %426 = arith.mulf %425, %409 : vector<32x32xf32>
    %427 = arith.addf %408, %426 : vector<32x32xf32>
    %c61 = arith.constant 61 : index
    %428 = memref.load %arg7[%c61] : memref<72xf32, #tpu.memory_space<smem>>
    %429 = vector.broadcast %428 : f32 to vector<32x32xf32>
    %430 = arith.mulf %429, %410 : vector<32x32xf32>
    %431 = arith.addf %427, %430 : vector<32x32xf32>
    %c62 = arith.constant 62 : index
    %432 = memref.load %arg7[%c62] : memref<72xf32, #tpu.memory_space<smem>>
    %433 = vector.broadcast %432 : f32 to vector<32x32xf32>
    %434 = arith.mulf %433, %411 : vector<32x32xf32>
    %435 = arith.addf %431, %434 : vector<32x32xf32>
    %c3_72 = arith.constant 3 : index
    %c0_73 = arith.constant 0 : index
    %c0_74 = arith.constant 0 : index
    %436 = vector.load %arg14[%c3_72, %c0_73, %c0_74] : memref<4x34x34xf32, #tpu.memory_space<vmem>>, vector<1x34x34xf32>
    %437 = vector.shape_cast %436 : vector<1x34x34xf32> to vector<34x34xf32>
    %438 = vector.extract_strided_slice %437 {offsets = [0, 0], sizes = [34, 32], strides = [1, 1]} : vector<34x34xf32> to vector<34x32xf32>
    %439 = vector.extract_strided_slice %437 {offsets = [0, 1], sizes = [34, 32], strides = [1, 1]} : vector<34x34xf32> to vector<34x32xf32>
    %440 = vector.extract_strided_slice %437 {offsets = [0, 2], sizes = [34, 32], strides = [1, 1]} : vector<34x34xf32> to vector<34x32xf32>
    %441 = vector.extract_strided_slice %438 {offsets = [0, 0], sizes = [32, 32], strides = [1, 1]} : vector<34x32xf32> to vector<32x32xf32>
    %442 = vector.extract_strided_slice %439 {offsets = [0, 0], sizes = [32, 32], strides = [1, 1]} : vector<34x32xf32> to vector<32x32xf32>
    %443 = vector.extract_strided_slice %440 {offsets = [0, 0], sizes = [32, 32], strides = [1, 1]} : vector<34x32xf32> to vector<32x32xf32>
    %c27_75 = arith.constant 27 : index
    %444 = memref.load %arg7[%c27_75] : memref<72xf32, #tpu.memory_space<smem>>
    %445 = vector.broadcast %444 : f32 to vector<32x32xf32>
    %446 = arith.mulf %445, %441 : vector<32x32xf32>
    %447 = arith.addf %423, %446 : vector<32x32xf32>
    %c28_76 = arith.constant 28 : index
    %448 = memref.load %arg7[%c28_76] : memref<72xf32, #tpu.memory_space<smem>>
    %449 = vector.broadcast %448 : f32 to vector<32x32xf32>
    %450 = arith.mulf %449, %442 : vector<32x32xf32>
    %451 = arith.addf %447, %450 : vector<32x32xf32>
    %c29_77 = arith.constant 29 : index
    %452 = memref.load %arg7[%c29_77] : memref<72xf32, #tpu.memory_space<smem>>
    %453 = vector.broadcast %452 : f32 to vector<32x32xf32>
    %454 = arith.mulf %453, %443 : vector<32x32xf32>
    %455 = arith.addf %451, %454 : vector<32x32xf32>
    %c63 = arith.constant 63 : index
    %456 = memref.load %arg7[%c63] : memref<72xf32, #tpu.memory_space<smem>>
    %457 = vector.broadcast %456 : f32 to vector<32x32xf32>
    %458 = arith.mulf %457, %441 : vector<32x32xf32>
    %459 = arith.addf %435, %458 : vector<32x32xf32>
    %c64 = arith.constant 64 : index
    %460 = memref.load %arg7[%c64] : memref<72xf32, #tpu.memory_space<smem>>
    %461 = vector.broadcast %460 : f32 to vector<32x32xf32>
    %462 = arith.mulf %461, %442 : vector<32x32xf32>
    %463 = arith.addf %459, %462 : vector<32x32xf32>
    %c65 = arith.constant 65 : index
    %464 = memref.load %arg7[%c65] : memref<72xf32, #tpu.memory_space<smem>>
    %465 = vector.broadcast %464 : f32 to vector<32x32xf32>
    %466 = arith.mulf %465, %443 : vector<32x32xf32>
    %467 = arith.addf %463, %466 : vector<32x32xf32>
    %468 = vector.extract_strided_slice %438 {offsets = [1, 0], sizes = [32, 32], strides = [1, 1]} : vector<34x32xf32> to vector<32x32xf32>
    %469 = vector.extract_strided_slice %439 {offsets = [1, 0], sizes = [32, 32], strides = [1, 1]} : vector<34x32xf32> to vector<32x32xf32>
    %470 = vector.extract_strided_slice %440 {offsets = [1, 0], sizes = [32, 32], strides = [1, 1]} : vector<34x32xf32> to vector<32x32xf32>
    %c30_78 = arith.constant 30 : index
    %471 = memref.load %arg7[%c30_78] : memref<72xf32, #tpu.memory_space<smem>>
    %472 = vector.broadcast %471 : f32 to vector<32x32xf32>
    %473 = arith.mulf %472, %468 : vector<32x32xf32>
    %474 = arith.addf %455, %473 : vector<32x32xf32>
    %c31_79 = arith.constant 31 : index
    %475 = memref.load %arg7[%c31_79] : memref<72xf32, #tpu.memory_space<smem>>
    %476 = vector.broadcast %475 : f32 to vector<32x32xf32>
    %477 = arith.mulf %476, %469 : vector<32x32xf32>
    %478 = arith.addf %474, %477 : vector<32x32xf32>
    %c32 = arith.constant 32 : index
    %479 = memref.load %arg7[%c32] : memref<72xf32, #tpu.memory_space<smem>>
    %480 = vector.broadcast %479 : f32 to vector<32x32xf32>
    %481 = arith.mulf %480, %470 : vector<32x32xf32>
    %482 = arith.addf %478, %481 : vector<32x32xf32>
    %c66 = arith.constant 66 : index
    %483 = memref.load %arg7[%c66] : memref<72xf32, #tpu.memory_space<smem>>
    %484 = vector.broadcast %483 : f32 to vector<32x32xf32>
    %485 = arith.mulf %484, %468 : vector<32x32xf32>
    %486 = arith.addf %467, %485 : vector<32x32xf32>
    %c67 = arith.constant 67 : index
    %487 = memref.load %arg7[%c67] : memref<72xf32, #tpu.memory_space<smem>>
    %488 = vector.broadcast %487 : f32 to vector<32x32xf32>
    %489 = arith.mulf %488, %469 : vector<32x32xf32>
    %490 = arith.addf %486, %489 : vector<32x32xf32>
    %c68 = arith.constant 68 : index
    %491 = memref.load %arg7[%c68] : memref<72xf32, #tpu.memory_space<smem>>
    %492 = vector.broadcast %491 : f32 to vector<32x32xf32>
    %493 = arith.mulf %492, %470 : vector<32x32xf32>
    %494 = arith.addf %490, %493 : vector<32x32xf32>
    %495 = vector.extract_strided_slice %438 {offsets = [2, 0], sizes = [32, 32], strides = [1, 1]} : vector<34x32xf32> to vector<32x32xf32>
    %496 = vector.extract_strided_slice %439 {offsets = [2, 0], sizes = [32, 32], strides = [1, 1]} : vector<34x32xf32> to vector<32x32xf32>
    %497 = vector.extract_strided_slice %440 {offsets = [2, 0], sizes = [32, 32], strides = [1, 1]} : vector<34x32xf32> to vector<32x32xf32>
    %c33 = arith.constant 33 : index
    %498 = memref.load %arg7[%c33] : memref<72xf32, #tpu.memory_space<smem>>
    %499 = vector.broadcast %498 : f32 to vector<32x32xf32>
    %500 = arith.mulf %499, %495 : vector<32x32xf32>
    %501 = arith.addf %482, %500 : vector<32x32xf32>
    %c34 = arith.constant 34 : index
    %502 = memref.load %arg7[%c34] : memref<72xf32, #tpu.memory_space<smem>>
    %503 = vector.broadcast %502 : f32 to vector<32x32xf32>
    %504 = arith.mulf %503, %496 : vector<32x32xf32>
    %505 = arith.addf %501, %504 : vector<32x32xf32>
    %c35 = arith.constant 35 : index
    %506 = memref.load %arg7[%c35] : memref<72xf32, #tpu.memory_space<smem>>
    %507 = vector.broadcast %506 : f32 to vector<32x32xf32>
    %508 = arith.mulf %507, %497 : vector<32x32xf32>
    %509 = arith.addf %505, %508 : vector<32x32xf32>
    %c69 = arith.constant 69 : index
    %510 = memref.load %arg7[%c69] : memref<72xf32, #tpu.memory_space<smem>>
    %511 = vector.broadcast %510 : f32 to vector<32x32xf32>
    %512 = arith.mulf %511, %495 : vector<32x32xf32>
    %513 = arith.addf %494, %512 : vector<32x32xf32>
    %c70 = arith.constant 70 : index
    %514 = memref.load %arg7[%c70] : memref<72xf32, #tpu.memory_space<smem>>
    %515 = vector.broadcast %514 : f32 to vector<32x32xf32>
    %516 = arith.mulf %515, %496 : vector<32x32xf32>
    %517 = arith.addf %513, %516 : vector<32x32xf32>
    %c71 = arith.constant 71 : index
    %518 = memref.load %arg7[%c71] : memref<72xf32, #tpu.memory_space<smem>>
    %519 = vector.broadcast %518 : f32 to vector<32x32xf32>
    %520 = arith.mulf %519, %497 : vector<32x32xf32>
    %521 = arith.addf %517, %520 : vector<32x32xf32>
    %cst_80 = arith.constant 0.000000e+00 : f32
    %522 = vector.broadcast %cst_80 : f32 to vector<2x34x34xf32>
    %c0_81 = arith.constant 0 : index
    %c0_82 = arith.constant 0 : index
    %c0_83 = arith.constant 0 : index
    %523 = vector.load %arg15[%c0_81, %c0_82, %c0_83] : memref<2x34x34xf32, #tpu.memory_space<vmem>>, vector<2x34x34xf32>
    tpu.vector_store %arg15[%c0_81, %c0_82, %c0_83], %522 {strides = array<i32>} : memref<2x34x34xf32, #tpu.memory_space<vmem>>, vector<2x34x34xf32>,
    %c0_84 = arith.constant 0 : index
    %524 = memref.load %arg8[%c0_84] : memref<2xf32, #tpu.memory_space<smem>>
    %525 = vector.broadcast %524 : f32 to vector<32x32xf32>
    %526 = arith.mulf %509, %525 : vector<32x32xf32>
    %c0_85 = arith.constant 0 : index
    %527 = memref.load %arg9[%c0_85] : memref<2xf32, #tpu.memory_space<smem>>
    %528 = vector.broadcast %527 : f32 to vector<32x32xf32>
    %529 = arith.addf %526, %528 : vector<32x32xf32>
    %cst_86 = arith.constant 0.000000e+00 : f32
    %530 = vector.broadcast %cst_86 : f32 to vector<32x32xf32>
    %531 = arith.maximumf %529, %530 : vector<32x32xf32>
    %c0_87 = arith.constant 0 : index
    %c1_88 = arith.constant 1 : index
    %c1_89 = arith.constant 1 : index
    %532 = vector.load %arg15[%c0_87, %c1_88, %c1_89] : memref<2x34x34xf32, #tpu.memory_space<vmem>>, vector<1x32x32xf32>
    %533 = vector.shape_cast %532 : vector<1x32x32xf32> to vector<32x32xf32>
    %534 = vector.shape_cast %531 : vector<32x32xf32> to vector<1x32x32xf32>
    tpu.vector_store %arg15[%c0_87, %c1_88, %c1_89], %534 {strides = array<i32>} : memref<2x34x34xf32, #tpu.memory_space<vmem>>, vector<1x32x32xf32>,
    %c1_90 = arith.constant 1 : index
    %535 = memref.load %arg8[%c1_90] : memref<2xf32, #tpu.memory_space<smem>>
    %536 = vector.broadcast %535 : f32 to vector<32x32xf32>
    %537 = arith.mulf %521, %536 : vector<32x32xf32>
    %c1_91 = arith.constant 1 : index
    %538 = memref.load %arg9[%c1_91] : memref<2xf32, #tpu.memory_space<smem>>
    %539 = vector.broadcast %538 : f32 to vector<32x32xf32>
    %540 = arith.addf %537, %539 : vector<32x32xf32>
    %cst_92 = arith.constant 0.000000e+00 : f32
    %541 = vector.broadcast %cst_92 : f32 to vector<32x32xf32>
    %542 = arith.maximumf %540, %541 : vector<32x32xf32>
    %c1_93 = arith.constant 1 : index
    %c1_94 = arith.constant 1 : index
    %c1_95 = arith.constant 1 : index
    %543 = vector.load %arg15[%c1_93, %c1_94, %c1_95] : memref<2x34x34xf32, #tpu.memory_space<vmem>>, vector<1x32x32xf32>
    %544 = vector.shape_cast %543 : vector<1x32x32xf32> to vector<32x32xf32>
    %545 = vector.shape_cast %542 : vector<32x32xf32> to vector<1x32x32xf32>
    tpu.vector_store %arg15[%c1_93, %c1_94, %c1_95], %545 {strides = array<i32>} : memref<2x34x34xf32, #tpu.memory_space<vmem>>, vector<1x32x32xf32>,
    %cst_96 = arith.constant 0.000000e+00 : f32
    %546 = vector.broadcast %cst_96 : f32 to vector<32x32xf32>
    %cst_97 = arith.constant 0.000000e+00 : f32
    %547 = vector.broadcast %cst_97 : f32 to vector<32x32xf32>
    %c0_98 = arith.constant 0 : index
    %c0_99 = arith.constant 0 : index
    %c0_100 = arith.constant 0 : index
    %548 = vector.load %arg15[%c0_98, %c0_99, %c0_100] : memref<2x34x34xf32, #tpu.memory_space<vmem>>, vector<1x34x34xf32>
    %549 = vector.shape_cast %548 : vector<1x34x34xf32> to vector<34x34xf32>
    %550 = vector.extract_strided_slice %549 {offsets = [0, 0], sizes = [34, 32], strides = [1, 1]} : vector<34x34xf32> to vector<34x32xf32>
    %551 = vector.extract_strided_slice %549 {offsets = [0, 1], sizes = [34, 32], strides = [1, 1]} : vector<34x34xf32> to vector<34x32xf32>
    %552 = vector.extract_strided_slice %549 {offsets = [0, 2], sizes = [34, 32], strides = [1, 1]} : vector<34x34xf32> to vector<34x32xf32>
    %553 = vector.extract_strided_slice %550 {offsets = [0, 0], sizes = [32, 32], strides = [1, 1]} : vector<34x32xf32> to vector<32x32xf32>
    %554 = vector.extract_strided_slice %551 {offsets = [0, 0], sizes = [32, 32], strides = [1, 1]} : vector<34x32xf32> to vector<32x32xf32>
    %555 = vector.extract_strided_slice %552 {offsets = [0, 0], sizes = [32, 32], strides = [1, 1]} : vector<34x32xf32> to vector<32x32xf32>
    %c0_101 = arith.constant 0 : index
    %556 = memref.load %arg10[%c0_101] : memref<36xf32, #tpu.memory_space<smem>>
    %557 = vector.broadcast %556 : f32 to vector<32x32xf32>
    %558 = arith.mulf %557, %553 : vector<32x32xf32>
    %559 = arith.addf %546, %558 : vector<32x32xf32>
    %c1_102 = arith.constant 1 : index
    %560 = memref.load %arg10[%c1_102] : memref<36xf32, #tpu.memory_space<smem>>
    %561 = vector.broadcast %560 : f32 to vector<32x32xf32>
    %562 = arith.mulf %561, %554 : vector<32x32xf32>
    %563 = arith.addf %559, %562 : vector<32x32xf32>
    %c2_103 = arith.constant 2 : index
    %564 = memref.load %arg10[%c2_103] : memref<36xf32, #tpu.memory_space<smem>>
    %565 = vector.broadcast %564 : f32 to vector<32x32xf32>
    %566 = arith.mulf %565, %555 : vector<32x32xf32>
    %567 = arith.addf %563, %566 : vector<32x32xf32>
    %c18_104 = arith.constant 18 : index
    %568 = memref.load %arg10[%c18_104] : memref<36xf32, #tpu.memory_space<smem>>
    %569 = vector.broadcast %568 : f32 to vector<32x32xf32>
    %570 = arith.mulf %569, %553 : vector<32x32xf32>
    %571 = arith.addf %547, %570 : vector<32x32xf32>
    %c19_105 = arith.constant 19 : index
    %572 = memref.load %arg10[%c19_105] : memref<36xf32, #tpu.memory_space<smem>>
    %573 = vector.broadcast %572 : f32 to vector<32x32xf32>
    %574 = arith.mulf %573, %554 : vector<32x32xf32>
    %575 = arith.addf %571, %574 : vector<32x32xf32>
    %c20_106 = arith.constant 20 : index
    %576 = memref.load %arg10[%c20_106] : memref<36xf32, #tpu.memory_space<smem>>
    %577 = vector.broadcast %576 : f32 to vector<32x32xf32>
    %578 = arith.mulf %577, %555 : vector<32x32xf32>
    %579 = arith.addf %575, %578 : vector<32x32xf32>
    %580 = vector.extract_strided_slice %550 {offsets = [1, 0], sizes = [32, 32], strides = [1, 1]} : vector<34x32xf32> to vector<32x32xf32>
    %581 = vector.extract_strided_slice %551 {offsets = [1, 0], sizes = [32, 32], strides = [1, 1]} : vector<34x32xf32> to vector<32x32xf32>
    %582 = vector.extract_strided_slice %552 {offsets = [1, 0], sizes = [32, 32], strides = [1, 1]} : vector<34x32xf32> to vector<32x32xf32>
    %c3_107 = arith.constant 3 : index
    %583 = memref.load %arg10[%c3_107] : memref<36xf32, #tpu.memory_space<smem>>
    %584 = vector.broadcast %583 : f32 to vector<32x32xf32>
    %585 = arith.mulf %584, %580 : vector<32x32xf32>
    %586 = arith.addf %567, %585 : vector<32x32xf32>
    %c4_108 = arith.constant 4 : index
    %587 = memref.load %arg10[%c4_108] : memref<36xf32, #tpu.memory_space<smem>>
    %588 = vector.broadcast %587 : f32 to vector<32x32xf32>
    %589 = arith.mulf %588, %581 : vector<32x32xf32>
    %590 = arith.addf %586, %589 : vector<32x32xf32>
    %c5_109 = arith.constant 5 : index
    %591 = memref.load %arg10[%c5_109] : memref<36xf32, #tpu.memory_space<smem>>
    %592 = vector.broadcast %591 : f32 to vector<32x32xf32>
    %593 = arith.mulf %592, %582 : vector<32x32xf32>
    %594 = arith.addf %590, %593 : vector<32x32xf32>
    %c21_110 = arith.constant 21 : index
    %595 = memref.load %arg10[%c21_110] : memref<36xf32, #tpu.memory_space<smem>>
    %596 = vector.broadcast %595 : f32 to vector<32x32xf32>
    %597 = arith.mulf %596, %580 : vector<32x32xf32>
    %598 = arith.addf %579, %597 : vector<32x32xf32>
    %c22_111 = arith.constant 22 : index
    %599 = memref.load %arg10[%c22_111] : memref<36xf32, #tpu.memory_space<smem>>
    %600 = vector.broadcast %599 : f32 to vector<32x32xf32>
    %601 = arith.mulf %600, %581 : vector<32x32xf32>
    %602 = arith.addf %598, %601 : vector<32x32xf32>
    %c23_112 = arith.constant 23 : index
    %603 = memref.load %arg10[%c23_112] : memref<36xf32, #tpu.memory_space<smem>>
    %604 = vector.broadcast %603 : f32 to vector<32x32xf32>
    %605 = arith.mulf %604, %582 : vector<32x32xf32>
    %606 = arith.addf %602, %605 : vector<32x32xf32>
    %607 = vector.extract_strided_slice %550 {offsets = [2, 0], sizes = [32, 32], strides = [1, 1]} : vector<34x32xf32> to vector<32x32xf32>
    %608 = vector.extract_strided_slice %551 {offsets = [2, 0], sizes = [32, 32], strides = [1, 1]} : vector<34x32xf32> to vector<32x32xf32>
    %609 = vector.extract_strided_slice %552 {offsets = [2, 0], sizes = [32, 32], strides = [1, 1]} : vector<34x32xf32> to vector<32x32xf32>
    %c6_113 = arith.constant 6 : index
    %610 = memref.load %arg10[%c6_113] : memref<36xf32, #tpu.memory_space<smem>>
    %611 = vector.broadcast %610 : f32 to vector<32x32xf32>
    %612 = arith.mulf %611, %607 : vector<32x32xf32>
    %613 = arith.addf %594, %612 : vector<32x32xf32>
    %c7_114 = arith.constant 7 : index
    %614 = memref.load %arg10[%c7_114] : memref<36xf32, #tpu.memory_space<smem>>
    %615 = vector.broadcast %614 : f32 to vector<32x32xf32>
    %616 = arith.mulf %615, %608 : vector<32x32xf32>
    %617 = arith.addf %613, %616 : vector<32x32xf32>
    %c8_115 = arith.constant 8 : index
    %618 = memref.load %arg10[%c8_115] : memref<36xf32, #tpu.memory_space<smem>>
    %619 = vector.broadcast %618 : f32 to vector<32x32xf32>
    %620 = arith.mulf %619, %609 : vector<32x32xf32>
    %621 = arith.addf %617, %620 : vector<32x32xf32>
    %c24_116 = arith.constant 24 : index
    %622 = memref.load %arg10[%c24_116] : memref<36xf32, #tpu.memory_space<smem>>
    %623 = vector.broadcast %622 : f32 to vector<32x32xf32>
    %624 = arith.mulf %623, %607 : vector<32x32xf32>
    %625 = arith.addf %606, %624 : vector<32x32xf32>
    %c25_117 = arith.constant 25 : index
    %626 = memref.load %arg10[%c25_117] : memref<36xf32, #tpu.memory_space<smem>>
    %627 = vector.broadcast %626 : f32 to vector<32x32xf32>
    %628 = arith.mulf %627, %608 : vector<32x32xf32>
    %629 = arith.addf %625, %628 : vector<32x32xf32>
    %c26_118 = arith.constant 26 : index
    %630 = memref.load %arg10[%c26_118] : memref<36xf32, #tpu.memory_space<smem>>
    %631 = vector.broadcast %630 : f32 to vector<32x32xf32>
    %632 = arith.mulf %631, %609 : vector<32x32xf32>
    %633 = arith.addf %629, %632 : vector<32x32xf32>
    %c1_119 = arith.constant 1 : index
    %c0_120 = arith.constant 0 : index
    %c0_121 = arith.constant 0 : index
    %634 = vector.load %arg15[%c1_119, %c0_120, %c0_121] : memref<2x34x34xf32, #tpu.memory_space<vmem>>, vector<1x34x34xf32>
    %635 = vector.shape_cast %634 : vector<1x34x34xf32> to vector<34x34xf32>
    %636 = vector.extract_strided_slice %635 {offsets = [0, 0], sizes = [34, 32], strides = [1, 1]} : vector<34x34xf32> to vector<34x32xf32>
    %637 = vector.extract_strided_slice %635 {offsets = [0, 1], sizes = [34, 32], strides = [1, 1]} : vector<34x34xf32> to vector<34x32xf32>
    %638 = vector.extract_strided_slice %635 {offsets = [0, 2], sizes = [34, 32], strides = [1, 1]} : vector<34x34xf32> to vector<34x32xf32>
    %639 = vector.extract_strided_slice %636 {offsets = [0, 0], sizes = [32, 32], strides = [1, 1]} : vector<34x32xf32> to vector<32x32xf32>
    %640 = vector.extract_strided_slice %637 {offsets = [0, 0], sizes = [32, 32], strides = [1, 1]} : vector<34x32xf32> to vector<32x32xf32>
    %641 = vector.extract_strided_slice %638 {offsets = [0, 0], sizes = [32, 32], strides = [1, 1]} : vector<34x32xf32> to vector<32x32xf32>
    %c9_122 = arith.constant 9 : index
    %642 = memref.load %arg10[%c9_122] : memref<36xf32, #tpu.memory_space<smem>>
    %643 = vector.broadcast %642 : f32 to vector<32x32xf32>
    %644 = arith.mulf %643, %639 : vector<32x32xf32>
    %645 = arith.addf %621, %644 : vector<32x32xf32>
    %c10_123 = arith.constant 10 : index
    %646 = memref.load %arg10[%c10_123] : memref<36xf32, #tpu.memory_space<smem>>
    %647 = vector.broadcast %646 : f32 to vector<32x32xf32>
    %648 = arith.mulf %647, %640 : vector<32x32xf32>
    %649 = arith.addf %645, %648 : vector<32x32xf32>
    %c11_124 = arith.constant 11 : index
    %650 = memref.load %arg10[%c11_124] : memref<36xf32, #tpu.memory_space<smem>>
    %651 = vector.broadcast %650 : f32 to vector<32x32xf32>
    %652 = arith.mulf %651, %641 : vector<32x32xf32>
    %653 = arith.addf %649, %652 : vector<32x32xf32>
    %c27_125 = arith.constant 27 : index
    %654 = memref.load %arg10[%c27_125] : memref<36xf32, #tpu.memory_space<smem>>
    %655 = vector.broadcast %654 : f32 to vector<32x32xf32>
    %656 = arith.mulf %655, %639 : vector<32x32xf32>
    %657 = arith.addf %633, %656 : vector<32x32xf32>
    %c28_126 = arith.constant 28 : index
    %658 = memref.load %arg10[%c28_126] : memref<36xf32, #tpu.memory_space<smem>>
    %659 = vector.broadcast %658 : f32 to vector<32x32xf32>
    %660 = arith.mulf %659, %640 : vector<32x32xf32>
    %661 = arith.addf %657, %660 : vector<32x32xf32>
    %c29_127 = arith.constant 29 : index
    %662 = memref.load %arg10[%c29_127] : memref<36xf32, #tpu.memory_space<smem>>
    %663 = vector.broadcast %662 : f32 to vector<32x32xf32>
    %664 = arith.mulf %663, %641 : vector<32x32xf32>
    %665 = arith.addf %661, %664 : vector<32x32xf32>
    %666 = vector.extract_strided_slice %636 {offsets = [1, 0], sizes = [32, 32], strides = [1, 1]} : vector<34x32xf32> to vector<32x32xf32>
    %667 = vector.extract_strided_slice %637 {offsets = [1, 0], sizes = [32, 32], strides = [1, 1]} : vector<34x32xf32> to vector<32x32xf32>
    %668 = vector.extract_strided_slice %638 {offsets = [1, 0], sizes = [32, 32], strides = [1, 1]} : vector<34x32xf32> to vector<32x32xf32>
    %c12_128 = arith.constant 12 : index
    %669 = memref.load %arg10[%c12_128] : memref<36xf32, #tpu.memory_space<smem>>
    %670 = vector.broadcast %669 : f32 to vector<32x32xf32>
    %671 = arith.mulf %670, %666 : vector<32x32xf32>
    %672 = arith.addf %653, %671 : vector<32x32xf32>
    %c13_129 = arith.constant 13 : index
    %673 = memref.load %arg10[%c13_129] : memref<36xf32, #tpu.memory_space<smem>>
    %674 = vector.broadcast %673 : f32 to vector<32x32xf32>
    %675 = arith.mulf %674, %667 : vector<32x32xf32>
    %676 = arith.addf %672, %675 : vector<32x32xf32>
    %c14_130 = arith.constant 14 : index
    %677 = memref.load %arg10[%c14_130] : memref<36xf32, #tpu.memory_space<smem>>
    %678 = vector.broadcast %677 : f32 to vector<32x32xf32>
    %679 = arith.mulf %678, %668 : vector<32x32xf32>
    %680 = arith.addf %676, %679 : vector<32x32xf32>
    %c30_131 = arith.constant 30 : index
    %681 = memref.load %arg10[%c30_131] : memref<36xf32, #tpu.memory_space<smem>>
    %682 = vector.broadcast %681 : f32 to vector<32x32xf32>
    %683 = arith.mulf %682, %666 : vector<32x32xf32>
    %684 = arith.addf %665, %683 : vector<32x32xf32>
    %c31_132 = arith.constant 31 : index
    %685 = memref.load %arg10[%c31_132] : memref<36xf32, #tpu.memory_space<smem>>
    %686 = vector.broadcast %685 : f32 to vector<32x32xf32>
    %687 = arith.mulf %686, %667 : vector<32x32xf32>
    %688 = arith.addf %684, %687 : vector<32x32xf32>
    %c32_133 = arith.constant 32 : index
    %689 = memref.load %arg10[%c32_133] : memref<36xf32, #tpu.memory_space<smem>>
    %690 = vector.broadcast %689 : f32 to vector<32x32xf32>
    %691 = arith.mulf %690, %668 : vector<32x32xf32>
    %692 = arith.addf %688, %691 : vector<32x32xf32>
    %693 = vector.extract_strided_slice %636 {offsets = [2, 0], sizes = [32, 32], strides = [1, 1]} : vector<34x32xf32> to vector<32x32xf32>
    %694 = vector.extract_strided_slice %637 {offsets = [2, 0], sizes = [32, 32], strides = [1, 1]} : vector<34x32xf32> to vector<32x32xf32>
    %695 = vector.extract_strided_slice %638 {offsets = [2, 0], sizes = [32, 32], strides = [1, 1]} : vector<34x32xf32> to vector<32x32xf32>
    %c15_134 = arith.constant 15 : index
    %696 = memref.load %arg10[%c15_134] : memref<36xf32, #tpu.memory_space<smem>>
    %697 = vector.broadcast %696 : f32 to vector<32x32xf32>
    %698 = arith.mulf %697, %693 : vector<32x32xf32>
    %699 = arith.addf %680, %698 : vector<32x32xf32>
    %c16_135 = arith.constant 16 : index
    %700 = memref.load %arg10[%c16_135] : memref<36xf32, #tpu.memory_space<smem>>
    %701 = vector.broadcast %700 : f32 to vector<32x32xf32>
    %702 = arith.mulf %701, %694 : vector<32x32xf32>
    %703 = arith.addf %699, %702 : vector<32x32xf32>
    %c17_136 = arith.constant 17 : index
    %704 = memref.load %arg10[%c17_136] : memref<36xf32, #tpu.memory_space<smem>>
    %705 = vector.broadcast %704 : f32 to vector<32x32xf32>
    %706 = arith.mulf %705, %695 : vector<32x32xf32>
    %707 = arith.addf %703, %706 : vector<32x32xf32>
    %c33_137 = arith.constant 33 : index
    %708 = memref.load %arg10[%c33_137] : memref<36xf32, #tpu.memory_space<smem>>
    %709 = vector.broadcast %708 : f32 to vector<32x32xf32>
    %710 = arith.mulf %709, %693 : vector<32x32xf32>
    %711 = arith.addf %692, %710 : vector<32x32xf32>
    %c34_138 = arith.constant 34 : index
    %712 = memref.load %arg10[%c34_138] : memref<36xf32, #tpu.memory_space<smem>>
    %713 = vector.broadcast %712 : f32 to vector<32x32xf32>
    %714 = arith.mulf %713, %694 : vector<32x32xf32>
    %715 = arith.addf %711, %714 : vector<32x32xf32>
    %c35_139 = arith.constant 35 : index
    %716 = memref.load %arg10[%c35_139] : memref<36xf32, #tpu.memory_space<smem>>
    %717 = vector.broadcast %716 : f32 to vector<32x32xf32>
    %718 = arith.mulf %717, %695 : vector<32x32xf32>
    %719 = arith.addf %715, %718 : vector<32x32xf32>
    %c0_140 = arith.constant 0 : index
    %720 = memref.load %arg11[%c0_140] : memref<2xf32, #tpu.memory_space<smem>>
    %721 = vector.broadcast %720 : f32 to vector<32x32xf32>
    %722 = arith.mulf %707, %721 : vector<32x32xf32>
    %c0_141 = arith.constant 0 : index
    %723 = memref.load %arg12[%c0_141] : memref<2xf32, #tpu.memory_space<smem>>
    %724 = vector.broadcast %723 : f32 to vector<32x32xf32>
    %725 = arith.addf %722, %724 : vector<32x32xf32>
    %cst_142 = arith.constant 0.000000e+00 : f32
    %726 = vector.broadcast %cst_142 : f32 to vector<32x32xf32>
    %727 = arith.maximumf %725, %726 : vector<32x32xf32>
    %c0_143 = arith.constant 0 : index
    %c0_144 = arith.constant 0 : index
    %c0_145 = arith.constant 0 : index
    %c0_146 = arith.constant 0 : index
    %728 = vector.load %arg13[%c0_143, %c0_144, %c0_145, %c0_146] : memref<1x2x32x32xf32, #tpu.memory_space<vmem>>, vector<1x1x32x32xf32>
    %729 = vector.shape_cast %728 : vector<1x1x32x32xf32> to vector<32x32xf32>
    %730 = vector.shape_cast %727 : vector<32x32xf32> to vector<1x1x32x32xf32>
    tpu.vector_store %arg13[%c0_143, %c0_144, %c0_145, %c0_146], %730 {strides = array<i32>} : memref<1x2x32x32xf32, #tpu.memory_space<vmem>>, vector<1x1x32x32xf32>,
    %c1_147 = arith.constant 1 : index
    %731 = memref.load %arg11[%c1_147] : memref<2xf32, #tpu.memory_space<smem>>
    %732 = vector.broadcast %731 : f32 to vector<32x32xf32>
    %733 = arith.mulf %719, %732 : vector<32x32xf32>
    %c1_148 = arith.constant 1 : index
    %734 = memref.load %arg12[%c1_148] : memref<2xf32, #tpu.memory_space<smem>>
    %735 = vector.broadcast %734 : f32 to vector<32x32xf32>
    %736 = arith.addf %733, %735 : vector<32x32xf32>
    %cst_149 = arith.constant 0.000000e+00 : f32
    %737 = vector.broadcast %cst_149 : f32 to vector<32x32xf32>
    %738 = arith.maximumf %736, %737 : vector<32x32xf32>
    %c0_150 = arith.constant 0 : index
    %c1_151 = arith.constant 1 : index
    %c0_152 = arith.constant 0 : index
    %c0_153 = arith.constant 0 : index
    %739 = vector.load %arg13[%c0_150, %c1_151, %c0_152, %c0_153] : memref<1x2x32x32xf32, #tpu.memory_space<vmem>>, vector<1x1x32x32xf32>
    %740 = vector.shape_cast %739 : vector<1x1x32x32xf32> to vector<32x32xf32>
    %741 = vector.shape_cast %738 : vector<32x32xf32> to vector<1x1x32x32xf32>
    tpu.vector_store %arg13[%c0_150, %c1_151, %c0_152, %c0_153], %741 {strides = array<i32>} : memref<1x2x32x32xf32, #tpu.memory_space<vmem>>, vector<1x1x32x32xf32>,
    return
  }
  func.func @transform_0(%arg0: i32) -> (i32, i32, i32) {
    %c0_i32 = arith.constant 0 : i32
    %c0_i32_0 = arith.constant 0 : i32
    %c0_i32_1 = arith.constant 0 : i32
    return %arg0, %c0_i32, %c0_i32_0 : i32, i32, i32
  }
  func.func @transform_1(%arg0: i32) -> (i32, i32, i32, i32) {
    %c0_i32 = arith.constant 0 : i32
    %c0_i32_0 = arith.constant 0 : i32
    %c0_i32_1 = arith.constant 0 : i32
    %c0_i32_2 = arith.constant 0 : i32
    return %arg0, %c0_i32, %c0_i32_0, %c0_i32_1 : i32, i32, i32, i32
  }
  func.func @transform_2(%arg0: i32) -> (i32, i32) {
    %c0_i32 = arith.constant 0 : i32
    %c0_i32_0 = arith.constant 0 : i32
    %c0_i32_1 = arith.constant 0 : i32
    return %c0_i32, %c0_i32_0 : i32, i32
  }
  func.func @transform_3(%arg0: i32) -> (i32, i32) {
    %c0_i32 = arith.constant 0 : i32
    %c0_i32_0 = arith.constant 0 : i32
    %c0_i32_1 = arith.constant 0 : i32
    return %c0_i32, %c0_i32_0 : i32, i32
  }
  func.func @transform_4(%arg0: i32) -> i32 {
    %c0_i32 = arith.constant 0 : i32
    %c0_i32_0 = arith.constant 0 : i32
    return %c0_i32 : i32
  }
  func.func @transform_5(%arg0: i32) -> i32 {
    %c0_i32 = arith.constant 0 : i32
    %c0_i32_0 = arith.constant 0 : i32
    return %c0_i32 : i32
  }
  func.func @transform_6(%arg0: i32) -> i32 {
    %c0_i32 = arith.constant 0 : i32
    %c0_i32_0 = arith.constant 0 : i32
    return %c0_i32 : i32
  }
  func.func @transform_7(%arg0: i32) -> i32 {
    %c0_i32 = arith.constant 0 : i32
    %c0_i32_0 = arith.constant 0 : i32
    return %c0_i32 : i32
  }
  func.func @transform_8(%arg0: i32) -> i32 {
    %c0_i32 = arith.constant 0 : i32
    %c0_i32_0 = arith.constant 0 : i32
    return %c0_i32 : i32
  }
  func.func @transform_9(%arg0: i32) -> i32 {
    %c0_i32 = arith.constant 0 : i32
    %c0_i32_0 = arith.constant 0 : i32
    return %c0_i32 : i32
  }
  func.func @transform_10(%arg0: i32) -> i32 {
    %c0_i32 = arith.constant 0 : i32
    %c0_i32_0 = arith.constant 0 : i32
    return %c0_i32 : i32
  }
  func.func @transform_11(%arg0: i32) -> i32 {
    %c0_i32 = arith.constant 0 : i32
    %c0_i32_0 = arith.constant 0 : i32
    return %c0_i32 : i32
  }
  func.func @transform_12(%arg0: i32) -> (i32, i32, i32, i32) {
    %c0_i32 = arith.constant 0 : i32
    %c0_i32_0 = arith.constant 0 : i32
    %c0_i32_1 = arith.constant 0 : i32
    %c0_i32_2 = arith.constant 0 : i32
    return %arg0, %c0_i32, %c0_i32_0, %c0_i32_1 : i32, i32, i32, i32
  }
}

</mosaic_0001>

<bundles_post_ra>
// kernel: upsample_forward.1
= control target key start
LH: loop header
LB: loop body
LE: loop exit
PB: predicated region body
PF: predicated region fallthrough
CT: control target
= control target key end

     0   :  { %s10001_s0 = inlined_call_operand.vmem [shape: f32[2,64,16], index: 0, kind: input, shape index: {}]   ;;  %s10002_s1 = inlined_call_operand.vmem [shape: f32[2,2,32,32], index: 1, kind: input, shape index: {}]   ;;  %s10003_s2 = inlined_call_operand.vmem [shape: f32[16,32], index: 2, kind: input, shape index: {}]   ;;  %s10004_s3 = inlined_call_operand.vmem [shape: f32[128,64], index: 3, kind: input, shape index: {}]   ;;  %s10005_s4 = inlined_call_operand.vmem [shape: f32[32], index: 4, kind: input, shape index: {}]   ;;  %s10006_s5 = inlined_call_operand.vmem [shape: f32[2], index: 5, kind: input, shape index: {}]   ;;  %s10007_s6 = inlined_call_operand.vmem [shape: f32[72], index: 6, kind: input, shape index: {}]   ;;  %s10008_s7 = inlined_call_operand.vmem [shape: f32[2], index: 7, kind: input, shape index: {}]   ;;  %s10009_s8 = inlined_call_operand.vmem [shape: f32[2], index: 8, kind: input, shape index: {}]   ;;  %s10010_s9 = inlined_call_operand.vmem [shape: f32[36], index: 9, kind: input, shape index: {}]   ;;  %s10011_s10 = inlined_call_operand.vmem [shape: f32[2], index: 10, kind: input, shape index: {}]   ;;  %s10012_s11 = inlined_call_operand.vmem [shape: f32[2], index: 11, kind: input, shape index: {}]   ;;  %s10013_s12 = inlined_call_operand.hbm [shape: f32[2,2,32,32], index: 12, kind: output, shape index: {}]  }
   0x1   :  { %10128 = sst [smem:[#allocation112_spill]] %s10005_s4 }
   0x2   :  { %10129 = sst [smem:[#allocation113_spill]] %s10006_s5 }
   0x3   :  { %10130 = sst [smem:[#allocation114_spill]] %s10008_s7 }
   0x4   :  { %10131 = sst [smem:[#allocation115_spill]] %s10010_s9 }
   0x5   :  { %17 = vsyncpa [#allocation6], 0 }
   0x6   :  { %18 = vsyncpa [#allocation8], 0 }
   0x7   :  { %19 = vsyncpa [#allocation11], 0 }
   0x8   :  { %20 = vsyncpa [#allocation14], 0 }
   0x9   :  { %21 = vsyncpa [#allocation17], 0 }
   0xa   :  { %22 = vsyncpa [#allocation5], 0 }
   0xb   :  { %24 = vsyncpa [#allocation5 + $0x1], 0  ;;  %s5805_s21 = smov 0   ;;  %s5807_s22 = smov 0  }
   0xc   :  { %s5809_s23 = smov 0   ;;  %s5811_s24 = smov 0  }
   0xd LB: > { %10132 = sst [smem:[#allocation25_spill]] %s5720_s23  ;;  %s5826_s25 = sadd.s32 4294967295, %s5724_s24   ;;  %s5724_s24 = sphi %s5811_s24, %s10502_s24   ;;  %s5720_s23 = sphi %s5809_s23, %s10501_s23   ;;  %s5716_s22 = sphi %s5807_s22, %s10500_s22   ;;  %s5712_s21 = sphi %s5805_s21, %s10499_s21  }
   0xe   : > { %s5155_s26 = sadd.s32 4294967294, %s5724_s24   ;;  %s5830_s27 = sadd.s32 1, %s5724_s24  }
   0xf   : > { %s299_s28 = sadd.s32 1, %s5720_s23  ;;  %s296_s29 = ssub.s32 %s5724_s24, %s5830_s27 }
  0x10   : > { %p309_p0 = scmp.ne.s32.totalorder %s5720_s23, %s5716_s22  ;;  %p297_p1 = scmp.eq.s32.totalorder %s296_s29, 0 }
  0x11   : > { %p310_p2 = scmp.eq.s32.totalorder %s5826_s25, 1  ;;  %p315_p3 = scmp.ne.s32.totalorder %s5716_s22, %s5712_s21 }
  0x12   : > { %p316_p4 = scmp.eq.s32.totalorder %s5155_s26, 1  ;;  %p5156_p7 = scmp.ge.s32.totalorder %s5724_s24, 1 }
  0x13   : > { %s5841_s30 = scalar_select %p297_p1, %s5720_s23, %s299_s28  }
  0x14   : > { %p5843_p5 = por %p310_p2, %p309_p0  ;;  %p5847_p6 = por %p316_p4, %p315_p3 }
  0x15   : > { %10133 = sst [smem:[#allocation26_spill]] %s5841_s30  ;;  %p323_p8 = scmp.lt.s32.totalorder %s5724_s24, 3 }
  0x16   : > { %p5441_p9 = scmp.eq.s32.totalorder %s5826_s25, 0  ;;  %s10137_s5 = sld [smem:[#allocation113_spill]] }
  0x17   : > { %p5854_p10 = pnand %p5156_p7, %p323_p8  ;;  %s10138_s7 = sld [smem:[#allocation114_spill]] }
  0x18   : > { %s10140_s9 = sld [smem:[#allocation115_spill]]  ;;  %s5726_s20 = smov [#allocation7]  }
  0x19   : > { %p5412_p11 = pneg %p5854_p10  ;;  %s10141_s4 = sld [smem:[#allocation112_spill]] }
  0x1a   : > { %s5728_s23 = smov [#allocation13]   ;;  %s5729_s30 = smov [#allocation4]  }
  0x1b   : > { %p5868_p12 = pnand %p5441_p9, %p5412_p11  ;;  %s5732_s29 = smov [#allocation15]  }
  0x1c   : > { %s351_s18 = sshll.u32 %s10137_s5, 4  ;;  %s361_s5 = sshll.u32 %s10007_s6, 4  ;;  %s352_s18 = int_to_ptr.vmem [resolvable:$true] %s351_s18  ;;  %s362_s5 = int_to_ptr.vmem [resolvable:$true] %s361_s5 }
  0x1d   : > { %s371_s26 = sshll.u32 %s10138_s7, 4  ;;  %s5727_s7 = smov [#allocation10]   ;;  %s372_s26 = int_to_ptr.vmem [resolvable:$true] %s371_s26 }
  0x1e   : > { %s391_s16 = sshll.u32 %s10140_s9, 4  ;;  %s392_s16 = int_to_ptr.vmem [resolvable:$true] %s391_s16 }
  0x1f   : > { %s341_s19 = sshll.u32 %s10141_s4, 4  ;;  %s5733_s4 = smov [#allocation16]   ;;  %s342_s19 = int_to_ptr.vmem [resolvable:$true] %s341_s19 }
  0x20   : > { %5418 = dma.vmem_to_smem (!%p5868_p12), %s352_s18, 16, %s5726_s20, [#allocation8]  }
  0x21   : > { %5424 = dma.vmem_to_smem (!%p5868_p12), %s372_s26, 16, %s5727_s7, [#allocation11]  }
  0x22   : > { %5430 = dma.vmem_to_smem (!%p5868_p12), %s392_s16, 16, %s5728_s23, [#allocation14]  }
  0x23   : > { %5415 = dma.vmem_to_smem (!%p5868_p12), %s342_s19, 16, %s5729_s30, [#allocation6]  }
  0x24   : > { %s381_s18 = sshll.u32 %s10009_s8, 4  ;;  %s5730_s20 = smov [#allocation9]   ;;  %s382_s18 = int_to_ptr.vmem [resolvable:$true] %s381_s18 }
  0x25   : > { %5421 = dma.vmem_to_smem (!%p5868_p12), %s362_s5, 16, %s5730_s20, [#allocation8]  }
  0x26   : > { %s5731_s7 = smov [#allocation12]   ;;  %s401_s16 = sshll.u32 %s10011_s10, 4  ;;  %s402_s16 = int_to_ptr.vmem [resolvable:$true] %s401_s16 }
  0x27   : > { %5427 = dma.vmem_to_smem (!%p5868_p12), %s382_s18, 16, %s5731_s7, [#allocation11]  }
  0x28   : > { %s411_s30 = sshll.u32 %s10012_s11, 4  ;;  %440 = sbr.rel (%p5854_p10) target bundleno = 1688 (0x698), region = 68  ;;  %s412_s30 = int_to_ptr.vmem [resolvable:$true] %s411_s30 }
  0x29   : > { %5433 = dma.vmem_to_smem (!%p5868_p12), %s402_s16, 16, %s5732_s29, [#allocation14]  }
  0x2a   : > { %5436 = dma.vmem_to_smem (!%p5868_p12), %s412_s30, 16, %s5733_s4, [#allocation17]  }
  0x2d   : > { %5687 = dma.done.wait (%p5441_p9), [#allocation6], 16  }
  0x2e   : > { %5689 = vsyncadd (%p5441_p9), [#allocation6], 4294967280 }
  0x2f   : > { %5691 = dma.done.wait (%p5441_p9), [#allocation8], 32  }
  0x30   : > { %5693 = vsyncadd (%p5441_p9), [#allocation8], 4294967264 }
  0x31   : > { %5695 = dma.done.wait (%p5441_p9), [#allocation11], 32  }
  0x32   : > { %5697 = vsyncadd (%p5441_p9), [#allocation11], 4294967264 }
  0x33   : > { %5699 = dma.done.wait (%p5441_p9), [#allocation14], 32  }
  0x34   : > { %5701 = vsyncadd (%p5441_p9), [#allocation14], 4294967264 }
  0x35   : > { %5703 = dma.done.wait (%p5441_p9), [#allocation17], 16  }
  0x36   : > { %5705 = vsyncadd (%p5441_p9), [#allocation17], 4294967280 }
  0x37   : > { %482 = sfence }
  0x38   : > { %v543_v0 = vld [vmem:[%s10003_s2 + $0x8] sm:$0xff]  ;;  %v542_v1 = vld [vmem:[%s10003_s2] sm:$0xff]  ;;  %p524_p13 = scmp.lt.s32.totalorder %s5826_s25, 1  ;;  %vm544_vm0 = vcmask 130048   ;;  %s5734_s30 = smov 1   ;;  %vm1497_vm1 = vcmask 277504  }
  0x39   : > { %583 = vmatpush.msra.mxu0 %v543_v0  ;;  %v5735_v11 = vmov 0.0   ;;  %vm1539_vm2 = vcmask 269320   ;;  %vm1502_vm3 = vcmask 271360   ;;  %s5240_s29 = sld [smem:[#allocation9 + $0x1]]  ;;  %s5736_s23 = smov 127   ;;  %vm826_vm4 = vcmask 1046528  }
  0x3a   : > { %s525_s18 = scalar_select %p524_p13, %s5826_s25, 1  ;;  %1500 = vst.msk [vmem:[#allocation2 + $0x10] sm:$0xff] %vm1497_vm1, %v5735_v11  ;;  %vm1961_vm5 = vcmask 1045504   ;;  %vm626_vm6 = vcmask 523264   ;;  %vm1587_vm7 = vcmask 261128   ;;  %vm1591_vm8 = vcmask 260104  }
  0x3b   : > { %584 = vmatpush.msra.mxu0 %v542_v1  ;;  %1501 = vst.msk [vmem:[#allocation2 + $0x18] sm:$0xff] %vm1497_vm1, %v5735_v11  ;;  %s5241_s4 = sld [smem:[#allocation9 + $0x2]]  ;;  %vm4960_vm9 = vcmask 261120  }
  0x3c   : > { %s5359_s20 = sshll.u32 %s525_s18, 6  ;;  %1498 = vst.msk [vmem:[#allocation2] sm:$0xff] %vm1497_vm1, %v5735_v11  ;;  %s5243_s15 = sld [smem:[#allocation9 + $0x25]] }
  0x3d   : > { %s5939_s26 = scalar_lea.vmem %s10002_s1, %s5359_s20  ;;  %s5944_s19 = scalar_lea.vmem %s10001_s0, %s5359_s20  ;;  %1499 = vst.msk [vmem:[#allocation2 + $0x8] sm:$0xff] %vm1497_vm1, %v5735_v11 }
  0x3e   : > { %v1521_v2 = vld [vmem:[%s5939_s26 + $0x10] sm:$0xff]  ;;  %v1519_v3 = vld [vmem:[%s5939_s26] sm:$0xff]  ;;  %v1520_v5 = vld [vmem:[%s5939_s26 + $0x8] sm:$0xff]  ;;  %1504 = vst.msk [vmem:[#allocation2 + $0x28] sm:$0xff] %vm1497_vm1, %v5735_v11  ;;  %s5244_s28 = sld [smem:[#allocation9 + $0x26]] }
  0x3f   : > { %v534_v4 = vld [vmem:[%s5944_s19] sm:$0xff]  ;;  %1531 = vrot.lane.b32.xlu0 %v1521_v2, %s5734_s30  ;;  %1527 = vrot.lane.b32.xlu1 %v1519_v3, %s5734_s30  ;;  %v1522_v6 = vld [vmem:[%s5939_s26 + $0x18] sm:$0xff]  ;;  %1505 = vst.msk [vmem:[#allocation2 + $0x30] sm:$0xff] %vm1497_vm1, %v5735_v11  ;;  %s6005_s5 = sld [smem:[#allocation9 + $0x4]] }
  0x40   : > { %5180 = vmatmul.msk.f32.vlgmr.msra.gmra.mxu0 %vm544_vm0, %v534_v4  ;;  %1529 = vrot.lane.b32.xlu2 %v1520_v5, %s5734_s30  ;;  %v535_v7 = vld [vmem:[%s5944_s19 + $0x8] sm:$0xff]  ;;  %v536_v8 = vld [vmem:[%s5944_s19 + $0x10] sm:$0xff]  ;;  %v537_v9 = vld [vmem:[%s5944_s19 + $0x18] sm:$0xff]  ;;  %1506 = vst.msk [vmem:[#allocation2 + $0x38] sm:$0xff] %vm1497_vm1, %v5735_v11  ;;  %s6007_s17 = sld [smem:[#allocation9 + $0x5]] }
  0x41   : > { %v5236_v10 = vld [vmem:[%s5939_s26 + $0x20] sm:$0xff]  ;;  %1507 = vst.msk [vmem:[#allocation2 + $0x40] sm:$0xff] %vm1497_vm1, %v5735_v11  ;;  %v539_v13 = vld [vmem:[%s5944_s19 + $0x28] sm:$0xff]  ;;  %v540_v14 = vld [vmem:[%s5944_s19 + $0x30] sm:$0xff]  ;;  %v1630_v22 = vstv %s5240_s29  ;;  %s5250_s18 = sld [smem:[#allocation9 + $0x29]] }
  0x42   : > { %v538_v12 = vld [vmem:[%s5944_s19 + $0x20] sm:$0xff]  ;;  %1509 = vst.msk [vmem:[#allocation2 + $0x50] sm:$0xff] %vm1497_vm1, %v5735_v11  ;;  %v541_v15 = vld [vmem:[%s5944_s19 + $0x38] sm:$0xff]  ;;  %v5237_v16 = vld [vmem:[%s5939_s26 + $0x28] sm:$0xff]  ;;  %s5252_s20 = sld [smem:[#allocation9 + $0x7]]  ;;  %v1656_v31 = vstv %s5241_s4  ;;  %s5737_s19 = smov 126  }
  0x43   : > { %1510 = vst.msk [vmem:[#allocation2 + $0x58] sm:$0xff] %vm1497_vm1, %v5735_v11  ;;  %v5239_v17 = vld [vmem:[%s5939_s26 + $0x38] sm:$0xff]  ;;  %v5238_v18 = vld [vmem:[%s5939_s26 + $0x30] sm:$0xff]  ;;  %s5253_s7 = sld [smem:[#allocation9 + $0x8]]  ;;  %v1692_v36 = vstv %s5243_s15 }
  0x44   : > { %1511 = vst.msk [vmem:[#allocation2 + $0x60] sm:$0xff] %vm1497_vm1, %v5735_v11  ;;  %s5255_s26 = sld [smem:[#allocation9 + $0x2b]]  ;;  %v6029_v37 = vstv %s5244_s28 }
  0x45   : > { %1512 = vst.msk [vmem:[#allocation2 + $0x68] sm:$0xff] %vm1497_vm1, %v5735_v11  ;;  %s5256_s16 = sld [smem:[#allocation9 + $0x2c]]  ;;  %v6035_v39 = vstv %s6005_s5 }
  0x46   : > { %1514 = vst.msk [vmem:[#allocation2 + $0x78] sm:$0xff] %vm1497_vm1, %v5735_v11  ;;  %s5245_s9 = sld [smem:[#allocation9 + $0x3]]  ;;  %v6038_v40 = vstv %s6007_s17 }
  0x47   : > { %1533 = vrot.lane.b32.xlu1 %v1522_v6, %s5734_s30  ;;  %1515 = vst.msk [vmem:[#allocation2 + $0x80] sm:$0xff] %vm1497_vm1, %v5735_v11  ;;  %1555 = vrot.lane.b32.xlu0 %v5237_v16, %s5734_s30  ;;  %v6031_v38 = vstv %s5250_s18  ;;  %s6050_s29 = sld [smem:[#allocation9 + $0x27]] }
  0x48   : > { %5181 = vmatmul.msk.f32.gmra.mxu0 %vm544_vm0, %v535_v7  ;;  %1553 = vrot.lane.b32.xlu2 %v5236_v10, %s5734_s30  ;;  %1516 = vst.msk [vmem:[#allocation2 + $0x88] sm:$0xff] %vm1497_vm1, %v5735_v11  ;;  %v6040_v41 = vstv %s5252_s20  ;;  %s6173_s4 = sld [smem:[#allocation9 + $0x6]] }
  0x49   : > { %1517 = vst.msk [vmem:[#allocation2 + $0x90] sm:$0xff] %vm1497_vm1, %v5735_v11  ;;  %v6046_v43 = vstv %s5253_s7  ;;  %s6242_s15 = sld [smem:[#allocation9 + $0x2a]] }
  0x4a   : > { %3779 = vst.msk [vmem:[#allocation3] sm:$0xff] %vm1497_vm1, %v5735_v11  ;;  %v6048_v44 = vstv %s5255_s26  ;;  %s5249_s28 = sld [smem:[#allocation9 + $0x28]] }
  0x4b   : > { %3780 = vst.msk [vmem:[#allocation3 + $0x8] sm:$0xff] %vm1497_vm1, %v5735_v11  ;;  %v6056_v47 = vstv %s5256_s16  ;;  %s5258_s20 = sld [smem:[#allocation9 + $0xa]] }
  0x4c   : > { %3781 = vst.msk [vmem:[#allocation3 + $0x10] sm:$0xff] %vm1497_vm1, %v5735_v11  ;;  %v6058_v48 = vstv %s5245_s9  ;;  %s5242_s7 = sld [smem:[#allocation9 + $0x24]] }
  0x4d   : > { %3782 = vst.msk [vmem:[#allocation3 + $0x18] sm:$0xff] %vm1497_vm1, %v5735_v11  ;;  %s5263_s9 = sld [smem:[#allocation9 + $0xc]] }
  0x4e   : > { %3784 = vst.msk [vmem:[#allocation3 + $0x28] sm:$0xff] %vm1497_vm1, %v5735_v11  ;;  %s5268_s5 = sld [smem:[#allocation9 + $0x32]] }
  0x4f   : > { %3785 = vst.msk [vmem:[#allocation3 + $0x30] sm:$0xff] %vm1497_vm1, %v5735_v11  ;;  %1557 = vrot.lane.b32.xlu1 %v5238_v18, %s5734_s30  ;;  %s5270_s17 = sld [smem:[#allocation9 + $0x10]] }
  0x50   : > { %5182 = vmatmul.msk.f32.gmra.mxu0 %vm544_vm0, %v536_v8  ;;  %3786 = vst.msk [vmem:[#allocation3 + $0x38] sm:$0xff] %vm1497_vm1, %v5735_v11  ;;  %1559 = vrot.lane.b32.xlu2 %v5239_v17, %s5734_s30  ;;  %s5261_s18 = sld [smem:[#allocation9 + $0x2e]] }
  0x51   : > { %3787 = vst.msk [vmem:[#allocation3 + $0x40] sm:$0xff] %vm1497_vm1, %v5735_v11  ;;  %s5273_s26 = sld [smem:[#allocation9 + $0x34]] }
  0x52   : > { %1503 = vst.msk [vmem:[#allocation2 + $0x20] sm:$0x3] %vm1502_vm3, %v5735_v11  ;;  %s5264_s16 = sld [smem:[#allocation9 + $0xd]] }
  0x53   : > { %1513 = vst.msk [vmem:[#allocation2 + $0x70] sm:$0x3] %vm1502_vm3, %v5735_v11 }
  0x54   : > { %1518 = vst.msk [vmem:[#allocation2 + $0x98] sm:$0x3] %vm1502_vm3, %v5735_v11 }
  0x55   : > { %1508 = vst.msk [vmem:[#allocation2 + $0x48] sm:$0x3] %vm1502_vm3, %v5735_v11 }
  0x56   : > { %3783 = vst.msk [vmem:[#allocation3 + $0x20] sm:$0x3] %vm1502_vm3, %v5735_v11 }
  0x57   : > { %3788 = vst.msk [vmem:[#allocation3 + $0x48] sm:$0x3] %vm1502_vm3, %v5735_v11 }
  0x58   : > { %5183 = vmatmul.msk.f32.gmra.mxu0 %vm544_vm0, %v537_v9 }
  0x60   : > { %5184 = vmatmul.msk.f32.gmra.mxu0 %vm544_vm0, %v538_v12 }
  0x68   : > { %5185 = vmatmul.msk.f32.gmra.mxu0 %vm544_vm0, %v539_v13  ;;  %v6125_v13 = vstv %s6050_s29  ;;  %s1619_s29 = sld [smem:[#allocation9]] }
  0x70   : > { %5186 = vmatmul.msk.f32.gmra.mxu0 %vm544_vm0, %v540_v14 }
  0x78   : > { %5187 = vmatmul.msk.f32.gmra.mxu0 %vm544_vm0, %v541_v15 }
  0x9a   : > { %v1530_v19 = vpop.permute.xlu2 %1529 }
  0x9b   : > { %1541 = vst.msk [vmem:[#allocation2 + $0x9] sm:$0xff] %vm1539_vm2, %v1530_v19 }
  0xb1   : > { %v1532_v20 = vpop.permute.xlu0 %1531  ;;  %v1528_v21 = vpop.permute.xlu1 %1527 }
  0xb2   : > { %1542 = vst.msk [vmem:[#allocation2 + $0x11] sm:$0xff] %vm1539_vm2, %v1532_v20 }
  0xb3   : > { %1540 = vst.msk [vmem:[#allocation2 + $0x1] sm:$0xff] %vm1539_vm2, %v1528_v21 }
  0xb9   : > { %v6009_v23 = vld [vmem:[#allocation2 + $0x10] sm:$0xff]  ;;  %v1534_v24 = vpop.permute.xlu1 %1533 }
  0xba   : > { %v6011_v25 = vld [vmem:[#allocation2] sm:$0xff]  ;;  %v6013_v26 = vld [vmem:[#allocation2 + $0x8] sm:$0xff]  ;;  %1543 = vst.msk [vmem:[#allocation2 + $0x19] sm:$0xff] %vm1539_vm2, %v1534_v24  ;;  %v1633_v27 = vmul.f32 %v1630_v22, %v6009_v23  ;;  %v1916_v46 = vmul.f32 %v6031_v38, %v6009_v23  ;;  %v1659_v50 = vmul.f32 %v1656_v31, %v6009_v23  ;;  %v1695_v51 = vmul.f32 %v1692_v36, %v6009_v23 }
  0xbb   : > { %v1632_v28 = vmul.f32 %v1630_v22, %v6013_v26  ;;  %v1631_v29 = vmul.f32 %v1630_v22, %v6011_v25  ;;  %v1658_v32 = vmul.f32 %v1656_v31, %v6013_v26  ;;  %v1657_v34 = vmul.f32 %v1656_v31, %v6011_v25 }
  0xbc   : > { %1643 = vrot.lane.b32.xlu1 %v1633_v27, %s5736_s23  ;;  %v1915_v45 = vmul.f32 %v6031_v38, %v6013_v26  ;;  %v1693_v49 = vmul.f32 %v1692_v36, %v6011_v25  ;;  %v6065_v52 = vmul.f32 %v6029_v37, %v6009_v23  ;;  %v1694_v53 = vmul.f32 %v1692_v36, %v6013_v26 }
  0xbd   : > { %1641 = vrot.lane.b32.xlu0 %v1632_v28, %s5736_s23  ;;  %1639 = vrot.lane.b32.xlu2 %v1631_v29, %s5736_s23  ;;  %v6022_v30 = vpop.f32.mrf.mxu0  ;;  %v6070_v54 = vmul.f32 %v6029_v37, %v6013_v26  ;;  %v1927_v56 = vrot.slane %v1916_v46, 1  ;;  %v6074_v57 = vmul.f32 %v6035_v39, %v6013_v26  ;;  %v1914_v58 = vmul.f32 %v6031_v38, %v6011_v25 }
  0xbe   : > { %v1925_v55 = vrot.slane %v1915_v45, 1  ;;  %v1981_v59 = vmul.f32 %v6040_v41, %v6011_v25  ;;  %v1982_v60 = vmul.f32 %v6040_v41, %v6013_v26  ;;  %v6084_v61 = vmul.f32 %v6035_v39, %v6009_v23 }
  0xbf   : > { %v1924_v2 = vrot.slane %v1914_v58, 1  ;;  %v6101_v5 = vmul.f32 %v6029_v37, %v6011_v25  ;;  %v1774_v6 = vmul.f32 %v6035_v39, %v6011_v25  ;;  %v6107_v7 = vmul.f32 %v6038_v40, %v6011_v25 }
  0xc0   : > { %v6087_v62 = vsel %vm826_vm4, %v1925_v55, %v1927_v56  ;;  %v1991_v3 = vrot.slane %v1981_v59, 2  ;;  %v1992_v4 = vrot.slane %v1982_v60, 2  ;;  %v6116_v10 = vmul.f32 %v6038_v40, %v6013_v26 }
  0xc1   : > { %v6025_v33 = vld [vmem:[#allocation2 + $0x18] sm:$0xff]  ;;  %v6119_v11 = vsel %vm826_vm4, %v1924_v2, %v1925_v55  ;;  %v1785_v14 = vrot.slane %v6074_v57, 1  ;;  %v1983_v17 = vmul.f32 %v6040_v41, %v6009_v23  ;;  %v10018_v18 = vrot.slane %v6084_v61, 1 }
  0xc2   : > { %v1634_v35 = vmul.f32 %v1630_v22, %v6025_v33  ;;  %v6091_v63 = vmul.f32 %v6031_v38, %v6025_v33  ;;  %v6095_v0 = vmul.f32 %v6040_v41, %v6025_v33  ;;  %v1660_v1 = vmul.f32 %v1656_v31, %v6025_v33 }
  0xc3   : > { %v6122_v12 = vsel %vm1961_vm5, %v1991_v3, %v1992_v4  ;;  %v2020_v19 = vmul.f32 %v6046_v43, %v6009_v23  ;;  %v6141_v20 = vmul.f32 %v6046_v43, %v6025_v33  ;;  %v2019_v21 = vmul.f32 %v6046_v43, %v6013_v26 }
  0xc4   : > { %1667 = vrot.lane.b32.xlu1 %v1658_v32, %s5737_s19  ;;  %v10017_v8 = vrot.slane %v6091_v63, 1  ;;  %v10016_v16 = vrot.slane %v6095_v0, 2  ;;  %v1696_v22 = vmul.f32 %v1692_v36, %v6025_v33  ;;  %v1784_v24 = vrot.slane %v1774_v6, 1 }
  0xc5   : > { %1665 = vrot.lane.b32.xlu0 %v1657_v34, %s5737_s19  ;;  %1645 = vrot.lane.b32.xlu2 %v1634_v35, %s5736_s23  ;;  %v6044_v42 = vpop.f32.mrf.mxu0  ;;  %v1994_v27 = vrot.slane %v1983_v17, 2  ;;  %v2018_v28 = vmul.f32 %v6046_v43, %v6011_v25  ;;  %v2031_v29 = vrot.slane %v2020_v19, 2  ;;  %v10015_v31 = vrot.slane %v6141_v20, 2  ;;  %v6151_v35 = vld [vmem:[#allocation2 + $0x20] sm:$0x3] }
  0xc6   : > { %v6131_v15 = vsel %vm826_vm4, %v1927_v56, %v10017_v8  ;;  %v2029_v32 = vrot.slane %v2019_v21, 2  ;;  %v2085_v34 = vmul.f32 %v6048_v44, %v6013_v26  ;;  %v2084_v57 = vmul.f32 %v6048_v44, %v6011_v25 }
  0xc7   : > { %v6156_v45 = vsel %vm1961_vm5, %v1994_v27, %v10016_v16  ;;  %v6159_v36 = vsel %vm1961_vm5, %v1992_v4, %v1994_v27  ;;  %v2028_v46 = vrot.slane %v2018_v28, 2  ;;  %v2122_v4 = vmul.f32 %v6056_v47, %v6013_v26 }
  0xc8   : > { %v6169_v55 = vsel %vm1961_vm5, %v2029_v32, %v2031_v29  ;;  %v2095_v56 = vrot.slane %v2085_v34, 2  ;;  %v2094_v3 = vrot.slane %v2084_v57, 2  ;;  %v2087_v6 = vmul.f32 %v6048_v44, %v6025_v33 }
  0xc9   : > { %v6178_v59 = vsel %vm1961_vm5, %v2028_v46, %v2029_v32  ;;  %v2088_v17 = vmul.f32 %v6048_v44, %v6151_v35  ;;  %v6195_v21 = vmul.f32 %v6035_v39, %v6025_v33  ;;  %v2132_v27 = vrot.slane %v2122_v4, 2 }
  0xca   : > { %v2099_v28 = vrot.slane %v2087_v6, 2  ;;  %v1786_v32 = vsel %vm826_vm4, %v1784_v24, %v1785_v14  ;;  %v1722_v34 = vmul.f32 %v6029_v37, %v6025_v33  ;;  %v2124_v46 = vmul.f32 %v6056_v47, %v6025_v33 }
  0xcb   : > { %v1747_v6 = vmul.f32 %v6058_v48, %v6009_v23 }
  0xcc   : > { %1701 = vrot.lane.b32.xlu1 %v1693_v49, %s5736_s23  ;;  %v2086_v49 = vmul.f32 %v6048_v44, %v6009_v23  ;;  %v1788_v44 = vsel %vm826_vm4, %v1785_v14, %v10018_v18  ;;  %v6224_v14 = vmul.f32 %v6035_v39, %v6151_v35  ;;  %v2136_v24 = vrot.slane %v2124_v46, 2 }
  0xcd   : > { %1671 = vrot.lane.b32.xlu0 %v1660_v1, %s5737_s19  ;;  %1669 = vrot.lane.b32.xlu2 %v1659_v50, %s5737_s19  ;;  %v6112_v9 = vpop.f32.mrf.mxu0  ;;  %v6166_v50 = vsel %vm1961_vm5, %v2031_v29, %v10015_v31  ;;  %v2121_v1 = vmul.f32 %v6056_v47, %v6011_v25  ;;  %v2101_v29 = vrot.slane %v2088_v17, 2  ;;  %v1950_v17 = vstv %s6173_s4  ;;  %s5267_s4 = sld [smem:[#allocation9 + $0x31]] }
  0xce   : > { %v2097_v60 = vrot.slane %v2086_v49, 2  ;;  %v1745_v39 = vmul.f32 %v6058_v48, %v6011_v25  ;;  %v1758_v46 = vrot.slane %v1747_v6, 1 }
  0xd0   : > { %v6218_v57 = vsel %vm1961_vm5, %v2097_v60, %v2099_v28 }
  0xd4   : > { %1707 = vrot.lane.b32.xlu1 %v1696_v22, %s5736_s23  ;;  %v6201_v22 = vsel %vm1961_vm5, %v2094_v3, %v2095_v56  ;;  %v2123_v3 = vmul.f32 %v6056_v47, %v6009_v23 }
  0xd5   : > { %1705 = vrot.lane.b32.xlu0 %v1695_v51, %s5736_s23  ;;  %1703 = vrot.lane.b32.xlu2 %v1694_v53, %s5736_s23  ;;  %v6184_v2 = vpop.f32.mrf.mxu0  ;;  %v6198_v51 = vsel %vm1961_vm5, %v2095_v56, %v2097_v60  ;;  %v2131_v53 = vrot.slane %v2121_v1, 2  ;;  %v6215_v56 = vsel %vm1961_vm5, %v2099_v28, %v2101_v29  ;;  %v2125_v1 = vmul.f32 %v6056_v47, %v6151_v35 }
  0xd6   : > { %v1748_v60 = vmul.f32 %v6058_v48, %v6025_v33  ;;  %v1746_v28 = vmul.f32 %v6058_v48, %v6013_v26  ;;  %v1848_v47 = vmul.f32 %v6125_v13, %v6011_v25 }
  0xd7   : > { %v6212_v49 = vsel %vm1961_vm5, %v2131_v53, %v2132_v27  ;;  %v2138_v4 = vrot.slane %v2125_v1, 2  ;;  %v2134_v53 = vrot.slane %v2123_v3, 2  ;;  %v1849_v3 = vmul.f32 %v6125_v13, %v6013_v26 }
  0xd8   : > { %v1760_v1 = vrot.slane %v1748_v60, 1  ;;  %v1756_v8 = vrot.slane %v1746_v28, 1  ;;  %v1858_v18 = vrot.slane %v1848_v47, 1  ;;  %v1952_v28 = vmul.f32 %v1950_v17, %v6013_v26 }
  0xd9   : > { %v6256_v31 = vsel %vm1961_vm5, %v2134_v53, %v2136_v24  ;;  %v6259_v16 = vsel %vm1961_vm5, %v2132_v27, %v2134_v53  ;;  %v1859_v37 = vrot.slane %v1849_v3, 1  ;;  %v1851_v27 = vmul.f32 %v6125_v13, %v6025_v33 }
  0xda   : > { %v6270_v60 = vsel %vm826_vm4, %v1756_v8, %v1758_v46  ;;  %v1963_v19 = vrot.slane %v1952_v28, 2  ;;  %v1791_v28 = vrot.slane %v6224_v14, 1 }
  0xdb   : > { %v6277_v53 = vsel %vm826_vm4, %v1858_v18, %v1859_v37  ;;  %v1863_v47 = vrot.slane %v1851_v27, 1  ;;  %v1954_v18 = vmul.f32 %v1950_v17, %v6025_v33  ;;  %v2054_v27 = vstv %s6242_s15  ;;  %s6680_s15 = sld [smem:[#allocation9 + $0xe]] }
  0xdc   : > { %1731 = vrot.lane.b32.xlu1 %v6065_v52, %s5737_s19  ;;  %v6251_v52 = vsel %vm1961_vm5, %v2136_v24, %v2138_v4  ;;  %v1749_v4 = vmul.f32 %v6058_v48, %v6151_v35  ;;  %v1852_v24 = vmul.f32 %v6125_v13, %v6151_v35  ;;  %10142 = vst [vmem:[#allocation27_spill] sm:$0xff] %v6277_v53 }
  0xdd   : > { %1729 = vrot.lane.b32.xlu0 %v6070_v54, %s5737_s19  ;;  %1727 = vrot.lane.b32.xlu2 %v6101_v5, %s5737_s19  ;;  %v6248_v29 = vpop.f32.mrf.mxu0  ;;  %v1755_v54 = vrot.slane %v1745_v39, 1  ;;  %v6262_v5 = vsel %vm826_vm4, %v1758_v46, %v1760_v1  ;;  %v1850_v48 = vmul.f32 %v6125_v13, %v6009_v23  ;;  %v1951_v46 = vmul.f32 %v1950_v17, %v6011_v25 }
  0xde   : > { %v1762_v39 = vrot.slane %v1749_v4, 1  ;;  %v1865_v3 = vrot.slane %v1852_v24, 1  ;;  %v2059_v14 = vmul.f32 %v2054_v27, %v6151_v35 }
  0xdf   : > { %v6267_v6 = vsel %vm826_vm4, %v1755_v54, %v1756_v8  ;;  %v1953_v8 = vmul.f32 %v1950_v17, %v6009_v23  ;;  %v1861_v58 = vrot.slane %v1850_v48, 1  ;;  %v1962_v53 = vrot.slane %v1951_v46, 2 }
  0xe0   : > { %v6285_v54 = vsel %vm826_vm4, %v1760_v1, %v1762_v39  ;;  %v6290_v4 = vsel %vm826_vm4, %v1863_v47, %v1865_v3  ;;  %v1967_v48 = vrot.slane %v1954_v18, 2  ;;  %v2056_v18 = vmul.f32 %v2054_v27, %v6013_v26 }
  0xe1   : > { %v1965_v13 = vrot.slane %v1953_v8, 2  ;;  %v6298_v1 = vsel %vm826_vm4, %v1859_v37, %v1861_v58  ;;  %v6301_v39 = vsel %vm826_vm4, %v1861_v58, %v1863_v47  ;;  %v1955_v58 = vmul.f32 %v1950_v17, %v6151_v35 }
  0xe2   : > { %10143 = vst [vmem:[#allocation28_spill] sm:$0xff] %v6298_v1  ;;  %v2055_v47 = vmul.f32 %v2054_v27, %v6011_v25  ;;  %v10150_v1 = vrot.slane %v6195_v21, 1 }
  0xe3   : > { %10144 = vst [vmem:[#allocation29_spill] sm:$0xff] %v6301_v39  ;;  %v6306_v3 = vsel %vm1961_vm5, %v1963_v19, %v1965_v13  ;;  %v6313_v8 = vsel %vm1961_vm5, %v1965_v13, %v1967_v48  ;;  %v10148_v13 = vrot.slane %v6116_v10, 1 }
  0xe4   : > { %1795 = vrot.lane.b32.xlu1 %v1788_v44, %s5736_s23  ;;  %v2057_v44 = vmul.f32 %v2054_v27, %v6009_v23  ;;  %10145 = vst [vmem:[#allocation30_spill] sm:$0xff] %v6306_v3  ;;  %v1813_v3 = vmul.f32 %v6038_v40, %v6009_v23  ;;  %v1792_v39 = vsel %vm826_vm4, %v10150_v1, %v1791_v28 }
  0xe5   : > { %1793 = vrot.lane.b32.xlu0 %v1786_v32, %s5736_s23  ;;  %1733 = vrot.lane.b32.xlu2 %v1722_v34, %s5737_s19  ;;  %v6295_v24 = vpop.f32.mrf.mxu0  ;;  %v6309_v32 = vsel %vm1961_vm5, %v1962_v53, %v1963_v19  ;;  %v2058_v34 = vmul.f32 %v2054_v27, %v6025_v33  ;;  %10147 = vst [vmem:[#allocation32_spill] sm:$0xff] %v6313_v8  ;;  %v1554_v19 = vpop.permute.xlu2 %1553  ;;  %v1969_v53 = vrot.slane %v1955_v58, 2  ;;  %v2066_v8 = vrot.slane %v2056_v18, 2 }
  0xe6   : > { %10146 = vst [vmem:[#allocation31_spill] sm:$0xff] %v6309_v32  ;;  %v2068_v37 = vrot.slane %v2057_v44, 2  ;;  %v2065_v32 = vrot.slane %v2055_v47, 2  ;;  %v10149_v44 = vrot.slane %v6107_v7, 1  ;;  %v2072_v27 = vrot.slane %v2059_v14, 2 }
  0xe7   : > { %v2070_v46 = vrot.slane %v2058_v34, 2  ;;  %1566 = vst.msk [vmem:[#allocation2 + $0x29] sm:$0xff] %vm1539_vm2, %v1554_v19  ;;  %v1814_v58 = vmul.f32 %v6038_v40, %v6025_v33  ;;  %v1815_v47 = vmul.f32 %v6038_v40, %v6151_v35  ;;  %v6338_v7 = vsel %vm1961_vm5, %v1967_v48, %v1969_v53 }
  0xe8   : > { %v1823_v17 = vsel %vm826_vm4, %v10149_v44, %v10148_v13  ;;  %v10151_v19 = vmov %v10150_v1  ;;  %v10152_v18 = vrot.slane %v6084_v61, 1  ;;  %v6347_v13 = vsel %vm1961_vm5, %v2065_v32, %v2066_v8 }
  0xe9   : > { %v6328_v34 = vsel %vm1961_vm5, %v2068_v37, %v2070_v46  ;;  %v6350_v1 = vsel %vm1961_vm5, %v2066_v8, %v2068_v37  ;;  %v6353_v28 = vsel %vm1961_vm5, %v2070_v46, %v2072_v27  ;;  %v1826_v48 = vrot.slane %v1814_v58, 1 }
  0xea   : > { %v1790_v14 = vsel %vm826_vm4, %v10152_v18, %v10151_v19  ;;  %v1828_v21 = vrot.slane %v1815_v47, 1  ;;  %v1824_v53 = vrot.slane %v1813_v3, 1  ;;  %v1876_v61 = vstv %s5249_s28  ;;  %s5272_s28 = sld [smem:[#allocation9 + $0x33]] }
  0xeb   : > { %v10153_v37 = vrot.slane %v6116_v10, 1  ;;  %v1879_v46 = vmul.f32 %v1876_v61, %v6009_v23  ;;  %v1878_v27 = vmul.f32 %v1876_v61, %v6013_v26  ;;  %v1877_v58 = vmul.f32 %v1876_v61, %v6011_v25 }
  0xec   : > { %1830 = vrot.lane.b32.xlu1 %v1823_v17, %s5737_s19  ;;  %v1829_v32 = vsel %vm826_vm4, %v1826_v48, %v1828_v21  ;;  %v1827_v8 = vsel %vm826_vm4, %v1824_v53, %v1826_v48  ;;  %v1880_v17 = vmul.f32 %v1876_v61, %v6025_v33  ;;  %v622_v21 = vld [vmem:[%s10004_s3 + $0x60] sm:$0xff] }
  0xed   : > { %1799 = vrot.lane.b32.xlu0 %v1792_v39, %s5736_s23  ;;  %1797 = vrot.lane.b32.xlu2 %v1790_v14, %s5736_s23  ;;  %v604_v40 = vpop.f32.mrf.mxu0  ;;  %v1560_v44 = vpop.permute.xlu2 %1559  ;;  %v1825_v39 = vsel %vm826_vm4, %v10153_v37, %v1824_v53  ;;  %v1890_v10 = vrot.slane %v1879_v46, 1  ;;  %v1888_v19 = vrot.slane %v1878_v27, 1  ;;  %v1887_v18 = vrot.slane %v1877_v58, 1  ;;  %v623_v37 = vld [vmem:[%s10004_s3 + $0x68] sm:$0xff]  ;;  %v614_v27 = vld [vmem:[%s10004_s3 + $0x20] sm:$0xff] }
  0xee   : > { %1569 = vst.msk [vmem:[#allocation2 + $0x41] sm:$0xff] %vm1539_vm2, %v1560_v44  ;;  %v1892_v47 = vrot.slane %v1880_v17, 1  ;;  %v1918_v53 = vmul.f32 %v6031_v38, %v6151_v35  ;;  %v611_v38 = vld [vmem:[%s10004_s3 + $0x8] sm:$0xff]  ;;  %v1985_v44 = vmul.f32 %v6040_v41, %v6151_v35  ;;  %v613_v17 = vld [vmem:[%s10004_s3 + $0x18] sm:$0xff] }
  0xef   : > { %v1889_v48 = vsel %vm826_vm4, %v1887_v18, %v1888_v19 }
  0xf0   : > { %v1893_v14 = vsel %vm826_vm4, %v1890_v10, %v1892_v47  ;;  %v1998_v41 = vrot.slane %v1985_v44, 2 }
  0xf4   : > { %1836 = vrot.lane.b32.xlu1 %v1829_v32, %s5737_s19  ;;  %v10154_v32 = vrot.slane %v6091_v63, 1  ;;  %v10155_v63 = vrot.slane %v6095_v0, 2  ;;  %v618_v0 = vld [vmem:[%s10004_s3 + $0x40] sm:$0xff] }
  0xf5   : > { %1834 = vrot.lane.b32.xlu0 %v1827_v8, %s5737_s19  ;;  %1832 = vrot.lane.b32.xlu2 %v1825_v39, %s5737_s19  ;;  %v607_v3 = vpop.f32.mrf.mxu0  ;;  %v612_v39 = vld [vmem:[%s10004_s3 + $0x10] sm:$0xff] }
  0xf6   : > { %683 = vmatpush.msra.mxu1 %v607_v3  ;;  %5362 = vmatpush.msra.mxu2 %v607_v3 }
  0xf7   : > { %5363 = vmatpush.msra.mxu3 %v607_v3 }
  0xf8   : > { %684 = vmatpush.msra.mxu1 %v604_v40  ;;  %5364 = vmatpush.msra.mxu2 %v604_v40 }
  0xf9   : > { %5365 = vmatpush.msra.mxu3 %v604_v40  ;;  %v1891_v40 = vsel %vm826_vm4, %v1888_v19, %v1890_v10 }
  0xfa   : > { %685 = vmatpush.msra.mxu1 %v6295_v24  ;;  %5366 = vmatpush.msra.mxu2 %v6295_v24 }
  0xfb   : > { %5367 = vmatpush.msra.mxu3 %v6295_v24  ;;  %v1881_v24 = vmul.f32 %v1876_v61, %v6151_v35  ;;  %v1931_v61 = vrot.slane %v1918_v53, 1 }
  0xfc   : > { %686 = vmatpush.msra.mxu1 %v6248_v29  ;;  %5368 = vmatpush.msra.mxu2 %v6248_v29 }
  0xfd   : > { %5369 = vmatpush.msra.mxu3 %v6248_v29  ;;  %1900 = vrot.lane.b32.xlu1 %v1893_v14, %s5736_s23  ;;  %v1894_v29 = vrot.slane %v1881_v24, 1  ;;  %v1932_v8 = vsel %vm826_vm4, %v10154_v32, %v1931_v61 }
  0xfe   : > { %1898 = vrot.lane.b32.xlu0 %v1891_v40, %s5736_s23  ;;  %1896 = vrot.lane.b32.xlu2 %v1889_v48, %s5736_s23 }
  0xff   : > { %687 = vmatpush.msra.mxu1 %v6184_v2  ;;  %5370 = vmatpush.msra.mxu2 %v6184_v2 }
 0x100   : > { %5371 = vmatpush.msra.mxu3 %v6184_v2  ;;  %v610_v2 = vld [vmem:[%s10004_s3] sm:$0xff] }
 0x101   : > { %688 = vmatpush.msra.mxu1 %v6112_v9  ;;  %5372 = vmatpush.msra.mxu2 %v6112_v9 }
 0x102   : > { %5373 = vmatpush.msra.mxu3 %v6112_v9  ;;  %v616_v9 = vld [vmem:[%s10004_s3 + $0x30] sm:$0xff] }
 0x103   : > { %689 = vmatpush.msra.mxu1 %v6044_v42  ;;  %5374 = vmatpush.msra.mxu2 %v6044_v42 }
 0x104   : > { %5375 = vmatpush.msra.mxu3 %v6044_v42  ;;  %v1895_v42 = vsel %vm826_vm4, %v1892_v47, %v1894_v29 }
 0x105   : > { %690 = vmatpush.msra.mxu1 %v6022_v30  ;;  %5376 = vmatpush.msra.mxu2 %v6022_v30 }
 0x106   : > { %5377 = vmatpush.msra.mxu3 %v6022_v30  ;;  %1935 = vrot.lane.b32.xlu1 %v6087_v62, %s5737_s19  ;;  %v1556_v30 = vpop.permute.xlu0 %1555  ;;  %v1558_v62 = vpop.permute.xlu1 %1557 }
 0x107   : > { %1933 = vrot.lane.b32.xlu0 %v6119_v11, %s5737_s19  ;;  %1902 = vrot.lane.b32.xlu2 %v1895_v42, %s5736_s23  ;;  %1567 = vst.msk [vmem:[#allocation2 + $0x31] sm:$0xff] %vm1539_vm2, %v1556_v30  ;;  %v617_v11 = vld [vmem:[%s10004_s3 + $0x38] sm:$0xff]  ;;  %v6516_v42 = vld [vmem:[#allocation2 + $0x28] sm:$0xff] }
 0x108   : > { %5188 = vmatmul.msk.f32.vlgmr.msra.gmra.mxu1 %vm626_vm6, %v610_v2  ;;  %5194 = vmatmul.msk.f32.vlgmr.msra.gmra.mxu2 %vm626_vm6, %v616_v9  ;;  %1568 = vst.msk [vmem:[#allocation2 + $0x39] sm:$0xff] %vm1539_vm2, %v1558_v62  ;;  %v2172_v2 = vstv %s5258_s20  ;;  %v619_v9 = vld [vmem:[%s10004_s3 + $0x48] sm:$0xff]  ;;  %s6585_s20 = sld [smem:[#allocation9 + $0x11]] }
 0x109   : > { %5200 = vmatmul.msk.f32.vlgmr.msra.gmra.mxu3 %vm626_vm6, %v622_v21  ;;  %v2173_v62 = vmul.f32 %v2172_v2, %v6516_v42 }
 0x10e   : > { %2000 = vrot.lane.b32.xlu1 %v6122_v12, %s5736_s23  ;;  %v1999_v12 = vsel %vm1961_vm5, %v10155_v63, %v1998_v41  ;;  %v620_v41 = vld [vmem:[%s10004_s3 + $0x50] sm:$0xff]  ;;  %v6540_v63 = vstv %s5263_s9  ;;  %s5274_s9 = sld [smem:[#allocation9 + $0x35]] }
 0x10f   : > { %1939 = vrot.lane.b32.xlu0 %v1932_v8, %s5737_s19  ;;  %1937 = vrot.lane.b32.xlu2 %v6131_v15, %s5737_s19  ;;  %v624_v15 = vld [vmem:[%s10004_s3 + $0x70] sm:$0xff]  ;;  %v6507_v48 = vld [vmem:[#allocation2 + $0x38] sm:$0xff]  ;;  %10157 = vst [vmem:[#allocation33_spill] sm:$0xff] %v6540_v63 }
 0x110   : > { %5189 = vmatmul.msk.f32.gmra.mxu1 %vm626_vm6, %v611_v38  ;;  %5195 = vmatmul.msk.f32.gmra.mxu2 %vm626_vm6, %v617_v11  ;;  %v1682_v38 = vstv %s5242_s7  ;;  %v6531_v11 = vld [vmem:[#allocation2 + $0x40] sm:$0xff]  ;;  %s6612_s7 = sld [smem:[#allocation9 + $0x2f]] }
 0x111   : > { %5201 = vmatmul.msk.f32.gmra.mxu3 %vm626_vm6, %v623_v37  ;;  %v1683_v44 = vmul.f32 %v1682_v38, %v6011_v25 }
 0x116   : > { %2006 = vrot.lane.b32.xlu1 %v1999_v12, %s5736_s23  ;;  %v6542_v12 = vld [vmem:[#allocation2 + $0x48] sm:$0x3] }
 0x117   : > { %2004 = vrot.lane.b32.xlu0 %v6156_v45, %s5736_s23  ;;  %2002 = vrot.lane.b32.xlu2 %v6159_v36, %s5736_s23  ;;  %v1640_v46 = vpop.permute.xlu2 %1639  ;;  %v2022_v45 = vmul.f32 %v6046_v43, %v6151_v35  ;;  %v10156_v43 = vrot.slane %v6141_v20, 2  ;;  %v615_v20 = vld [vmem:[%s10004_s3 + $0x28] sm:$0xff] }
 0x118   : > { %5190 = vmatmul.msk.f32.gmra.mxu1 %vm626_vm6, %v612_v39  ;;  %5196 = vmatmul.msk.f32.gmra.mxu2 %vm626_vm6, %v618_v0  ;;  %v6547_v39 = vmul.f32 %v6540_v63, %v6531_v11 }
 0x119   : > { %5202 = vmatmul.msk.f32.gmra.mxu3 %vm626_vm6, %v624_v15  ;;  %v2035_v3 = vrot.slane %v2022_v45, 2 }
 0x11b   : > { %v2036_v35 = vsel %vm1961_vm5, %v10156_v43, %v2035_v3  ;;  %v2291_v43 = vmul.f32 %v6540_v63, %v6542_v12 }
 0x11e   : > { %2041 = vrot.lane.b32.xlu1 %v6166_v50, %s5737_s19 }
 0x11f   : > { %2039 = vrot.lane.b32.xlu0 %v6169_v55, %s5737_s19  ;;  %2037 = vrot.lane.b32.xlu2 %v6178_v59, %s5737_s19  ;;  %v1646_v36 = vpop.permute.xlu2 %1645  ;;  %v625_v55 = vld [vmem:[%s10004_s3 + $0x78] sm:$0xff]  ;;  %v1620_v59 = vstv %s1619_s29  ;;  %s5259_s29 = sld [smem:[#allocation9 + $0xb]] }
 0x120   : > { %5191 = vmatmul.msk.f32.gmra.mxu1 %vm626_vm6, %v613_v17  ;;  %v1622_v18 = vmul.f32 %v1620_v59, %v6013_v26  ;;  %5197 = vmatmul.msk.f32.gmra.mxu2 %vm626_vm6, %v619_v9  ;;  %v1624_v61 = vmul.f32 %v1620_v59, %v6025_v33 }
 0x121   : > { %5203 = vmatmul.msk.f32.gmra.mxu3 %vm626_vm6, %v625_v55  ;;  %v1686_v55 = vmul.f32 %v1682_v38, %v6025_v33 }
 0x122   : > { %v1654_v32 = vadd.f32 %v1646_v36, %v1624_v61  ;;  %v10158_v36 = vld [vmem:[#allocation27_spill] sm:$0xff] }
 0x126   : > { %2105 = vrot.lane.b32.xlu1 %v6198_v51, %s5736_s23  ;;  %v1623_v51 = vmul.f32 %v1620_v59, %v6009_v23 }
 0x127   : > { %2103 = vrot.lane.b32.xlu0 %v6201_v22, %s5736_s23  ;;  %2043 = vrot.lane.b32.xlu2 %v2036_v35, %s5737_s19  ;;  %v1670_v50 = vpop.permute.xlu2 %1669  ;;  %v6560_v35 = vstv %s5267_s4  ;;  %s6673_s4 = sld [smem:[#allocation9 + $0xf]] }
 0x128   : > { %5192 = vmatmul.msk.f32.gmra.mxu1 %vm626_vm6, %v614_v27  ;;  %5198 = vmatmul.msk.f32.gmra.mxu2 %vm626_vm6, %v620_v41  ;;  %v10025_v27 = vrot.slane %v6547_v39, 1  ;;  %10159 = vst [vmem:[#allocation27_spill] sm:$0xff] %v6560_v35  ;;  %v10166_v41 = vld [vmem:[#allocation29_spill] sm:$0xff] }
 0x12e   : > { %2140 = vrot.lane.b32.xlu1 %v6212_v49, %s5737_s19  ;;  %v1644_v22 = vpop.permute.xlu1 %1643  ;;  %v1621_v49 = vmul.f32 %v1620_v59, %v6011_v25 }
 0x12f   : > { %2109 = vrot.lane.b32.xlu0 %v6215_v56, %s5736_s23  ;;  %2107 = vrot.lane.b32.xlu2 %v6218_v57, %s5736_s23  ;;  %v1642_v58 = vpop.permute.xlu0 %1641  ;;  %v6497_v10 = vpop.permute.xlu2 %1703  ;;  %v1653_v47 = vadd.f32 %v1644_v22, %v1623_v51  ;;  %v2423_v51 = vmul.f32 %v6560_v35, %v6542_v12 }
 0x130   : > { %5193 = vmatmul.msk.f32.gmra.mxu1 %vm626_vm6, %v615_v20  ;;  %v1652_v56 = vadd.f32 %v1642_v58, %v1622_v18  ;;  %v1651_v40 = vadd.f32 %v1640_v46, %v1621_v49  ;;  %v2198_v46 = vstv %s5259_s29  ;;  %v6567_v20 = vmul.f32 %v6560_v35, %v6531_v11  ;;  %s6649_s29 = sld [smem:[#allocation9 + $0x30]] }
 0x131   : > { %v1679_v19 = vadd.f32 %v1670_v50, %v1653_v47  ;;  %v2199_v45 = vmul.f32 %v2198_v46, %v6516_v42  ;;  %v2176_v50 = vmul.f32 %v2172_v2, %v6531_v11  ;;  %v2436_v49 = vrot.slane %v2423_v51, 1 }
 0x132   : > { %10160 = vst [vmem:[#allocation34_spill] sm:$0xff] %v6567_v20  ;;  %v10024_v18 = vrot.slane %v6567_v20, 1  ;;  %v2202_v9 = vmul.f32 %v2198_v46, %v6531_v11 }
 0x133   : > { %v6502_v14 = vadd.f32 %v6262_v5, %v1679_v19 }
 0x136   : > { %2146 = vrot.lane.b32.xlu1 %v6251_v52, %s5737_s19  ;;  %v1668_v57 = vpop.permute.xlu1 %1667  ;;  %v6518_v52 = vld [vmem:[#allocation2 + $0x30] sm:$0xff] }
 0x137   : > { %2144 = vrot.lane.b32.xlu0 %v6256_v31, %s5737_s19  ;;  %2142 = vrot.lane.b32.xlu2 %v6259_v16, %s5737_s19  ;;  %v1666_v24 = vpop.permute.xlu0 %1665  ;;  %v1728_v5 = vpop.permute.xlu2 %1727  ;;  %v1678_v29 = vadd.f32 %v1668_v57, %v1652_v56  ;;  %v2175_v16 = vmul.f32 %v2172_v2, %v6507_v48  ;;  %v2174_v30 = vmul.f32 %v2172_v2, %v6518_v52  ;;  %v6581_v56 = vstv %s5268_s5  ;;  %s5211_s5 = sld [smem:[#allocation4 + $0x13]] }
 0x138   : > { %v1677_v21 = vadd.f32 %v1666_v24, %v1651_v40  ;;  %v2200_v0 = vmul.f32 %v2198_v46, %v6518_v52  ;;  %10161 = vst [vmem:[#allocation35_spill] sm:$0xff] %v6581_v56  ;;  %v6583_v40 = vstv %s5270_s17  ;;  %v1685_v57 = vmul.f32 %v1682_v38, %v6009_v23  ;;  %s5209_s17 = sld [smem:[#allocation4 + $0x12]] }
 0x139   : > { %v6522_v31 = vadd.f32 %v6270_v60, %v1678_v29  ;;  %10162 = vst [vmem:[#allocation36_spill] sm:$0xff] %v6583_v40  ;;  %v2234_v24 = vstv %s5261_s18  ;;  %v6594_v29 = vsel %vm826_vm4, %v10024_v18, %v2436_v49  ;;  %v1684_v2 = vmul.f32 %v1682_v38, %v6013_v26  ;;  %s5207_s18 = sld [smem:[#allocation4 + $0x11]] }
 0x13a   : > { %v6526_v53 = vadd.f32 %v6267_v6, %v1677_v21  ;;  %10163 = vst [vmem:[#allocation37_spill] sm:$0xff] %v6594_v29  ;;  %v2235_v21 = vmul.f32 %v2234_v24, %v6516_v42  ;;  %v2236_v51 = vmul.f32 %v2234_v24, %v6518_v52 }
 0x13b   : > { %v1714_v26 = vadd.f32 %v6497_v10, %v1684_v2  ;;  %v2526_v10 = vmul.f32 %v6583_v40, %v6542_v12  ;;  %v6655_v2 = vstv %s5273_s26  ;;  %s5215_s26 = sld [smem:[#allocation4 + $0x15]] }
 0x13c   : > { %10172 = vst [vmem:[#allocation42_spill] sm:$0xff] %v6655_v2 }
 0x13e   : > { %2185 = vrot.lane.b32.xlu1 %v2175_v16, %s5736_s23  ;;  %v1702_v60 = vpop.permute.xlu1 %1701  ;;  %v6601_v16 = vmul.f32 %v6581_v56, %v6531_v11 }
 0x13f   : > { %2183 = vrot.lane.b32.xlu0 %v2174_v30, %s5736_s23  ;;  %2181 = vrot.lane.b32.xlu2 %v2173_v62, %s5736_s23  ;;  %v1672_v6 = vpop.permute.xlu0 %1671  ;;  %v1734_v8 = vpop.permute.xlu2 %1733  ;;  %v1713_v37 = vadd.f32 %v1702_v60, %v1683_v44  ;;  %v2201_v30 = vmul.f32 %v2198_v46, %v6507_v48  ;;  %v6608_v62 = vmul.f32 %v6583_v40, %v6531_v11  ;;  %v10168_v46 = vld [vmem:[#allocation28_spill] sm:$0xff] }
 0x140   : > { %v1680_v25 = vadd.f32 %v1672_v6, %v1654_v32  ;;  %10164 = vst [vmem:[#allocation38_spill] sm:$0xff] %v6601_v16  ;;  %v10022_v38 = vrot.slane %v6601_v16, 1 }
 0x141   : > { %v1739_v15 = vadd.f32 %v1728_v5, %v1713_v37  ;;  %10165 = vst [vmem:[#allocation39_spill] sm:$0xff] %v6608_v62  ;;  %v10021_v37 = vrot.slane %v6608_v62, 2 }
 0x142   : > { %v6551_v17 = vadd.f32 %v6285_v54, %v1680_v25  ;;  %v2304_v54 = vrot.slane %v2291_v43, 1 }
 0x143   : > { %v6555_v3 = vadd.f32 %v10158_v36, %v1739_v15  ;;  %v6632_v36 = vstv %s6585_s20  ;;  %s5206_s20 = sld [smem:[#allocation4 + $0x1]] }
 0x144   : > { %v6578_v33 = vsel %vm826_vm4, %v10025_v27, %v2304_v54  ;;  %10169 = vst [vmem:[#allocation28_spill] sm:$0xff] %v6632_v36  ;;  %v6636_v43 = vmul.f32 %v6632_v36, %v6531_v11  ;;  %v2563_v54 = vmul.f32 %v6632_v36, %v6542_v12 }
 0x146   : > { %2209 = vrot.lane.b32.xlu1 %v2200_v0, %s5737_s19  ;;  %v1708_v59 = vpop.permute.xlu1 %1707  ;;  %10170 = vst [vmem:[#allocation40_spill] sm:$0xff] %v6636_v43 }
 0x147   : > { %2207 = vrot.lane.b32.xlu0 %v2199_v45, %s5737_s19  ;;  %2187 = vrot.lane.b32.xlu2 %v2176_v50, %s5736_s23  ;;  %v1706_v22 = vpop.permute.xlu0 %1705  ;;  %v6573_v58 = vpop.permute.xlu2 %1797  ;;  %v1716_v47 = vadd.f32 %v1708_v59, %v1686_v55  ;;  %v2539_v45 = vrot.slane %v2526_v10, 2  ;;  %v2238_v50 = vmul.f32 %v2234_v24, %v6531_v11  ;;  %v2237_v59 = vmul.f32 %v2234_v24, %v6507_v48 }
 0x148   : > { %v1715_v23 = vadd.f32 %v1706_v22, %v1685_v57  ;;  %v10020_v22 = vrot.slane %v6636_v43, 2  ;;  %v2260_v24 = vstv %s6612_s7  ;;  %v1807_v27 = vadd.f32 %v6573_v58, %v6502_v14  ;;  %s5257_s7 = sld [smem:[#allocation9 + $0x9]] }
 0x149   : > { %v1742_v19 = vadd.f32 %v1734_v8, %v1716_v47  ;;  %v6642_v55 = vsel %vm1961_vm5, %v10021_v37, %v2539_v45  ;;  %v2261_v10 = vmul.f32 %v2260_v24, %v6516_v42  ;;  %v2352_v37 = vstv %s6680_s15  ;;  %s5208_s15 = sld [smem:[#allocation4 + $0x2]] }
 0x14a   : > { %10171 = vst [vmem:[#allocation41_spill] sm:$0xff] %v6642_v55 }
 0x14b   : > { %v6589_v5 = vadd.f32 %v6290_v4, %v1742_v19  ;;  %v2460_v4 = vmul.f32 %v6581_v56, %v6542_v12  ;;  %v2576_v19 = vrot.slane %v2563_v54, 2 }
 0x14d   : > { %v2473_v6 = vrot.slane %v2460_v4, 1  ;;  %v6667_v4 = vmul.f32 %v6655_v2, %v6531_v11 }
 0x14e   : > { %2243 = vrot.lane.b32.xlu1 %v2235_v21, %s5736_s23  ;;  %v1732_v61 = vpop.permute.xlu1 %1731  ;;  %v2315_v21 = vstv %s5264_s16  ;;  %s5210_s16 = sld [smem:[#allocation4 + $0x3]] }
 0x14f   : > { %2213 = vrot.lane.b32.xlu0 %v2202_v9, %s5737_s19  ;;  %2211 = vrot.lane.b32.xlu2 %v2201_v30, %s5737_s19  ;;  %v1730_v44 = vpop.permute.xlu0 %1729  ;;  %v1833_v32 = vpop.permute.xlu2 %1832  ;;  %v1741_v60 = vadd.f32 %v1732_v61, %v1715_v23  ;;  %v6626_v15 = vsel %vm826_vm4, %v10022_v38, %v2473_v6  ;;  %v6663_v23 = vsel %vm1961_vm5, %v10020_v22, %v2576_v19  ;;  %v6733_v38 = vstv %s5272_s28  ;;  %s5217_s28 = sld [smem:[#allocation4 + $0x16]] }
 0x150   : > { %v1740_v8 = vadd.f32 %v1730_v44, %v1714_v26  ;;  %10167 = vst [vmem:[#allocation29_spill] sm:$0xff] %v6626_v15  ;;  %v6669_v26 = vstv %s5274_s9  ;;  %v2263_v61 = vmul.f32 %v2260_v24, %v6507_v48  ;;  %v2317_v44 = vmul.f32 %v2315_v21, %v6518_v52  ;;  %s5214_s9 = sld [smem:[#allocation4 + $0x5]] }
 0x151   : > { %v6621_v25 = vadd.f32 %v10166_v41, %v1741_v60  ;;  %10173 = vst [vmem:[#allocation43_spill] sm:$0xff] %v6663_v23  ;;  %v6678_v60 = vmul.f32 %v2315_v21, %v6507_v48  ;;  %v10019_v41 = vrot.slane %v6667_v4, 2  ;;  %v2666_v54 = vmul.f32 %v6669_v26, %v6542_v12 }
 0x152   : > { %v6629_v0 = vadd.f32 %v10168_v46, %v1740_v8  ;;  %10174 = vst [vmem:[#allocation44_spill] sm:$0xff] %v6667_v4  ;;  %v2262_v8 = vmul.f32 %v2260_v24, %v6518_v52 }
 0x153   : > { %10175 = vst [vmem:[#allocation45_spill] sm:$0xff] %v6669_v26 }
 0x154   : > { %10185 = vst [vmem:[#allocation51_spill] sm:$0xff] %v6733_v38 }
 0x156   : > { %2249 = vrot.lane.b32.xlu1 %v2238_v50, %s5736_s23  ;;  %v1796_v47 = vpop.permute.xlu1 %1795  ;;  %v6691_v50 = vmul.f32 %v6669_v26, %v6531_v11 }
 0x157   : > { %2247 = vrot.lane.b32.xlu0 %v2237_v59, %s5736_s23  ;;  %2245 = vrot.lane.b32.xlu2 %v2236_v51, %s5736_s23  ;;  %v1794_v49 = vpop.permute.xlu0 %1793  ;;  %v1806_v57 = vadd.f32 %v1796_v47, %v6522_v31  ;;  %v2629_v31 = vmul.f32 %v6655_v2, %v6542_v12  ;;  %v6696_v59 = vstv %s6649_s29  ;;  %v2316_v47 = vmul.f32 %v2315_v21, %v6516_v42  ;;  %s5231_s29 = sld [smem:[#allocation4 + $0x1d]] }
 0x158   : > { %v6657_v9 = vpop.permute.xlu2 %1896  ;;  %v1805_v45 = vadd.f32 %v1794_v49, %v6526_v53  ;;  %10178 = vst [vmem:[#allocation46_spill] sm:$0xff] %v6691_v50 }
 0x159   : > { %v1843_v30 = vadd.f32 %v1833_v32, %v1806_v57  ;;  %v10176_v32 = vld [vmem:[#allocation30_spill] sm:$0xff]  ;;  %v2642_v46 = vrot.slane %v2629_v31, 2  ;;  %10179 = vst [vmem:[#allocation47_spill] sm:$0xff] %v6696_v59  ;;  %v10023_v57 = vrot.slane %v6691_v50, 2  ;;  %v2327_v31 = vrot.slane %v2317_v44, 1 }
 0x15a   : > { %v2326_v44 = vrot.slane %v2316_v47, 1 }
 0x15b   : > { %v6683_v6 = vadd.f32 %v10176_v32, %v1843_v30  ;;  %v6703_v19 = vsel %vm1961_vm5, %v10019_v41, %v2642_v46  ;;  %v2679_v30 = vrot.slane %v2666_v54, 2  ;;  %v2329_v46 = vrot.slane %v6678_v60, 1  ;;  %v10181_v41 = vld [vmem:[#allocation31_spill] sm:$0xff] }
 0x15c   : > { %10180 = vst [vmem:[#allocation48_spill] sm:$0xff] %v6703_v19  ;;  %v6727_v54 = vstv %s6673_s4  ;;  %v2319_v60 = vmul.f32 %v2315_v21, %v6531_v11  ;;  %s5230_s4 = sld [smem:[#allocation4 + $0xd]] }
 0x15d   : > { %10177 = vst [vmem:[#allocation30_spill] sm:$0xff] %v6683_v6  ;;  %v2497_v47 = vmul.f32 %v6727_v54, %v6542_v12  ;;  %v2330_v18 = vsel %vm826_vm4, %v2327_v31, %v2329_v46 }
 0x15e   : > { %2273 = vrot.lane.b32.xlu1 %v2263_v61, %s5737_s19  ;;  %v1831_v51 = vpop.permute.xlu1 %1830  ;;  %v6710_v61 = vmul.f32 %v6696_v59, %v6531_v11  ;;  %10184 = vst [vmem:[#allocation50_spill] sm:$0xff] %v6727_v54 }
 0x15f   : > { %2271 = vrot.lane.b32.xlu0 %v2262_v8, %s5737_s19  ;;  %2269 = vrot.lane.b32.xlu2 %v2261_v10, %s5737_s19  ;;  %v1800_v53 = vpop.permute.xlu0 %1799  ;;  %v1842_v49 = vadd.f32 %v1831_v51, %v1805_v45  ;;  %v6721_v8 = vsel %vm1961_vm5, %v10023_v57, %v2679_v30  ;;  %v2394_v10 = vmul.f32 %v6696_v59, %v6542_v12  ;;  %v2510_v58 = vrot.slane %v2497_v47, 2 }
 0x160   : > { %10183 = vst [vmem:[#allocation49_spill] sm:$0xff] %v6721_v8  ;;  %v10026_v45 = vrot.slane %v6710_v61, 1  ;;  %v2264_v51 = vmul.f32 %v2260_v24, %v6531_v11  ;;  %v6737_v30 = vmul.f32 %v6727_v54, %v6531_v11  ;;  %v1808_v57 = vadd.f32 %v1800_v53, %v6551_v17 }
 0x161   : > { %v6712_v32 = vpop.permute.xlu2 %1902  ;;  %v6716_v22 = vadd.f32 %v10181_v41, %v1842_v49  ;;  %v2407_v41 = vrot.slane %v2394_v10, 1  ;;  %v2320_v49 = vmul.f32 %v2315_v21, %v6542_v12  ;;  %v2353_v24 = vmul.f32 %v2352_v37, %v6516_v42  ;;  %v621_v10 = vld [vmem:[%s10004_s3 + $0x58] sm:$0xff] }
 0x162   : > { %v2354_v53 = vmul.f32 %v2352_v37, %v6518_v52  ;;  %5199 = vmatmul.msk.f32.gmra.mxu2 %vm626_vm6, %v621_v10  ;;  %v10029_v14 = vrot.slane %v6737_v30, 2  ;;  %v2331_v10 = vrot.slane %v2319_v60, 1 }
 0x163   : > { %10182 = vst [vmem:[#allocation31_spill] sm:$0xff] %v6716_v22  ;;  %v6750_v21 = vsel %vm826_vm4, %v10026_v45, %v2407_v41  ;;  %v2328_v22 = vsel %vm826_vm4, %v2326_v44, %v2327_v31  ;;  %v6762_v41 = vmul.f32 %v6733_v38, %v6531_v11  ;;  %v2363_v44 = vrot.slane %v2353_v24, 1 }
 0x164   : > { %v2333_v45 = vrot.slane %v2320_v49, 1  ;;  %v2332_v24 = vsel %vm826_vm4, %v2329_v46, %v2331_v10 }
 0x165   : > { %10186 = vst [vmem:[#allocation52_spill] sm:$0xff] %v6762_v41 }
 0x166   : > { %2337 = vrot.lane.b32.xlu1 %v2330_v18, %s5736_s23  ;;  %v1837_v17 = vpop.permute.xlu1 %1836  ;;  %v2334_v49 = vsel %vm826_vm4, %v2331_v10, %v2333_v45 }
 0x167   : > { %2335 = vrot.lane.b32.xlu0 %v2328_v22, %s5736_s23  ;;  %2275 = vrot.lane.b32.xlu2 %v2264_v51, %s5737_s19  ;;  %v1835_v42 = vpop.permute.xlu0 %1834  ;;  %v1845_v6 = vadd.f32 %v1837_v17, %v1808_v57  ;;  %v10187_v22 = vld [vmem:[#allocation32_spill] sm:$0xff]  ;;  %v6774_v57 = vsel %vm1961_vm5, %v10029_v14, %v2510_v58  ;;  %v2364_v51 = vrot.slane %v2354_v53, 1  ;;  %v10028_v17 = vrot.slane %v6762_v41, 2 }
 0x168   : > { %v1844_v31 = vadd.f32 %v1835_v42, %v1807_v27  ;;  %v2600_v27 = vmul.f32 %v6733_v38, %v6542_v12  ;;  %v2355_v53 = vmul.f32 %v2352_v37, %v6507_v48  ;;  %v6884_v14 = vstv %s5230_s4  ;;  %s7112_s4 = sld [smem:[#allocation4 + $0x9]] }
 0x169   : > { %v1938_v18 = vpop.permute.xlu2 %1937  ;;  %v6766_v52 = vadd.f32 %v6338_v7, %v1845_v6  ;;  %v2365_v47 = vsel %vm826_vm4, %v2363_v44, %v2364_v51  ;;  %v2356_v7 = vmul.f32 %v2352_v37, %v6531_v11  ;;  %v2357_v6 = vmul.f32 %v2352_v37, %v6542_v12 }
 0x16a   : > { %v6769_v50 = vadd.f32 %v10187_v22, %v1844_v31  ;;  %v2613_v60 = vrot.slane %v2600_v27, 2  ;;  %v2366_v22 = vrot.slane %v2355_v53, 1  ;;  %v1911_v53 = vadd.f32 %v6712_v32, %v6589_v5 }
 0x16b   : > { %v2368_v46 = vrot.slane %v2356_v7, 1  ;;  %v2370_v44 = vrot.slane %v2357_v6, 1 }
 0x16c   : > { %v6791_v58 = vsel %vm1961_vm5, %v10028_v17, %v2613_v60 }
 0x16d   : > { %10188 = vst [vmem:[#allocation32_spill] sm:$0xff] %v6791_v58  ;;  %v2371_v27 = vsel %vm826_vm4, %v2368_v46, %v2370_v44 }
 0x16e   : > { %2372 = vrot.lane.b32.xlu1 %v2365_v47, %s5737_s19  ;;  %v2369_v47 = vsel %vm826_vm4, %v2366_v22, %v2368_v46  ;;  %v6822_v46 = vstv %s5206_s20  ;;  %s6918_s20 = sld [smem:[#allocation9 + $0x2d]] }
 0x16f   : > { %2341 = vrot.lane.b32.xlu0 %v2334_v49, %s5736_s23  ;;  %2339 = vrot.lane.b32.xlu2 %v2332_v24, %s5736_s23  ;;  %v1901_v42 = vpop.permute.xlu1 %1900  ;;  %v2367_v49 = vsel %vm826_vm4, %v2364_v51, %v2366_v22 }
 0x170   : > { %v1899_v12 = vpop.permute.xlu0 %1898  ;;  %v1910_v31 = vadd.f32 %v1901_v42, %v6621_v25  ;;  %v1908_v25 = vadd.f32 %v6657_v9, %v6555_v3 }
 0x171   : > { %v6794_v45 = vpop.permute.xlu2 %2002  ;;  %v1909_v60 = vadd.f32 %v1899_v12, %v6629_v0 }
 0x172   : > { %10189 = vst [vmem:[#allocation53_spill] sm:$0xff] %v6794_v45  ;;  %v1947_v10 = vadd.f32 %v1938_v18, %v1910_v31  ;;  %v6820_v31 = vstv %s5207_s18  ;;  %s6912_s18 = sld [smem:[#allocation4 + $0x6]] }
 0x174   : > { %v6797_v37 = vadd.f32 %v6328_v34, %v1947_v10  ;;  %v6835_v10 = vstv %s5257_s7  ;;  %s6922_s7 = sld [smem:[#allocation4 + $0x7]] }
 0x175   : > { %10194 = vst [vmem:[#allocation58_spill] sm:$0xff] %v6835_v10 }
 0x176   : > { %2378 = vrot.lane.b32.xlu1 %v2371_v27, %s5737_s19 }
 0x177   : > { %2376 = vrot.lane.b32.xlu0 %v2369_v47, %s5737_s19  ;;  %2374 = vrot.lane.b32.xlu2 %v2367_v49, %s5737_s19  ;;  %v6842_v47 = vstv %s5215_s26  ;;  %v6844_v49 = vstv %s5210_s16  ;;  %s6962_s26 = sld [smem:[#allocation4 + $0xf]] }
 0x178   : > { %v1936_v18 = vpop.permute.xlu1 %1935  ;;  %s6965_s16 = sld [smem:[#allocation4 + $0x17]] }
 0x179   : > { %v1934_v34 = vpop.permute.xlu0 %1933  ;;  %v6808_v7 = vpop.permute.xlu2 %2037  ;;  %v1946_v6 = vadd.f32 %v1936_v18, %v1909_v60  ;;  %v6848_v18 = vstv %s5214_s9  ;;  %s6977_s9 = sld [smem:[#allocation4 + $0x1e]] }
 0x17a   : > { %10190 = vst [vmem:[#allocation54_spill] sm:$0xff] %v6808_v7  ;;  %v1945_v24 = vadd.f32 %v1934_v34, %v1908_v25  ;;  %v2166_v34 = vmul.f32 %v6835_v10, %v6531_v11 }
 0x17b   : > { %v6811_v51 = vadd.f32 %v6350_v1, %v1946_v6 }
 0x17c   : > { %v6814_v0 = vadd.f32 %v6347_v13, %v1945_v24 }
 0x17d   : > { %10191 = vst [vmem:[#allocation55_spill] sm:$0xff] %v6811_v51  ;;  %v6898_v51 = vstv %s5208_s15  ;;  %v7038_v56 = vstv %s6962_s26  ;;  %s5235_s15 = sld [smem:[#allocation4 + $0x1f]] }
 0x17e   : > { %10192 = vst [vmem:[#allocation56_spill] sm:$0xff] %v6814_v0  ;;  %s744_s26 = sld [smem:[#allocation4]] }
 0x180   : > { %v6818_v42 = vpop.permute.xlu1 %2000 }
 0x181   : > { %10193 = vst [vmem:[#allocation57_spill] sm:$0xff] %v6818_v42  ;;  %v1940_v3 = vpop.permute.xlu0 %1939  ;;  %v2044_v9 = vpop.permute.xlu2 %2043 }
 0x182   : > { %v1948_v12 = vadd.f32 %v1940_v3, %v1911_v53 }
 0x184   : > { %v6825_v1 = vadd.f32 %v6353_v28, %v1948_v12 }
 0x185   : > { %v6827_v13 = vpop.f32.mrf.mxu1 }
 0x186   : > { %v792_v5 = vmul.f32 %v6820_v31, %v6827_v13  ;;  %v766_v32 = vmul.f32 %v6822_v46, %v6827_v13 }
 0x188   : > { %800 = vrot.lane.b32.xlu2 %v792_v5, %s5736_s23  ;;  %774 = vrot.lane.b32.xlu0 %v766_v32, %s5736_s23  ;;  %v2007_v44 = vpop.permute.xlu1 %2006  ;;  %v6869_v5 = vstv %s5231_s29  ;;  %s7061_s29 = sld [smem:[#allocation4 + $0xe]] }
 0x189   : > { %v6837_v22 = vpop.permute.xlu0 %2004  ;;  %v6839_v28 = vpop.permute.xlu2 %2107  ;;  %v2015_v27 = vadd.f32 %v2007_v44, %v6766_v52  ;;  %v869_v52 = vmul.f32 %v6844_v49, %v6827_v13 }
 0x18a   : > { %v2014_v40 = vadd.f32 %v6837_v22, %v6769_v50 }
 0x18b   : > { %v2052_v60 = vadd.f32 %v2044_v9, %v2015_v27  ;;  %v6846_v25 = vpop.f32.mrf.mxu2 }
 0x18c   : > { %v983_v6 = vmul.f32 %v6842_v47, %v6846_v25  ;;  %v957_v3 = vmul.f32 %v6848_v18, %v6846_v25  ;;  %v6871_v32 = vpop.f32.mrf.mxu3 }
 0x18d   : > { %v6854_v24 = vpop.f32.mrf.mxu1  ;;  %v6858_v53 = vadd.f32 %v2166_v34, %v2052_v60  ;;  %v877_v34 = vrot.slane %v869_v52, 1  ;;  %v1357_v17 = vmul.f32 %v6869_v5, %v6871_v32 }
 0x18e   : > { %993 = vrot.lane.b32.xlu1 %v983_v6, %s5736_s23  ;;  %v793_v9 = vmul.f32 %v6820_v31, %v6854_v24  ;;  %v6867_v12 = vmul.f32 %v6844_v49, %v6854_v24 }
 0x190   : > { %967 = vrot.lane.b32.xlu0 %v957_v3, %s5736_s23  ;;  %802 = vrot.lane.b32.xlu2 %v793_v9, %s5736_s23  ;;  %v6875_v44 = vpop.permute.xlu1 %2041  ;;  %v10030_v6 = vrot.slane %v6867_v12, 1  ;;  %v1331_v9 = vmul.f32 %v6884_v14, %v6871_v32 }
 0x191   : > { %v6877_v27 = vpop.permute.xlu0 %2039  ;;  %v6879_v60 = vpop.permute.xlu2 %2142  ;;  %v2051_v29 = vadd.f32 %v6875_v44, %v2014_v40  ;;  %v7052_v40 = vmul.f32 %v6540_v63, %v6507_v48 }
 0x192   : > { %10195 = vst [vmem:[#allocation59_spill] sm:$0xff] %v6877_v27  ;;  %v879_v3 = vsel %vm826_vm4, %v877_v34, %v10030_v6  ;;  %v818_v34 = vmul.f32 %v6898_v51, %v6827_v13  ;;  %v6910_v6 = vmul.f32 %v6898_v51, %v6854_v24 }
 0x193   : > { %10196 = vst [vmem:[#allocation60_spill] sm:$0xff] %v6879_v60  ;;  %v6892_v52 = vpop.f32.mrf.mxu2 }
 0x194   : > { %10197 = vst [vmem:[#allocation61_spill] sm:$0xff] %v6892_v52  ;;  %v984_v58 = vmul.f32 %v6842_v47, %v6892_v52  ;;  %v10203_v8 = vrot.slane %v6910_v6, 1  ;;  %v6951_v4 = vpop.f32.mrf.mxu3 }
 0x195   : > { %v6929_v45 = vpop.f32.mrf.mxu1  ;;  %10216 = vst [vmem:[#allocation77_spill] sm:$0xff] %v7052_v40 }
 0x196   : > { %1365 = vrot.lane.b32.xlu1 %v1357_v17, %s5736_s23  ;;  %v958_v17 = vmul.f32 %v6848_v18, %v6892_v52 }
 0x198   : > { %1339 = vrot.lane.b32.xlu0 %v1331_v9, %s5736_s23  ;;  %884 = vrot.lane.b32.xlu2 %v879_v3, %s5736_s23  ;;  %v6896_v60 = vpop.permute.xlu1 %2105  ;;  %v767_v3 = vmul.f32 %v6822_v46, %v6854_v24  ;;  %v6916_v9 = vstv %s5211_s5  ;;  %s7245_s5 = sld [smem:[#allocation4 + $0xa]] }
 0x199   : > { %10198 = vst [vmem:[#allocation62_spill] sm:$0xff] %v6896_v60  ;;  %v6900_v0 = vpop.permute.xlu0 %2103  ;;  %v6902_v7 = vpop.permute.xlu2 %2181  ;;  %v843_v60 = vstv %s5209_s17  ;;  %v6940_v42 = vmul.f32 %v6916_v9, %v6854_v24  ;;  %s5225_s17 = sld [smem:[#allocation4 + $0x1a]] }
 0x19a   : > { %10199 = vst [vmem:[#allocation63_spill] sm:$0xff] %v6900_v0  ;;  %v6920_v0 = vstv %s5217_s28  ;;  %v844_v41 = vmul.f32 %v843_v60, %v6827_v13  ;;  %v845_v38 = vmul.f32 %v843_v60, %v6854_v24  ;;  %v846_v55 = vmul.f32 %v843_v60, %v6929_v45  ;;  %s5223_s28 = sld [smem:[#allocation4 + $0x19]] }
 0x19b   : > { %10200 = vst [vmem:[#allocation64_spill] sm:$0xff] %v6902_v7  ;;  %v827_v7 = vrot.slane %v818_v34, 1  ;;  %v6927_v27 = vmul.f32 %v6920_v0, %v6892_v52  ;;  %v902_v34 = vmul.f32 %v6916_v9, %v6827_v13 }
 0x19c   : > { %10201 = vst [vmem:[#allocation65_spill] sm:$0xff] %v6920_v0  ;;  %v852_v23 = vrot.slane %v844_v41, 1  ;;  %v6972_v41 = vstv %s6918_s20  ;;  %v7045_v20 = vpop.f32.mrf.mxu3  ;;  %s7284_s20 = sld [smem:[#allocation7 + $0x1]] }
 0x19d   : > { %10202 = vst [vmem:[#allocation66_spill] sm:$0xff] %v6927_v27  ;;  %v6945_v19 = vsel %vm826_vm4, %v827_v7, %v10203_v8  ;;  %v853_v8 = vrot.slane %v845_v38, 1  ;;  %v910_v62 = vrot.slane %v902_v34, 1  ;;  %v6980_v7 = vstv %s6922_s7  ;;  %s5227_s7 = sld [smem:[#allocation4 + $0x1b]] }
 0x19e   : > { %969 = vrot.lane.b32.xlu1 %v958_v17, %s5736_s23  ;;  %v6949_v17 = vmul.f32 %v6920_v0, %v6846_v25  ;;  %v1332_v0 = vmul.f32 %v6884_v14, %v6951_v4  ;;  %10207 = vst [vmem:[#allocation70_spill] sm:$0xff] %v6972_v41  ;;  %v820_v34 = vmul.f32 %v6898_v51, %v6929_v45 }
 0x19f   : > { %v6975_v38 = vsel %vm826_vm4, %v852_v23, %v853_v8  ;;  %v1358_v23 = vmul.f32 %v6869_v5, %v6951_v4  ;;  %10215 = vst [vmem:[#allocation76_spill] sm:$0xff] %v7045_v20 }
 0x1a0   : > { %10204 = vst [vmem:[#allocation67_spill] sm:$0xff] %v6949_v17  ;;  %995 = vrot.lane.b32.xlu2 %v984_v58, %s5736_s23  ;;  %776 = vrot.lane.b32.xlu0 %v767_v3, %s5736_s23  ;;  %v6955_v26 = vpop.permute.xlu1 %2140  ;;  %v10048_v3 = vrot.slane %v6949_v17, 1  ;;  %v10208_v58 = vrot.slane %v6927_v27, 1  ;;  %v10212_v17 = vrot.slane %v6940_v42, 1 }
 0x1a1   : > { %10205 = vst [vmem:[#allocation68_spill] sm:$0xff] %v6955_v26  ;;  %v2110_v2 = vpop.permute.xlu0 %2109  ;;  %v6957_v43 = vpop.permute.xlu2 %2187  ;;  %v6969_v26 = vstv %s6912_s18  ;;  %s5205_s18 = sld [smem:[#allocation4 + $0x10]] }
 0x1a2   : > { %10206 = vst [vmem:[#allocation69_spill] sm:$0xff] %v6969_v26  ;;  %v6990_v15 = vsel %vm826_vm4, %v10048_v3, %v10208_v58  ;;  %v6997_v36 = vmul.f32 %v6969_v26, %v6892_v52  ;;  %v7001_v16 = vmul.f32 %v6969_v26, %v6846_v25  ;;  %v2118_v27 = vadd.f32 %v2110_v2, %v6825_v1 }
 0x1a3   : > { %10209 = vst [vmem:[#allocation71_spill] sm:$0xff] %v6990_v15  ;;  %v912_v58 = vsel %vm826_vm4, %v910_v62, %v10212_v17  ;;  %v855_v3 = vrot.slane %v846_v55, 1  ;;  %v7013_v15 = vpop.f32.mrf.mxu1  ;;  %v7019_v1 = vmul.f32 %v6980_v7, %v6846_v25  ;;  %v2228_v62 = vmul.f32 %v6972_v41, %v6531_v11 }
 0x1a4   : > { %10210 = vst [vmem:[#allocation72_spill] sm:$0xff] %v6997_v36  ;;  %v830_v17 = vrot.slane %v820_v34, 1  ;;  %v768_v11 = vmul.f32 %v6822_v46, %v6929_v45  ;;  %v2165_v34 = vmul.f32 %v6835_v10, %v6507_v48  ;;  %v7056_v44 = vmul.f32 %v6898_v51, %v7013_v15 }
 0x1a5   : > { %10211 = vst [vmem:[#allocation73_spill] sm:$0xff] %v7001_v16  ;;  %v7026_v26 = vsel %vm826_vm4, %v853_v8, %v855_v3  ;;  %v7059_v10 = vstv %s6977_s9  ;;  %v10221_v63 = vrot.slane %v6997_v36, 1  ;;  %v10222_v51 = vrot.slane %v7001_v16, 1  ;;  %s740_s9 = sld [smem:[#allocation7]] }
 0x1a6   : > { %1341 = vrot.lane.b32.xlu1 %v1332_v0, %s5736_s23  ;;  %v7009_v0 = vmul.f32 %v6980_v7, %v6892_v52  ;;  %10213 = vst [vmem:[#allocation74_spill] sm:$0xff] %v7019_v1  ;;  %v7092_v16 = vmul.f32 %v7038_v56, %v6951_v4 }
 0x1a7   : > { %10217 = vst [vmem:[#allocation78_spill] sm:$0xff] %v7056_v44  ;;  %v7079_v35 = vsel %vm826_vm4, %v10222_v51, %v10221_v63  ;;  %v1409_v63 = vmul.f32 %v7059_v10, %v6951_v4 }
 0x1a8   : > { %1367 = vrot.lane.b32.xlu2 %v1358_v23, %s5736_s23  ;;  %917 = vrot.lane.b32.xlu0 %v912_v58, %s5736_s23  ;;  %v2147_v2 = vpop.permute.xlu1 %2146  ;;  %v7029_v23 = vmul.f32 %v843_v60, %v7013_v15  ;;  %v7048_v58 = vstv %s6965_s16  ;;  %10223 = vst [vmem:[#allocation81_spill] sm:$0xff] %v7079_v35  ;;  %s5226_s16 = sld [smem:[#allocation4 + $0xb]] }
 0x1a9   : > { %v7023_v55 = vpop.permute.xlu0 %2144  ;;  %v2212_v50 = vpop.permute.xlu2 %2211  ;;  %v2155_v22 = vadd.f32 %v2147_v2, %v2118_v27  ;;  %v1070_v27 = vrot.slane %v7009_v0, 1  ;;  %v794_v0 = vmul.f32 %v6820_v31, %v6929_v45 }
 0x1aa   : > { %10214 = vst [vmem:[#allocation75_spill] sm:$0xff] %v7029_v23  ;;  %v10063_v8 = vrot.slane %v7029_v23, 1  ;;  %v2169_v23 = vadd.f32 %v2165_v34, %v2051_v29  ;;  %v1093_v34 = vmul.f32 %v7048_v58, %v6892_v52 }
 0x1ab   : > { %v7041_v2 = vadd.f32 %v2228_v62, %v2155_v22  ;;  %v10219_v22 = vrot.slane %v6910_v6, 1  ;;  %v10069_v6 = vrot.slane %v7056_v44, 1 }
 0x1ac   : > { %v7067_v62 = vsel %vm826_vm4, %v855_v3, %v10063_v8  ;;  %v1433_v3 = vmul.f32 %v7038_v56, %v6871_v32 }
 0x1ad   : > { %10218 = vst [vmem:[#allocation79_spill] sm:$0xff] %v7067_v62  ;;  %v7072_v60 = vsel %vm826_vm4, %v10219_v22, %v830_v17  ;;  %v10224_v22 = vrot.slane %v7019_v1, 1  ;;  %v10073_v1 = vrot.slane %v7092_v16, 1 }
 0x1ae   : > { %10220 = vst [vmem:[#allocation80_spill] sm:$0xff] %v7072_v60  ;;  %778 = vrot.lane.b32.xlu1 %v768_v11, %s5736_s23  ;;  %v7098_v11 = vmul.f32 %v7059_v10, %v7045_v20  ;;  %v1441_v52 = vrot.slane %v1433_v3, 1 }
 0x1af   : > { %v1071_v8 = vsel %vm826_vm4, %v10224_v22, %v1070_v27  ;;  %v7108_v22 = vsel %vm826_vm4, %v830_v17, %v10069_v6  ;;  %v1103_v17 = vrot.slane %v1093_v34, 1  ;;  %v7129_v6 = vstv %s7061_s29  ;;  %s5213_s29 = sld [smem:[#allocation4 + $0x14]] }
 0x1b0   : > { %1076 = vrot.lane.b32.xlu2 %v1071_v8, %s5736_s23  ;;  %804 = vrot.lane.b32.xlu0 %v794_v0, %s5736_s23  ;;  %v2186_v29 = vpop.permute.xlu1 %2185  ;;  %v1417_v8 = vrot.slane %v1409_v63, 1  ;;  %v10070_v0 = vrot.slane %v7098_v11, 1  ;;  %v7141_v34 = vmul.f32 %v7129_v6, %v7045_v20 }
 0x1b1   : > { %v7110_v35 = vpop.permute.xlu0 %2183  ;;  %v2195_v36 = vadd.f32 %v2186_v29, %v2169_v23  ;;  %v7115_v62 = vpop.permute.xlu2 %2245  ;;  %v10228_v23 = vrot.slane %v6547_v39, 1  ;;  %v10229_v29 = vrot.slane %v7052_v40, 1 }
 0x1b2   : > { %10225 = vst [vmem:[#allocation82_spill] sm:$0xff] %v7110_v35  ;;  %v7121_v51 = vsel %vm826_vm4, %v1417_v8, %v10070_v0  ;;  %v1443_v0 = vsel %vm826_vm4, %v1441_v52, %v10073_v1  ;;  %v7165_v52 = vstv %s7112_s4  ;;  %v10236_v1 = vrot.slane %v6940_v42, 1  ;;  %s5221_s4 = sld [smem:[#allocation4 + $0x18]] }
 0x1b3   : > { %10226 = vst [vmem:[#allocation83_spill] sm:$0xff] %v7115_v62  ;;  %v2221_v60 = vadd.f32 %v2212_v50, %v2195_v36  ;;  %v2303_v63 = vsel %vm826_vm4, %v10229_v29, %v10228_v23  ;;  %v1408_v36 = vmul.f32 %v7059_v10, %v6871_v32  ;;  %v7135_v50 = vmul.f32 %v6916_v9, %v6929_v45 }
 0x1b4   : > { %10227 = vst [vmem:[#allocation84_spill] sm:$0xff] %v7121_v51  ;;  %v1384_v23 = vmul.f32 %v7129_v6, %v6951_v4  ;;  %v1383_v29 = vmul.f32 %v7129_v6, %v6871_v32  ;;  %v7161_v51 = vpop.f32.mrf.mxu2 }
 0x1b5   : > { %v7137_v3 = vadd.f32 %v2303_v63, %v2221_v60  ;;  %v1416_v39 = vrot.slane %v1408_v36, 1  ;;  %v10074_v60 = vrot.slane %v7141_v34, 1  ;;  %v10076_v44 = vrot.slane %v7135_v50, 1 }
 0x1b6   : > { %1111 = vrot.lane.b32.xlu1 %v1103_v17, %s5736_s23  ;;  %v1392_v62 = vrot.slane %v1384_v23, 1  ;;  %v1391_v40 = vrot.slane %v1383_v29, 1  ;;  %v1143_v23 = vmul.f32 %v7165_v52, %v7161_v51  ;;  %v7183_v29 = vstv %s5235_s15  ;;  %s5212_s15 = sld [smem:[#allocation4 + $0x4]] }
 0x1b7   : > { %v7157_v36 = vsel %vm826_vm4, %v1416_v39, %v1417_v8 }
 0x1b8   : > { %1448 = vrot.lane.b32.xlu2 %v1443_v0, %s5736_s23  ;;  %1078 = vrot.lane.b32.xlu0 %v1070_v27, %s5736_s23  ;;  %v7154_v63 = vpop.permute.xlu1 %2209  ;;  %10231 = vst [vmem:[#allocation86_spill] sm:$0xff] %v7157_v36  ;;  %v7169_v0 = vmul.f32 %v7048_v58, %v6846_v25  ;;  %v7174_v27 = vsel %vm826_vm4, %v1392_v62, %v10074_v60 }
 0x1b9   : > { %10230 = vst [vmem:[#allocation85_spill] sm:$0xff] %v7154_v63  ;;  %v7159_v35 = vpop.permute.xlu0 %2207  ;;  %v7177_v8 = vsel %vm826_vm4, %v1391_v40, %v1392_v62  ;;  %v7179_v39 = vpop.permute.xlu2 %2269  ;;  %v1466_v62 = vmul.f32 %v7183_v29, %v6871_v32  ;;  %v1467_v60 = vmul.f32 %v7183_v29, %v6951_v4 }
 0x1ba   : > { %10232 = vst [vmem:[#allocation87_spill] sm:$0xff] %v7159_v35  ;;  %v914_v35 = vsel %vm826_vm4, %v10236_v1, %v10076_v44  ;;  %v10075_v63 = vrot.slane %v7169_v0, 1 }
 0x1bb   : > { %10233 = vst [vmem:[#allocation88_spill] sm:$0xff] %v7174_v27  ;;  %v1475_v44 = vrot.slane %v1467_v60, 1 }
 0x1bc   : > { %10234 = vst [vmem:[#allocation89_spill] sm:$0xff] %v7177_v8  ;;  %v1104_v40 = vsel %vm826_vm4, %v10075_v63, %v1103_v17  ;;  %v769_v17 = vmul.f32 %v6822_v46, %v7013_v15  ;;  %v1474_v63 = vrot.slane %v1466_v62, 1  ;;  %v1333_v8 = vmul.f32 %v6884_v14, %v7045_v20 }
 0x1bd   : > { %10235 = vst [vmem:[#allocation90_spill] sm:$0xff] %v7179_v39  ;;  %v2196_v39 = vadd.f32 %v6957_v43, %v6858_v53  ;;  %v795_v62 = vmul.f32 %v6820_v31, %v7013_v15  ;;  %v7243_v31 = vmul.f32 %v6916_v9, %v7013_v15 }
 0x1be   : > { %919 = vrot.lane.b32.xlu1 %v914_v35, %s5736_s23  ;;  %v1476_v53 = vsel %vm826_vm4, %v1474_v63, %v1475_v44 }
 0x1c0   : > { %1151 = vrot.lane.b32.xlu2 %v1143_v23, %s5736_s23  ;;  %1109 = vrot.lane.b32.xlu0 %v1104_v40, %s5736_s23  ;;  %v7203_v42 = vpop.permute.xlu1 %2243  ;;  %v7216_v23 = vmul.f32 %v6844_v49, %v6929_v45 }
 0x1c1   : > { %10237 = vst [vmem:[#allocation91_spill] sm:$0xff] %v7203_v42  ;;  %v2214_v35 = vpop.permute.xlu0 %2213  ;;  %v2276_v43 = vpop.permute.xlu2 %2275 }
 0x1c2   : > { %v2222_v1 = vadd.f32 %v2214_v35, %v2196_v39  ;;  %v880_v63 = vrot.slane %v7216_v23, 1  ;;  %v2117_v35 = vadd.f32 %v6839_v28, %v6797_v37  ;;  %v7258_v23 = vstv %s5223_s28  ;;  %s5220_s28 = sld [smem:[#allocation4 + $0x8]] }
 0x1c4   : > { %v7210_v36 = vadd.f32 %v6578_v33, %v2222_v1  ;;  %v7223_v33 = vmul.f32 %v6844_v49, %v7013_v15  ;;  %v7236_v1 = vpop.f32.mrf.mxu3  ;;  %v10239_v49 = vrot.slane %v6867_v12, 1  ;;  %v2154_v37 = vadd.f32 %v7023_v55, %v2117_v35 }
 0x1c5   : > { %10238 = vst [vmem:[#allocation92_spill] sm:$0xff] %v7236_v1  ;;  %v7264_v55 = vmul.f32 %v7129_v6, %v7236_v1 }
 0x1c6   : > { %780 = vrot.lane.b32.xlu1 %v769_v17, %s5736_s23  ;;  %v881_v17 = vsel %vm826_vm4, %v10239_v49, %v880_v63  ;;  %v7278_v49 = vmul.f32 %v7059_v10, %v7236_v1  ;;  %v10247_v10 = vrot.slane %v7135_v50, 1 }
 0x1c7   : > { %10242 = vst [vmem:[#allocation95_spill] sm:$0xff] %v7264_v55  ;;  %v10077_v35 = vrot.slane %v7264_v55, 1 }
 0x1c8   : > { %1343 = vrot.lane.b32.xlu2 %v1333_v8, %s5736_s23  ;;  %1481 = vrot.lane.b32.xlu0 %v1476_v53, %s5736_s23  ;;  %v2250_v46 = vpop.permute.xlu1 %2249  ;;  %v7230_v8 = vmul.f32 %v7183_v29, %v7045_v20  ;;  %10244 = vst [vmem:[#allocation97_spill] sm:$0xff] %v7278_v49 }
 0x1c9   : > { %v2248_v60 = vpop.permute.xlu0 %2247  ;;  %v2258_v39 = vadd.f32 %v2250_v46, %v7041_v2  ;;  %v882_v2 = vrot.slane %v7223_v33, 1  ;;  %v7251_v28 = vpop.permute.xlu2 %2339  ;;  %v10079_v46 = vrot.slane %v7243_v31, 1 }
 0x1ca   : > { %v10078_v9 = vrot.slane %v7230_v8, 1 }
 0x1cb   : > { %v2284_v40 = vadd.f32 %v2276_v43, %v2258_v39  ;;  %v7269_v39 = vmul.f32 %v6696_v59, %v6507_v48  ;;  %v10252_v59 = vrot.slane %v7278_v49, 1 }
 0x1cc   : > { %v1478_v6 = vsel %vm826_vm4, %v1475_v44, %v10078_v9 }
 0x1cd   : > { %v7248_v43 = vadd.f32 %v6750_v21, %v2284_v40  ;;  %v2227_v21 = vmul.f32 %v6972_v41, %v6507_v48  ;;  %10243 = vst [vmem:[#allocation96_spill] sm:$0xff] %v7269_v39  ;;  %v1169_v40 = vmul.f32 %v7258_v23, %v7161_v51  ;;  %v10245_v48 = vrot.slane %v7141_v34, 1 }
 0x1ce   : > { %806 = vrot.lane.b32.xlu1 %v795_v62, %s5736_s23  ;;  %v7273_v62 = vpop.f32.mrf.mxu2  ;;  %v10084_v44 = vrot.slane %v7269_v39, 1  ;;  %v7306_v34 = vstv %s5225_s17  ;;  %v10253_v41 = vrot.slane %v7098_v11, 1  ;;  %v1359_v39 = vmul.f32 %v6869_v5, %v7045_v20  ;;  %s5228_s17 = sld [smem:[#allocation4 + $0xc]] }
 0x1cf   : > { %10240 = vst [vmem:[#allocation93_spill] sm:$0xff] %v7248_v43  ;;  %v2231_v33 = vadd.f32 %v2227_v21, %v2154_v37  ;;  %v7291_v37 = vsel %vm826_vm4, %v10245_v48, %v10077_v35  ;;  %v916_v21 = vsel %vm826_vm4, %v10247_v10, %v10079_v46  ;;  %v1221_v50 = vmul.f32 %v7306_v34, %v7273_v62  ;;  %v7319_v10 = vpop.f32.mrf.mxu1 }
 0x1d0   : > { %886 = vrot.lane.b32.xlu0 %v881_v17, %s5736_s23  ;;  %890 = vrot.lane.b32.xlu2 %v882_v2, %s5736_s23  ;;  %v2274_v12 = vpop.permute.xlu1 %2273  ;;  %10246 = vst [vmem:[#allocation98_spill] sm:$0xff] %v7291_v37  ;;  %v10251_v48 = vrot.slane %v6710_v61, 1  ;;  %v981_v42 = vmul.f32 %v6842_v47, %v7319_v10  ;;  %v883_v61 = vsel %vm826_vm4, %v880_v63, %v882_v2  ;;  %v7383_v43 = vstv %s5227_s7  ;;  %s5279_s7 = sld [smem:[#allocation9 + $0x37]] }
 0x1d1   : > { %v7255_v53 = vpop.permute.xlu0 %2271  ;;  %v2257_v17 = vadd.f32 %v2248_v60, %v2231_v33  ;;  %v1229_v9 = vrot.slane %v1221_v50, 1  ;;  %v7337_v50 = vsel %vm826_vm4, %v10253_v41, %v10252_v59  ;;  %v7357_v59 = vmul.f32 %v7038_v56, %v7045_v20 }
 0x1d2   : > { %10241 = vst [vmem:[#allocation94_spill] sm:$0xff] %v7255_v53  ;;  %v2406_v53 = vsel %vm826_vm4, %v10084_v44, %v10251_v48 }
 0x1d3   : > { %v2283_v60 = vadd.f32 %v2274_v12, %v2257_v17  ;;  %v1220_v12 = vmul.f32 %v7306_v34, %v7161_v51  ;;  %v7315_v17 = vpop.permute.xlu2 %2374  ;;  %10254 = vst [vmem:[#allocation102_spill] sm:$0xff] %v7337_v50  ;;  %v10257_v50 = vrot.slane %v7092_v16, 1  ;;  %v1360_v16 = vmul.f32 %v6869_v5, %v7236_v1 }
 0x1d4   : > { %10250 = vst [vmem:[#allocation101_spill] sm:$0xff] %v7315_v17  ;;  %v7351_v17 = vstv %s7284_s20  ;;  %s5276_s20 = sld [smem:[#allocation9 + $0x13]] }
 0x1d5   : > { %v1228_v46 = vrot.slane %v1220_v12, 1  ;;  %v7339_v12 = vadd.f32 %v2406_v53, %v2283_v60 }
 0x1d6   : > { %1483 = vrot.lane.b32.xlu1 %v1478_v6, %s5736_s23  ;;  %v7304_v6 = vstv %s7245_s5  ;;  %v7353_v11 = vpop.f32.mrf.mxu2  ;;  %s5229_s5 = sld [smem:[#allocation4 + $0x1c]] }
 0x1d7   : > { %10255 = vst [vmem:[#allocation103_spill] sm:$0xff] %v7339_v12  ;;  %v7345_v44 = vsel %vm826_vm4, %v1228_v46, %v1229_v9  ;;  %v7366_v46 = vmul.f32 %v7304_v6, %v7353_v11 }
 0x1d8   : > { %1177 = vrot.lane.b32.xlu0 %v1169_v40, %s5736_s23  ;;  %921 = vrot.lane.b32.xlu2 %v916_v21, %s5736_s23  ;;  %v7301_v33 = vpop.permute.xlu1 %2337  ;;  %v7317_v40 = vstv %s5205_s18  ;;  %v1196_v21 = vmul.f32 %v7304_v6, %v7273_v62  ;;  %s5277_s18 = sld [smem:[#allocation9 + $0x14]] }
 0x1d9   : > { %10248 = vst [vmem:[#allocation99_spill] sm:$0xff] %v7301_v33  ;;  %v7309_v35 = vpop.permute.xlu0 %2335  ;;  %v756_v48 = vmul.f32 %v7317_v40, %v6827_v13  ;;  %v1170_v33 = vmul.f32 %v7258_v23, %v7273_v62 }
 0x1da   : > { %10249 = vst [vmem:[#allocation100_spill] sm:$0xff] %v7309_v35  ;;  %v1195_v35 = vmul.f32 %v7304_v6, %v7161_v51  ;;  %v1204_v41 = vrot.slane %v1196_v21, 1  ;;  %v10088_v21 = vrot.slane %v7357_v59, 1 }
 0x1db   : > { %v760_v53 = vadd.f32 %v756_v48, %v7351_v17  ;;  %v10086_v48 = vrot.slane %v7366_v46, 1 }
 0x1dc   : > { %v1203_v63 = vrot.slane %v1195_v35, 1  ;;  %v7372_v35 = vmul.f32 %v7038_v56, %v7236_v1  ;;  %v757_v56 = vmul.f32 %v7317_v40, %v6854_v24 }
 0x1de   : > { %888 = vrot.lane.b32.xlu1 %v883_v61, %s5736_s23 }
 0x1e0   : > { %1369 = vrot.lane.b32.xlu0 %v1359_v39, %s5736_s23  ;;  %989 = vrot.lane.b32.xlu2 %v981_v42, %s5736_s23  ;;  %v7361_v2 = vpop.permute.xlu1 %2372  ;;  %v7376_v42 = vmul.f32 %v7306_v34, %v7353_v11 }
 0x1e1   : > { %10256 = vst [vmem:[#allocation104_spill] sm:$0xff] %v7361_v2  ;;  %v2342_v60 = vpop.permute.xlu0 %2341  ;;  %v7381_v2 = vsel %vm826_vm4, %v1203_v63, %v1204_v41  ;;  %v10090_v63 = vrot.slane %v7372_v35, 1 }
 0x1e2   : > { %v801_v61 = vpop.permute.xlu2 %800  ;;  %v10087_v12 = vrot.slane %v7376_v42, 1  ;;  %v2350_v20 = vadd.f32 %v2342_v60, %v7210_v36  ;;  %v955_v36 = vmul.f32 %v6848_v18, %v7319_v10 }
 0x1e3   : > { %v812_v39 = vadd.f32 %v801_v61, %v760_v53  ;;  %v7394_v53 = vsel %vm826_vm4, %v1204_v41, %v10086_v48  ;;  %v7412_v41 = vmul.f32 %v7383_v43, %v7273_v62 }
 0x1e4   : > { %v7401_v61 = vsel %vm826_vm4, %v1229_v9, %v10087_v12  ;;  %v761_v9 = vadd.f32 %v757_v56, %v7351_v17  ;;  %v2349_v56 = vadd.f32 %v7251_v28, %v7137_v3  ;;  %v10259_v3 = vrot.slane %v7243_v31, 1 }
 0x1e5   : > { %v7389_v37 = vadd.f32 %v6975_v38, %v812_v39  ;;  %v1445_v38 = vsel %vm826_vm4, %v10257_v50, %v10088_v21  ;;  %v1278_v39 = vmul.f32 %v7383_v43, %v7161_v51  ;;  %v7421_v50 = vld [vmem:[#allocation2 + $0x38] sm:$0xff]  ;;  %v10098_v21 = vrot.slane %v7412_v41, 1 }
 0x1e6   : > { %1179 = vrot.lane.b32.xlu1 %v1170_v33, %s5736_s23  ;;  %v7425_v48 = vmul.f32 %v7421_v50, %v6727_v54  ;;  %v7449_v28 = vstv %s744_s26  ;;  %s5295_s26 = sld [smem:[#allocation9 + $0x1d]] }
 0x1e8   : > { %1450 = vrot.lane.b32.xlu0 %v1445_v38, %s5736_s23  ;;  %1454 = vrot.lane.b32.xlu2 %v10090_v63, %s5736_s23  ;;  %10258 = vst [vmem:[#allocation105_spill] sm:$0xff] %v7425_v48  ;;  %v1286_v38 = vrot.slane %v1278_v39, 1  ;;  %v2379_v63 = vpop.permute.xlu1 %2378  ;;  %v10096_v54 = vrot.slane %v7425_v48, 2 }
 0x1e9   : > { %v2377_v49 = vpop.permute.xlu0 %2376 }
 0x1ea   : > { %v803_v33 = vpop.permute.xlu2 %802  ;;  %v2386_v55 = vadd.f32 %v2377_v49, %v2349_v56  ;;  %v1288_v39 = vsel %vm826_vm4, %v1286_v38, %v10098_v21  ;;  %v10260_v49 = vrot.slane %v6737_v30, 2  ;;  %v1144_v30 = vmul.f32 %v7165_v52, %v7273_v62 }
 0x1eb   : > { %v813_v12 = vadd.f32 %v803_v33, %v761_v9  ;;  %v2387_v9 = vadd.f32 %v2379_v63, %v2350_v20  ;;  %v1469_v33 = vmul.f32 %v7183_v29, %v7236_v1  ;;  %v7451_v20 = vstv %s5226_s16  ;;  %s5280_s16 = sld [smem:[#allocation9 + $0x38]] }
 0x1ec   : > { %v2509_v29 = vsel %vm1961_vm5, %v10096_v54, %v10260_v49  ;;  %v746_v63 = vmul.f32 %v7449_v28, %v6827_v13  ;;  %v1246_v38 = vmul.f32 %v7451_v20, %v7273_v62  ;;  %v7472_v56 = vstv %s740_s9  ;;  %s5297_s9 = sld [smem:[#allocation9 + $0x40]] }
 0x1ed   : > { %v7432_v5 = vadd.f32 %v7026_v26, %v813_v12  ;;  %v1479_v12 = vrot.slane %v1469_v33, 1  ;;  %v7459_v31 = vadd.f32 %v6774_v57, %v2387_v9  ;;  %v7461_v60 = vadd.f32 %v2509_v29, %v2386_v55 }
 0x1ee   : > { %1371 = vrot.lane.b32.xlu1 %v1360_v16, %s5736_s23  ;;  %v1245_v16 = vmul.f32 %v7451_v20, %v7161_v51  ;;  %v10263_v57 = vrot.slane %v7230_v8, 1  ;;  %v750_v13 = vadd.f32 %v746_v63, %v7472_v56  ;;  %v1171_v49 = vmul.f32 %v7258_v23, %v7353_v11 }
 0x1ef   : > { %10261 = vst [vmem:[#allocation106_spill] sm:$0xff] %v7459_v31  ;;  %v10270_v21 = vrot.slane %v7366_v46, 1  ;;  %v10272_v31 = vld [vmem:[#allocation74_spill] sm:$0xff]  ;;  %v10275_v46 = vrot.slane %v7412_v41, 1  ;;  %v748_v41 = vmul.f32 %v7449_v28, %v6929_v45 }
 0x1f0   : > { %923 = vrot.lane.b32.xlu0 %v10259_v3, %s5736_s23  ;;  %1293 = vrot.lane.b32.xlu2 %v1288_v39, %s5736_s23  ;;  %10262 = vst [vmem:[#allocation107_spill] sm:$0xff] %v7461_v60  ;;  %v1480_v55 = vsel %vm826_vm4, %v10263_v57, %v1479_v12  ;;  %v1253_v9 = vrot.slane %v1245_v16, 1  ;;  %v1254_v39 = vrot.slane %v1246_v38, 1  ;;  %v7499_v57 = vpop.f32.mrf.mxu1 }
 0x1f2   : > { %v7445_v26 = vpop.permute.xlu2 %884  ;;  %v1255_v8 = vsel %vm826_vm4, %v1253_v9, %v1254_v39  ;;  %v7511_v9 = vmul.f32 %v7451_v20, %v7353_v11 }
 0x1f6   : > { %963 = vrot.lane.b32.xlu1 %v955_v36, %s5736_s23 }
 0x1f8   : > { %1153 = vrot.lane.b32.xlu0 %v1144_v30, %s5736_s23  ;;  %1485 = vrot.lane.b32.xlu2 %v1480_v55, %s5736_s23  ;;  %v1334_v30 = vmul.f32 %v6884_v14, %v7236_v1  ;;  %v10264_v55 = vrot.slane %v7372_v35, 1 }
 0x1fa   : > { %v775_v33 = vpop.permute.xlu0 %774  ;;  %v7480_v3 = vpop.permute.xlu2 %995 }
 0x1fb   : > { %v786_v36 = vadd.f32 %v775_v33, %v750_v13  ;;  %v10265_v13 = vrot.slane %v7357_v59, 1  ;;  %v1145_v59 = vmul.f32 %v7165_v52, %v7353_v11 }
 0x1fd   : > { %v7485_v29 = vadd.f32 %v6945_v19, %v786_v36  ;;  %v956_v19 = vmul.f32 %v6848_v18, %v7499_v57  ;;  %v1447_v14 = vsel %vm826_vm4, %v10265_v13, %v10264_v55  ;;  %v7517_v36 = vpop.f32.mrf.mxu2 }
 0x1fe   : > { %1260 = vrot.lane.b32.xlu1 %v1255_v8, %s5736_s23  ;;  %v982_v8 = vmul.f32 %v6842_v47, %v7499_v57  ;;  %v7538_v55 = vmul.f32 %v7306_v34, %v7517_v36 }
 0x200   : > { %v7491_v63 = vpop.permute.xlu1 %993  ;;  %1345 = vrot.lane.b32.xlu0 %v1334_v30, %s5736_s23  ;;  %1181 = vrot.lane.b32.xlu2 %v1171_v49, %s5736_s23  ;;  %v10097_v49 = vrot.slane %v7511_v9, 1  ;;  %v7530_v30 = vmul.f32 %v7304_v6, %v7517_v36  ;;  %10268 = vst [vmem:[#allocation110_spill] sm:$0xff] %v7538_v55  ;;  %v7547_v6 = vmul.f32 %v7383_v43, %v7353_v11 }
 0x202   : > { %v7495_v16 = vpop.permute.xlu0 %967  ;;  %v7497_v38 = vpop.permute.xlu2 %1367  ;;  %v10101_v13 = vrot.slane %v7530_v30, 1  ;;  %v1257_v47 = vsel %vm826_vm4, %v1254_v39, %v10097_v49  ;;  %v10269_v39 = vrot.slane %v7376_v42, 1 }
 0x204   : > { %v7569_v60 = vsel %vm826_vm4, %v10270_v21, %v10101_v13 }
 0x206   : > { %1452 = vrot.lane.b32.xlu1 %v1447_v14, %s5736_s23  ;;  %v10100_v14 = vrot.slane %v7538_v55, 1  ;;  %v10285_v55 = vld [vmem:[#allocation71_spill] sm:$0xff] }
 0x208   : > { %v7513_v33 = vpop.permute.xlu1 %1365  ;;  %1487 = vrot.lane.b32.xlu0 %v1479_v12, %s5736_s23  ;;  %965 = vrot.lane.b32.xlu2 %v956_v19, %s5736_s23  ;;  %v747_v12 = vmul.f32 %v7449_v28, %v6854_v24  ;;  %v1058_v19 = vmul.f32 %v6980_v7, %v7499_v57  ;;  %v1091_v24 = vmul.f32 %v7048_v58, %v7499_v57 }
 0x209   : > { %10266 = vst [vmem:[#allocation108_spill] sm:$0xff] %v7513_v33  ;;  %v7562_v49 = vsel %vm826_vm4, %v10269_v39, %v10100_v14  ;;  %v1090_v39 = vmul.f32 %v7048_v58, %v7319_v10  ;;  %v10274_v14 = vld [vmem:[#allocation80_spill] sm:$0xff] }
 0x20a   : > { %v7519_v18 = vpop.permute.xlu0 %1339  ;;  %v7521_v35 = vpop.permute.xlu2 %1076  ;;  %v751_v34 = vadd.f32 %v747_v12, %v7472_v56  ;;  %v1289_v12 = vrot.slane %v7547_v6, 1 }
 0x20b   : > { %10267 = vst [vmem:[#allocation109_spill] sm:$0xff] %v7519_v18  ;;  %v10273_v18 = vrot.slane %v10272_v31, 1  ;;  %v1057_v31 = vmul.f32 %v6980_v7, %v7319_v10  ;;  %v1098_v58 = vrot.slane %v1090_v39, 1 }
 0x20c   : > { %v1290_v21 = vsel %vm826_vm4, %v10275_v46, %v1289_v12 }
 0x20e   : > { %1155 = vrot.lane.b32.xlu1 %v1145_v59, %s5736_s23  ;;  %v1066_v59 = vrot.slane %v1058_v19, 1  ;;  %v1099_v19 = vrot.slane %v1091_v24, 1 }
 0x210   : > { %v7552_v54 = vpop.permute.xlu1 %969  ;;  %991 = vrot.lane.b32.xlu0 %v982_v8, %s5736_s23  ;;  %1262 = vrot.lane.b32.xlu2 %v1257_v47, %s5736_s23  ;;  %v1069_v42 = vsel %vm826_vm4, %v1066_v59, %v10273_v18  ;;  %v1100_v7 = vsel %vm826_vm4, %v1098_v58, %v1099_v19 }
 0x212   : > { %v7571_v8 = vpop.permute.xlu2 %1448  ;;  %v777_v47 = vpop.permute.xlu0 %776 }
 0x213   : > { %10271 = vst [vmem:[#allocation111_spill] sm:$0xff] %v7571_v8  ;;  %v787_v48 = vadd.f32 %v777_v47, %v751_v34  ;;  %v10276_v34 = vrot.slane %v7169_v0, 1  ;;  %v1065_v0 = vrot.slane %v1057_v31, 1  ;;  %v758_v47 = vmul.f32 %v7317_v40, %v6929_v45 }
 0x215   : > { %v7580_v33 = vadd.f32 %v10274_v14, %v787_v48  ;;  %v1102_v6 = vsel %vm826_vm4, %v1099_v19, %v10276_v34  ;;  %v1146_v14 = vmul.f32 %v7165_v52, %v7517_v36  ;;  %v1067_v39 = vsel %vm826_vm4, %v1065_v0, %v1066_v59 }
 0x216   : > { %1074 = vrot.lane.b32.xlu1 %v1069_v42, %s5736_s23  ;;  %v752_v42 = vadd.f32 %v748_v41, %v7472_v56  ;;  %v762_v19 = vadd.f32 %v758_v47, %v7351_v17  ;;  %v10278_v41 = vld [vmem:[#allocation79_spill] sm:$0xff] }
 0x217   : > { %v10279_v47 = vld [vmem:[#allocation27_spill] sm:$0xff] }
 0x218   : > { %v7591_v18 = vpop.permute.xlu1 %1341  ;;  %1295 = vrot.lane.b32.xlu0 %v1290_v21, %s5736_s23  ;;  %1107 = vrot.lane.b32.xlu2 %v1102_v6, %s5736_s23  ;;  %v1248_v21 = vmul.f32 %v7451_v20, %v7517_v36  ;;  %v1281_v6 = vmul.f32 %v7383_v43, %v7517_v36  ;;  %v1172_v20 = vmul.f32 %v7258_v23, %v7517_v36 }
 0x21a   : > { %v7595_v48 = vpop.permute.xlu2 %1151  ;;  %v7597_v24 = vpop.permute.xlu0 %917  ;;  %v1258_v58 = vrot.slane %v1248_v21, 1 }
 0x21e   : > { %1105 = vrot.lane.b32.xlu1 %v1100_v7, %s5736_s23  ;;  %v7625_v7 = vld [vmem:[#allocation2 + $0x28] sm:$0xff] }
 0x220   : > { %v779_v46 = vpop.permute.xlu1 %778  ;;  %1072 = vrot.lane.b32.xlu0 %v1067_v39, %s5736_s23  ;;  %1157 = vrot.lane.b32.xlu2 %v1146_v14, %s5736_s23  ;;  %v1291_v14 = vrot.slane %v1281_v6, 1  ;;  %v10280_v6 = vrot.slane %v7511_v9, 1 }
 0x221   : > { %v788_v52 = vadd.f32 %v779_v46, %v752_v42  ;;  %v2419_v42 = vmul.f32 %v7625_v7, %v10279_v47 }
 0x222   : > { %v7614_v34 = vpop.permute.xlu2 %1343  ;;  %v805_v45 = vpop.permute.xlu0 %804 }
 0x223   : > { %10277 = vst [vmem:[#allocation74_spill] sm:$0xff] %v7614_v34  ;;  %v814_v31 = vadd.f32 %v805_v45, %v762_v19  ;;  %v7619_v59 = vadd.f32 %v7108_v22, %v788_v52  ;;  %v7633_v22 = vld [vmem:[#allocation2 + $0x30] sm:$0xff]  ;;  %v2429_v21 = vrot.slane %v2419_v42, 1  ;;  %v1292_v52 = vsel %vm826_vm4, %v1289_v12, %v1291_v14 }
 0x224   : > { %v2420_v43 = vmul.f32 %v7633_v22, %v10279_v47  ;;  %v2421_v45 = vmul.f32 %v7421_v50, %v10279_v47  ;;  %v7651_v42 = vstv %s5213_s29  ;;  %s5294_s29 = sld [smem:[#allocation9 + $0x1c]] }
 0x225   : > { %v865_v0 = vadd.f32 %v10278_v41, %v814_v31  ;;  %v1259_v31 = vsel %vm826_vm4, %v10280_v6, %v1258_v58  ;;  %v947_v47 = vmul.f32 %v7651_v42, %v6846_v25 }
 0x226   : > { %1266 = vrot.lane.b32.xlu1 %v1258_v58, %s5736_s23  ;;  %v2430_v19 = vrot.slane %v2420_v43, 1  ;;  %v2432_v12 = vrot.slane %v2421_v45, 1  ;;  %v749_v58 = vmul.f32 %v7449_v28, %v7013_v15 }
 0x228   : > { %v7629_v39 = vpop.permute.xlu1 %1111  ;;  %1183 = vrot.lane.b32.xlu0 %v1172_v20, %s5736_s23  ;;  %1299 = vrot.lane.b32.xlu2 %v1291_v14, %s5736_s23  ;;  %v2431_v41 = vsel %vm826_vm4, %v2429_v21, %v2430_v19  ;;  %v2433_v28 = vsel %vm826_vm4, %v2430_v19, %v2432_v12  ;;  %v10287_v19 = vld [vmem:[#allocation78_spill] sm:$0xff] }
 0x22a   : > { %v7637_v46 = vpop.permute.xlu0 %1078  ;;  %v891_v23 = vpop.permute.xlu2 %890 }
 0x22e   : > { %1297 = vrot.lane.b32.xlu1 %v1292_v52, %s5736_s23  ;;  %v10281_v52 = vld [vmem:[#allocation34_spill] sm:$0xff] }
 0x22f   : > { %v10282_v6 = vrot.slane %v10281_v52, 1 }
 0x230   : > { %v7647_v20 = vpop.permute.xlu1 %919  ;;  %1264 = vrot.lane.b32.xlu0 %v1259_v31, %s5736_s23  ;;  %2438 = vrot.lane.b32.xlu2 %v2431_v41, %s5736_s23  ;;  %v10283_v41 = vld [vmem:[#allocation35_spill] sm:$0xff] }
 0x231   : > { %v2435_v31 = vsel %vm826_vm4, %v2432_v12, %v10282_v6  ;;  %v2457_v13 = vmul.f32 %v7633_v22, %v10283_v41  ;;  %v2458_v45 = vmul.f32 %v7421_v50, %v10283_v41  ;;  %v10288_v12 = vrot.slane %v10287_v19, 1 }
 0x232   : > { %v1110_v14 = vpop.permute.xlu0 %1109  ;;  %v922_v43 = vpop.permute.xlu2 %921 }
 0x233   : > { %v931_v9 = vadd.f32 %v922_v43, %v865_v0  ;;  %v753_v0 = vadd.f32 %v749_v58, %v7472_v56  ;;  %v2456_v43 = vmul.f32 %v7625_v7, %v10283_v41  ;;  %v2467_v6 = vrot.slane %v2457_v13, 1  ;;  %v10289_v13 = vld [vmem:[#allocation36_spill] sm:$0xff] }
 0x234   : > { %v2469_v34 = vrot.slane %v2458_v45, 1  ;;  %v7678_v56 = vstv %s5221_s4  ;;  %v2522_v45 = vmul.f32 %v7625_v7, %v10289_v13  ;;  %v2524_v1 = vmul.f32 %v7421_v50, %v10289_v13  ;;  %s5298_s4 = sld [smem:[#allocation9 + $0x41]] }
 0x235   : > { %v951_v21 = vadd.f32 %v947_v47, %v931_v9  ;;  %v10284_v9 = vld [vmem:[#allocation37_spill] sm:$0xff] }
 0x236   : > { %2442 = vrot.lane.b32.xlu1 %v2435_v31, %s5736_s23 }
 0x237   : > { %v1003_v8 = vadd.f32 %v7491_v63, %v951_v21  ;;  %v2466_v21 = vrot.slane %v2456_v43, 1 }
 0x238   : > { %v781_v47 = vpop.permute.xlu1 %780  ;;  %2440 = vrot.lane.b32.xlu0 %v2433_v28, %s5736_s23  ;;  %2444 = vrot.lane.b32.xlu2 %v10284_v9, %s5736_s23  ;;  %v1135_v28 = vmul.f32 %v7678_v56, %v7353_v11  ;;  %v7684_v9 = vstv %s5212_s15  ;;  %s5282_s15 = sld [smem:[#allocation9 + $0x16]] }
 0x239   : > { %v789_v52 = vadd.f32 %v781_v47, %v753_v0  ;;  %v1053_v31 = vadd.f32 %v10285_v55, %v1003_v8  ;;  %v10290_v55 = vld [vmem:[#allocation61_spill] sm:$0xff]  ;;  %v2470_v47 = vsel %vm826_vm4, %v2467_v6, %v2469_v34 }
 0x23a   : > { %v7674_v27 = vpop.permute.xlu0 %1481  ;;  %v7676_v63 = vpop.permute.xlu2 %989  ;;  %v938_v8 = vmul.f32 %v7684_v9, %v10290_v55 }
 0x23b   : > { %10286 = vst [vmem:[#allocation80_spill] sm:$0xff] %v7674_v27  ;;  %v841_v58 = vadd.f32 %v10288_v12, %v789_v52  ;;  %v1119_v41 = vadd.f32 %v1110_v14, %v1053_v31  ;;  %v2523_v14 = vmul.f32 %v7633_v22, %v10289_v13  ;;  %v2468_v52 = vsel %vm826_vm4, %v2466_v21, %v2467_v6  ;;  %v10291_v31 = vld [vmem:[#allocation38_spill] sm:$0xff]  ;;  %v10294_v21 = vld [vmem:[#allocation72_spill] sm:$0xff] }
 0x23c   : > { %v10292_v19 = vrot.slane %v10291_v31, 1  ;;  %v2535_v6 = vrot.slane %v2524_v1, 2 }
 0x23d   : > { %v899_v0 = vadd.f32 %v891_v23, %v841_v58  ;;  %v7691_v27 = vadd.f32 %v1135_v28, %v1119_v41  ;;  %v2532_v58 = vrot.slane %v2522_v45, 2  ;;  %v10296_v45 = vld [vmem:[#allocation28_spill] sm:$0xff] }
 0x23e   : > { %2477 = vrot.lane.b32.xlu1 %v2470_v47, %s5737_s19  ;;  %v2472_v12 = vsel %vm826_vm4, %v2469_v34, %v10292_v19  ;;  %v7709_v34 = vstv %s5220_s28  ;;  %s5283_s28 = sld [smem:[#allocation9 + $0x17]] }
 0x23f   : > { %v942_v43 = vadd.f32 %v938_v8, %v899_v0  ;;  %v2533_v8 = vrot.slane %v2523_v14, 2  ;;  %v10295_v0 = vrot.slane %v10294_v21, 1  ;;  %v2559_v14 = vmul.f32 %v7625_v7, %v10296_v45 }
 0x240   : > { %v807_v23 = vpop.permute.xlu1 %806  ;;  %2475 = vrot.lane.b32.xlu0 %v2468_v52, %s5737_s19  ;;  %2479 = vrot.lane.b32.xlu2 %v2472_v12, %s5737_s19  ;;  %v1126_v52 = vmul.f32 %v7709_v34, %v7517_v36  ;;  %v10298_v12 = vld [vmem:[#allocation29_spill] sm:$0xff] }
 0x241   : > { %v978_v41 = vadd.f32 %v7552_v54, %v942_v43  ;;  %v2534_v13 = vsel %vm1961_vm5, %v2532_v58, %v2533_v8  ;;  %v2536_v54 = vsel %vm1961_vm5, %v2533_v8, %v2535_v6  ;;  %v2569_v8 = vrot.slane %v2559_v14, 2 }
 0x242   : > { %v887_v28 = vpop.permute.xlu0 %886  ;;  %v7705_v47 = vpop.permute.xlu2 %1454  ;;  %v937_v14 = vmul.f32 %v7684_v9, %v6846_v25 }
 0x243   : > { %10293 = vst [vmem:[#allocation79_spill] sm:$0xff] %v7705_v47  ;;  %v1029_v31 = vadd.f32 %v10295_v0, %v978_v41  ;;  %v2561_v0 = vmul.f32 %v7421_v50, %v10296_v45 }
 0x245   : > { %v1087_v19 = vadd.f32 %v7637_v46, %v1029_v31  ;;  %v2560_v46 = vmul.f32 %v7633_v22, %v10296_v45  ;;  %v10299_v31 = vld [vmem:[#allocation41_spill] sm:$0xff]  ;;  %v2572_v45 = vrot.slane %v2561_v0, 2 }
 0x246   : > { %2541 = vrot.lane.b32.xlu1 %v2534_v13, %s5736_s23  ;;  %v10300_v13 = vld [vmem:[#allocation39_spill] sm:$0xff] }
 0x247   : > { %v7719_v1 = vadd.f32 %v1126_v52, %v1087_v19  ;;  %v2570_v21 = vrot.slane %v2560_v46, 2  ;;  %v10301_v19 = vrot.slane %v10300_v13, 2 }
 0x248   : > { %v7721_v43 = vpop.permute.xlu1 %1483  ;;  %2481 = vrot.lane.b32.xlu0 %v10298_v12, %s5737_s19  ;;  %2543 = vrot.lane.b32.xlu2 %v2536_v54, %s5736_s23 }
 0x249   : > { %10297 = vst [vmem:[#allocation27_spill] sm:$0xff] %v7721_v43  ;;  %v2538_v52 = vsel %vm1961_vm5, %v2535_v6, %v10301_v19  ;;  %v2571_v54 = vsel %vm1961_vm5, %v2569_v8, %v2570_v21  ;;  %v10303_v19 = vld [vmem:[#allocation40_spill] sm:$0xff]  ;;  %v2573_v0 = vsel %vm1961_vm5, %v2570_v21, %v2572_v45 }
 0x24a   : > { %v7728_v58 = vpop.permute.xlu0 %1177  ;;  %v7730_v41 = vpop.permute.xlu2 %1293  ;;  %v10304_v8 = vrot.slane %v10303_v19, 2 }
 0x24c   : > { %v2575_v47 = vsel %vm1961_vm5, %v2572_v45, %v10304_v8 }
 0x24e   : > { %2547 = vrot.lane.b32.xlu1 %v10299_v31, %s5736_s23 }
 0x250   : > { %v889_v12 = vpop.permute.xlu1 %888  ;;  %2545 = vrot.lane.b32.xlu0 %v2538_v52, %s5736_s23  ;;  %2578 = vrot.lane.b32.xlu2 %v2571_v54, %s5737_s19  ;;  %v10305_v52 = vld [vmem:[#allocation42_spill] sm:$0xff] }
 0x251   : > { %v898_v46 = vadd.f32 %v889_v12, %v7619_v59  ;;  %v2626_v54 = vmul.f32 %v7633_v22, %v10305_v52  ;;  %v2627_v25 = vmul.f32 %v7421_v50, %v10305_v52  ;;  %v759_v59 = vmul.f32 %v7317_v40, %v7013_v15  ;;  %v10306_v12 = vld [vmem:[#allocation81_spill] sm:$0xff] }
 0x252   : > { %v7745_v43 = vpop.permute.xlu0 %1369  ;;  %v7747_v31 = vpop.permute.xlu2 %1485  ;;  %v1125_v15 = vmul.f32 %v7709_v34, %v7353_v11 }
 0x253   : > { %10302 = vst [vmem:[#allocation34_spill] sm:$0xff] %v7747_v31  ;;  %v941_v13 = vadd.f32 %v937_v14, %v898_v46  ;;  %v2636_v19 = vrot.slane %v2626_v54, 2  ;;  %v2638_v8 = vrot.slane %v2627_v25, 2  ;;  %v763_v45 = vadd.f32 %v759_v59, %v7351_v17 }
 0x254   : > { %v897_v25 = vadd.f32 %v887_v28, %v7580_v33  ;;  %v936_v33 = vmul.f32 %v7684_v9, %v7499_v57 }
 0x255   : > { %v977_v6 = vadd.f32 %v7495_v16, %v941_v13  ;;  %v2625_v16 = vmul.f32 %v7625_v7, %v10305_v52  ;;  %v10307_v13 = vld [vmem:[#allocation43_spill] sm:$0xff]  ;;  %v815_v54 = vadd.f32 %v807_v23, %v763_v45 }
 0x256   : > { %2582 = vrot.lane.b32.xlu1 %v2575_v47, %s5737_s19 }
 0x257   : > { %v1028_v14 = vadd.f32 %v10306_v12, %v977_v6  ;;  %v2635_v52 = vrot.slane %v2625_v16, 2  ;;  %v10311_v16 = vld [vmem:[#allocation44_spill] sm:$0xff] }
 0x258   : > { %v7764_v46 = vpop.permute.xlu1 %1179  ;;  %2580 = vrot.lane.b32.xlu0 %v2573_v0, %s5737_s19  ;;  %2584 = vrot.lane.b32.xlu2 %v10307_v13, %s5737_s19  ;;  %v10309_v0 = vld [vmem:[#allocation69_spill] sm:$0xff]  ;;  %v10312_v13 = vrot.slane %v10311_v16, 2 }
 0x259   : > { %v1086_v47 = vadd.f32 %v7521_v35, %v1028_v14  ;;  %v7778_v31 = vmul.f32 %v10309_v0, %v7499_v57  ;;  %v2639_v35 = vsel %vm1961_vm5, %v2636_v19, %v2638_v8  ;;  %v10310_v14 = vld [vmem:[#allocation45_spill] sm:$0xff]  ;;  %v2637_v59 = vsel %vm1961_vm5, %v2635_v52, %v2636_v19 }
 0x25a   : > { %v7772_v40 = vpop.permute.xlu0 %1450  ;;  %v1182_v21 = vpop.permute.xlu2 %1181  ;;  %v2662_v11 = vmul.f32 %v7625_v7, %v10310_v14  ;;  %v2663_v17 = vmul.f32 %v7633_v22, %v10310_v14  ;;  %v2641_v23 = vsel %vm1961_vm5, %v2638_v8, %v10312_v13  ;;  %v2664_v7 = vmul.f32 %v7421_v50, %v10310_v14  ;;  %v10313_v22 = vld [vmem:[#allocation75_spill] sm:$0xff]  ;;  %v10315_v13 = vld [vmem:[#allocation73_spill] sm:$0xff] }
 0x25b   : > { %10308 = vst [vmem:[#allocation35_spill] sm:$0xff] %v7772_v40  ;;  %v1191_v6 = vadd.f32 %v1182_v21, %v7691_v27  ;;  %v1129_v12 = vadd.f32 %v1125_v15, %v1086_v47  ;;  %v10314_v19 = vrot.slane %v10313_v22, 1  ;;  %v940_v15 = vadd.f32 %v936_v33, %v897_v25  ;;  %v10317_v33 = vld [vmem:[#allocation48_spill] sm:$0xff] }
 0x25c   : > { %v2672_v21 = vrot.slane %v2662_v11, 2  ;;  %v948_v52 = vmul.f32 %v7651_v42, %v10290_v55  ;;  %v2675_v16 = vrot.slane %v2664_v7, 2 }
 0x25d   : > { %v7788_v27 = vadd.f32 %v7562_v49, %v1191_v6  ;;  %v1016_v49 = vrot.slane %v7778_v31, 1  ;;  %v866_v47 = vadd.f32 %v10314_v19, %v815_v54  ;;  %v2673_v6 = vrot.slane %v2663_v17, 2  ;;  %v10318_v19 = vld [vmem:[#allocation66_spill] sm:$0xff] }
 0x25e   : > { %2646 = vrot.lane.b32.xlu1 %v2639_v35, %s5736_s23 }
 0x25f   : > { %v2674_v54 = vsel %vm1961_vm5, %v2672_v21, %v2673_v6  ;;  %v2676_v17 = vsel %vm1961_vm5, %v2673_v6, %v2675_v16 }
 0x260   : > { %v7798_v28 = vpop.permute.xlu1 %1371  ;;  %2644 = vrot.lane.b32.xlu0 %v2637_v59, %s5736_s23  ;;  %2648 = vrot.lane.b32.xlu2 %v2641_v23, %s5736_s23  ;;  %v10316_v59 = vrot.slane %v10315_v13, 1 }
 0x262   : > { %v924_v8 = vpop.permute.xlu0 %923  ;;  %v966_v45 = vpop.permute.xlu2 %965  ;;  %v1019_v23 = vsel %vm826_vm4, %v1016_v49, %v10316_v59 }
 0x263   : > { %v932_v35 = vadd.f32 %v924_v8, %v866_v47  ;;  %v976_v14 = vadd.f32 %v966_v45, %v940_v15  ;;  %v10319_v47 = vrot.slane %v10318_v19, 1  ;;  %v1136_v8 = vmul.f32 %v7678_v56, %v7517_v36  ;;  %v10321_v45 = vld [vmem:[#allocation46_spill] sm:$0xff] }
 0x264   : > { %v10322_v6 = vrot.slane %v10321_v45, 2  ;;  %v946_v19 = vmul.f32 %v7651_v42, %v7499_v57 }
 0x265   : > { %v952_v40 = vadd.f32 %v948_v52, %v932_v35  ;;  %v1027_v25 = vadd.f32 %v1019_v23, %v976_v14 }
 0x266   : > { %2681 = vrot.lane.b32.xlu1 %v2674_v54, %s5737_s19  ;;  %v2678_v52 = vsel %vm1961_vm5, %v2675_v16, %v10322_v6  ;;  %v10323_v54 = vld [vmem:[#allocation65_spill] sm:$0xff]  ;;  %v930_v16 = vadd.f32 %v7647_v20, %v7432_v5  ;;  %v929_v5 = vadd.f32 %v7597_v24, %v7389_v37  ;;  %v945_v20 = vmul.f32 %v7651_v42, %v7319_v10 }
 0x267   : > { %v1004_v11 = vadd.f32 %v7480_v3, %v952_v40  ;;  %v10320_v3 = vld [vmem:[#allocation49_spill] sm:$0xff]  ;;  %v1007_v37 = vmul.f32 %v10309_v0, %v7319_v10 }
 0x268   : > { %v964_v55 = vpop.permute.xlu1 %963  ;;  %2650 = vrot.lane.b32.xlu0 %v10317_v33, %s5736_s23  ;;  %2683 = vrot.lane.b32.xlu2 %v2676_v17, %s5737_s19  ;;  %v10324_v17 = vrot.slane %v7530_v30, 1  ;;  %v949_v24 = vadd.f32 %v945_v20, %v929_v5 }
 0x269   : > { %v1054_v15 = vadd.f32 %v10319_v47, %v1004_v11  ;;  %v1033_v11 = vmul.f32 %v10323_v54, %v7499_v57  ;;  %v1032_v57 = vmul.f32 %v10323_v54, %v7319_v10  ;;  %v935_v54 = vmul.f32 %v7684_v9, %v7319_v10 }
 0x26a   : > { %v1154_v7 = vpop.permute.xlu0 %1153  ;;  %v7819_v22 = vpop.permute.xlu2 %1262 }
 0x26b   : > { %v1120_v21 = vadd.f32 %v7629_v39, %v1054_v15  ;;  %v1041_v15 = vrot.slane %v1033_v11, 1  ;;  %v1134_v11 = vmul.f32 %v7678_v56, %v7273_v62 }
 0x26d   : > { %v7828_v40 = vadd.f32 %v1136_v8, %v1120_v21  ;;  %v950_v8 = vadd.f32 %v946_v19, %v930_v16 }
 0x26e   : > { %2687 = vrot.lane.b32.xlu1 %v10320_v3, %s5737_s19 }
 0x270   : > { %v7833_v35 = vpop.permute.xlu1 %1260  ;;  %2685 = vrot.lane.b32.xlu0 %v2678_v52, %s5737_s19 }
 0x272   : > { %v7836_v14 = vpop.permute.xlu0 %1345  ;;  %v1108_v13 = vpop.permute.xlu2 %1107 }
 0x278   : > { %v7838_v39 = vpop.permute.xlu1 %1452 }
 0x27a   : > { %v7840_v59 = vpop.permute.xlu0 %1487  ;;  %v1158_v36 = vpop.permute.xlu2 %1157 }
 0x27b   : > { %v1166_v23 = vadd.f32 %v1158_v36, %v7719_v1  ;;  %v10325_v1 = vld [vmem:[#allocation67_spill] sm:$0xff] }
 0x27c   : > { %v10326_v6 = vrot.slane %v10325_v1, 1  ;;  %v1320_v1 = vstv %s5229_s5  ;;  %s5286_s5 = sld [smem:[#allocation9 + $0x3b]] }
 0x27d   : > { %v7849_v33 = vadd.f32 %v10324_v17, %v1166_v23 }
 0x27e   : > { %v1044_v52 = vsel %vm826_vm4, %v1041_v15, %v10326_v6 }
 0x280   : > { %v1156_v47 = vpop.permute.xlu1 %1155 }
 0x281   : > { %v1165_v21 = vadd.f32 %v1156_v47, %v1129_v12  ;;  %v896_v12 = vadd.f32 %v7445_v26, %v7485_v29  ;;  %v1040_v47 = vrot.slane %v1032_v57, 1  ;;  %v1001_v26 = vadd.f32 %v7676_v63, %v949_v24 }
 0x282   : > { %v992_v3 = vpop.permute.xlu0 %991  ;;  %v1310_v57 = vstv %s5228_s17  ;;  %v1321_v24 = vmul.f32 %v1320_v1, %v6871_v32  ;;  %s5288_s17 = sld [smem:[#allocation9 + $0x19]] }
 0x283   : > { %v1002_v45 = vadd.f32 %v992_v3, %v950_v8  ;;  %v7857_v36 = vadd.f32 %v7569_v60, %v1165_v21  ;;  %v1124_v60 = vmul.f32 %v7709_v34, %v7273_v62  ;;  %v939_v29 = vadd.f32 %v935_v54, %v896_v12  ;;  %v1300_v62 = vpop.permute.xlu2 %1299 }
 0x284   : > { %v1015_v8 = vrot.slane %v1007_v37, 1  ;;  %v1042_v10 = vsel %vm826_vm4, %v1040_v47, %v1041_v15  ;;  %v1123_v12 = vmul.f32 %v7709_v34, %v7161_v51  ;;  %v1312_v31 = vmul.f32 %v1310_v57, %v6951_v4 }
 0x285   : > { %v1052_v30 = vadd.f32 %v1044_v52, %v1002_v45  ;;  %v975_v3 = vadd.f32 %v964_v55, %v939_v29  ;;  %v1051_v52 = vadd.f32 %v1042_v10, %v1001_v26  ;;  %v1133_v55 = vmul.f32 %v7678_v56, %v7161_v51  ;;  %v10329_v26 = vld [vmem:[#allocation88_spill] sm:$0xff] }
 0x287   : > { %v1118_v23 = vadd.f32 %v1108_v13, %v1052_v30 }
 0x288   : > { %v1075_v16 = vpop.permute.xlu1 %1074 }
 0x289   : > { %v1085_v17 = vadd.f32 %v1075_v16, %v1027_v25  ;;  %v1138_v42 = vadd.f32 %v1134_v11, %v1118_v23  ;;  %v1322_v25 = vmul.f32 %v1320_v1, %v6951_v4 }
 0x28a   : > { %v1296_v19 = vpop.permute.xlu0 %1295 }
 0x28b   : > { %v1128_v13 = vadd.f32 %v1124_v60, %v1085_v17  ;;  %v1190_v21 = vadd.f32 %v7764_v46, %v1138_v42  ;;  %v1017_v46 = vsel %vm826_vm4, %v1015_v8, %v1016_v49  ;;  %v10327_v49 = vld [vmem:[#allocation84_spill] sm:$0xff]  ;;  %v7895_v16 = vpop.permute.xlu2 %2438 }
 0x28c   : > { %v10328_v17 = vld [vmem:[#allocation92_spill] sm:$0xff] }
 0x28d   : > { %v1164_v45 = vadd.f32 %v1154_v7, %v1128_v13  ;;  %v1240_v0 = vadd.f32 %v7401_v61, %v1190_v21  ;;  %v1026_v61 = vadd.f32 %v1017_v46, %v975_v3  ;;  %v1314_v42 = vmul.f32 %v1310_v57, %v10328_v17  ;;  %v10332_v3 = vld [vmem:[#allocation108_spill] sm:$0xff] }
 0x28f   : > { %v1215_v9 = vadd.f32 %v7394_v53, %v1164_v45  ;;  %v1306_v6 = vadd.f32 %v1296_v19, %v1240_v0  ;;  %v1311_v19 = vmul.f32 %v1310_v57, %v6871_v32  ;;  %v10333_v32 = vld [vmem:[#allocation95_spill] sm:$0xff] }
 0x290   : > { %v1106_v63 = vpop.permute.xlu1 %1105  ;;  %v10334_v10 = vrot.slane %v10333_v32, 1 }
 0x291   : > { %v1326_v5 = vadd.f32 %v1322_v25, %v1306_v6  ;;  %v1117_v7 = vadd.f32 %v1106_v63, %v1051_v52  ;;  %v1273_v30 = vadd.f32 %v7819_v22, %v1215_v9  ;;  %v10335_v6 = vld [vmem:[#allocation86_spill] sm:$0xff] }
 0x292   : > { %v1073_v15 = vpop.permute.xlu0 %1072 }
 0x293   : > { %v1378_v53 = vadd.f32 %v7497_v38, %v1326_v5  ;;  %v1137_v20 = vadd.f32 %v1133_v55, %v1117_v7  ;;  %v1084_v23 = vadd.f32 %v1073_v15, %v1026_v61  ;;  %v1316_v22 = vadd.f32 %v1312_v31, %v1273_v30  ;;  %v2445_v46 = vpop.permute.xlu2 %2444  ;;  %v10338_v30 = vld [vmem:[#allocation89_spill] sm:$0xff] }
 0x295   : > { %v7892_v11 = vadd.f32 %v10327_v49, %v1378_v53  ;;  %v1189_v56 = vadd.f32 %v7728_v58, %v1137_v20  ;;  %v1127_v60 = vadd.f32 %v1123_v12, %v1084_v23  ;;  %v1352_v51 = vadd.f32 %v7591_v18, %v1316_v22  ;;  %v10339_v23 = vld [vmem:[#allocation51_spill] sm:$0xff]  ;;  %v10343_v22 = vld [vmem:[#allocation102_spill] sm:$0xff] }
 0x296   : > { %v7926_v31 = vmul.f32 %v7421_v50, %v10339_v23 }
 0x297   : > { %v1239_v37 = vadd.f32 %v7345_v44, %v1189_v56  ;;  %v1163_v38 = vadd.f32 %v7595_v48, %v1127_v60  ;;  %v1403_v44 = vadd.f32 %v10329_v26, %v1352_v51 }
 0x298   : > { %v1267_v54 = vpop.permute.xlu1 %1266  ;;  %10340 = vst [vmem:[#allocation37_spill] sm:$0xff] %v7926_v31 }
 0x299   : > { %v1305_v4 = vadd.f32 %v7730_v41, %v1239_v37  ;;  %v1214_v34 = vadd.f32 %v7381_v2, %v1163_v38  ;;  %v1275_v58 = vadd.f32 %v1267_v54, %v7849_v33  ;;  %v10330_v41 = vld [vmem:[#allocation110_spill] sm:$0xff]  ;;  %v1324_v33 = vmul.f32 %v1320_v1, %v10328_v17 }
 0x29a   : > { %v1184_v47 = vpop.permute.xlu0 %1183  ;;  %v10331_v8 = vrot.slane %v10330_v41, 1  ;;  %v10344_v38 = vld [vmem:[#allocation74_spill] sm:$0xff] }
 0x29b   : > { %v1325_v29 = vadd.f32 %v1321_v24, %v1305_v4  ;;  %v1272_v48 = vadd.f32 %v7833_v35, %v1214_v34  ;;  %v1318_v13 = vadd.f32 %v1314_v42, %v1275_v58  ;;  %v1192_v21 = vadd.f32 %v1184_v47, %v7828_v40  ;;  %v10336_v35 = vld [vmem:[#allocation109_spill] sm:$0xff]  ;;  %v10346_v4 = vld [vmem:[#allocation103_spill] sm:$0xff]  ;;  %v2480_v17 = vpop.permute.xlu2 %2479 }
 0x29d   : > { %v1354_v18 = vadd.f32 %v7836_v14, %v1318_v13  ;;  %v1242_v2 = vadd.f32 %v10331_v8, %v1192_v21  ;;  %v1377_v45 = vadd.f32 %v10332_v3, %v1325_v29  ;;  %v1315_v0 = vadd.f32 %v1311_v19, %v1272_v48  ;;  %v10337_v14 = vld [vmem:[#allocation76_spill] sm:$0xff]  ;;  %v10352_v21 = vld [vmem:[#allocation79_spill] sm:$0xff] }
 0x29e   : > { %v1323_v55 = vmul.f32 %v1320_v1, %v10337_v14  ;;  %v1313_v12 = vmul.f32 %v1310_v57, %v10337_v14  ;;  %v10341_v1 = vld [vmem:[#allocation97_spill] sm:$0xff]  ;;  %v10105_v57 = vrot.slane %v7926_v31, 2  ;;  %v10351_v48 = vld [vmem:[#allocation80_spill] sm:$0xff] }
 0x29f   : > { %v1405_v9 = vadd.f32 %v10334_v10, %v1354_v18  ;;  %v1308_v25 = vadd.f32 %v1300_v62, %v1242_v2  ;;  %v1427_v52 = vadd.f32 %v10335_v6, %v1377_v45  ;;  %v1351_v63 = vadd.f32 %v10336_v35, %v1315_v0  ;;  %v10354_v2 = vld [vmem:[#allocation35_spill] sm:$0xff]  ;;  %v10355_v45 = vld [vmem:[#allocation93_spill] sm:$0xff] }
 0x2a0   : > { %v1298_v40 = vpop.permute.xlu1 %1297  ;;  %v10342_v60 = vrot.slane %v10341_v1, 1  ;;  %v1461_v3 = vadd.f32 %v10354_v2, %v1403_v44  ;;  %v2453_v0 = vadd.f32 %v2445_v46, %v10355_v45 }
 0x2a1   : > { %v1328_v5 = vadd.f32 %v1324_v33, %v1308_v25  ;;  %v1307_v7 = vadd.f32 %v1298_v40, %v7788_v27  ;;  %v1402_v15 = vadd.f32 %v10338_v30, %v1351_v63  ;;  %v1493_v13 = vadd.f32 %v10351_v48, %v1427_v52  ;;  %v10356_v33 = vld [vmem:[#allocation111_spill] sm:$0xff] }
 0x2a2   : > { %v1265_v61 = vpop.permute.xlu0 %1264  ;;  %v1463_v18 = vadd.f32 %v10352_v21, %v1405_v9  ;;  %v10357_v9 = vld [vmem:[#allocation32_spill] sm:$0xff] }
 0x2a3   : > { %v1380_v53 = vadd.f32 %v7798_v28, %v1328_v5  ;;  %v1327_v20 = vadd.f32 %v1323_v55, %v1307_v7  ;;  %v1274_v62 = vadd.f32 %v1265_v61, %v7857_v36  ;;  %v10345_v36 = vld [vmem:[#allocation98_spill] sm:$0xff]  ;;  %v1460_v32 = vadd.f32 %v10356_v33, %v1402_v15  ;;  %v7968_v52 = vpop.permute.xlu2 %2543 }
 0x2a5   : > { %v1379_v49 = vadd.f32 %v7745_v43, %v1327_v20  ;;  %v1317_v56 = vadd.f32 %v1313_v12, %v1274_v62  ;;  %v1430_v27 = vadd.f32 %v10342_v60, %v1380_v53  ;;  %v10347_v43 = vld [vmem:[#allocation34_spill] sm:$0xff] }
 0x2a7   : > { %v1429_v37 = vadd.f32 %v10343_v22, %v1379_v49  ;;  %v1353_v24 = vadd.f32 %v10344_v38, %v1317_v56  ;;  %v1496_v28 = vadd.f32 %v7840_v59, %v1430_v27  ;;  %v10349_v59 = vld [vmem:[#allocation52_spill] sm:$0xff]  ;;  %v2713_v38 = vstv %s5276_s20  ;;  %s5291_s20 = sld [smem:[#allocation9 + $0x3d]] }
 0x2a8   : > { %v2443_v54 = vpop.permute.xlu1 %2442  ;;  %v10350_v47 = vrot.slane %v10349_v59, 2 }
 0x2a9   : > { %v1404_v51 = vadd.f32 %v10345_v36, %v1353_v24  ;;  %v2452_v50 = vadd.f32 %v2443_v54, %v10346_v4  ;;  %1603 = vrot.lane.b32.xlu1 %v1496_v28, %s5734_s30  ;;  %v1495_v34 = vadd.f32 %v10347_v43, %v1429_v37  ;;  %v8006_v37 = vstv %s5277_s18  ;;  %s5285_s18 = sld [smem:[#allocation9 + $0x3a]] }
 0x2aa   : > { %v7939_v42 = vpop.permute.xlu0 %2440  ;;  %v2612_v26 = vsel %vm1961_vm5, %v10105_v57, %v10350_v47  ;;  %v8008_v24 = vstv %s5279_s7  ;;  %v8024_v43 = vstv %s5295_s26  ;;  %s5292_s7 = sld [smem:[#allocation9 + $0x3e]] }
 0x2ab   : > { %10348 = vst [vmem:[#allocation71_spill] sm:$0xff] %v7939_v42  ;;  %v2489_v58 = vadd.f32 %v2480_v17, %v2452_v50  ;;  %1601 = vrot.lane.b32.xlu0 %v1495_v34, %s5734_s30  ;;  %v1462_v19 = vadd.f32 %v7838_v39, %v1404_v51  ;;  %v10353_v39 = vld [vmem:[#allocation27_spill] sm:$0xff]  ;;  %v7972_v35 = vpop.permute.xlu2 %2578  ;;  %v2801_v34 = vstv %s5280_s16  ;;  %v8026_v17 = vstv %s5297_s9  ;;  %s5289_s26 = sld [smem:[#allocation9 + $0x1a]] }
 0x2ac   : > { %v1494_v8 = vadd.f32 %v10353_v39, %v7892_v11  ;;  %v3342_v39 = vstv %s5298_s4  ;;  %s5278_s16 = sld [smem:[#allocation9 + $0x36]] }
 0x2ad   : > { %1578 = vrot.lane.b32.xlu2 %v1462_v19, %s5734_s30  ;;  %v7949_v29 = vadd.f32 %v2612_v26, %v2489_v58  ;;  %v3254_v26 = vstv %s5294_s29  ;;  %s5275_s9 = sld [smem:[#allocation9 + $0x12]] }
 0x2ae   : > { %s5284_s29 = sld [smem:[#allocation9 + $0x39]] }
 0x2af   : > { %s5281_s4 = sld [smem:[#allocation9 + $0x15]] }
 0x2b0   : > { %v7970_v11 = vpop.permute.xlu1 %2477 }
 0x2b1   : > { %1597 = vrot.lane.b32.xlu1 %v1493_v13, %s5734_s30  ;;  %10358 = vst [vmem:[#allocation78_spill] sm:$0xff] %v7970_v11 }
 0x2b2   : > { %v7954_v41 = vpop.permute.xlu0 %2475 }
 0x2b3   : > { %1580 = vrot.lane.b32.xlu0 %v1463_v18, %s5734_s30  ;;  %v7976_v63 = vpop.permute.xlu2 %2584 }
 0x2b5   : > { %1599 = vrot.lane.b32.xlu2 %v1494_v8, %s5734_s30 }
 0x2b8   : > { %v7974_v44 = vpop.permute.xlu1 %2541 }
 0x2b9   : > { %1576 = vrot.lane.b32.xlu1 %v1461_v3, %s5734_s30 }
 0x2ba   : > { %v2482_v10 = vpop.permute.xlu0 %2481 }
 0x2bb   : > { %v2490_v25 = vadd.f32 %v2482_v10, %v2453_v0  ;;  %1574 = vrot.lane.b32.xlu0 %v1460_v32, %s5734_s30  ;;  %v7982_v5 = vpop.permute.xlu2 %2648 }
 0x2bd   : > { %v7966_v6 = vadd.f32 %v10357_v9, %v2490_v25 }
 0x2c0   : > { %v7978_v46 = vpop.permute.xlu1 %2547 }
 0x2c2   : > { %v7980_v40 = vpop.permute.xlu0 %2545 }
 0x2c3   : > { %10359 = vst [vmem:[#allocation36_spill] sm:$0xff] %v7980_v40  ;;  %v7988_v7 = vpop.permute.xlu2 %2683 }
 0x2c4   : > { %10361 = vst [vmem:[#allocation38_spill] sm:$0xff] %v7988_v7 }
 0x2c8   : > { %v7984_v14 = vpop.permute.xlu1 %2582 }
 0x2c9   : > { %10360 = vst [vmem:[#allocation61_spill] sm:$0xff] %v7984_v14 }
 0x2ca   : > { %v7986_v55 = vpop.permute.xlu0 %2580 }
 0x2d0   : > { %v7990_v61 = vpop.permute.xlu1 %2646 }
 0x2d1   : > { %10362 = vst [vmem:[#allocation72_spill] sm:$0xff] %v7990_v61 }
 0x2d2   : > { %v7992_v30 = vpop.permute.xlu0 %2644 }
 0x2d3   : > { %10363 = vst [vmem:[#allocation28_spill] sm:$0xff] %v7992_v30  ;;  %v8517_v30 = vld [vmem:[#allocation2 + $0x28] sm:$0xff] }
 0x2d8   : > { %v7995_v53 = vpop.permute.xlu1 %2681 }
 0x2d9   : > { %10364 = vst [vmem:[#allocation29_spill] sm:$0xff] %v7995_v53 }
 0x2da   : > { %v7997_v20 = vpop.permute.xlu0 %2650 }
 0x2e0   : > { %v8000_v62 = vpop.permute.xlu1 %2687 }
 0x2e2   : > { %v8002_v49 = vpop.permute.xlu0 %2685 }
 0x307   : > { %v1579_v15 = vpop.permute.xlu2 %1578 }
 0x308   : > { %1590 = vst.msk [vmem:[#allocation2 + $0x61] sm:$0xff] %vm1587_vm7, %v1579_v15 }
 0x30f   : > { %v1600_v12 = vpop.permute.xlu2 %1599 }
 0x310   : > { %1611 = vst.msk [vmem:[#allocation2 + $0x81] sm:$0xff] %vm1587_vm7, %v1600_v12 }
 0x31b   : > { %v1604_v56 = vpop.permute.xlu1 %1603 }
 0x31c   : > { %1613 = vst.msk [vmem:[#allocation2 + $0x91] sm:$0x7f] %vm1591_vm8, %v1604_v56 }
 0x31d   : > { %v1602_v1 = vpop.permute.xlu0 %1601 }
 0x31e   : > { %1612 = vst.msk [vmem:[#allocation2 + $0x89] sm:$0xff] %vm1587_vm7, %v1602_v1 }
 0x323   : > { %v1598_v60 = vpop.permute.xlu1 %1597 }
 0x324   : > { %1610 = vst.msk [vmem:[#allocation2 + $0x79] sm:$0xff] %vm1587_vm7, %v1598_v60 }
 0x325   : > { %v1581_v27 = vpop.permute.xlu0 %1580  ;;  %v8022_v50 = vld [vmem:[#allocation2 + $0x90] sm:$0xff] }
 0x326   : > { %1592 = vst.msk [vmem:[#allocation2 + $0x69] sm:$0x7f] %vm1591_vm8, %v1581_v27  ;;  %v3284_v58 = vmul.f32 %v8024_v43, %v8022_v50  ;;  %v3320_v59 = vmul.f32 %v8026_v17, %v8022_v50  ;;  %v3258_v13 = vmul.f32 %v3254_v26, %v8022_v50  ;;  %v3346_v2 = vmul.f32 %v3342_v39, %v8022_v50  ;;  %v8082_v27 = vld [vmem:[#allocation2 + $0x88] sm:$0xff] }
 0x32b   : > { %v1577_v22 = vpop.permute.xlu1 %1576  ;;  %v8046_v18 = vld [vmem:[#allocation2 + $0x78] sm:$0xff]  ;;  %v8080_v60 = vld [vmem:[#allocation2 + $0x80] sm:$0xff] }
 0x32c   : > { %1589 = vst.msk [vmem:[#allocation2 + $0x59] sm:$0xff] %vm1587_vm7, %v1577_v22  ;;  %v3281_v8 = vmul.f32 %v8024_v43, %v8046_v18  ;;  %v3317_v3 = vmul.f32 %v8026_v17, %v8046_v18  ;;  %v3255_v12 = vmul.f32 %v3254_v26, %v8046_v18  ;;  %v3343_v22 = vmul.f32 %v3342_v39, %v8046_v18 }
 0x32d   : > { %v8011_v28 = vld [vmem:[#allocation2 + $0x68] sm:$0xff]  ;;  %v1575_v54 = vpop.permute.xlu0 %1574 }
 0x32e   : > { %1588 = vst.msk [vmem:[#allocation2 + $0x51] sm:$0xff] %vm1587_vm7, %v1575_v54  ;;  %v2743_v36 = vmul.f32 %v8006_v37, %v8011_v28  ;;  %v2717_v51 = vmul.f32 %v2713_v38, %v8011_v28  ;;  %v2779_v4 = vmul.f32 %v8008_v24, %v8011_v28  ;;  %v2805_v19 = vmul.f32 %v2801_v34, %v8011_v28 }
 0x32f   : > { %v3257_v54 = vmul.f32 %v3254_v26, %v8082_v27 }
 0x330   : > { %2754 = vrot.lane.b32.xlu0 %v2743_v36, %s5737_s19  ;;  %2728 = vrot.lane.b32.xlu2 %v2717_v51, %s5736_s23  ;;  %v3319_v51 = vmul.f32 %v8026_v17, %v8082_v27 }
 0x331   : > { %2790 = vrot.lane.b32.xlu1 %v2779_v4, %s5736_s23  ;;  %v3282_v4 = vmul.f32 %v8024_v43, %v8080_v60 }
 0x333   : > { %v8058_v0 = vld [vmem:[#allocation2 + $0x60] sm:$0xff] }
 0x334   : > { %v2716_v10 = vmul.f32 %v2713_v38, %v8058_v0  ;;  %v2778_v9 = vmul.f32 %v8008_v24, %v8058_v0  ;;  %v2804_v1 = vmul.f32 %v2801_v34, %v8058_v0  ;;  %v2742_v36 = vmul.f32 %v8006_v37, %v8058_v0 }
 0x335   : > { %v8036_v47 = vld [vmem:[#allocation2 + $0x50] sm:$0xff]  ;;  %v8056_v45 = vld [vmem:[#allocation2 + $0x58] sm:$0xff] }
 0x336   : > { %v2740_v48 = vmul.f32 %v8006_v37, %v8036_v47  ;;  %v2776_v21 = vmul.f32 %v8008_v24, %v8036_v47  ;;  %v2714_v33 = vmul.f32 %v2713_v38, %v8036_v47  ;;  %v2715_v32 = vmul.f32 %v2713_v38, %v8056_v45 }
 0x337   : > { %v2802_v25 = vmul.f32 %v2801_v34, %v8036_v47  ;;  %v2741_v15 = vmul.f32 %v8006_v37, %v8056_v45  ;;  %v2803_v56 = vmul.f32 %v2801_v34, %v8056_v45  ;;  %v3256_v38 = vmul.f32 %v3254_v26, %v8080_v60  ;;  %v8099_v34 = vld [vmem:[#allocation2 + $0x70] sm:$0x3] }
 0x338   : > { %3295 = vrot.lane.b32.xlu0 %v3284_v58, %s5737_s19  ;;  %2816 = vrot.lane.b32.xlu2 %v2805_v19, %s5737_s19  ;;  %v8101_v58 = vstv %s5282_s15  ;;  %v8103_v19 = vstv %s5283_s28  ;;  %v2777_v37 = vmul.f32 %v8008_v24, %v8056_v45  ;;  %v3345_v26 = vmul.f32 %v3342_v39, %v8082_v27  ;;  %s5300_s15 = sld [smem:[#allocation9 + $0x1f]] }
 0x339   : > { %3331 = vrot.lane.b32.xlu1 %v3320_v59, %s5736_s23  ;;  %v3344_v59 = vmul.f32 %v3342_v39, %v8080_v60  ;;  %v2898_v24 = vmul.f32 %v8103_v19, %v8099_v34  ;;  %s5301_s28 = sld [smem:[#allocation9 + $0x20]] }
 0x340   : > { %2748 = vrot.lane.b32.xlu0 %v2740_v48, %s5737_s19  ;;  %3269 = vrot.lane.b32.xlu2 %v3258_v13, %s5736_s23  ;;  %v8111_v48 = vmul.f32 %v8101_v58, %v8011_v28  ;;  %v2861_v13 = vmul.f32 %v8101_v58, %v8099_v34 }
 0x341   : > { %2784 = vrot.lane.b32.xlu1 %v2776_v21, %s5736_s23  ;;  %v8119_v21 = vmul.f32 %v8103_v19, %v8011_v28 }
 0x342   : > { %v10110_v39 = vrot.slane %v8111_v48, 1 }
 0x348   : > { %3289 = vrot.lane.b32.xlu0 %v3281_v8, %s5737_s19  ;;  %3357 = vrot.lane.b32.xlu2 %v3346_v2, %s5737_s19  ;;  %v2874_v8 = vrot.slane %v2861_v13, 1  ;;  %v10109_v2 = vrot.slane %v8119_v21, 1 }
 0x349   : > { %3325 = vrot.lane.b32.xlu1 %v3317_v3, %s5736_s23  ;;  %v2911_v3 = vrot.slane %v2898_v24, 1 }
 0x350   : > { %2722 = vrot.lane.b32.xlu2 %v2714_v33, %s5736_s23  ;;  %2724 = vrot.lane.b32.xlu0 %v2715_v32, %s5736_s23  ;;  %v8126_v33 = vstv %s5286_s5  ;;  %v8128_v32 = vstv %s5288_s17  ;;  %s5303_s5 = sld [smem:[#allocation9 + $0x43]] }
 0x351   : > { %2726 = vrot.lane.b32.xlu1 %v2716_v10, %s5736_s23  ;;  %v3283_v10 = vmul.f32 %v8024_v43, %v8082_v27  ;;  %v8148_v43 = vmul.f32 %v8128_v32, %v8011_v28  ;;  %s5287_s17 = sld [smem:[#allocation9 + $0x18]] }
 0x358   : > { %2810 = vrot.lane.b32.xlu2 %v2802_v25, %s5737_s19  ;;  %2788 = vrot.lane.b32.xlu0 %v2778_v9, %s5736_s23  ;;  %v2875_v25 = vsel %vm826_vm4, %v10110_v39, %v2874_v8  ;;  %v8137_v9 = vmul.f32 %v8126_v33, %v8011_v28 }
 0x359   : > { %2750 = vrot.lane.b32.xlu1 %v2741_v15, %s5737_s19  ;;  %v3001_v15 = vmul.f32 %v8126_v33, %v8099_v34 }
 0x360   : > { %3263 = vrot.lane.b32.xlu2 %v3255_v12, %s5736_s23  ;;  %2812 = vrot.lane.b32.xlu0 %v2803_v56, %s5737_s19  ;;  %v2912_v12 = vsel %vm826_vm4, %v10109_v2, %v2911_v3  ;;  %v3067_v56 = vmul.f32 %v8128_v32, %v8099_v34 }
 0x361   : > { %2814 = vrot.lane.b32.xlu1 %v2804_v1, %s5737_s19  ;;  %v10108_v1 = vrot.slane %v8137_v9, 1 }
 0x368   : > { %3351 = vrot.lane.b32.xlu2 %v3343_v22, %s5737_s19  ;;  %3265 = vrot.lane.b32.xlu0 %v3256_v38, %s5736_s23  ;;  %v3014_v22 = vrot.slane %v3001_v15, 1  ;;  %v8154_v38 = vstv %s5285_s18  ;;  %s5304_s18 = sld [smem:[#allocation9 + $0x44]] }
 0x369   : > { %3267 = vrot.lane.b32.xlu1 %v3257_v54, %s5736_s23  ;;  %v10106_v54 = vrot.slane %v8148_v43, 2  ;;  %v2964_v13 = vmul.f32 %v8154_v38, %v8099_v34 }
 0x370   : > { %2752 = vrot.lane.b32.xlu2 %v2742_v36, %s5737_s19  ;;  %3329 = vrot.lane.b32.xlu0 %v3319_v51, %s5736_s23  ;;  %v3080_v36 = vrot.slane %v3067_v56, 2  ;;  %v8157_v51 = vstv %s5291_s20  ;;  %s5290_s20 = sld [smem:[#allocation9 + $0x3c]] }
 0x371   : > { %3291 = vrot.lane.b32.xlu1 %v3282_v4, %s5737_s19  ;;  %v8159_v4 = vstv %s5292_s7  ;;  %v8174_v24 = vmul.f32 %v8157_v51, %v8011_v28  ;;  %v3170_v8 = vmul.f32 %v8157_v51, %v8099_v34  ;;  %s8497_s7 = sld [smem:[#allocation9 + $0x22]] }
 0x372   : > { %v8185_v3 = vmul.f32 %v8159_v4, %v8011_v28 }
 0x373   : > { %v10107_v56 = vrot.slane %v8174_v24, 2 }
 0x378   : > { %2786 = vrot.lane.b32.xlu2 %v2777_v37, %s5736_s23  ;;  %3353 = vrot.lane.b32.xlu0 %v3344_v59, %s5737_s19  ;;  %v3318_v37 = vmul.f32 %v8026_v17, %v8080_v60  ;;  %v8165_v59 = vmul.f32 %v8154_v38, %v8011_v28  ;;  %v3081_v17 = vsel %vm1961_vm5, %v10106_v54, %v3080_v36  ;;  %v8194_v36 = vstv %s5289_s26  ;;  %s8566_s26 = sld [smem:[#allocation9 + $0x23]] }
 0x379   : > { %3355 = vrot.lane.b32.xlu1 %v3345_v26, %s5737_s19  ;;  %v3015_v26 = vsel %vm826_vm4, %v10108_v1, %v3014_v22  ;;  %v3183_v22 = vrot.slane %v3170_v8, 2  ;;  %v8199_v57 = vmul.f32 %v8194_v36, %v8011_v28  ;;  %v2857_v8 = vmul.f32 %v8101_v58, %v8036_v47 }
 0x37a   : > { %v2975_v15 = vrot.slane %v8165_v59, 1  ;;  %v3101_v31 = vmul.f32 %v8194_v36, %v8056_v45 }
 0x37b   : > { %v3184_v59 = vsel %vm1961_vm5, %v10107_v56, %v3183_v22  ;;  %v2859_v22 = vmul.f32 %v8101_v58, %v8058_v0  ;;  %v10112_v56 = vrot.slane %v8199_v57, 2  ;;  %v2867_v39 = vrot.slane %v2857_v8, 1 }
 0x37d   : > { %v2870_v7 = vrot.slane %v2859_v22, 1  ;;  %v10366_v22 = vrot.slane %v8111_v48, 1 }
 0x380   : > { %3293 = vrot.lane.b32.xlu2 %v3283_v10, %s5737_s19  ;;  %2882 = vrot.lane.b32.xlu0 %v2875_v25, %s5736_s23  ;;  %v3207_v10 = vmul.f32 %v8159_v4, %v8099_v34 }
 0x381   : > { %2919 = vrot.lane.b32.xlu1 %v2912_v12, %s5737_s19  ;;  %v2977_v12 = vrot.slane %v2964_v13, 1  ;;  %v2858_v13 = vmul.f32 %v8101_v58, %v8056_v45  ;;  %v2894_v58 = vmul.f32 %v8103_v19, %v8036_v47 }
 0x383   : > { %v2978_v54 = vsel %vm826_vm4, %v2975_v15, %v2977_v12  ;;  %v2868_v2 = vrot.slane %v2858_v13, 1  ;;  %v2904_v13 = vrot.slane %v2894_v58, 1 }
 0x388   : > { %3327 = vrot.lane.b32.xlu2 %v3318_v37, %s5736_s23  ;;  %3022 = vrot.lane.b32.xlu0 %v3015_v26, %s5737_s19  ;;  %v10111_v37 = vrot.slane %v8185_v3, 2  ;;  %v3220_v26 = vrot.slane %v3207_v10, 2 }
 0x389   : > { %3088 = vrot.lane.b32.xlu1 %v3081_v17, %s5736_s23  ;;  %v3104_v17 = vmul.f32 %v8194_v36, %v8099_v34 }
 0x38a   : > { %v8190_v25 = vpop.permute.xlu2 %2728  ;;  %v3221_v10 = vsel %vm1961_vm5, %v10111_v37, %v3220_v26  ;;  %v2869_v26 = vsel %vm826_vm4, %v2867_v39, %v2868_v2  ;;  %v2961_v37 = vmul.f32 %v8154_v38, %v8056_v45 }
 0x38b   : > { %v3117_v1 = vrot.slane %v3104_v17, 2  ;;  %v2895_v17 = vmul.f32 %v8103_v19, %v8056_v45 }
 0x38d   : > { %v2905_v8 = vrot.slane %v2895_v17, 1 }
 0x390   : > { %2985 = vrot.lane.b32.xlu2 %v2978_v54, %s5736_s23  ;;  %3191 = vrot.lane.b32.xlu0 %v3184_v59, %s5736_s23  ;;  %v3118_v54 = vsel %vm1961_vm5, %v10112_v56, %v3117_v1  ;;  %v2896_v59 = vmul.f32 %v8103_v19, %v8058_v0  ;;  %v2906_v19 = vsel %vm826_vm4, %v2904_v13, %v2905_v8 }
 0x391   : > { %3228 = vrot.lane.b32.xlu1 %v3221_v10, %s5737_s19  ;;  %v2871_v10 = vsel %vm826_vm4, %v2868_v2, %v2870_v7  ;;  %v10367_v2 = vrot.slane %v8119_v21, 1  ;;  %v2960_v13 = vmul.f32 %v8154_v38, %v8036_v47 }
 0x392   : > { %v8217_v12 = vpop.permute.xlu2 %2816  ;;  %v2907_v39 = vrot.slane %v2896_v59, 1  ;;  %v2962_v59 = vmul.f32 %v8154_v38, %v8058_v0  ;;  %v2999_v38 = vmul.f32 %v8126_v33, %v8058_v0 }
 0x394   : > { %v2973_v58 = vrot.slane %v2962_v59, 1  ;;  %v2908_v17 = vsel %vm826_vm4, %v2905_v8, %v2907_v39 }
 0x398   : > { %3125 = vrot.lane.b32.xlu2 %v3118_v54, %s5737_s19  ;;  %2876 = vrot.lane.b32.xlu0 %v2869_v26, %s5736_s23  ;;  %v2873_v54 = vsel %vm826_vm4, %v2870_v7, %v10366_v22  ;;  %v2910_v26 = vsel %vm826_vm4, %v2907_v39, %v10367_v2  ;;  %v2997_v2 = vmul.f32 %v8126_v33, %v8036_v47 }
 0x399   : > { %2878 = vrot.lane.b32.xlu1 %v2871_v10, %s5736_s23  ;;  %v2971_v10 = vrot.slane %v2961_v37, 1 }
 0x39a   : > { %v8236_v1 = vpop.permute.xlu2 %3269  ;;  %v3007_v56 = vrot.slane %v2997_v2, 1 }
 0x39b   : > { %10365 = vst [vmem:[#allocation41_spill] sm:$0xff] %v8236_v1  ;;  %v2974_v22 = vsel %vm826_vm4, %v2971_v10, %v2973_v58 }
 0x3a0   : > { %2880 = vrot.lane.b32.xlu2 %v2873_v54, %s5736_s23  ;;  %2917 = vrot.lane.b32.xlu0 %v2910_v26, %s5737_s19  ;;  %v2998_v54 = vmul.f32 %v8126_v33, %v8056_v45  ;;  %v2976_v26 = vsel %vm826_vm4, %v2973_v58, %v2975_v15  ;;  %v3063_v33 = vmul.f32 %v8128_v32, %v8036_v47 }
 0x3a1   : > { %2913 = vrot.lane.b32.xlu1 %v2906_v19, %s5737_s19  ;;  %v2970_v19 = vrot.slane %v2960_v13, 1  ;;  %v3064_v13 = vmul.f32 %v8128_v32, %v8056_v45 }
 0x3a2   : > { %v8252_v48 = vpop.permute.xlu0 %2754  ;;  %v8254_v7 = vpop.permute.xlu2 %3357  ;;  %v3008_v59 = vrot.slane %v2998_v54, 1 }
 0x3a3   : > { %10368 = vst [vmem:[#allocation39_spill] sm:$0xff] %v8254_v7  ;;  %v8256_v21 = vpop.permute.xlu1 %2790  ;;  %v2972_v15 = vsel %vm826_vm4, %v2970_v19, %v2971_v10  ;;  %v3073_v19 = vrot.slane %v3063_v33, 2  ;;  %v8511_v7 = vstv %s5290_s20  ;;  %s3795_s20 = sld [smem:[#allocation12]] }
 0x3a4   : > { %v3009_v58 = vsel %vm826_vm4, %v3007_v56, %v3008_v59  ;;  %v8290_v56 = vstv %s5278_s16  ;;  %s8610_s16 = sld [smem:[#allocation9 + $0x46]] }
 0x3a8   : > { %2915 = vrot.lane.b32.xlu2 %v2908_v17, %s5737_s19  ;;  %2981 = vrot.lane.b32.xlu0 %v2974_v22, %s5736_s23  ;;  %v3010_v17 = vrot.slane %v2999_v38, 1  ;;  %v3065_v22 = vmul.f32 %v8128_v32, %v8058_v0  ;;  %v2769_v32 = vmul.f32 %v8290_v56, %v8011_v28 }
 0x3a9   : > { %2983 = vrot.lane.b32.xlu1 %v2976_v26, %s5736_s23 }
 0x3aa   : > { %v8270_v37 = vpop.permute.xlu0 %3295  ;;  %v8272_v39 = vpop.permute.xlu2 %2722  ;;  %v3011_v26 = vsel %vm826_vm4, %v3008_v59, %v3010_v17  ;;  %v3076_v38 = vrot.slane %v3065_v22, 2  ;;  %v3074_v59 = vrot.slane %v3064_v13, 2  ;;  %v10374_v22 = vrot.slane %v8137_v9, 1 }
 0x3ab   : > { %10369 = vst [vmem:[#allocation40_spill] sm:$0xff] %v8270_v37  ;;  %v8276_v8 = vpop.permute.xlu1 %3331  ;;  %v10375_v13 = vrot.slane %v8148_v43, 2  ;;  %v8324_v9 = vstv %s5281_s4  ;;  %v3537_v37 = vstv %s5304_s18  ;;  %s8771_s4 = sld [smem:[#allocation9 + $0x42]] }
 0x3ac   : > { %10370 = vst [vmem:[#allocation42_spill] sm:$0xff] %v8276_v8  ;;  %v3013_v33 = vsel %vm826_vm4, %v3010_v17, %v10374_v22  ;;  %v3111_v22 = vrot.slane %v3101_v31, 2  ;;  %v3539_v1 = vmul.f32 %v3537_v37, %v8080_v60  ;;  %s3789_s18 = sld [smem:[#allocation10]] }
 0x3b0   : > { %2979 = vrot.lane.b32.xlu2 %v2972_v15, %s5736_s23  ;;  %3016 = vrot.lane.b32.xlu0 %v3009_v58, %s5737_s19  ;;  %v2659_v15 = vadd.f32 %v7997_v20, %v7966_v6  ;;  %v8300_v58 = vstv %s5275_s9  ;;  %v3079_v6 = vsel %vm1961_vm5, %v3076_v38, %v10375_v13  ;;  %v8315_v20 = vstv %s5284_s29  ;;  %s8660_s9 = sld [smem:[#allocation9 + $0x47]] }
 0x3b1   : > { %3018 = vrot.lane.b32.xlu1 %v3011_v26, %s5737_s19  ;;  %v10373_v26 = vld [vmem:[#allocation106_spill] sm:$0xff]  ;;  %v2707_v40 = vmul.f32 %v8300_v58, %v8011_v28  ;;  %s8740_s29 = sld [smem:[#allocation9 + $0x3f]] }
 0x3b2   : > { %v8292_v10 = vpop.permute.xlu0 %2748  ;;  %v8294_v54 = vpop.permute.xlu2 %2810  ;;  %v2556_v61 = vadd.f32 %v7978_v46, %v10373_v26  ;;  %v2696_v14 = vadd.f32 %v8000_v62, %v2659_v15  ;;  %v3075_v46 = vsel %vm1961_vm5, %v3073_v19, %v3074_v59  ;;  %v3102_v62 = vmul.f32 %v8194_v36, %v8058_v0 }
 0x3b3   : > { %10371 = vst [vmem:[#allocation81_spill] sm:$0xff] %v8294_v54  ;;  %v8296_v2 = vpop.permute.xlu1 %2784  ;;  %v8334_v19 = vmul.f32 %v8315_v20, %v8011_v28 }
 0x3b4   : > { %10372 = vst [vmem:[#allocation43_spill] sm:$0xff] %v8296_v2  ;;  %v2773_v17 = vadd.f32 %v2769_v32, %v2696_v14  ;;  %v2593_v43 = vadd.f32 %v7976_v63, %v2556_v61  ;;  %v8343_v14 = vmul.f32 %v8324_v9, %v8011_v28  ;;  %v2832_v63 = vmul.f32 %v8324_v9, %v8099_v34 }
 0x3b5   : > { %v3113_v31 = vrot.slane %v3102_v62, 2  ;;  %v3077_v32 = vsel %vm1961_vm5, %v3074_v59, %v3076_v38  ;;  %v10380_v62 = vrot.slane %v8199_v57, 2 }
 0x3b6   : > { %v2799_v13 = vadd.f32 %v8256_v21, %v2773_v17  ;;  %10379 = vst [vmem:[#allocation75_spill] sm:$0xff] %v8343_v14  ;;  %v2711_v61 = vadd.f32 %v2707_v40, %v2593_v43  ;;  %v3166_v40 = vmul.f32 %v8157_v51, %v8036_v47  ;;  %v10114_v38 = vrot.slane %v8343_v14, 1 }
 0x3b7   : > { %v3114_v17 = vsel %vm1961_vm5, %v3111_v22, %v3113_v31  ;;  %v2845_v59 = vrot.slane %v2832_v63, 1 }
 0x3b8   : > { %3020 = vrot.lane.b32.xlu2 %v3013_v33, %s5737_s19  ;;  %3086 = vrot.lane.b32.xlu0 %v3079_v6, %s5736_s23  ;;  %v2935_v33 = vmul.f32 %v8315_v20, %v8099_v34  ;;  %v2737_v21 = vadd.f32 %v8190_v25, %v2711_v61  ;;  %v2825_v42 = vadd.f32 %v8217_v12, %v2799_v13  ;;  %v3176_v61 = vrot.slane %v3166_v40, 2 }
 0x3b9   : > { %3082 = vrot.lane.b32.xlu1 %v3075_v46, %s5736_s23  ;;  %v3100_v46 = vmul.f32 %v8194_v36, %v8036_v47  ;;  %v3116_v25 = vsel %vm1961_vm5, %v3113_v31, %v10380_v62  ;;  %v3168_v13 = vmul.f32 %v8157_v51, %v8058_v0  ;;  %v3204_v40 = vmul.f32 %v8159_v4, %v8056_v45 }
 0x3ba   : > { %v8328_v15 = vpop.permute.xlu0 %3289  ;;  %v8330_v26 = vpop.permute.xlu2 %3263  ;;  %v2948_v11 = vrot.slane %v2935_v33, 1  ;;  %v2763_v36 = vadd.f32 %v8252_v48, %v2737_v21 }
 0x3bb   : > { %10376 = vst [vmem:[#allocation69_spill] sm:$0xff] %v8328_v15  ;;  %v8339_v6 = vpop.permute.xlu1 %3325  ;;  %v3167_v15 = vmul.f32 %v8157_v51, %v8056_v45  ;;  %v3110_v33 = vrot.slane %v3100_v46, 2  ;;  %v3179_v46 = vrot.slane %v3168_v13, 2  ;;  %v3397_v13 = vstv %s5300_s15  ;;  %s8773_s15 = sld [smem:[#allocation9 + $0x1b]] }
 0x3bc   : > { %10377 = vst [vmem:[#allocation45_spill] sm:$0xff] %v8330_v26  ;;  %v10115_v26 = vrot.slane %v8334_v19, 1 }
 0x3bd   : > { %10378 = vst [vmem:[#allocation44_spill] sm:$0xff] %v8339_v6  ;;  %v3177_v57 = vrot.slane %v3167_v15, 2  ;;  %v3112_v51 = vsel %vm1961_vm5, %v3110_v33, %v3111_v22  ;;  %v3203_v15 = vmul.f32 %v8159_v4, %v8036_v47  ;;  %v3214_v33 = vrot.slane %v3204_v40, 2  ;;  %v10401_v6 = vld [vmem:[#allocation82_spill] sm:$0xff] }
 0x3be   : > { %v2949_v48 = vsel %vm826_vm4, %v10115_v26, %v2948_v11  ;;  %v3205_v11 = vmul.f32 %v8159_v4, %v8058_v0  ;;  %v10385_v47 = vrot.slane %v8185_v3, 2  ;;  %v3400_v3 = vmul.f32 %v3397_v13, %v8082_v27 }
 0x3bf   : > { %v8377_v31 = vadd.f32 %v2949_v48, %v2825_v42  ;;  %v3180_v42 = vsel %vm1961_vm5, %v3177_v57, %v3179_v46  ;;  %v10384_v48 = vrot.slane %v8174_v24, 2 }
 0x3c0   : > { %3084 = vrot.lane.b32.xlu2 %v3077_v32, %s5736_s23  ;;  %3121 = vrot.lane.b32.xlu0 %v3114_v17, %s5737_s19  ;;  %v2846_v32 = vsel %vm826_vm4, %v10114_v38, %v2845_v59  ;;  %v3178_v17 = vsel %vm1961_vm5, %v3176_v61, %v3177_v57  ;;  %v3216_v62 = vrot.slane %v3205_v11, 2  ;;  %v3399_v61 = vmul.f32 %v3397_v13, %v8080_v60 }
 0x3c1   : > { %3123 = vrot.lane.b32.xlu1 %v3116_v25, %s5737_s19  ;;  %v8382_v21 = vadd.f32 %v2846_v32, %v2763_v36  ;;  %v3213_v25 = vrot.slane %v3203_v15, 2  ;;  %v3182_v57 = vsel %vm1961_vm5, %v3179_v46, %v10384_v48  ;;  %v3398_v32 = vmul.f32 %v3397_v13, %v8046_v18  ;;  %v8421_v15 = vld [vmem:[#allocation2 + $0x98] sm:$0x3] }
 0x3c2   : > { %v8366_v43 = vpop.permute.xlu2 %3351  ;;  %v8368_v12 = vpop.permute.xlu0 %2724  ;;  %v3219_v4 = vsel %vm1961_vm5, %v3216_v62, %v10385_v47  ;;  %v3409_v11 = vrot.slane %v3399_v61, 1  ;;  %v3411_v40 = vrot.slane %v3400_v3, 1  ;;  %v3401_v48 = vmul.f32 %v3397_v13, %v8022_v50 }
 0x3c3   : > { %10381 = vst [vmem:[#allocation73_spill] sm:$0xff] %v8366_v43  ;;  %v8375_v63 = vpop.permute.xlu1 %2726  ;;  %v3434_v47 = vstv %s5301_s28  ;;  %s8788_s28 = sld [smem:[#allocation9 + $0x1e]] }
 0x3c4   : > { %10382 = vst [vmem:[#allocation48_spill] sm:$0xff] %v8375_v63  ;;  %v3435_v61 = vmul.f32 %v3434_v47, %v8046_v18  ;;  %v3437_v26 = vmul.f32 %v3434_v47, %v8082_v27 }
 0x3c6   : > { %v3445_v38 = vrot.slane %v3435_v61, 1 }
 0x3c8   : > { %3119 = vrot.lane.b32.xlu2 %v3112_v51, %s5737_s19  ;;  %3185 = vrot.lane.b32.xlu0 %v3178_v17, %s5736_s23  ;;  %v3215_v51 = vsel %vm1961_vm5, %v3213_v25, %v3214_v33  ;;  %v3217_v25 = vsel %vm1961_vm5, %v3214_v33, %v3216_v62 }
 0x3c9   : > { %3187 = vrot.lane.b32.xlu1 %v3180_v42, %s5736_s23  ;;  %v3408_v42 = vrot.slane %v3398_v32, 1  ;;  %v3436_v32 = vmul.f32 %v3434_v47, %v8080_v60 }
 0x3ca   : > { %v8396_v22 = vpop.permute.xlu2 %2752  ;;  %v8398_v59 = vpop.permute.xlu0 %2788 }
 0x3cb   : > { %10383 = vst [vmem:[#allocation66_spill] sm:$0xff] %v8396_v22  ;;  %v8400_v36 = vpop.permute.xlu1 %2750  ;;  %v8481_v22 = vstv %s5287_s17  ;;  %s5308_s17 = sld [smem:[#allocation9 + $0x45]] }
 0x3d0   : > { %3189 = vrot.lane.b32.xlu2 %v3182_v57, %s5736_s23  ;;  %3226 = vrot.lane.b32.xlu0 %v3219_v4, %s5737_s19  ;;  %v3410_v57 = vsel %vm826_vm4, %v3408_v42, %v3409_v11  ;;  %v3402_v4 = vmul.f32 %v3397_v13, %v8421_v15  ;;  %v3413_v42 = vrot.slane %v3401_v48, 1  ;;  %v3439_v48 = vmul.f32 %v3434_v47, %v8421_v15 }
 0x3d1   : > { %3222 = vrot.lane.b32.xlu1 %v3215_v51, %s5737_s19  ;;  %v3412_v51 = vsel %vm826_vm4, %v3409_v11, %v3411_v40 }
 0x3d2   : > { %v8414_v24 = vpop.permute.xlu2 %2786  ;;  %v8416_v46 = vpop.permute.xlu0 %2812  ;;  %v3415_v13 = vrot.slane %v3402_v4, 1  ;;  %v3414_v11 = vsel %vm826_vm4, %v3411_v40, %v3413_v42 }
 0x3d3   : > { %10386 = vst [vmem:[#allocation49_spill] sm:$0xff] %v8414_v24  ;;  %v8419_v17 = vpop.permute.xlu1 %2814 }
 0x3d4   : > { %10387 = vst [vmem:[#allocation46_spill] sm:$0xff] %v8416_v46  ;;  %v3438_v46 = vmul.f32 %v3434_v47, %v8022_v50 }
 0x3d8   : > { %3224 = vrot.lane.b32.xlu2 %v3217_v25, %s5737_s19  ;;  %3417 = vrot.lane.b32.xlu0 %v3410_v57, %s5736_s23  ;;  %v3446_v25 = vrot.slane %v3436_v32, 1  ;;  %v3416_v57 = vsel %vm826_vm4, %v3413_v42, %v3415_v13  ;;  %v3448_v32 = vrot.slane %v3437_v26, 1  ;;  %v3450_v42 = vrot.slane %v3438_v46, 1  ;;  %v10394_v13 = vld [vmem:[#allocation30_spill] sm:$0xff] }
 0x3d9   : > { %3419 = vrot.lane.b32.xlu1 %v3412_v51, %s5736_s23 }
 0x3da   : > { %v8433_v3 = vpop.permute.xlu2 %3293  ;;  %v8435_v62 = vpop.permute.xlu0 %3265  ;;  %v3447_v51 = vsel %vm826_vm4, %v3445_v38, %v3446_v25  ;;  %v3500_v38 = vstv %s5303_s5  ;;  %v3449_v47 = vsel %vm826_vm4, %v3446_v25, %v3448_v32  ;;  %s5305_s5 = sld [smem:[#allocation9 + $0x21]] }
 0x3db   : > { %10388 = vst [vmem:[#allocation65_spill] sm:$0xff] %v8433_v3  ;;  %v8437_v33 = vpop.permute.xlu1 %3267  ;;  %v10395_v3 = vld [vmem:[#allocation53_spill] sm:$0xff]  ;;  %v3503_v46 = vmul.f32 %v3500_v38, %v8082_v27 }
 0x3dc   : > { %10389 = vst [vmem:[#allocation67_spill] sm:$0xff] %v8435_v62  ;;  %v10404_v62 = vld [vmem:[#allocation31_spill] sm:$0xff] }
 0x3dd   : > { %10390 = vst [vmem:[#allocation84_spill] sm:$0xff] %v8437_v33  ;;  %v3452_v33 = vrot.slane %v3439_v48, 1  ;;  %v8466_v48 = vld [vmem:[#allocation2 + $0x30] sm:$0xff]  ;;  %v3514_v63 = vrot.slane %v3503_v46, 1 }
 0x3df   : > { %v3453_v26 = vsel %vm826_vm4, %v3450_v42, %v3452_v33 }
 0x3e0   : > { %3421 = vrot.lane.b32.xlu2 %v3414_v11, %s5736_s23  ;;  %3423 = vrot.lane.b32.xlu0 %v3416_v57, %s5736_s23  ;;  %v2013_v11 = vadd.f32 %v10395_v3, %v10394_v13  ;;  %v10396_v57 = vld [vmem:[#allocation59_spill] sm:$0xff]  ;;  %v3504_v3 = vmul.f32 %v3500_v38, %v8022_v50  ;;  %v10397_v13 = vld [vmem:[#allocation58_spill] sm:$0xff] }
 0x3e1   : > { %3454 = vrot.lane.b32.xlu1 %v3447_v51, %s5737_s19  ;;  %v3451_v51 = vsel %vm826_vm4, %v3448_v32, %v3450_v42  ;;  %v2164_v25 = vmul.f32 %v8466_v48, %v10397_v13  ;;  %v10398_v32 = vld [vmem:[#allocation33_spill] sm:$0xff] }
 0x3e2   : > { %v8448_v4 = vpop.permute.xlu2 %3327  ;;  %v8450_v61 = vpop.permute.xlu0 %3329  ;;  %v2050_v24 = vadd.f32 %v10396_v57, %v2013_v11  ;;  %v8472_v11 = vmul.f32 %v8466_v48, %v10398_v32  ;;  %v3516_v43 = vrot.slane %v3504_v3, 1  ;;  %v3538_v3 = vmul.f32 %v3537_v37, %v8046_v18 }
 0x3e3   : > { %10391 = vst [vmem:[#allocation92_spill] sm:$0xff] %v8448_v4  ;;  %v8452_v40 = vpop.permute.xlu1 %3291  ;;  %v3501_v4 = vmul.f32 %v3500_v38, %v8046_v18 }
 0x3e4   : > { %10392 = vst [vmem:[#allocation88_spill] sm:$0xff] %v8450_v61  ;;  %v3502_v61 = vmul.f32 %v3500_v38, %v8080_v60  ;;  %v2168_v42 = vadd.f32 %v2164_v25, %v2050_v24  ;;  %v8489_v24 = vmul.f32 %v8481_v22, %v8011_v28 }
 0x3e5   : > { %10393 = vst [vmem:[#allocation110_spill] sm:$0xff] %v8452_v40 }
 0x3e6   : > { %v3512_v14 = vrot.slane %v3502_v61, 1  ;;  %v2194_v40 = vadd.f32 %v10401_v6, %v2168_v42  ;;  %10402 = vst [vmem:[#allocation86_spill] sm:$0xff] %v8489_v24  ;;  %v10403_v61 = vld [vmem:[#allocation85_spill] sm:$0xff]  ;;  %v3540_v42 = vmul.f32 %v3537_v37, %v8082_v27 }
 0x3e8   : > { %3456 = vrot.lane.b32.xlu2 %v3449_v47, %s5737_s19  ;;  %3458 = vrot.lane.b32.xlu0 %v3451_v51, %s5737_s19  ;;  %v3511_v51 = vrot.slane %v3501_v4, 1  ;;  %v3038_v4 = vmul.f32 %v8481_v22, %v8099_v34  ;;  %v2220_v25 = vadd.f32 %v10403_v61, %v2194_v40  ;;  %v3515_v6 = vsel %vm826_vm4, %v3512_v14, %v3514_v63  ;;  %v10406_v40 = vld [vmem:[#allocation77_spill] sm:$0xff] }
 0x3e9   : > { %3460 = vrot.lane.b32.xlu1 %v3453_v26, %s5737_s19  ;;  %v3505_v26 = vmul.f32 %v3500_v38, %v8421_v15  ;;  %v3517_v38 = vsel %vm826_vm4, %v3514_v63, %v3516_v43  ;;  %v10407_v61 = vrot.slane %v10406_v40, 1  ;;  %v3548_v40 = vrot.slane %v3538_v3, 1 }
 0x3ea   : > { %v8475_v57 = vpop.permute.xlu2 %2985  ;;  %v8477_v33 = vpop.permute.xlu0 %3353  ;;  %v3513_v46 = vsel %vm826_vm4, %v3511_v51, %v3512_v14  ;;  %v10408_v51 = vrot.slane %v8472_v11, 1  ;;  %v3051_v2 = vrot.slane %v3038_v4, 2 }
 0x3eb   : > { %10399 = vst [vmem:[#allocation108_spill] sm:$0xff] %v8477_v33  ;;  %v8479_v47 = vpop.permute.xlu1 %3355  ;;  %v3518_v8 = vrot.slane %v3505_v26, 1  ;;  %v10411_v26 = vld [vmem:[#allocation54_spill] sm:$0xff] }
 0x3ec   : > { %10400 = vst [vmem:[#allocation95_spill] sm:$0xff] %v8479_v47  ;;  %v10405_v47 = vld [vmem:[#allocation57_spill] sm:$0xff]  ;;  %v2301_v14 = vsel %vm826_vm4, %v10408_v51, %v10407_v61  ;;  %v3551_v61 = vrot.slane %v3540_v42, 1  ;;  %v8523_v51 = vmul.f32 %v8511_v7, %v8011_v28  ;;  %v10414_v42 = vrot.slane %v8489_v24, 2 }
 0x3ed   : > { %v2012_v33 = vadd.f32 %v10405_v47, %v10404_v62  ;;  %v2311_v53 = vadd.f32 %v2301_v14, %v2220_v25  ;;  %v10412_v25 = vld [vmem:[#allocation99_spill] sm:$0xff]  ;;  %v10413_v14 = vld [vmem:[#allocation50_spill] sm:$0xff]  ;;  %v3519_v54 = vsel %vm826_vm4, %v3516_v43, %v3518_v8 }
 0x3ee   : > { %10410 = vst [vmem:[#allocation76_spill] sm:$0xff] %v8523_v51  ;;  %v8531_v3 = vmul.f32 %v8466_v48, %v10413_v14  ;;  %v3052_v28 = vsel %vm1961_vm5, %v10414_v42, %v3051_v2 }
 0x3ef   : > { %v2049_v4 = vadd.f32 %v10411_v26, %v2012_v33  ;;  %v3542_v26 = vmul.f32 %v3537_v37, %v8421_v15 }
 0x3f0   : > { %3520 = vrot.lane.b32.xlu2 %v3513_v46, %s5736_s23  ;;  %3522 = vrot.lane.b32.xlu0 %v3515_v6, %s5736_s23  ;;  %v3549_v6 = vrot.slane %v3539_v1, 1  ;;  %v3141_v1 = vmul.f32 %v8511_v7, %v8099_v34 }
 0x3f1   : > { %3524 = vrot.lane.b32.xlu1 %v3517_v38, %s5736_s23  ;;  %v2163_v38 = vmul.f32 %v8517_v30, %v10397_v13 }
 0x3f2   : > { %v8513_v46 = vpop.permute.xlu2 %3125  ;;  %v2883_v63 = vpop.permute.xlu0 %2882  ;;  %v3552_v13 = vsel %vm826_vm4, %v3549_v6, %v3551_v61  ;;  %v3550_v34 = vsel %vm826_vm4, %v3548_v40, %v3549_v6  ;;  %v3154_v2 = vrot.slane %v3141_v1, 2  ;;  %v2994_v6 = vadd.f32 %v8475_v57, %v8377_v31 }
 0x3f3   : > { %10409 = vst [vmem:[#allocation109_spill] sm:$0xff] %v8513_v46  ;;  %v2891_v62 = vadd.f32 %v2883_v63, %v8382_v21  ;;  %v2920_v47 = vpop.permute.xlu1 %2919  ;;  %v2348_v21 = vadd.f32 %v10412_v25, %v2311_v53  ;;  %v3541_v46 = vmul.f32 %v3537_v37, %v8022_v50  ;;  %v3603_v53 = vstv %s8497_s7  ;;  %s5311_s7 = sld [smem:[#allocation10 + $0x1]] }
 0x3f4   : > { %v3604_v8 = vmul.f32 %v3603_v53, %v8046_v18  ;;  %v3605_v43 = vmul.f32 %v3603_v53, %v8080_v60  ;;  %v2287_v37 = vmul.f32 %v8517_v30, %v10398_v32 }
 0x3f5   : > { %v2928_v63 = vadd.f32 %v2920_v47, %v2891_v62  ;;  %v2167_v47 = vadd.f32 %v2163_v38, %v2049_v4  ;;  %v3553_v1 = vrot.slane %v3541_v46, 1  ;;  %v3555_v38 = vrot.slane %v3542_v26, 1  ;;  %v10417_v4 = vld [vmem:[#allocation101_spill] sm:$0xff] }
 0x3f6   : > { %v2385_v62 = vadd.f32 %v10417_v4, %v2348_v21  ;;  %v3614_v31 = vrot.slane %v3604_v8, 2  ;;  %v3615_v57 = vrot.slane %v3605_v43, 2  ;;  %v10422_v46 = vld [vmem:[#allocation105_spill] sm:$0xff]  ;;  %v10424_v21 = vrot.slane %v8531_v3, 2 }
 0x3f7   : > { %v8540_v33 = vadd.f32 %v3052_v28, %v2928_v63  ;;  %v10416_v63 = vld [vmem:[#allocation64_spill] sm:$0xff]  ;;  %v10423_v26 = vrot.slane %v10422_v46, 2  ;;  %v3554_v43 = vsel %vm826_vm4, %v3551_v61, %v3553_v1  ;;  %v3607_v4 = vmul.f32 %v3603_v53, %v8022_v50 }
 0x3f8   : > { %3526 = vrot.lane.b32.xlu2 %v3519_v54, %s5736_s23  ;;  %3557 = vrot.lane.b32.xlu0 %v3550_v34, %s5737_s19  ;;  %v2193_v42 = vadd.f32 %v10416_v63, %v2167_v47  ;;  %v10419_v54 = vld [vmem:[#allocation56_spill] sm:$0xff]  ;;  %v2297_v63 = vrot.slane %v2287_v37, 1  ;;  %v3608_v37 = vmul.f32 %v3603_v53, %v8421_v15 }
 0x3f9   : > { %3559 = vrot.lane.b32.xlu1 %v3552_v13, %s5737_s19  ;;  %v10418_v13 = vrot.slane %v8523_v51, 2  ;;  %v2507_v8 = vsel %vm1961_vm5, %v10424_v21, %v10423_v26  ;;  %v3619_v26 = vrot.slane %v3607_v4, 2  ;;  %v10428_v21 = vld [vmem:[#allocation47_spill] sm:$0xff] }
 0x3fa   : > { %v8555_v40 = vpop.permute.xlu2 %2880  ;;  %v3023_v25 = vpop.permute.xlu0 %3022 }
 0x3fb   : > { %10415 = vst [vmem:[#allocation89_spill] sm:$0xff] %v8555_v40  ;;  %v3031_v28 = vadd.f32 %v3023_v25, %v2994_v6  ;;  %v8558_v34 = vpop.permute.xlu1 %3088  ;;  %v3155_v32 = vsel %vm1961_vm5, %v10418_v13, %v3154_v2  ;;  %v10420_v40 = vld [vmem:[#allocation63_spill] sm:$0xff]  ;;  %v3556_v2 = vsel %vm826_vm4, %v3553_v1, %v3555_v38  ;;  %v2517_v13 = vadd.f32 %v2507_v8, %v2385_v62 }
 0x3fc   : > { %v2115_v47 = vadd.f32 %v10420_v40, %v10419_v54  ;;  %v10421_v6 = vld [vmem:[#allocation87_spill] sm:$0xff]  ;;  %v3616_v54 = vsel %vm1961_vm5, %v3614_v31, %v3615_v57  ;;  %v10425_v40 = vld [vmem:[#allocation68_spill] sm:$0xff]  ;;  %v2705_v1 = vmul.f32 %v8300_v58, %v8056_v45  ;;  %v2390_v8 = vmul.f32 %v8517_v30, %v10428_v21 }
 0x3fd   : > { %v8564_v24 = vadd.f32 %v3155_v32, %v3031_v28  ;;  %v2219_v25 = vadd.f32 %v10421_v6, %v2193_v42  ;;  %v3606_v28 = vmul.f32 %v3603_v53, %v8082_v27  ;;  %v2554_v61 = vadd.f32 %v7968_v52, %v2517_v13  ;;  %v10426_v32 = vld [vmem:[#allocation70_spill] sm:$0xff] }
 0x3fe   : > { %v2152_v42 = vadd.f32 %v10425_v40, %v2115_v47  ;;  %v2225_v31 = vmul.f32 %v8517_v30, %v10426_v32  ;;  %v10427_v6 = vrot.slane %v8472_v11, 1  ;;  %v2493_v11 = vmul.f32 %v8517_v30, %v10413_v14 }
 0x3ff   : > { %v3617_v46 = vrot.slane %v3606_v28, 2  ;;  %v10429_v28 = vld [vmem:[#allocation100_spill] sm:$0xff]  ;;  %v8615_v40 = vmul.f32 %v8324_v9, %v8058_v0 }
 0x400   : > { %3561 = vrot.lane.b32.xlu2 %v3554_v43, %s5737_s19  ;;  %3563 = vrot.lane.b32.xlu0 %v3556_v2, %s5737_s19  ;;  %v2299_v53 = vsel %vm826_vm4, %v2297_v63, %v10427_v6  ;;  %v2591_v43 = vadd.f32 %v7986_v55, %v2554_v61  ;;  %v3621_v2 = vrot.slane %v3608_v37, 2  ;;  %v2229_v13 = vadd.f32 %v2225_v31, %v2152_v42 }
 0x401   : > { %3623 = vrot.lane.b32.xlu1 %v3616_v54, %s5736_s23  ;;  %v2310_v52 = vadd.f32 %v2299_v53, %v2219_v25  ;;  %v8605_v54 = vmul.f32 %v8466_v48, %v10428_v21  ;;  %v3640_v63 = vstv %s8566_s26  ;;  %v8619_v55 = vmul.f32 %v8324_v9, %v8056_v45  ;;  %v10430_v53 = vld [vmem:[#allocation91_spill] sm:$0xff]  ;;  %s5312_s26 = sld [smem:[#allocation12 + $0x1]] }
 0x402   : > { %v8589_v38 = vpop.permute.xlu2 %2915  ;;  %v8591_v62 = vpop.permute.xlu0 %3191  ;;  %v2709_v25 = vadd.f32 %v2705_v1, %v2591_v43  ;;  %v3618_v37 = vsel %vm1961_vm5, %v3615_v57, %v3617_v46  ;;  %v3620_v42 = vsel %vm1961_vm5, %v3617_v46, %v3619_v26  ;;  %v3641_v14 = vmul.f32 %v3640_v63, %v8046_v18  ;;  %v10431_v43 = vld [vmem:[#allocation104_spill] sm:$0xff] }
 0x403   : > { %v8598_v47 = vpop.permute.xlu1 %3228  ;;  %v2347_v4 = vadd.f32 %v10429_v28, %v2310_v52  ;;  %v3642_v61 = vmul.f32 %v3640_v63, %v8080_v60  ;;  %v3622_v1 = vsel %vm1961_vm5, %v3619_v26, %v3621_v2  ;;  %v3643_v31 = vmul.f32 %v3640_v63, %v8082_v27 }
 0x404   : > { %v3644_v6 = vmul.f32 %v3640_v63, %v8022_v50  ;;  %v2255_v52 = vadd.f32 %v10430_v53, %v2229_v13  ;;  %v2400_v21 = vrot.slane %v2390_v8, 1  ;;  %v2503_v57 = vrot.slane %v2493_v11, 2  ;;  %v10433_v53 = vld [vmem:[#allocation90_spill] sm:$0xff] }
 0x405   : > { %v2735_v46 = vadd.f32 %v8368_v12, %v2709_v25  ;;  %v2384_v28 = vadd.f32 %v10431_v43, %v2347_v4  ;;  %v3651_v8 = vrot.slane %v3641_v14, 2  ;;  %v3652_v11 = vrot.slane %v3642_v61, 2 }
 0x406   : > { %v2841_v12 = vrot.slane %v8615_v40, 1  ;;  %v3654_v25 = vrot.slane %v3643_v31, 2  ;;  %v2281_v32 = vadd.f32 %v10433_v53, %v2255_v52  ;;  %v10434_v43 = vrot.slane %v8531_v3, 2 }
 0x407   : > { %v2761_v50 = vadd.f32 %v8400_v36, %v2735_v46  ;;  %v10435_v36 = vrot.slane %v8619_v55, 1  ;;  %v3645_v61 = vmul.f32 %v3640_v63, %v8421_v15  ;;  %v3653_v52 = vsel %vm1961_vm5, %v3651_v8, %v3652_v11 }
 0x408   : > { %3625 = vrot.lane.b32.xlu2 %v3618_v37, %s5736_s23  ;;  %3627 = vrot.lane.b32.xlu0 %v3620_v42, %s5736_s23  ;;  %v2401_v42 = vrot.slane %v8605_v54, 1  ;;  %v2505_v26 = vsel %vm1961_vm5, %v2503_v57, %v10434_v43  ;;  %v8668_v63 = vmul.f32 %v8481_v22, %v8056_v45  ;;  %v8684_v45 = vmul.f32 %v8481_v22, %v8058_v0 }
 0x409   : > { %3629 = vrot.lane.b32.xlu1 %v3622_v1, %s5736_s23  ;;  %v3656_v1 = vrot.slane %v3644_v6, 2  ;;  %v2516_v51 = vadd.f32 %v2505_v26, %v2384_v28  ;;  %v2842_v14 = vsel %vm826_vm4, %v10435_v36, %v2841_v12  ;;  %v2658_v28 = vadd.f32 %v7982_v5, %v7949_v29  ;;  %v8698_v36 = vld [vmem:[#allocation2 + $0x50] sm:$0xff] }
 0x40a   : > { %v8634_v37 = vpop.permute.xlu2 %2979  ;;  %v8637_v2 = vpop.permute.xlu0 %2876  ;;  %v2402_v4 = vsel %vm826_vm4, %v2400_v21, %v2401_v42  ;;  %v2852_v6 = vadd.f32 %v2842_v14, %v2761_v50  ;;  %v3655_v21 = vsel %vm1961_vm5, %v3652_v11, %v3654_v25  ;;  %v3658_v11 = vrot.slane %v3645_v61, 2 }
 0x40b   : > { %10432 = vst [vmem:[#allocation51_spill] sm:$0xff] %v8634_v37  ;;  %v2879_v13 = vpop.permute.xlu1 %2878  ;;  %v3706_v37 = vstv %s8610_s16  ;;  %v2553_v57 = vadd.f32 %v7974_v44, %v2516_v51  ;;  %v3657_v46 = vsel %vm1961_vm5, %v3654_v25, %v3656_v1  ;;  %v2413_v51 = vadd.f32 %v2402_v4, %v2281_v32  ;;  %s5314_s16 = sld [smem:[#allocation13 + $0x2]] }
 0x40c   : > { %v3708_v31 = vmul.f32 %v3706_v37, %v8080_v60  ;;  %v3707_v3 = vmul.f32 %v3706_v37, %v8046_v18  ;;  %v2768_v18 = vmul.f32 %v8290_v56, %v8058_v0  ;;  %v2889_v26 = vadd.f32 %v2879_v13, %v2852_v6 }
 0x40d   : > { %v8676_v44 = vmul.f32 %v3706_v37, %v8082_v27  ;;  %v8688_v29 = vmul.f32 %v8466_v48, %v10339_v23  ;;  %v2695_v5 = vadd.f32 %v8002_v49, %v2658_v28  ;;  %v2450_v32 = vadd.f32 %v7895_v16, %v2413_v51 }
 0x40e   : > { %v3718_v27 = vrot.slane %v3708_v31, 2  ;;  %v3717_v25 = vrot.slane %v3707_v3, 2  ;;  %v2590_v53 = vadd.f32 %v7972_v35, %v2553_v57  ;;  %v2596_v4 = vmul.f32 %v8517_v30, %v10339_v23  ;;  %v8710_v23 = vld [vmem:[#allocation2 + $0x90] sm:$0xff] }
 0x40f   : > { %v3045_v43 = vrot.slane %v8668_v63, 2  ;;  %v2704_v14 = vmul.f32 %v8698_v36, %v8300_v58  ;;  %v2772_v49 = vadd.f32 %v2768_v18, %v2695_v5  ;;  %v2926_v61 = vadd.f32 %v8589_v38, %v2889_v26 }
 0x410   : > { %3660 = vrot.lane.b32.xlu2 %v3653_v52, %s5737_s19  ;;  %3662 = vrot.lane.b32.xlu0 %v3655_v21, %s5737_s19  ;;  %v3720_v31 = vrot.slane %v8676_v44, 2  ;;  %v3659_v16 = vsel %vm1961_vm5, %v3656_v1, %v3658_v11  ;;  %v3047_v6 = vrot.slane %v8684_v45, 2  ;;  %v8708_v35 = vmul.f32 %v8315_v20, %v8058_v0  ;;  %v8724_v1 = vld [vmem:[#allocation2 + $0x78] sm:$0xff] }
 0x411   : > { %3664 = vrot.lane.b32.xlu1 %v3657_v46, %s5737_s19  ;;  %v3710_v30 = vmul.f32 %v8710_v23, %v3706_v37  ;;  %v3719_v21 = vsel %vm1961_vm5, %v3717_v25, %v3718_v27  ;;  %v3743_v3 = vstv %s8660_s9  ;;  %v3711_v38 = vmul.f32 %v3706_v37, %v8421_v15  ;;  %s5313_s9 = sld [smem:[#allocation13 + $0x1]] }
 0x412   : > { %v8678_v50 = vpop.permute.xlu2 %3020  ;;  %v8680_v8 = vpop.permute.xlu0 %2917  ;;  %v3721_v52 = vsel %vm1961_vm5, %v3718_v27, %v3720_v31  ;;  %v3048_v0 = vsel %vm1961_vm5, %v3045_v43, %v3047_v6  ;;  %v3744_v57 = vmul.f32 %v8724_v1, %v3743_v3  ;;  %v8728_v46 = vmul.f32 %v3743_v3, %v8080_v60 }
 0x413   : > { %v8691_v13 = vpop.permute.xlu1 %2913  ;;  %v2606_v28 = vrot.slane %v2596_v4, 2  ;;  %v2798_v37 = vadd.f32 %v8398_v59, %v2772_v49  ;;  %v2828_v18 = vmul.f32 %v8698_v36, %v8324_v9  ;;  %v3058_v26 = vadd.f32 %v3048_v0, %v2926_v61 }
 0x414   : > { %v2487_v44 = vadd.f32 %v7954_v41, %v2450_v32  ;;  %v2607_v51 = vrot.slane %v8688_v29, 2  ;;  %v2708_v11 = vadd.f32 %v2704_v14, %v2590_v53  ;;  %v10126_v27 = vrot.slane %v8708_v35, 1 }
 0x415   : > { %v2824_v60 = vadd.f32 %v8419_v17, %v2798_v37  ;;  %v3722_v4 = vrot.slane %v3710_v30, 2  ;;  %v3724_v49 = vrot.slane %v3711_v38, 2  ;;  %v3754_v41 = vrot.slane %v3744_v57, 2 }
 0x416   : > { %v2734_v61 = vadd.f32 %v8272_v39, %v2708_v11  ;;  %v3755_v32 = vrot.slane %v8728_v46, 2  ;;  %v2608_v53 = vsel %vm1961_vm5, %v2606_v28, %v2607_v51  ;;  %v2838_v14 = vrot.slane %v2828_v18, 1  ;;  %v8765_v28 = vld [vmem:[#allocation2 + $0x60] sm:$0xff] }
 0x417   : > { %v3723_v0 = vsel %vm1961_vm5, %v3720_v31, %v3722_v4  ;;  %v3725_v57 = vsel %vm1961_vm5, %v3722_v4, %v3724_v49  ;;  %v3747_v46 = vmul.f32 %v8710_v23, %v3743_v3  ;;  %v8769_v37 = vmul.f32 %v8765_v28, %v8511_v7 }
 0x418   : > { %3666 = vrot.lane.b32.xlu2 %v3659_v16, %s5737_s19  ;;  %3726 = vrot.lane.b32.xlu0 %v3719_v21, %s5736_s23  ;;  %v2619_v16 = vadd.f32 %v2608_v53, %v2487_v44  ;;  %v2760_v17 = vadd.f32 %v8292_v10, %v2734_v61  ;;  %v8755_v21 = vld [vmem:[#allocation2 + $0x88] sm:$0xff]  ;;  %v3756_v10 = vsel %vm1961_vm5, %v3754_v41, %v3755_v32  ;;  %v10437_v31 = vrot.slane %v8619_v55, 1  ;;  %v10438_v44 = vld [vmem:[#allocation28_spill] sm:$0xff]  ;;  %v10439_v53 = vld [vmem:[#allocation29_spill] sm:$0xff] }
 0x419   : > { %3728 = vrot.lane.b32.xlu1 %v3721_v52, %s5736_s23  ;;  %v10436_v52 = vrot.slane %v8334_v19, 1  ;;  %v3746_v39 = vmul.f32 %v8755_v21, %v3743_v3  ;;  %v3748_v19 = vmul.f32 %v3743_v3, %v8421_v15  ;;  %v3034_v3 = vmul.f32 %v8698_v36, %v8481_v22 }
 0x41a   : > { %v3085_v5 = vpop.permute.xlu2 %3084  ;;  %v8737_v25 = vpop.permute.xlu0 %2981  ;;  %v2840_v18 = vsel %vm826_vm4, %v2838_v14, %v10437_v31  ;;  %v2656_v11 = vadd.f32 %v10438_v44, %v2619_v16  ;;  %v8791_v55 = vstv %s8740_s29  ;;  %v3759_v22 = vrot.slane %v3747_v46, 2  ;;  %v10442_v31 = vld [vmem:[#allocation43_spill] sm:$0xff]  ;;  %s5316_s29 = sld [smem:[#allocation13 + $0x13]] }
 0x41b   : > { %v8742_v59 = vadd.f32 %v3085_v5, %v3058_v26  ;;  %v2984_v9 = vpop.permute.xlu1 %2983  ;;  %v2947_v30 = vsel %vm826_vm4, %v10126_v27, %v10436_v52  ;;  %v2766_v5 = vmul.f32 %v8698_v36, %v8290_v56  ;;  %v2851_v4 = vadd.f32 %v2840_v18, %v2760_v17 }
 0x41c   : > { %v2956_v38 = vadd.f32 %v2947_v30, %v2824_v60  ;;  %v3200_v60 = vadd.f32 %v8591_v62, %v8564_v24  ;;  %v3757_v41 = vrot.slane %v3746_v39, 2  ;;  %v2693_v14 = vadd.f32 %v10439_v53, %v2656_v11 }
 0x41d   : > { %v2888_v16 = vadd.f32 %v8637_v2, %v2851_v4  ;;  %v3761_v52 = vrot.slane %v3748_v19, 2  ;;  %v10122_v30 = vrot.slane %v8769_v37, 2  ;;  %v3044_v62 = vrot.slane %v3034_v3, 2 }
 0x41e   : > { %v2993_v26 = vadd.f32 %v2984_v9, %v2956_v38  ;;  %v2770_v17 = vadd.f32 %v2766_v5, %v2693_v14  ;;  %v3310_v38 = vmul.f32 %v8710_v23, %v8791_v55  ;;  %v2931_v2 = vmul.f32 %v8698_v36, %v8315_v20 }
 0x41f   : > { %v2925_v39 = vadd.f32 %v8691_v13, %v2888_v16  ;;  %v3758_v46 = vsel %vm1961_vm5, %v3755_v32, %v3757_v41  ;;  %v8824_v32 = vstv %s8771_s4  ;;  %v8832_v3 = vstv %s8773_s15  ;;  %s5317_s4 = sld [smem:[#allocation13 + $0x14]] }
 0x420   : > { %3730 = vrot.lane.b32.xlu2 %v3723_v0, %s5736_s23  ;;  %3732 = vrot.lane.b32.xlu0 %v3725_v57, %s5736_s23  ;;  %v3030_v24 = vadd.f32 %v8678_v50, %v2993_v26  ;;  %v3237_v0 = vadd.f32 %v8598_v47, %v3200_v60  ;;  %v3097_v57 = vadd.f32 %v8558_v34, %v8540_v33  ;;  %v10440_v33 = vld [vmem:[#allocation76_spill] sm:$0xff]  ;;  %v8837_v4 = vstv %s8788_s28  ;;  %s5332_s15 = sld [smem:[#allocation13 + $0xb]] }
 0x421   : > { %3763 = vrot.lane.b32.xlu1 %v3756_v10, %s5737_s19  ;;  %v3760_v50 = vsel %vm1961_vm5, %v3757_v41, %v3759_v22  ;;  %v8809_v10 = vld [vmem:[#allocation2 + $0x58] sm:$0xff]  ;;  %v3762_v47 = vsel %vm1961_vm5, %v3759_v22, %v3761_v52  ;;  %v10441_v34 = vrot.slane %v10440_v33, 2  ;;  %v2796_v18 = vadd.f32 %v10442_v31, %v2770_v17  ;;  %v10443_v41 = vld [vmem:[#allocation109_spill] sm:$0xff]  ;;  %s5331_s28 = sld [smem:[#allocation13 + $0xa]] }
 0x422   : > { %v3120_v49 = vpop.permute.xlu2 %3119  ;;  %v8786_v61 = vpop.permute.xlu0 %3016  ;;  %v8813_v19 = vmul.f32 %v8809_v10, %v8315_v20  ;;  %v3046_v26 = vsel %vm1961_vm5, %v3044_v62, %v3045_v43  ;;  %v3314_v44 = vadd.f32 %v3310_v38, %v3237_v0  ;;  %v3134_v22 = vadd.f32 %v10443_v41, %v3097_v57  ;;  %v10444_v62 = vld [vmem:[#allocation81_spill] sm:$0xff]  ;;  %v10445_v0 = vld [vmem:[#allocation42_spill] sm:$0xff]  ;;  %v10447_v41 = vld [vmem:[#allocation51_spill] sm:$0xff] }
 0x423   : > { %v8793_v9 = vpop.permute.xlu1 %3018  ;;  %v3153_v13 = vsel %vm1961_vm5, %v10122_v30, %v10441_v34  ;;  %v3057_v60 = vadd.f32 %v3046_v26, %v2925_v39  ;;  %v8842_v16 = vmul.f32 %v8710_v23, %v8824_v32  ;;  %v3476_v63 = vmul.f32 %v8824_v32, %v8421_v15 }
 0x424   : > { %v3162_v20 = vadd.f32 %v3153_v13, %v3030_v24  ;;  %v2941_v43 = vrot.slane %v2931_v2, 1  ;;  %v10123_v52 = vrot.slane %v8813_v19, 1  ;;  %v2822_v17 = vadd.f32 %v10444_v62, %v2796_v18 }
 0x425   : > { %v3248_v38 = vmul.f32 %v8710_v23, %v8832_v3  ;;  %v3340_v39 = vadd.f32 %v10445_v0, %v3314_v44  ;;  %v3489_v33 = vrot.slane %v3476_v63, 1  ;;  %v3137_v13 = vmul.f32 %v8698_v36, %v8511_v7  ;;  %v10446_v44 = vld [vmem:[#allocation39_spill] sm:$0xff]  ;;  %v10448_v36 = vld [vmem:[#allocation41_spill] sm:$0xff]  ;;  %v10449_v0 = vld [vmem:[#allocation40_spill] sm:$0xff] }
 0x426   : > { %v2943_v34 = vsel %vm826_vm4, %v2941_v43, %v10123_v52  ;;  %v10460_v52 = vld [vmem:[#allocation44_spill] sm:$0xff]  ;;  %v3245_v45 = vmul.f32 %v8724_v1, %v8832_v3 }
 0x427   : > { %v3252_v2 = vadd.f32 %v3248_v38, %v3134_v22  ;;  %v2954_v31 = vadd.f32 %v2943_v34, %v2822_v17  ;;  %v10450_v34 = vld [vmem:[#allocation55_spill] sm:$0xff] }
 0x428   : > { %3765 = vrot.lane.b32.xlu2 %v3758_v46, %s5737_s19  ;;  %3767 = vrot.lane.b32.xlu0 %v3760_v50, %s5737_s19  ;;  %v8855_v46 = vmul.f32 %v8710_v23, %v8837_v4  ;;  %v3373_v50 = vmul.f32 %v8837_v4, %v8421_v15 }
 0x429   : > { %3769 = vrot.lane.b32.xlu1 %v3762_v47, %s5737_s19  ;;  %v10119_v47 = vrot.slane %v8842_v16, 1  ;;  %v2991_v22 = vadd.f32 %v10447_v41, %v2954_v31  ;;  %v3278_v43 = vadd.f32 %v10448_v36, %v3252_v2  ;;  %v10451_v31 = vld [vmem:[#allocation62_spill] sm:$0xff]  ;;  %v10452_v41 = vld [vmem:[#allocation60_spill] sm:$0xff] }
 0x42a   : > { %v3190_v11 = vpop.permute.xlu2 %3189  ;;  %v8834_v5 = vpop.permute.xlu0 %3086  ;;  %v10120_v26 = vrot.slane %v8855_v46, 1  ;;  %v10453_v36 = vld [vmem:[#allocation70_spill] sm:$0xff] }
 0x42b   : > { %v3199_v53 = vadd.f32 %v3190_v11, %v3162_v20  ;;  %v3083_v14 = vpop.permute.xlu1 %3082  ;;  %v3366_v11 = vadd.f32 %v10446_v44, %v3340_v39  ;;  %v3028_v38 = vadd.f32 %v8786_v61, %v2991_v22  ;;  %v3304_v39 = vadd.f32 %v10449_v0, %v3278_v43 }
 0x42c   : > { %v3094_v24 = vadd.f32 %v3083_v14, %v3057_v60  ;;  %v3386_v60 = vrot.slane %v3373_v50, 1  ;;  %v2226_v43 = vmul.f32 %v8466_v48, %v10453_v36  ;;  %v3472_v48 = vmul.f32 %v8724_v1, %v8824_v32  ;;  %v10456_v36 = vld [vmem:[#allocation94_spill] sm:$0xff] }
 0x42e   : > { %v8851_v57 = vadd.f32 %v3120_v49, %v3094_v24  ;;  %v8867_v49 = vmul.f32 %v8809_v10, %v8511_v7  ;;  %v3490_v7 = vsel %vm826_vm4, %v10119_v47, %v3489_v33  ;;  %v3147_v24 = vrot.slane %v3137_v13, 2 }
 0x42f   : > { %v8882_v17 = vadd.f32 %v3490_v7, %v3366_v11  ;;  %v2116_v33 = vadd.f32 %v10451_v31, %v10450_v34  ;;  %v8901_v7 = vld [vmem:[#allocation2 + $0x80] sm:$0xff]  ;;  %v10455_v34 = vld [vmem:[#allocation67_spill] sm:$0xff] }
 0x430   : > { %v10121_v62 = vrot.slane %v8867_v49, 2 }
 0x431   : > { %v2153_v22 = vadd.f32 %v10452_v41, %v2116_v33 }
 0x432   : > { %v8869_v18 = vpop.permute.xlu2 %3224  ;;  %v3122_v20 = vpop.permute.xlu0 %3121  ;;  %v3149_v2 = vsel %vm1961_vm5, %v3147_v24, %v10121_v62  ;;  %v8909_v24 = vmul.f32 %v8901_v7, %v8837_v4 }
 0x433   : > { %v3132_v14 = vadd.f32 %v3122_v20, %v8742_v59  ;;  %v8875_v63 = vpop.permute.xlu1 %3123  ;;  %v3387_v59 = vsel %vm826_vm4, %v10120_v26, %v3386_v60  ;;  %v3160_v13 = vadd.f32 %v3149_v2, %v3028_v38  ;;  %v3246_v60 = vmul.f32 %v8901_v7, %v8832_v3  ;;  %v10454_v38 = vld [vmem:[#allocation83_spill] sm:$0xff]  ;;  %v10458_v26 = vld [vmem:[#allocation96_spill] sm:$0xff] }
 0x434   : > { %v8889_v50 = vadd.f32 %v3387_v59, %v3304_v39  ;;  %v2230_v39 = vadd.f32 %v2226_v43, %v2153_v22  ;;  %v3307_v22 = vmul.f32 %v8724_v1, %v8791_v55  ;;  %v10459_v62 = vrot.slane %v10458_v26, 1  ;;  %v10462_v26 = vld [vmem:[#allocation71_spill] sm:$0xff] }
 0x435   : > { %v3250_v0 = vadd.f32 %v3246_v60, %v3132_v14  ;;  %v8923_v14 = vmul.f32 %v8901_v7, %v8824_v32 }
 0x436   : > { %v2256_v59 = vadd.f32 %v10454_v38, %v2230_v39  ;;  %v10457_v38 = vld [vmem:[#allocation110_spill] sm:$0xff]  ;;  %v2404_v30 = vsel %vm826_vm4, %v2401_v42, %v10459_v62 }
 0x437   : > { %v3276_v31 = vadd.f32 %v10455_v34, %v3250_v0  ;;  %v10125_v0 = vrot.slane %v8909_v24, 1  ;;  %v3483_v47 = vrot.slane %v8923_v14, 1 }
 0x438   : > { %v2282_v43 = vadd.f32 %v10456_v36, %v2256_v59 }
 0x43a   : > { %v8896_v20 = vpop.permute.xlu2 %3421  ;;  %v3186_v44 = vpop.permute.xlu0 %3185 }
 0x43b   : > { %v3197_v61 = vadd.f32 %v3186_v44, %v3160_v13  ;;  %v8898_v11 = vpop.permute.xlu1 %3187  ;;  %v8915_v13 = vmul.f32 %v8755_v21, %v8837_v4 }
 0x43d   : > { %v10124_v34 = vrot.slane %v8915_v13, 1 }
 0x43f   : > { %v3383_v59 = vsel %vm826_vm4, %v10125_v0, %v10124_v34  ;;  %v10465_v34 = vld [vmem:[#allocation36_spill] sm:$0xff] }
 0x442   : > { %v3457_v2 = vpop.permute.xlu2 %3456  ;;  %v3227_v33 = vpop.permute.xlu0 %3226 }
 0x443   : > { %v8917_v44 = vadd.f32 %v3227_v33, %v3199_v53  ;;  %v3223_v41 = vpop.permute.xlu1 %3222  ;;  %v3302_v53 = vadd.f32 %v10457_v38, %v3276_v31  ;;  %v3482_v33 = vrot.slane %v3472_v48, 1  ;;  %v10464_v38 = vld [vmem:[#allocation107_spill] sm:$0xff] }
 0x444   : > { %v3234_v60 = vadd.f32 %v3223_v41, %v3197_v61  ;;  %v2414_v41 = vadd.f32 %v2404_v30, %v2282_v43  ;;  %v10463_v43 = vld [vmem:[#allocation78_spill] sm:$0xff]  ;;  %v2555_v0 = vadd.f32 %v10465_v34, %v10464_v38  ;;  %v8965_v34 = vstv %s5305_s5  ;;  %s5335_s5 = sld [smem:[#allocation13 + $0x1d]] }
 0x445   : > { %v3393_v36 = vadd.f32 %v3383_v59, %v3302_v53  ;;  %v3484_v42 = vsel %vm826_vm4, %v3482_v33, %v3483_v47  ;;  %v3579_v29 = vmul.f32 %v8965_v34, %v8421_v15 }
 0x446   : > { %v3311_v39 = vadd.f32 %v3307_v22, %v3234_v60  ;;  %v10461_v22 = vld [vmem:[#allocation73_spill] sm:$0xff]  ;;  %v2451_v54 = vadd.f32 %v10462_v26, %v2414_v41 }
 0x447   : > { %v10466_v41 = vld [vmem:[#allocation61_spill] sm:$0xff] }
 0x448   : > { %v3337_v61 = vadd.f32 %v10460_v52, %v3311_v39  ;;  %v2488_v39 = vadd.f32 %v10463_v43, %v2451_v54  ;;  %v2592_v59 = vadd.f32 %v10466_v41, %v2555_v0  ;;  %v10467_v26 = vld [vmem:[#allocation37_spill] sm:$0xff]  ;;  %v8973_v0 = vmul.f32 %v8710_v23, %v8965_v34 }
 0x449   : > { %v10468_v27 = vrot.slane %v10467_v26, 2 }
 0x44a   : > { %v3521_v31 = vpop.permute.xlu2 %3520  ;;  %v3363_v48 = vadd.f32 %v10461_v22, %v3337_v61  ;;  %v8944_v60 = vpop.permute.xlu0 %3417  ;;  %v2706_v61 = vmul.f32 %v8765_v28, %v8300_v58  ;;  %v10469_v58 = vld [vmem:[#allocation72_spill] sm:$0xff]  ;;  %v3590_v41 = vrot.slane %v8973_v0, 2 }
 0x44b   : > { %v3420_v30 = vpop.permute.xlu1 %3419  ;;  %v2610_v33 = vsel %vm1961_vm5, %v2607_v51, %v10468_v27  ;;  %v10471_v51 = vld [vmem:[#allocation66_spill] sm:$0xff] }
 0x44c   : > { %v3495_v52 = vadd.f32 %v3484_v42, %v3363_v48  ;;  %v3430_v62 = vadd.f32 %v3420_v30, %v3393_v36  ;;  %v2620_v48 = vadd.f32 %v2610_v33, %v2488_v39  ;;  %v2710_v36 = vadd.f32 %v2706_v61, %v2592_v59  ;;  %v10473_v39 = vld [vmem:[#allocation75_spill] sm:$0xff] }
 0x44d   : > { %v10474_v38 = vrot.slane %v10473_v39, 1  ;;  %v3592_v59 = vrot.slane %v3579_v29, 2 }
 0x44e   : > { %v8955_v22 = vadd.f32 %v3521_v31, %v3495_v52  ;;  %v8957_v53 = vadd.f32 %v3457_v2, %v3430_v62  ;;  %v2657_v28 = vadd.f32 %v10469_v58, %v2620_v48  ;;  %v10470_v2 = vld [vmem:[#allocation48_spill] sm:$0xff]  ;;  %v2767_v52 = vmul.f32 %v8809_v10, %v8290_v56  ;;  %v10472_v62 = vld [vmem:[#allocation38_spill] sm:$0xff]  ;;  %v10475_v10 = vld [vmem:[#allocation49_spill] sm:$0xff] }
 0x44f   : > { %v2736_v31 = vadd.f32 %v10470_v2, %v2710_v36  ;;  %v2844_v61 = vsel %vm826_vm4, %v2841_v12, %v10474_v38  ;;  %v10476_v2 = vld [vmem:[#allocation89_spill] sm:$0xff]  ;;  %v3593_v40 = vsel %vm1961_vm5, %v3590_v41, %v3592_v59  ;;  %v10480_v38 = vrot.slane %v8708_v35, 1 }
 0x450   : > { %v2694_v43 = vadd.f32 %v10472_v62, %v2657_v28 }
 0x451   : > { %v2762_v27 = vadd.f32 %v10471_v51, %v2736_v31 }
 0x452   : > { %v3527_v54 = vpop.permute.xlu2 %3526  ;;  %v3424_v42 = vpop.permute.xlu0 %3423  ;;  %v2771_v26 = vadd.f32 %v2767_v52, %v2694_v43 }
 0x453   : > { %v8967_v30 = vpop.permute.xlu1 %3454  ;;  %v2853_v33 = vadd.f32 %v2844_v61, %v2762_v27  ;;  %v3432_v48 = vadd.f32 %v3424_v42, %v8889_v50  ;;  %v10477_v27 = vld [vmem:[#allocation46_spill] sm:$0xff]  ;;  %v10481_v61 = vrot.slane %v8813_v19, 1 }
 0x454   : > { %v2797_v28 = vadd.f32 %v10475_v10, %v2771_v26  ;;  %v10478_v42 = vld [vmem:[#allocation86_spill] sm:$0xff]  ;;  %v3247_v10 = vmul.f32 %v8755_v21, %v8832_v3 }
 0x455   : > { %v2890_v31 = vadd.f32 %v10476_v2, %v2853_v33  ;;  %v10479_v52 = vrot.slane %v10478_v42, 2 }
 0x456   : > { %v2823_v50 = vadd.f32 %v10477_v27, %v2797_v28  ;;  %v3369_v28 = vmul.f32 %v8724_v1, %v8837_v4 }
 0x457   : > { %v2927_v12 = vadd.f32 %v8680_v8, %v2890_v31  ;;  %v3050_v62 = vsel %vm1961_vm5, %v3047_v6, %v10479_v52  ;;  %v2945_v8 = vsel %vm826_vm4, %v10481_v61, %v10480_v38  ;;  %v10482_v31 = vld [vmem:[#allocation45_spill] sm:$0xff]  ;;  %v10487_v61 = vrot.slane %v8909_v24, 1 }
 0x458   : > { %v2955_v26 = vadd.f32 %v2945_v8, %v2823_v50  ;;  %v3379_v27 = vrot.slane %v3369_v28, 1  ;;  %v10485_v50 = vld [vmem:[#allocation84_spill] sm:$0xff]  ;;  %v3308_v24 = vmul.f32 %v8901_v7, %v8791_v55  ;;  %v10490_v28 = vrot.slane %v8915_v13, 1 }
 0x459   : > { %v3059_v43 = vadd.f32 %v3050_v62, %v2927_v12 }
 0x45a   : > { %v8988_v36 = vpop.permute.xlu0 %3458  ;;  %v8990_v58 = vpop.permute.xlu2 %3561  ;;  %v2992_v6 = vadd.f32 %v8737_v25, %v2955_v26  ;;  %v10483_v25 = vrot.slane %v8769_v37, 2  ;;  %v10486_v37 = vld [vmem:[#allocation69_spill] sm:$0xff]  ;;  %v3381_v8 = vsel %vm826_vm4, %v3379_v27, %v10487_v61  ;;  %v3575_v26 = vmul.f32 %v8724_v1, %v8965_v34  ;;  %v10492_v61 = vld [vmem:[#allocation108_spill] sm:$0xff] }
 0x45b   : > { %v3461_v56 = vpop.permute.xlu1 %3460  ;;  %v3096_v33 = vadd.f32 %v8834_v5, %v3059_v43  ;;  %v9028_v5 = vstv %s5308_s17  ;;  %s3867_s17 = sld [smem:[#allocation13]] }
 0x45c   : > { %v3469_v51 = vadd.f32 %v3461_v56, %v3432_v48  ;;  %v3249_v56 = vadd.f32 %v3245_v45, %v8851_v57  ;;  %v3029_v19 = vadd.f32 %v8793_v9, %v2992_v6  ;;  %v10484_v57 = vrot.slane %v8867_v49, 2 }
 0x45d   : > { %v3133_v35 = vadd.f32 %v8875_v63, %v3096_v33  ;;  %v9042_v3 = vmul.f32 %v8710_v23, %v9028_v5  ;;  %v3682_v4 = vmul.f32 %v9028_v5, %v8421_v15  ;;  %v3535_v23 = vadd.f32 %v3527_v54, %v8882_v17 }
 0x45e   : > { %v8998_v29 = vadd.f32 %v3593_v40, %v3469_v51  ;;  %v3275_v51 = vadd.f32 %v10482_v31, %v3249_v56  ;;  %v3151_v63 = vsel %vm1961_vm5, %v10484_v57, %v10483_v25  ;;  %v9056_v15 = vmul.f32 %v8901_v7, %v8965_v34 }
 0x45f   : > { %v3251_v2 = vadd.f32 %v3247_v10, %v3133_v35  ;;  %v3161_v12 = vadd.f32 %v3151_v63, %v3029_v19  ;;  %v3693_v43 = vrot.slane %v9042_v3, 2  ;;  %v3695_v38 = vrot.slane %v3682_v4, 2  ;;  %v10491_v4 = vld [vmem:[#allocation92_spill] sm:$0xff] }
 0x460   : > { %v3301_v62 = vadd.f32 %v10486_v37, %v3275_v51  ;;  %v10489_v10 = vrot.slane %v8855_v46, 1  ;;  %v3585_v31 = vrot.slane %v3575_v26, 2 }
 0x461   : > { %v3277_v42 = vadd.f32 %v10485_v50, %v3251_v2  ;;  %v3198_v52 = vadd.f32 %v8898_v11, %v3161_v12  ;;  %v10488_v11 = vld [vmem:[#allocation65_spill] sm:$0xff]  ;;  %v3696_v54 = vsel %vm1961_vm5, %v3693_v43, %v3695_v38 }
 0x462   : > { %v9006_v39 = vpop.permute.xlu0 %3522  ;;  %v9018_v48 = vpop.permute.xlu2 %3625  ;;  %v3392_v6 = vadd.f32 %v3381_v8, %v3301_v62  ;;  %v3385_v2 = vsel %vm826_vm4, %v10490_v28, %v10489_v10  ;;  %v10493_v10 = vld [vmem:[#allocation88_spill] sm:$0xff] }
 0x463   : > { %v9013_v59 = vpop.permute.xlu1 %3524  ;;  %v3303_v33 = vadd.f32 %v10488_v11, %v3277_v42  ;;  %v3235_v45 = vadd.f32 %v8869_v18, %v3198_v52  ;;  %v3586_v18 = vrot.slane %v9056_v15, 2  ;;  %v9094_v11 = vstv %s3789_s18  ;;  %s5319_s18 = sld [smem:[#allocation13 + $0x4]] }
 0x464   : > { %v3429_v17 = vadd.f32 %v8944_v60, %v3392_v6  ;;  %v9079_v60 = vmul.f32 %v8755_v21, %v8965_v34 }
 0x465   : > { %v3394_v25 = vadd.f32 %v3385_v2, %v3303_v33  ;;  %v3312_v57 = vadd.f32 %v3308_v24, %v3235_v45  ;;  %v3587_v46 = vsel %vm1961_vm5, %v3585_v31, %v3586_v18 }
 0x466   : > { %v3466_v63 = vadd.f32 %v8967_v30, %v3429_v17  ;;  %v3588_v52 = vrot.slane %v9079_v60, 2  ;;  %v3474_v30 = vmul.f32 %v8755_v21, %v8824_v32 }
 0x467   : > { %v3431_v13 = vadd.f32 %v8896_v20, %v3394_v25  ;;  %v3338_v27 = vadd.f32 %v10491_v4, %v3312_v57  ;;  %v3309_v20 = vmul.f32 %v8755_v21, %v8791_v55  ;;  %v9106_v55 = vstv %s3795_s20  ;;  %v10494_v57 = vld [vmem:[#allocation95_spill] sm:$0xff]  ;;  %s5315_s20 = sld [smem:[#allocation13 + $0x12]] }
 0x468   : > { %v3598_v50 = vadd.f32 %v3587_v46, %v3466_v63  ;;  %v3485_v26 = vrot.slane %v3474_v30, 1  ;;  %v3591_v32 = vsel %vm1961_vm5, %v3588_v52, %v3590_v41 }
 0x469   : > { %v3468_v37 = vadd.f32 %v8988_v36, %v3431_v13  ;;  %v3364_v8 = vadd.f32 %v10492_v61, %v3338_v27 }
 0x46a   : > { %v9031_v40 = vpop.permute.xlu0 %3557  ;;  %v3661_v49 = vpop.permute.xlu2 %3660  ;;  %v3486_v6 = vsel %vm826_vm4, %v3483_v47, %v3485_v26 }
 0x46b   : > { %v9038_v9 = vpop.permute.xlu1 %3559  ;;  %v3600_v36 = vadd.f32 %v3591_v32, %v3468_v37  ;;  %v3496_v0 = vadd.f32 %v3486_v6, %v3364_v8  ;;  %v3832_v8 = vstv %s5312_s26  ;;  %s5322_s26 = sld [smem:[#allocation13 + $0x16]] }
 0x46d   : > { %v3533_v14 = vadd.f32 %v9006_v39, %v3496_v0 }
 0x46f   : > { %v3570_v2 = vadd.f32 %v9038_v9, %v3533_v14  ;;  %v10495_v9 = vrot.slane %v8842_v16, 1 }
 0x472   : > { %v3564_v56 = vpop.permute.xlu0 %3563  ;;  %v3667_v12 = vpop.permute.xlu2 %3666 }
 0x473   : > { %v3572_v35 = vadd.f32 %v3564_v56, %v3535_v23  ;;  %v3624_v19 = vpop.permute.xlu1 %3623  ;;  %v3679_v56 = vmul.f32 %v8901_v7, %v9028_v5 }
 0x474   : > { %v3635_v62 = vadd.f32 %v3624_v19, %v3598_v50  ;;  %v3488_v50 = vsel %vm826_vm4, %v3485_v26, %v10495_v9 }
 0x475   : > { %v9074_v51 = vadd.f32 %v3696_v54, %v3572_v35  ;;  %v3689_v7 = vrot.slane %v3679_v56, 2 }
 0x476   : > { %v3672_v33 = vadd.f32 %v3661_v49, %v3635_v62  ;;  %v3680_v49 = vmul.f32 %v8755_v21, %v9028_v5  ;;  %v3826_v62 = vstv %s5311_s7  ;;  %s5320_s7 = sld [smem:[#allocation13 + $0x5]] }
 0x478   : > { %v3791_v47 = vmul.f32 %v9094_v11, %v3672_v33  ;;  %v3691_v25 = vrot.slane %v3680_v49, 2 }
 0x47a   : > { %v3628_v42 = vpop.permute.xlu0 %3627  ;;  %v3731_v24 = vpop.permute.xlu2 %3730  ;;  %v3797_v21 = vadd.f32 %v9106_v55, %v3791_v47  ;;  %v3694_v6 = vsel %vm1961_vm5, %v3691_v25, %v3693_v43  ;;  %v3589_v43 = vsel %vm1961_vm5, %v3586_v18, %v3588_v52  ;;  %v3904_v52 = vstv %s5314_s16  ;;  %s5323_s16 = sld [smem:[#allocation13 + $0x17]] }
 0x47b   : > { %v3630_v34 = vpop.permute.xlu1 %3629  ;;  %v3637_v35 = vadd.f32 %v3628_v42, %v3600_v36 }
 0x47c   : > { %v3638_v38 = vadd.f32 %v3630_v34, %v8998_v29  ;;  %v3313_v29 = vadd.f32 %v3309_v20, %v8917_v44  ;;  %v3801_v42 = vmax.f32 %v3797_v21, 0.0  ;;  %v3678_v20 = vmul.f32 %v8724_v1, %v9028_v5 }
 0x47e   : > { %v3675_v23 = vadd.f32 %v3667_v12, %v3638_v38  ;;  %v3339_v28 = vadd.f32 %v10493_v10, %v3313_v29  ;;  %v3692_v12 = vsel %vm1961_vm5, %v3689_v7, %v3691_v25  ;;  %v3569_v29 = vadd.f32 %v9031_v40, %v8955_v22 }
 0x47f   : > { %v3702_v4 = vadd.f32 %v3692_v12, %v3570_v2 }
 0x480   : > { %v3794_v45 = vmul.f32 %v9094_v11, %v3675_v23  ;;  %v3365_v63 = vadd.f32 %v10494_v57, %v3339_v28 }
 0x482   : > { %v3800_v19 = vadd.f32 %v9106_v55, %v3794_v45  ;;  %v9111_v41 = vpop.permute.xlu0 %3662  ;;  %v3497_v34 = vadd.f32 %v3488_v50, %v3365_v63  ;;  %v3766_v37 = vpop.permute.xlu2 %3765  ;;  %v3688_v45 = vrot.slane %v3678_v20, 2 }
 0x483   : > { %v3665_v44 = vpop.permute.xlu1 %3664 }
 0x484   : > { %v3804_v17 = vmax.f32 %v3800_v19, 0.0  ;;  %v3674_v54 = vadd.f32 %v3665_v44, %v3637_v35  ;;  %v3534_v61 = vadd.f32 %v9013_v59, %v3497_v34  ;;  %v3690_v1 = vsel %vm1961_vm5, %v3688_v45, %v3689_v7 }
 0x485   : > { %v3701_v5 = vadd.f32 %v3690_v1, %v3569_v29 }
 0x486   : > { %v3793_v31 = vmul.f32 %v9094_v11, %v3674_v54  ;;  %3815 = vrot.lane.b32.xlu2 %v3804_v17, %s5734_s30  ;;  %v3571_v26 = vadd.f32 %v8990_v58, %v3534_v61  ;;  %v3599_v17 = vadd.f32 %v3589_v43, %v8957_v53  ;;  %v9243_v43 = vstv %s3867_s17  ;;  %s5340_s17 = sld [smem:[#allocation13 + $0x1f]] }
 0x488   : > { %v3799_v39 = vadd.f32 %v9106_v55, %v3793_v31  ;;  %v3703_v59 = vadd.f32 %v3694_v6, %v3571_v26  ;;  %v3636_v10 = vadd.f32 %v9018_v48, %v3599_v17 }
 0x48a   : > { %v3803_v46 = vmax.f32 %v3799_v39, 0.0  ;;  %v3727_v13 = vpop.permute.xlu0 %3726  ;;  %v3740_v56 = vadd.f32 %v3731_v24, %v3703_v59  ;;  %v3673_v28 = vadd.f32 %v9111_v41, %v3636_v10  ;;  %v3878_v41 = vstv %s5313_s9  ;;  %s5325_s9 = sld [smem:[#allocation13 + $0x7]] }
 0x48b   : > { %v3729_v27 = vpop.permute.xlu1 %3728  ;;  %v3738_v49 = vadd.f32 %v3727_v13, %v3701_v5  ;;  %v3966_v39 = vstv %s5317_s4  ;;  %v9248_v10 = vstv %s5315_s20  ;;  %s5328_s4 = sld [smem:[#allocation13 + $0x19]] }
 0x48c   : > { %v3739_v30 = vadd.f32 %v3729_v27, %v3702_v4  ;;  %3813 = vrot.lane.b32.xlu1 %v3803_v46, %s5734_s30  ;;  %v3792_v60 = vmul.f32 %v9094_v11, %v3673_v28  ;;  %v3940_v11 = vstv %s5316_s29  ;;  %s5326_s29 = sld [smem:[#allocation13 + $0x8]] }
 0x48d   : > { %s5341_s20 = sld [smem:[#allocation13 + $0x20]] }
 0x48e   : > { %v3776_v38 = vadd.f32 %v3766_v37, %v3739_v30  ;;  %3809 = vrot.lane.b32.xlu2 %v3801_v42, %s5734_s30  ;;  %v3798_v15 = vadd.f32 %v9106_v55, %v3792_v60  ;;  %v4445_v42 = vstv %s5332_s15  ;;  %v4419_v30 = vstv %s5331_s28  ;;  %s5329_s15 = sld [smem:[#allocation13 + $0x1a]] }
 0x48f   : > { %v4021_v60 = vstv %s5319_s18  ;;  %s5337_s28 = sld [smem:[#allocation13 + $0xd]] }
 0x490   : > { %v3828_v23 = vmul.f32 %v3826_v62, %v3776_v38  ;;  %v3802_v18 = vmax.f32 %v3798_v15, 0.0  ;;  %s5321_s18 = sld [smem:[#allocation13 + $0x15]] }
 0x492   : > { %v3834_v16 = vadd.f32 %v3832_v8, %v3828_v23  ;;  %v3733_v32 = vpop.permute.xlu0 %3732 }
 0x493   : > { %v3764_v33 = vpop.permute.xlu1 %3763  ;;  %v3741_v0 = vadd.f32 %v3733_v32, %v9074_v51 }
 0x494   : > { %v3838_v36 = vmax.f32 %v3834_v16, 0.0  ;;  %v3775_v22 = vadd.f32 %v3764_v33, %v3738_v49 }
 0x496   : > { %3847 = vrot.lane.b32.xlu1 %v3838_v36, %s5734_s30  ;;  %v3827_v51 = vmul.f32 %v3826_v62, %v3775_v22 }
 0x498   : > { %v3833_v7 = vadd.f32 %v3832_v8, %v3827_v51 }
 0x49a   : > { %v3768_v58 = vpop.permute.xlu0 %3767  ;;  %v3837_v2 = vmax.f32 %v3833_v7, 0.0 }
 0x49b   : > { %v3777_v35 = vadd.f32 %v3768_v58, %v3740_v56  ;;  %v3770_v19 = vpop.permute.xlu1 %3769 }
 0x49c   : > { %v3778_v44 = vadd.f32 %v3770_v19, %v3741_v0 }
 0x49d   : > { %v3829_v14 = vmul.f32 %v3826_v62, %v3777_v35 }
 0x49e   : > { %v3830_v40 = vmul.f32 %v3826_v62, %v3778_v44 }
 0x49f   : > { %v3835_v3 = vadd.f32 %v3832_v8, %v3829_v14 }
 0x4a0   : > { %v3836_v47 = vadd.f32 %v3832_v8, %v3830_v40  ;;  %v9189_v8 = vstv %s5335_s5  ;;  %s5338_s5 = sld [smem:[#allocation13 + $0xe]] }
 0x4a1   : > { %v3839_v24 = vmax.f32 %v3835_v3, 0.0 }
 0x4a2   : > { %v3840_v54 = vmax.f32 %v3836_v47, 0.0 }
 0x4a3   : > { %3849 = vrot.lane.b32.xlu2 %v3839_v24, %s5734_s30 }
 0x4a4   : > { %3851 = vrot.lane.b32.xlu0 %v3840_v54, %s5734_s30 }
 0x4ac   : > { %3845 = vrot.lane.b32.xlu0 %v3837_v2, %s5734_s30 }
 0x4b4   : > { %3811 = vrot.lane.b32.xlu0 %v3802_v18, %s5734_s30  ;;  %s5334_s30 = sld [smem:[#allocation13 + $0x1c]] }
 0x4ba   : > { %v9175_v50 = vstv %s5334_s30  ;;  %s5318_s30 = sld [smem:[#allocation13 + $0x3]] }
 0x4e0   : > { %v3816_v53 = vpop.permute.xlu2 %3815 }
 0x4e1   : > { %3824 = vst.msk [vmem:[#allocation3 + $0x19] sm:$0xff] %vm1539_vm2, %v3816_v53 }
 0x4e8   : > { %v3810_v48 = vpop.permute.xlu2 %3809 }
 0x4e9   : > { %3821 = vst.msk [vmem:[#allocation3 + $0x1] sm:$0xff] %vm1539_vm2, %v3810_v48 }
 0x4f0   : > { %v9158_v31 = vld [vmem:[#allocation3] sm:$0xff] }
 0x4f1   : > { %v3905_v55 = vmul.f32 %v3904_v52, %v9158_v31  ;;  %v3879_v25 = vmul.f32 %v3878_v41, %v9158_v31  ;;  %v3941_v21 = vmul.f32 %v3940_v11, %v9158_v31  ;;  %v3967_v57 = vmul.f32 %v3966_v39, %v9158_v31 }
 0x4f2   : > { %v3869_v24 = vmul.f32 %v9243_v43, %v9158_v31 }
 0x4f3   : > { %3913 = vrot.lane.b32.xlu2 %v3905_v55, %s5737_s19  ;;  %3887 = vrot.lane.b32.xlu1 %v3879_v25, %s5736_s23 }
 0x4f4   : > { %3949 = vrot.lane.b32.xlu0 %v3941_v21, %s5736_s23 }
 0x4fb   : > { %3975 = vrot.lane.b32.xlu1 %v3967_v57, %s5737_s19 }
 0x4fd   : > { %v3850_v63 = vpop.permute.xlu2 %3849 }
 0x4fe   : > { %3860 = vst.msk [vmem:[#allocation3 + $0x39] sm:$0xff] %vm1539_vm2, %v3850_v63  ;;  %v3814_v12 = vpop.permute.xlu1 %3813  ;;  %v9268_v63 = vld [vmem:[#allocation3 + $0x20] sm:$0x3] }
 0x4ff   : > { %3823 = vst.msk [vmem:[#allocation3 + $0x11] sm:$0xff] %vm1539_vm2, %v3814_v12 }
 0x506   : > { %v9198_v32 = vld [vmem:[#allocation3 + $0x18] sm:$0xff] }
 0x507   : > { %v3908_v26 = vmul.f32 %v3904_v52, %v9198_v32  ;;  %v3882_v36 = vmul.f32 %v3878_v41, %v9198_v32  ;;  %v3944_v29 = vmul.f32 %v3940_v11, %v9198_v32  ;;  %v3970_v19 = vmul.f32 %v3966_v39, %v9198_v32 }
 0x508   : > { %v3848_v46 = vpop.permute.xlu1 %3847 }
 0x509   : > { %3859 = vst.msk [vmem:[#allocation3 + $0x31] sm:$0xff] %vm1539_vm2, %v3848_v46  ;;  %v4058_v46 = vstv %s5320_s7  ;;  %s5343_s7 = sld [smem:[#allocation13 + $0x10]] }
 0x510   : > { %v9218_v5 = vld [vmem:[#allocation3 + $0x38] sm:$0xff] }
 0x511   : > { %v4422_v58 = vmul.f32 %v4419_v30, %v9218_v5  ;;  %v4484_v3 = vmul.f32 %v9175_v50, %v9218_v5  ;;  %v4448_v47 = vmul.f32 %v4445_v42, %v9218_v5  ;;  %v4510_v28 = vmul.f32 %v9189_v8, %v9218_v5 }
 0x516   : > { %v3852_v13 = vpop.permute.xlu0 %3851 }
 0x517   : > { %3861 = vst.msk [vmem:[#allocation3 + $0x41] sm:$0xff] %vm1539_vm2, %v3852_v13 }
 0x51e   : > { %v3846_v4 = vpop.permute.xlu0 %3845  ;;  %v9228_v49 = vld [vmem:[#allocation3 + $0x40] sm:$0xff] }
 0x51f   : > { %3858 = vst.msk [vmem:[#allocation3 + $0x29] sm:$0xff] %vm1539_vm2, %v3846_v4  ;;  %v4449_v14 = vmul.f32 %v4445_v42, %v9228_v49  ;;  %v4423_v22 = vmul.f32 %v4419_v30, %v9228_v49  ;;  %v4485_v40 = vmul.f32 %v9175_v50, %v9228_v49  ;;  %v4511_v12 = vmul.f32 %v9189_v8, %v9228_v49 }
 0x526   : > { %v9173_v27 = vld [vmem:[#allocation3 + $0x28] sm:$0xff]  ;;  %v3812_v9 = vpop.permute.xlu0 %3811  ;;  %v9220_v0 = vld [vmem:[#allocation3 + $0x30] sm:$0xff] }
 0x527   : > { %3822 = vst.msk [vmem:[#allocation3 + $0x9] sm:$0xff] %vm1539_vm2, %v3812_v9  ;;  %v4482_v34 = vmul.f32 %v9175_v50, %v9173_v27  ;;  %v4446_v37 = vmul.f32 %v4445_v42, %v9173_v27  ;;  %v4420_v62 = vmul.f32 %v4419_v30, %v9173_v27  ;;  %v4508_v16 = vmul.f32 %v9189_v8, %v9173_v27 }
 0x528   : > { %v4421_v35 = vmul.f32 %v4419_v30, %v9220_v0  ;;  %v4447_v44 = vmul.f32 %v4445_v42, %v9220_v0  ;;  %v4509_v7 = vmul.f32 %v9189_v8, %v9220_v0  ;;  %v4483_v15 = vmul.f32 %v9175_v50, %v9220_v0 }
 0x529   : > { %4490 = vrot.lane.b32.xlu0 %v4482_v34, %s5736_s23  ;;  %4454 = vrot.lane.b32.xlu2 %v4446_v37, %s5737_s19  ;;  %v4025_v9 = vmul.f32 %v4021_v60, %v9198_v32  ;;  %v4059_v42 = vmul.f32 %v4058_v46, %v9158_v31  ;;  %v4026_v30 = vmul.f32 %v4021_v60, %v9268_v63 }
 0x52a   : > { %4428 = vrot.lane.b32.xlu1 %v4420_v62, %s5736_s23 }
 0x52b   : > { %v4037_v34 = vrot.slane %v4025_v9, 1  ;;  %v4069_v62 = vrot.slane %v4059_v42, 1  ;;  %v4039_v8 = vrot.slane %v4026_v30, 1 }
 0x52e   : > { %v9185_v38 = vld [vmem:[#allocation3 + $0x8] sm:$0xff]  ;;  %v9187_v61 = vld [vmem:[#allocation3 + $0x10] sm:$0xff] }
 0x52f   : > { %v3880_v23 = vmul.f32 %v3878_v41, %v9185_v38  ;;  %v3881_v20 = vmul.f32 %v3878_v41, %v9187_v61  ;;  %v3906_v33 = vmul.f32 %v3904_v52, %v9185_v38  ;;  %v3943_v45 = vmul.f32 %v3940_v11, %v9187_v61 }
 0x530   : > { %v3907_v6 = vmul.f32 %v3904_v52, %v9187_v61  ;;  %v3968_v59 = vmul.f32 %v3966_v39, %v9185_v38  ;;  %v3969_v56 = vmul.f32 %v3966_v39, %v9187_v61  ;;  %v3942_v1 = vmul.f32 %v3940_v11, %v9185_v38 }
 0x531   : > { %3889 = vrot.lane.b32.xlu2 %v3880_v23, %s5736_s23  ;;  %3891 = vrot.lane.b32.xlu0 %v3881_v20, %s5736_s23  ;;  %v4023_v18 = vmul.f32 %v4021_v60, %v9185_v38  ;;  %v4024_v53 = vmul.f32 %v4021_v60, %v9187_v61  ;;  %v3931_v52 = vmul.f32 %v9248_v10, %v9158_v31 }
 0x532   : > { %4516 = vrot.lane.b32.xlu1 %v4508_v16, %s5737_s19  ;;  %v4022_v41 = vmul.f32 %v4021_v60, %v9158_v31  ;;  %v4060_v50 = vmul.f32 %v4058_v46, %v9185_v38  ;;  %v4040_v20 = vsel %vm826_vm4, %v4037_v34, %v4039_v8  ;;  %v4061_v16 = vmul.f32 %v4058_v46, %v9187_v61 }
 0x533   : > { %v4033_v55 = vrot.slane %v4023_v18, 1  ;;  %v4035_v25 = vrot.slane %v4024_v53, 1 }
 0x534   : > { %v4032_v57 = vrot.slane %v4022_v41, 1  ;;  %v4070_v37 = vrot.slane %v4060_v50, 1 }
 0x535   : > { %v4036_v13 = vsel %vm826_vm4, %v4033_v55, %v4035_v25 }
 0x536   : > { %v4034_v4 = vsel %vm826_vm4, %v4032_v57, %v4033_v55  ;;  %v4071_v23 = vsel %vm826_vm4, %v4069_v62, %v4070_v37  ;;  %v4227_v55 = vstv %s5325_s9  ;;  %s9600_s9 = sld [smem:[#allocation13 + $0x18]] }
 0x537   : > { %v4230_v8 = vmul.f32 %v4227_v55, %v9187_v61 }
 0x539   : > { %3919 = vrot.lane.b32.xlu2 %v3908_v26, %s5737_s19  ;;  %3915 = vrot.lane.b32.xlu0 %v3906_v33, %s5737_s19  ;;  %v4062_v26 = vmul.f32 %v4058_v46, %v9198_v32  ;;  %v4038_v33 = vsel %vm826_vm4, %v4035_v25, %v4037_v34 }
 0x53a   : > { %3893 = vrot.lane.b32.xlu1 %v3882_v36, %s5736_s23  ;;  %v4063_v36 = vmul.f32 %v4058_v46, %v9268_v63 }
 0x541   : > { %3953 = vrot.lane.b32.xlu2 %v3943_v45, %s5736_s23  ;;  %3955 = vrot.lane.b32.xlu0 %v3944_v29, %s5736_s23  ;;  %v4072_v45 = vrot.slane %v4061_v16, 1  ;;  %v4074_v29 = vrot.slane %v4062_v26, 1  ;;  %v4232_v16 = vmul.f32 %v4227_v55, %v9268_v63 }
 0x542   : > { %3917 = vrot.lane.b32.xlu1 %v3907_v6, %s5737_s19  ;;  %v4076_v6 = vrot.slane %v4063_v36, 1 }
 0x549   : > { %3977 = vrot.lane.b32.xlu2 %v3968_v59, %s5737_s19  ;;  %3979 = vrot.lane.b32.xlu0 %v3969_v56, %s5737_s19  ;;  %v4124_v59 = vstv %s5322_s26  ;;  %v4077_v56 = vsel %vm826_vm4, %v4074_v29, %v4076_v6  ;;  %v4245_v6 = vrot.slane %v4232_v16, 2  ;;  %s5324_s26 = sld [smem:[#allocation13 + $0x6]] }
 0x54a   : > { %3951 = vrot.lane.b32.xlu1 %v3942_v1, %s5736_s23  ;;  %v4075_v1 = vsel %vm826_vm4, %v4072_v45, %v4074_v29  ;;  %v4129_v53 = vmul.f32 %v4124_v59, %v9268_v63 }
 0x54d   : > { %v3914_v54 = vpop.permute.xlu2 %3913 }
 0x551   : > { %4432 = vrot.lane.b32.xlu0 %v4422_v58, %s5736_s23  ;;  %4430 = vrot.lane.b32.xlu2 %v4421_v35, %s5736_s23  ;;  %v4126_v58 = vmul.f32 %v4124_v59, %v9185_v38  ;;  %v4127_v35 = vmul.f32 %v4124_v59, %v9187_v61 }
 0x552   : > { %3981 = vrot.lane.b32.xlu1 %v3970_v19, %s5737_s19  ;;  %v4073_v19 = vsel %vm826_vm4, %v4070_v37, %v4072_v45  ;;  %v4241_v45 = vrot.slane %v4230_v8, 2 }
 0x559   : > { %4456 = vrot.lane.b32.xlu0 %v4447_v44, %s5737_s19  ;;  %4460 = vrot.lane.b32.xlu2 %v4449_v14, %s5737_s19  ;;  %v4128_v44 = vmul.f32 %v4124_v59, %v9198_v32 }
 0x55a   : > { %4434 = vrot.lane.b32.xlu1 %v4423_v22, %s5736_s23  ;;  %v4125_v22 = vmul.f32 %v4124_v59, %v9158_v31  ;;  %v4264_v59 = vstv %s5326_s29  ;;  %s5344_s29 = sld [smem:[#allocation13 + $0x11]] }
 0x561   : > { %4496 = vrot.lane.b32.xlu0 %v4485_v40, %s5736_s23  ;;  %4494 = vrot.lane.b32.xlu2 %v4484_v3, %s5736_s23  ;;  %v4136_v40 = vrot.slane %v4126_v58, 1  ;;  %v4138_v3 = vrot.slane %v4127_v35, 1  ;;  %v4266_v58 = vmul.f32 %v4264_v59, %v9185_v38  ;;  %v4267_v35 = vmul.f32 %v4264_v59, %v9187_v61 }
 0x562   : > { %4458 = vrot.lane.b32.xlu1 %v4448_v47, %s5737_s19  ;;  %v4140_v47 = vrot.slane %v4128_v44, 1  ;;  %v4268_v44 = vmul.f32 %v4264_v59, %v9198_v32 }
 0x565   : > { %v3888_v17 = vpop.permute.xlu1 %3887 }
 0x566   : > { %v3899_v51 = vadd.f32 %v3888_v17, %v3869_v24  ;;  %v3950_v48 = vpop.permute.xlu0 %3949  ;;  %v4135_v24 = vrot.slane %v4125_v22, 1  ;;  %v4161_v17 = vstv %s5323_s16  ;;  %s5346_s16 = sld [smem:[#allocation13 + $0x22]] }
 0x567   : > { %v3961_v11 = vadd.f32 %v3950_v48, %v3931_v52  ;;  %v4165_v57 = vmul.f32 %v4161_v17, %v9198_v32 }
 0x568   : > { %v9254_v2 = vadd.f32 %v3914_v54, %v3899_v51  ;;  %v4141_v51 = vsel %vm826_vm4, %v4138_v3, %v4140_v47  ;;  %v4139_v54 = vsel %vm826_vm4, %v4136_v40, %v4138_v3  ;;  %v4137_v60 = vsel %vm826_vm4, %v4135_v24, %v4136_v40 }
 0x569   : > { %4520 = vrot.lane.b32.xlu0 %v4510_v28, %s5737_s19  ;;  %4518 = vrot.lane.b32.xlu2 %v4509_v7, %s5737_s19  ;;  %v4163_v28 = vmul.f32 %v4161_v17, %v9185_v38  ;;  %v4164_v7 = vmul.f32 %v4161_v17, %v9187_v61  ;;  %v4177_v50 = vrot.slane %v4165_v57, 1  ;;  %v4265_v3 = vmul.f32 %v4264_v59, %v9158_v31 }
 0x56a   : > { %4492 = vrot.lane.b32.xlu1 %v4483_v15, %s5736_s23  ;;  %v4162_v15 = vmul.f32 %v4161_v17, %v9158_v31  ;;  %v4276_v24 = vrot.slane %v4266_v58, 2 }
 0x56b   : > { %v4173_v48 = vrot.slane %v4163_v28, 1  ;;  %v4175_v52 = vrot.slane %v4164_v7, 1  ;;  %v4275_v28 = vrot.slane %v4265_v3, 2  ;;  %v4330_v7 = vstv %s5328_s4  ;;  %s9638_s4 = sld [smem:[#allocation13 + $0x23]] }
 0x56c   : > { %v4172_v41 = vrot.slane %v4162_v15, 1 }
 0x56d   : > { %v3976_v21 = vpop.permute.xlu1 %3975  ;;  %v4176_v25 = vsel %vm826_vm4, %v4173_v48, %v4175_v52 }
 0x56e   : > { %v9266_v39 = vadd.f32 %v3976_v21, %v3961_v11  ;;  %v4142_v11 = vrot.slane %v4129_v53, 1  ;;  %v4174_v21 = vsel %vm826_vm4, %v4172_v41, %v4173_v48  ;;  %v4332_v48 = vmul.f32 %v4330_v7, %v9185_v38 }
 0x56f   : > { %v4277_v41 = vsel %vm1961_vm5, %v4275_v28, %v4276_v24 }
 0x570   : > { %v4143_v46 = vsel %vm826_vm4, %v4140_v47, %v4142_v11 }
 0x571   : > { %4043 = vrot.lane.b32.xlu0 %v4036_v13, %s5736_s23  ;;  %4041 = vrot.lane.b32.xlu2 %v4034_v4, %s5736_s23  ;;  %v4228_v13 = vmul.f32 %v4227_v55, %v9158_v31  ;;  %v4166_v4 = vmul.f32 %v4161_v17, %v9268_v63  ;;  %v4278_v17 = vrot.slane %v4267_v35, 2 }
 0x572   : > { %4522 = vrot.lane.b32.xlu1 %v4511_v12, %s5737_s19  ;;  %v4229_v12 = vmul.f32 %v4227_v55, %v9185_v38 }
 0x573   : > { %v4238_v30 = vrot.slane %v4228_v13, 2  ;;  %v4179_v34 = vrot.slane %v4166_v4, 1  ;;  %v4279_v53 = vsel %vm1961_vm5, %v4276_v24, %v4278_v17 }
 0x574   : > { %v4239_v42 = vrot.slane %v4229_v12, 2  ;;  %v3872_v12 = vmul.f32 %v9243_v43, %v9198_v32 }
 0x575   : > { %v4180_v62 = vsel %vm826_vm4, %v4177_v50, %v4179_v34 }
 0x576   : > { %v4240_v37 = vsel %vm1961_vm5, %v4238_v30, %v4239_v42 }
 0x579   : > { %4078 = vrot.lane.b32.xlu0 %v4071_v23, %s5737_s19  ;;  %4047 = vrot.lane.b32.xlu2 %v4040_v20, %s5736_s23  ;;  %v4231_v23 = vmul.f32 %v4227_v55, %v9198_v32  ;;  %v4178_v20 = vsel %vm826_vm4, %v4175_v52, %v4177_v50  ;;  %v4333_v52 = vmul.f32 %v4330_v7, %v9187_v61  ;;  %v4342_v50 = vrot.slane %v4332_v48, 2 }
 0x57a   : > { %4045 = vrot.lane.b32.xlu1 %v4038_v33, %s5736_s23  ;;  %v4331_v55 = vmul.f32 %v4330_v7, %v9158_v31 }
 0x57b   : > { %v4243_v29 = vrot.slane %v4231_v23, 2  ;;  %v4367_v23 = vstv %s5329_s15  ;;  %s5333_s15 = sld [smem:[#allocation13 + $0x1b]] }
 0x57c   : > { %v4341_v34 = vrot.slane %v4331_v55, 2  ;;  %v4370_v48 = vmul.f32 %v4367_v23, %v9187_v61 }
 0x581   : > { %4084 = vrot.lane.b32.xlu0 %v4077_v56, %s5737_s19  ;;  %4082 = vrot.lane.b32.xlu2 %v4075_v1, %s5737_s19  ;;  %v4246_v56 = vsel %vm1961_vm5, %v4243_v29, %v4245_v6  ;;  %v4244_v1 = vsel %vm1961_vm5, %v4241_v45, %v4243_v29  ;;  %v4334_v29 = vmul.f32 %v4330_v7, %v9198_v32 }
 0x582   : > { %4080 = vrot.lane.b32.xlu1 %v4073_v19, %s5737_s19  ;;  %v4242_v19 = vsel %vm1961_vm5, %v4239_v42, %v4241_v45  ;;  %v4344_v42 = vrot.slane %v4333_v52, 2  ;;  %v4343_v45 = vsel %vm1961_vm5, %v4341_v34, %v4342_v50  ;;  %v4369_v6 = vmul.f32 %v4367_v23, %v9185_v38 }
 0x583   : > { %v9299_v14 = vpop.permute.xlu2 %4454  ;;  %v4346_v24 = vrot.slane %v4334_v29, 2 }
 0x584   : > { %v4345_v16 = vsel %vm1961_vm5, %v4342_v50, %v4344_v42 }
 0x585   : > { %v4347_v52 = vsel %vm1961_vm5, %v4344_v42, %v4346_v24 }
 0x589   : > { %4148 = vrot.lane.b32.xlu0 %v4141_v51, %s5736_s23  ;;  %4146 = vrot.lane.b32.xlu2 %v4139_v54, %s5736_s23  ;;  %v4280_v51 = vrot.slane %v4268_v44, 2  ;;  %v3870_v54 = vmul.f32 %v9243_v43, %v9185_v38 }
 0x58a   : > { %4144 = vrot.lane.b32.xlu1 %v4137_v60, %s5736_s23  ;;  %v9357_v60 = vstv %s5318_s30  ;;  %s5330_s30 = sld [smem:[#allocation13 + $0x9]] }
 0x58b   : > { %v9311_v18 = vpop.permute.xlu2 %3889  ;;  %v4281_v15 = vsel %vm1961_vm5, %v4278_v17, %v4280_v51  ;;  %v3997_v13 = vmul.f32 %v9357_v60, %v9268_v63  ;;  %v4379_v17 = vrot.slane %v4369_v6, 2 }
 0x58c   : > { %v3900_v11 = vadd.f32 %v9311_v18, %v3870_v54 }
 0x591   : > { %4183 = vrot.lane.b32.xlu0 %v4176_v25, %s5737_s19  ;;  %4181 = vrot.lane.b32.xlu2 %v4174_v21, %s5737_s19  ;;  %v9371_v25 = vmul.f32 %v9357_v60, %v9198_v32 }
 0x592   : > { %4150 = vrot.lane.b32.xlu1 %v4143_v46, %s5736_s23  ;;  %v4269_v46 = vmul.f32 %v4264_v59, %v9268_v63  ;;  %v3871_v59 = vmul.f32 %v9243_v43, %v9187_v61 }
 0x593   : > { %v9324_v9 = vpop.permute.xlu2 %3919 }
 0x594   : > { %v4282_v8 = vrot.slane %v4269_v46, 2 }
 0x599   : > { %4247 = vrot.lane.b32.xlu0 %v4240_v37, %s5736_s23  ;;  %4187 = vrot.lane.b32.xlu2 %v4180_v62, %s5737_s19  ;;  %v4008_v37 = vrot.slane %v9371_v25, 1 }
 0x59a   : > { %4185 = vrot.lane.b32.xlu1 %v4178_v20, %s5737_s19  ;;  %v4010_v20 = vrot.slane %v3997_v13, 1 }
 0x59b   : > { %v9335_v26 = vpop.permute.xlu0 %4490  ;;  %v9337_v33 = vpop.permute.xlu2 %3953 }
 0x59c   : > { %v9339_v36 = vpop.permute.xlu1 %4428  ;;  %v4011_v58 = vsel %vm826_vm4, %v4008_v37, %v4010_v20 }
 0x5a1   : > { %4253 = vrot.lane.b32.xlu0 %v4246_v56, %s5736_s23  ;;  %4251 = vrot.lane.b32.xlu2 %v4244_v1, %s5736_s23  ;;  %v4283_v56 = vsel %vm1961_vm5, %v4280_v51, %v4282_v8  ;;  %v4335_v1 = vmul.f32 %v4330_v7, %v9268_v63  ;;  %v3933_v7 = vmul.f32 %v9248_v10, %v9187_v61 }
 0x5a2   : > { %4249 = vrot.lane.b32.xlu1 %v4242_v19, %s5736_s23 }
 0x5a3   : > { %v9350_v22 = vpop.permute.xlu2 %3977  ;;  %v3892_v40 = vpop.permute.xlu0 %3891  ;;  %v4348_v28 = vrot.slane %v4335_v1, 2  ;;  %v9448_v1 = vld [vmem:[#allocation3 + $0x48] sm:$0x3] }
 0x5a4   : > { %v9353_v47 = vpop.permute.xlu1 %4516  ;;  %v3901_v35 = vadd.f32 %v3892_v40, %v3871_v59 }
 0x5a9   : > { %4288 = vrot.lane.b32.xlu0 %v4281_v15, %s5737_s19  ;;  %4286 = vrot.lane.b32.xlu2 %v4279_v53, %s5737_s19  ;;  %v4371_v15 = vmul.f32 %v4367_v23, %v9198_v32  ;;  %v4349_v53 = vsel %vm1961_vm5, %v4346_v24, %v4348_v28 }
 0x5aa   : > { %4284 = vrot.lane.b32.xlu1 %v4277_v41, %s5737_s19  ;;  %v3963_v41 = vadd.f32 %v9337_v33, %v3933_v7  ;;  %v3934_v33 = vmul.f32 %v9248_v10, %v9198_v32 }
 0x5ab   : > { %v3916_v21 = vpop.permute.xlu0 %3915  ;;  %v9373_v57 = vpop.permute.xlu2 %4430  ;;  %v4383_v50 = vrot.slane %v4371_v15, 2 }
 0x5ac   : > { %v9380_v18 = vadd.f32 %v3916_v21, %v3900_v11  ;;  %v3894_v4 = vpop.permute.xlu1 %3893  ;;  %v4372_v11 = vmul.f32 %v4367_v23, %v9268_v63 }
 0x5ad   : > { %v3902_v30 = vadd.f32 %v3894_v4, %v3872_v12  ;;  %v3932_v12 = vmul.f32 %v9248_v10, %v9185_v38  ;;  %v4381_v4 = vrot.slane %v4370_v48, 2 }
 0x5af   : > { %v3928_v62 = vadd.f32 %v9324_v9, %v3902_v30  ;;  %v4368_v9 = vmul.f32 %v4367_v23, %v9158_v31  ;;  %v4385_v30 = vrot.slane %v4372_v11, 2  ;;  %v4384_v23 = vsel %vm1961_vm5, %v4381_v4, %v4383_v50 }
 0x5b1   : > { %4352 = vrot.lane.b32.xlu0 %v4345_v16, %s5736_s23  ;;  %4350 = vrot.lane.b32.xlu2 %v4343_v45, %s5736_s23  ;;  %v9401_v43 = vadd.f32 %v4011_v58, %v3928_v62  ;;  %v4378_v54 = vrot.slane %v4368_v9, 2  ;;  %v4562_v62 = vstv %s5337_s28  ;;  %v4386_v8 = vsel %vm1961_vm5, %v4383_v50, %v4385_v30  ;;  %s5342_s28 = sld [smem:[#allocation13 + $0xf]] }
 0x5b2   : > { %4290 = vrot.lane.b32.xlu1 %v4283_v56, %s5737_s19  ;;  %v4564_v20 = vmul.f32 %v4562_v62, %v9220_v0  ;;  %v4563_v16 = vmul.f32 %v4562_v62, %v9173_v27  ;;  %v4382_v45 = vsel %vm1961_vm5, %v4379_v17, %v4381_v4  ;;  %v4566_v10 = vmul.f32 %v4562_v62, %v9228_v49 }
 0x5b3   : > { %v3956_v19 = vpop.permute.xlu0 %3955  ;;  %v9399_v44 = vpop.permute.xlu2 %4460  ;;  %v4380_v40 = vsel %vm1961_vm5, %v4378_v54, %v4379_v17  ;;  %v4565_v29 = vmul.f32 %v4562_v62, %v9218_v5  ;;  %v3993_v9 = vmul.f32 %v9357_v60, %v9158_v31  ;;  %v4567_v7 = vmul.f32 %v4562_v62, %v9448_v1 }
 0x5b4   : > { %v3918_v3 = vpop.permute.xlu1 %3917  ;;  %v3964_v6 = vadd.f32 %v3956_v19, %v3934_v33  ;;  %v4578_v17 = vrot.slane %v4566_v10, 1  ;;  %v4599_v19 = vstv %s5338_s5  ;;  %s5345_s5 = sld [smem:[#allocation13 + $0x21]] }
 0x5b5   : > { %v9403_v51 = vadd.f32 %v3918_v3, %v3901_v35  ;;  %v4574_v35 = vrot.slane %v4564_v20, 1  ;;  %v4573_v3 = vrot.slane %v4563_v16, 1  ;;  %v4576_v28 = vrot.slane %v4565_v29, 1 }
 0x5b6   : > { %v4003_v15 = vrot.slane %v3993_v9, 1  ;;  %v4601_v48 = vmul.f32 %v4599_v19, %v9220_v0  ;;  %v4602_v4 = vmul.f32 %v4599_v19, %v9218_v5  ;;  %v4580_v62 = vrot.slane %v4567_v7, 1 }
 0x5b7   : > { %v4603_v20 = vmul.f32 %v4599_v19, %v9228_v49  ;;  %v4604_v16 = vmul.f32 %v4599_v19, %v9448_v1 }
 0x5b8   : > { %v4611_v30 = vrot.slane %v4601_v48, 1 }
 0x5b9   : > { %4387 = vrot.lane.b32.xlu0 %v4380_v40, %s5737_s19  ;;  %4356 = vrot.lane.b32.xlu2 %v4349_v53, %s5736_s23  ;;  %v4577_v40 = vsel %vm826_vm4, %v4574_v35, %v4576_v28  ;;  %v4575_v53 = vsel %vm826_vm4, %v4573_v3, %v4574_v35  ;;  %v4615_v35 = vrot.slane %v4603_v20, 1 }
 0x5ba   : > { %4354 = vrot.lane.b32.xlu1 %v4347_v52, %s5736_s23  ;;  %v4600_v52 = vmul.f32 %v4599_v19, %v9173_v27  ;;  %v4617_v19 = vrot.slane %v4604_v16, 1 }
 0x5bb   : > { %v3980_v55 = vpop.permute.xlu0 %3979  ;;  %v9417_v21 = vpop.permute.xlu2 %4494 }
 0x5bc   : > { %v9421_v46 = vadd.f32 %v3980_v55, %v3963_v41  ;;  %v3952_v13 = vpop.permute.xlu1 %3951  ;;  %v4579_v41 = vsel %vm826_vm4, %v4576_v28, %v4578_v17  ;;  %v4610_v33 = vrot.slane %v4600_v52, 1  ;;  %v4618_v48 = vsel %vm826_vm4, %v4615_v35, %v4617_v19 }
 0x5bd   : > { %v3962_v42 = vadd.f32 %v3952_v13, %v3932_v12 }
 0x5bf   : > { %v9426_v34 = vadd.f32 %v9350_v22, %v3962_v42  ;;  %v9438_v22 = vmul.f32 %v9357_v60, %v9185_v38 }
 0x5c1   : > { %4393 = vrot.lane.b32.xlu0 %v4386_v8, %s5737_s19  ;;  %4391 = vrot.lane.b32.xlu2 %v4384_v23, %s5737_s19  ;;  %v4004_v54 = vrot.slane %v9438_v22, 1  ;;  %v4613_v8 = vrot.slane %v4602_v4, 1  ;;  %v4665_v23 = vstv %s5340_s17  ;;  %s4944_s17 = sld [smem:[#allocation15]] }
 0x5c2   : > { %4389 = vrot.lane.b32.xlu1 %v4382_v45, %s5737_s19  ;;  %v4581_v45 = vsel %vm826_vm4, %v4578_v17, %v4580_v62  ;;  %v4666_v10 = vmul.f32 %v4665_v23, %v9173_v27  ;;  %v4667_v29 = vmul.f32 %v4665_v23, %v9220_v0  ;;  %v4669_v7 = vmul.f32 %v4665_v23, %v9228_v49 }
 0x5c3   : > { %v9442_v59 = vpop.permute.xlu0 %4432  ;;  %v9444_v56 = vpop.permute.xlu2 %4518  ;;  %v4005_v11 = vsel %vm826_vm4, %v4003_v15, %v4004_v54  ;;  %v4616_v52 = vsel %vm826_vm4, %v4613_v8, %v4615_v35 }
 0x5c4   : > { %v3982_v58 = vpop.permute.xlu1 %3981  ;;  %v4016_v55 = vadd.f32 %v4005_v11, %v9254_v2  ;;  %v4612_v2 = vsel %vm826_vm4, %v4610_v33, %v4611_v30  ;;  %v4676_v28 = vrot.slane %v4666_v10, 1  ;;  %v4677_v15 = vrot.slane %v4667_v29, 1 }
 0x5c5   : > { %v9450_v24 = vadd.f32 %v3982_v58, %v3964_v6  ;;  %v4614_v6 = vsel %vm826_vm4, %v4611_v30, %v4613_v8  ;;  %v4681_v62 = vrot.slane %v4669_v7, 1  ;;  %v4702_v10 = vstv %s5341_s20  ;;  %s521_s20 = sand.u32 1, %s5716_s22  }
 0x5c6   : > { %v4704_v29 = vmul.f32 %v4702_v10, %v9220_v0  ;;  %v4703_v19 = vmul.f32 %v4702_v10, %v9173_v27 }
 0x5c9   : > { %4584 = vrot.lane.b32.xlu0 %v4577_v40, %s5736_s23  ;;  %4582 = vrot.lane.b32.xlu2 %v4575_v53, %s5736_s23  ;;  %v9491_v40 = vstv %s5321_s18  ;;  %v4678_v53 = vsel %vm826_vm4, %v4676_v28, %v4677_v15  ;;  %s4950_s18 = sld [smem:[#allocation16]] }
 0x5ca   : > { %4586 = vrot.lane.b32.xlu1 %v4579_v41, %s5736_s23  ;;  %v4670_v41 = vmul.f32 %v4665_v23, %v9448_v1  ;;  %v9503_v11 = vmul.f32 %v9491_v40, %v9185_v38  ;;  %v9517_v33 = vmul.f32 %v9491_v40, %v9198_v32 }
 0x5cb   : > { %v9466_v12 = vpop.permute.xlu0 %4456  ;;  %v4042_v13 = vpop.permute.xlu2 %4041 }
 0x5cc   : > { %v9469_v50 = vadd.f32 %v4042_v13, %v4016_v55  ;;  %v9471_v42 = vpop.permute.xlu1 %4434  ;;  %v9507_v55 = vmul.f32 %v9491_v40, %v9187_v61  ;;  %v4668_v13 = vmul.f32 %v4665_v23, %v9218_v5  ;;  %v4683_v8 = vrot.slane %v4670_v41, 1 }
 0x5cd   : > { %v10127_v16 = vrot.slane %v9503_v11, 1  ;;  %v4100_v23 = vmul.f32 %v9491_v40, %v9268_v63 }
 0x5d1   : > { %4619 = vrot.lane.b32.xlu0 %v4612_v2, %s5737_s19  ;;  %4588 = vrot.lane.b32.xlu2 %v4581_v45, %s5736_s23  ;;  %v4109_v2 = vrot.slane %v9507_v55, 1  ;;  %v4679_v45 = vrot.slane %v4668_v13, 1  ;;  %v4714_v13 = vrot.slane %v4704_v29, 1 }
 0x5d2   : > { %4621 = vrot.lane.b32.xlu1 %v4614_v6, %s5737_s19  ;;  %v4111_v6 = vrot.slane %v9517_v33, 1 }
 0x5d3   : > { %v9483_v9 = vpop.permute.xlu0 %4496  ;;  %v4048_v58 = vpop.permute.xlu2 %4047  ;;  %v4682_v35 = vsel %vm826_vm4, %v4679_v45, %v4681_v62  ;;  %v4680_v28 = vsel %vm826_vm4, %v4677_v15, %v4679_v45 }
 0x5d4   : > { %v9486_v3 = vadd.f32 %v4048_v58, %v9401_v43  ;;  %v9488_v17 = vpop.permute.xlu1 %4458  ;;  %v3995_v43 = vmul.f32 %v9357_v60, %v9187_v61  ;;  %v4684_v58 = vsel %vm826_vm4, %v4681_v62, %v4683_v8 }
 0x5d6   : > { %v4006_v20 = vrot.slane %v3995_v43, 1  ;;  %v4705_v43 = vmul.f32 %v4702_v10, %v9218_v5 }
 0x5d8   : > { %v4007_v7 = vsel %vm826_vm4, %v4004_v54, %v4006_v20 }
 0x5d9   : > { %4625 = vrot.lane.b32.xlu0 %v4618_v48, %s5737_s19  ;;  %4623 = vrot.lane.b32.xlu2 %v4616_v52, %s5737_s19  ;;  %v4706_v48 = vmul.f32 %v4702_v10, %v9228_v49  ;;  %v4113_v52 = vrot.slane %v4100_v23, 1  ;;  %v4017_v15 = vadd.f32 %v4007_v7, %v9380_v18  ;;  %v4707_v7 = vmul.f32 %v4702_v10, %v9448_v1 }
 0x5da   : > { %4685 = vrot.lane.b32.xlu1 %v4678_v53, %s5736_s23  ;;  %v4110_v53 = vsel %vm826_vm4, %v10127_v16, %v4109_v2 }
 0x5db   : > { %v9511_v4 = vpop.permute.xlu0 %4520  ;;  %v9513_v30 = vpop.permute.xlu2 %4082  ;;  %v4120_v41 = vadd.f32 %v4110_v53, %v9426_v34  ;;  %v4114_v62 = vsel %vm826_vm4, %v4111_v6, %v4113_v52  ;;  %v4718_v34 = vrot.slane %v4706_v48, 1 }
 0x5dc   : > { %v9519_v60 = vpop.permute.xlu1 %4492  ;;  %v9554_v18 = vadd.f32 %v4114_v62, %v9450_v24  ;;  %v4009_v24 = vsel %vm826_vm4, %v4006_v20, %v4008_v37 }
 0x5e1   : > { %4689 = vrot.lane.b32.xlu0 %v4682_v35, %s5736_s23  ;;  %4687 = vrot.lane.b32.xlu2 %v4680_v28, %s5736_s23  ;;  %v4716_v35 = vrot.slane %v4705_v43, 1  ;;  %v4768_v28 = vstv %s5343_s7  ;;  %s5175_s7 = sshll.u32 %s521_s20, 6 }
 0x5e2   : > { %4691 = vrot.lane.b32.xlu1 %v4684_v58, %s5736_s23  ;;  %v4713_v58 = vrot.slane %v4703_v19, 1  ;;  %v4770_v52 = vmul.f32 %v4768_v28, %v9220_v0  ;;  %v4771_v10 = vmul.f32 %v4768_v28, %v9218_v5  ;;  %v9569_v19 = vstv %s5324_s26  ;;  %s5348_s26 = sld [smem:[#allocation15 + $0x1]] }
 0x5e3   : > { %v4044_v22 = vpop.permute.xlu0 %4043  ;;  %v4147_v54 = vpop.permute.xlu2 %4146  ;;  %v4717_v29 = vsel %vm826_vm4, %v4714_v13, %v4716_v35 }
 0x5e4   : > { %v4054_v8 = vadd.f32 %v4044_v22, %v4017_v15  ;;  %v9549_v45 = vadd.f32 %v4147_v54, %v4120_v41  ;;  %v9551_v23 = vpop.permute.xlu1 %4522  ;;  %v4715_v53 = vsel %vm826_vm4, %v4713_v58, %v4714_v13  ;;  %v4769_v15 = vmul.f32 %v4768_v28, %v9173_v27 }
 0x5e5   : > { %v4719_v41 = vsel %vm826_vm4, %v4716_v35, %v4718_v34  ;;  %v4018_v22 = vadd.f32 %v4009_v24, %v9403_v51  ;;  %v4202_v54 = vmul.f32 %v9569_v19, %v9198_v32  ;;  %v4780_v58 = vrot.slane %v4770_v52, 2 }
 0x5e6   : > { %v4779_v25 = vrot.slane %v4769_v15, 2  ;;  %v4720_v35 = vrot.slane %v4707_v7, 1  ;;  %v4782_v20 = vrot.slane %v4771_v10, 2  ;;  %v4772_v51 = vmul.f32 %v4768_v28, %v9228_v49 }
 0x5e7   : > { %v4214_v24 = vrot.slane %v4202_v54, 2  ;;  %v4773_v52 = vmul.f32 %v4768_v28, %v9448_v1  ;;  %v9593_v15 = vmul.f32 %v9569_v19, %v9187_v61 }
 0x5e8   : > { %v4783_v16 = vsel %vm1961_vm5, %v4780_v58, %v4782_v20 }
 0x5e9   : > { %4724 = vrot.lane.b32.xlu0 %v4717_v29, %s5737_s19  ;;  %4722 = vrot.lane.b32.xlu2 %v4715_v53, %s5737_s19  ;;  %v4203_v29 = vmul.f32 %v9569_v19, %v9268_v63 }
 0x5ea   : > { %4726 = vrot.lane.b32.xlu1 %v4719_v41, %s5737_s19  ;;  %v4871_v41 = vstv %s5346_s16  ;;  %s9904_s16 = scalar_lea.vmem [#allocation18], %s5175_s7  ;;  %s5662_s7 = scalar_lea.hbm %s10013_s12, 128 }
 0x5eb   : > { %v4079_v48 = vpop.permute.xlu0 %4078  ;;  %v9571_v43 = vpop.permute.xlu2 %4181  ;;  %v4872_v7 = vmul.f32 %v4871_v41, %v9173_v27  ;;  %v4216_v10 = vrot.slane %v4203_v29, 2  ;;  %v4212_v29 = vrot.slane %v9593_v15, 2  ;;  %v5518_v15 = vld [vmem:[#allocation3 + $0x10] sm:$0xff] }
 0x5ec   : > { %v9577_v13 = vadd.f32 %v4079_v48, %v9469_v50  ;;  %v4046_v62 = vpop.permute.xlu1 %4045  ;;  %v4781_v50 = vsel %vm1961_vm5, %v4779_v25, %v4780_v58  ;;  %v4721_v48 = vsel %vm826_vm4, %v4718_v34, %v4720_v35  ;;  %v4096_v34 = vmul.f32 %v9491_v40, %v9158_v31 }
 0x5ed   : > { %v4055_v37 = vadd.f32 %v4046_v62, %v4018_v22  ;;  %v4784_v58 = vrot.slane %v4772_v51, 2  ;;  %v4786_v25 = vrot.slane %v4773_v52, 2  ;;  %v4217_v35 = vsel %vm1961_vm5, %v4214_v24, %v4216_v10 }
 0x5ee   : > { %v4875_v31 = vmul.f32 %v4871_v41, %v9228_v49  ;;  %v4876_v51 = vmul.f32 %v4871_v41, %v9448_v1  ;;  %v10496_v10 = vrot.slane %v9503_v11, 1 }
 0x5ef   : > { %v4092_v53 = vadd.f32 %v9513_v30, %v4055_v37  ;;  %v4873_v30 = vmul.f32 %v4871_v41, %v9220_v0  ;;  %v4882_v37 = vrot.slane %v4872_v7, 2  ;;  %v4787_v40 = vsel %vm1961_vm5, %v4784_v58, %v4786_v25 }
 0x5f0   : > { %v4112_v7 = vsel %vm826_vm4, %v4109_v2, %v4111_v6  ;;  %v4887_v55 = vrot.slane %v4875_v31, 2  ;;  %v4889_v25 = vrot.slane %v4876_v51, 2 }
 0x5f1   : > { %4788 = vrot.lane.b32.xlu0 %v4781_v50, %s5736_s23  ;;  %4728 = vrot.lane.b32.xlu2 %v4721_v48, %s5737_s19  ;;  %v4106_v48 = vrot.slane %v4096_v34, 1 }
 0x5f2   : > { %4790 = vrot.lane.b32.xlu1 %v4783_v16, %s5736_s23  ;;  %v4883_v16 = vrot.slane %v4873_v30, 2  ;;  %v4890_v51 = vsel %vm1961_vm5, %v4887_v55, %v4889_v25  ;;  %v4908_v25 = vstv %s9638_s4 }
 0x5f3   : > { %v4085_v22 = vpop.permute.xlu0 %4084  ;;  %v9596_v54 = vpop.permute.xlu2 %4187 }
 0x5f4   : > { %v4093_v28 = vadd.f32 %v4085_v22, %v9486_v3  ;;  %v4081_v62 = vpop.permute.xlu1 %4080  ;;  %v4785_v3 = vsel %vm1961_vm5, %v4782_v20, %v4784_v58  ;;  %v4884_v52 = vsel %vm1961_vm5, %v4882_v37, %v4883_v16  ;;  %v4215_v20 = vsel %vm1961_vm5, %v4212_v29, %v4214_v24 }
 0x5f5   : > { %v9604_v61 = vadd.f32 %v4081_v62, %v4054_v8  ;;  %v4874_v8 = vmul.f32 %v4871_v41, %v9218_v5  ;;  %v4121_v41 = vadd.f32 %v4112_v7, %v9421_v46  ;;  %v4224_v30 = vadd.f32 %v4215_v20, %v4092_v53 }
 0x5f6   : > { %v9607_v50 = vadd.f32 %v4217_v35, %v4093_v28  ;;  %v4108_v22 = vsel %vm826_vm4, %v4106_v48, %v10496_v10  ;;  %v9632_v62 = vstv %s9600_s9  ;;  %v4805_v35 = vstv %s5344_s29  ;;  %s5349_s9 = sld [smem:[#allocation16 + $0x1]]  ;;  %s5361_s29 = sshll.u32 %s5826_s25, 6 }
 0x5f7   : > { %v4119_v33 = vadd.f32 %v4108_v22, %v9266_v39  ;;  %v4885_v46 = vrot.slane %v4874_v8, 2  ;;  %v4306_v11 = vmul.f32 %v9632_v62, %v9268_v63  ;;  %v9646_v37 = vmul.f32 %v9632_v62, %v9198_v32 }
 0x5f8   : > { %v4809_v31 = vmul.f32 %v4805_v35, %v9228_v49  ;;  %v4200_v63 = vmul.f32 %v9569_v19, %v9185_v38  ;;  %v9659_v32 = vmul.f32 %v9632_v62, %v9185_v38 }
 0x5f9   : > { %4794 = vrot.lane.b32.xlu0 %v4787_v40, %s5736_s23  ;;  %4792 = vrot.lane.b32.xlu2 %v4785_v3, %s5736_s23  ;;  %v4888_v39 = vsel %vm1961_vm5, %v4885_v46, %v4887_v55  ;;  %v4886_v48 = vsel %vm1961_vm5, %v4883_v16, %v4885_v46  ;;  %v4807_v40 = vmul.f32 %v4805_v35, %v9220_v0  ;;  %v5516_v16 = vld [vmem:[#allocation3] sm:$0xff]  ;;  %v4317_v20 = vrot.slane %v9646_v37, 2 }
 0x5fa   : > { %4891 = vrot.lane.b32.xlu1 %v4884_v52, %s5736_s23  ;;  %v4806_v3 = vmul.f32 %v4805_v35, %v9173_v27  ;;  %v4199_v27 = vmul.f32 %v5516_v16, %v9569_v19  ;;  %v4302_v8 = vmul.f32 %v5516_v16, %v9632_v62  ;;  %v4821_v38 = vrot.slane %v4809_v31, 2 }
 0x5fb   : > { %v4149_v34 = vpop.permute.xlu0 %4148  ;;  %v4252_v28 = vpop.permute.xlu2 %4251  ;;  %v4817_v10 = vrot.slane %v4807_v40, 2  ;;  %v4319_v19 = vrot.slane %v4306_v11, 2 }
 0x5fc   : > { %v9634_v2 = vadd.f32 %v4149_v34, %v4121_v41  ;;  %v9636_v6 = vadd.f32 %v4252_v28, %v4224_v30  ;;  %v4145_v24 = vpop.permute.xlu1 %4144  ;;  %v4816_v22 = vrot.slane %v4806_v3, 2  ;;  %v4210_v28 = vrot.slane %v4200_v63, 2 }
 0x5fd   : > { %v4156_v58 = vadd.f32 %v4145_v24, %v4119_v33  ;;  %v4313_v33 = vrot.slane %v9659_v32, 2  ;;  %v4209_v24 = vrot.slane %v4199_v27, 2  ;;  %v4810_v3 = vmul.f32 %v4805_v35, %v9448_v1 }
 0x5fe   : > { %v4818_v40 = vsel %vm1961_vm5, %v4816_v22, %v4817_v10 }
 0x5ff   : > { %v4193_v53 = vadd.f32 %v9571_v43, %v4156_v58  ;;  %v4808_v43 = vmul.f32 %v4805_v35, %v9218_v5  ;;  %v4312_v58 = vrot.slane %v4302_v8, 2  ;;  %v4911_v35 = vmul.f32 %v4908_v25, %v9218_v5 }
 0x601   : > { %4895 = vrot.lane.b32.xlu0 %v4888_v39, %s5736_s23  ;;  %4893 = vrot.lane.b32.xlu2 %v4886_v48, %s5736_s23  ;;  %v4819_v55 = vrot.slane %v4808_v43, 2  ;;  %v4910_v39 = vmul.f32 %v4908_v25, %v9220_v0  ;;  %v4211_v0 = vsel %vm1961_vm5, %v4209_v24, %v4210_v28 }
 0x602   : > { %4897 = vrot.lane.b32.xlu1 %v4890_v51, %s5736_s23  ;;  %v4222_v63 = vadd.f32 %v4211_v0, %v9577_v13  ;;  %v4912_v13 = vmul.f32 %v4908_v25, %v9228_v49  ;;  %s5336_s23 = sld [smem:[#allocation13 + $0xc]] }
 0x603   : > { %v4184_v52 = vpop.permute.xlu0 %4183  ;;  %v4287_v7 = vpop.permute.xlu2 %4286  ;;  %v4822_v31 = vsel %vm1961_vm5, %v4819_v55, %v4821_v38  ;;  %v4820_v11 = vsel %vm1961_vm5, %v4817_v10, %v4819_v55  ;;  %v4920_v8 = vrot.slane %v4910_v39, 2  ;;  %v4922_v55 = vrot.slane %v4911_v35, 2 }
 0x604   : > { %v9667_v41 = vadd.f32 %v4184_v52, %v9549_v45  ;;  %v4151_v30 = vpop.permute.xlu1 %4150  ;;  %v9674_v45 = vld [vmem:[#allocation3 + $0x28] sm:$0xff] }
 0x605   : > { %v4159_v34 = vadd.f32 %v4151_v30, %v9554_v18  ;;  %v4909_v48 = vmul.f32 %v9674_v45, %v4908_v25  ;;  %v4320_v18 = vsel %vm1961_vm5, %v4317_v20, %v4319_v19  ;;  %v4923_v5 = vsel %vm1961_vm5, %v4920_v8, %v4922_v55 }
 0x607   : > { %v4196_v46 = vadd.f32 %v9596_v54, %v4159_v34  ;;  %v4314_v54 = vsel %vm1961_vm5, %v4312_v58, %v4313_v33  ;;  %v4919_v22 = vrot.slane %v4909_v48, 2  ;;  %v4823_v34 = vrot.slane %v4810_v3, 2 }
 0x608   : > { %v4325_v43 = vadd.f32 %v4314_v54, %v4193_v53  ;;  %v4913_v53 = vmul.f32 %v4908_v25, %v9448_v1 }
 0x609   : > { %4827 = vrot.lane.b32.xlu0 %v4820_v11, %s5737_s19  ;;  %4825 = vrot.lane.b32.xlu2 %v4818_v40, %s5737_s19  ;;  %v4328_v51 = vadd.f32 %v4320_v18, %v4196_v46  ;;  %v4921_v24 = vsel %vm1961_vm5, %v4919_v22, %v4920_v8  ;;  %v4824_v58 = vsel %vm1961_vm5, %v4821_v38, %v4823_v34  ;;  %v4924_v18 = vrot.slane %v4912_v13, 2 }
 0x60a   : > { %4829 = vrot.lane.b32.xlu1 %v4822_v31, %s5737_s19  ;;  %v4926_v31 = vrot.slane %v4913_v53, 2 }
 0x60b   : > { %v4248_v16 = vpop.permute.xlu0 %4247  ;;  %v4351_v27 = vpop.permute.xlu2 %4350  ;;  %v4925_v0 = vsel %vm1961_vm5, %v4922_v55, %v4924_v18 }
 0x60c   : > { %v9693_v52 = vadd.f32 %v4248_v16, %v4222_v63  ;;  %v4362_v30 = vadd.f32 %v4351_v27, %v4325_v43  ;;  %v4186_v10 = vpop.permute.xlu1 %4185  ;;  %v4927_v3 = vsel %vm1961_vm5, %v4924_v18, %v4926_v31  ;;  %v9723_v16 = vstv %s5336_s23 }
 0x60d   : > { %v4195_v19 = vadd.f32 %v4186_v10, %v9634_v2  ;;  %v4213_v2 = vsel %vm1961_vm5, %v4210_v28, %v4212_v29  ;;  %v4538_v32 = vmul.f32 %v9723_v16, %v9448_v1 }
 0x60e   : > { %v4223_v38 = vadd.f32 %v4213_v2, %v9604_v61  ;;  %v4304_v61 = vmul.f32 %v5518_v15, %v9632_v62  ;;  %v9727_v62 = vstv %s5330_s30  ;;  %s4998_s30 = scalar_lea.hbm %s10013_s12, %s5361_s29 }
 0x60f   : > { %v4551_v55 = vrot.slane %v4538_v32, 1  ;;  %s5001_s25 = sshll.u32 %s4998_s30, 4  ;;  %s5002_s25 = int_to_ptr.hbm [resolvable:$true] %s5001_s25 }
 0x611   : > { %4928 = vrot.lane.b32.xlu0 %v4921_v24, %s5737_s19  ;;  %4831 = vrot.lane.b32.xlu2 %v4824_v58, %s5737_s19 }
 0x612   : > { %4930 = vrot.lane.b32.xlu1 %v4923_v5, %s5737_s19 }
 0x613   : > { %v4254_v46 = vpop.permute.xlu0 %4253  ;;  %v4357_v39 = vpop.permute.xlu2 %4356 }
 0x614   : > { %v4262_v49 = vadd.f32 %v4254_v46, %v9607_v50  ;;  %v4365_v48 = vadd.f32 %v4357_v39, %v4328_v51  ;;  %v4250_v25 = vpop.permute.xlu1 %4249 }
 0x615   : > { %v4260_v11 = vadd.f32 %v4250_v25, %v4223_v38 }
 0x617   : > { %v9709_v40 = vadd.f32 %v4287_v7, %v4260_v11  ;;  %v4315_v7 = vrot.slane %v4304_v61, 2 }
 0x619   : > { %4934 = vrot.lane.b32.xlu0 %v4927_v3, %s5737_s19  ;;  %4932 = vrot.lane.b32.xlu2 %v4925_v0, %s5737_s19  ;;  %v4316_v51 = vsel %vm1961_vm5, %v4313_v33, %v4315_v7  ;;  %v4318_v58 = vsel %vm1961_vm5, %v4315_v7, %v4317_v20  ;;  %s5339_s19 = sld [smem:[#allocation13 + $0x1e]] }
 0x61a   : > { %v4326_v63 = vadd.f32 %v4316_v51, %v9667_v41  ;;  %v4327_v2 = vadd.f32 %v4318_v58, %v4195_v19  ;;  %v9756_v19 = vstv %s5333_s15  ;;  %s4987_s15 = scalar_lea.sflag [#allocation5], %s521_s20 }
 0x61b   : > { %v4289_v29 = vpop.permute.xlu0 %4288  ;;  %v4392_v50 = vpop.permute.xlu2 %4391 }
 0x61c   : > { %v4298_v28 = vadd.f32 %v4289_v29, %v9636_v6  ;;  %v9717_v54 = vpop.permute.xlu1 %4284  ;;  %v9731_v6 = vld [vmem:[#allocation3 + $0x40] sm:$0xff] }
 0x61d   : > { %v4537_v10 = vmul.f32 %v9731_v6, %v9723_v16  ;;  %v4413_v41 = vmul.f32 %v9731_v6, %v9727_v62  ;;  %v4475_v15 = vmul.f32 %v9731_v6, %v9756_v19 }
 0x61f   : > { %v4549_v34 = vrot.slane %v4537_v10, 1  ;;  %v9753_v31 = vstv %s5339_s19  ;;  %s4999_s19 = sshll.u32 %s9904_s16, 4  ;;  %s5000_s19 = int_to_ptr.vmem [resolvable:$true] %s4999_s19 }
 0x620   : > { %v9760_v3 = vmul.f32 %v9731_v6, %v9753_v31  ;;  %v4641_v0 = vmul.f32 %v9753_v31, %v9448_v1 }
 0x621   : > { %v4552_v39 = vsel %vm826_vm4, %v4549_v34, %v4551_v55 }
 0x622   : > { %v4652_v7 = vrot.slane %v9760_v3, 1  ;;  %v4654_v51 = vrot.slane %v4641_v0, 1 }
 0x623   : > { %v4353_v43 = vpop.permute.xlu0 %4352  ;;  %v9725_v27 = vpop.permute.xlu2 %4582 }
 0x624   : > { %v9729_v35 = vadd.f32 %v4353_v43, %v4326_v63  ;;  %v4291_v8 = vpop.permute.xlu1 %4290 }
 0x625   : > { %v4299_v33 = vadd.f32 %v4291_v8, %v4262_v49  ;;  %v9747_v49 = vld [vmem:[#allocation3 + $0x38] sm:$0xff] }
 0x627   : > { %v4417_v22 = vadd.f32 %v4413_v41, %v4299_v33 }
 0x629   : > { %v4443_v24 = vadd.f32 %v9471_v42, %v4417_v22  ;;  %v4412_v42 = vmul.f32 %v9747_v49, %v9727_v62 }
 0x62b   : > { %v4388_v13 = vpop.permute.xlu0 %4387  ;;  %v4589_v53 = vpop.permute.xlu2 %4588  ;;  %v4469_v5 = vadd.f32 %v9399_v44, %v4443_v24  ;;  %v4416_v20 = vadd.f32 %v4412_v42, %v4298_v28  ;;  %v4410_v42 = vmul.f32 %v9674_v45, %v9727_v62 }
 0x62c   : > { %v9744_v46 = vadd.f32 %v4388_v13, %v4362_v30  ;;  %v4355_v38 = vpop.permute.xlu1 %4354 }
 0x62d   : > { %v4560_v37 = vadd.f32 %v4552_v39, %v4469_v5  ;;  %v4364_v25 = vadd.f32 %v4355_v38, %v4327_v2  ;;  %v4442_v44 = vadd.f32 %v9442_v59, %v4416_v20  ;;  %v9770_v59 = vmul.f32 %v9747_v49, %v9723_v16 }
 0x62e   : > { %v4296_v2 = vadd.f32 %v9717_v54, %v9693_v52  ;;  %v4534_v52 = vmul.f32 %v9674_v45, %v9723_v16  ;;  %v9815_v54 = vld [vmem:[#allocation3 + $0x30] sm:$0xff] }
 0x62f   : > { %v9751_v18 = vadd.f32 %v4392_v50, %v4364_v25  ;;  %v4468_v28 = vadd.f32 %v9488_v17, %v4442_v44  ;;  %v4547_v43 = vrot.slane %v9770_v59, 1  ;;  %v4655_v17 = vsel %vm826_vm4, %v4652_v7, %v4654_v51 }
 0x630   : > { %v4597_v25 = vadd.f32 %v4589_v53, %v4560_v37  ;;  %v9819_v53 = vmul.f32 %v9815_v54, %v9723_v16 }
 0x633   : > { %v4394_v30 = vpop.permute.xlu0 %4393  ;;  %v4624_v11 = vpop.permute.xlu2 %4623 }
 0x634   : > { %v4402_v61 = vadd.f32 %v4394_v30, %v4365_v48  ;;  %v9766_v29 = vpop.permute.xlu1 %4389  ;;  %v4550_v48 = vsel %vm826_vm4, %v4547_v43, %v4549_v34  ;;  %v4414_v30 = vadd.f32 %v4410_v42, %v4296_v2 }
 0x635   : > { %v4559_v41 = vadd.f32 %v4550_v48, %v4468_v28  ;;  %v4545_v28 = vrot.slane %v9819_v53, 1 }
 0x636   : > { %v4479_v50 = vadd.f32 %v4475_v15, %v4402_v61  ;;  %v4440_v37 = vadd.f32 %v9339_v36, %v4414_v30 }
 0x638   : > { %v4505_v63 = vadd.f32 %v9483_v9, %v4479_v50  ;;  %v4544_v50 = vrot.slane %v4534_v52, 1  ;;  %v4466_v48 = vadd.f32 %v9299_v14, %v4440_v37 }
 0x63a   : > { %v4531_v8 = vadd.f32 %v9551_v23, %v4505_v63  ;;  %v9793_v23 = vstv %s5342_s28  ;;  %v4546_v36 = vsel %vm826_vm4, %v4544_v50, %v4545_v28  ;;  %v4411_v50 = vmul.f32 %v9815_v54, %v9727_v62  ;;  %s5656_s28 = sshra.s32 %s5002_s25, 4  ;;  %s5657_s28 = int_to_ptr.hbm [resolvable:$true] %s5656_s28 }
 0x63b   : > { %v9780_v10 = vpop.permute.xlu0 %4584  ;;  %v9782_v32 = vpop.permute.xlu2 %4687  ;;  %v9797_v13 = vmul.f32 %v9731_v6, %v9793_v23  ;;  %v4744_v5 = vmul.f32 %v9793_v23, %v9448_v1  ;;  %v9841_v14 = vmul.f32 %v9815_v54, %v9793_v23  ;;  %p5663_p3 = scmp.lt.s32.totalorder %s5657_s28, %s10013_s12 }
 0x63c   : > { %v4587_v33 = vpop.permute.xlu1 %4586  ;;  %v4663_v9 = vadd.f32 %v4655_v17, %v4531_v8 }
 0x63d   : > { %v4596_v22 = vadd.f32 %v4587_v33, %v4559_v41  ;;  %v4755_v39 = vrot.slane %v9797_v13, 2  ;;  %v4757_v38 = vrot.slane %v4744_v5, 2  ;;  %v9826_v41 = vstv %s5345_s5  ;;  %s5658_s5 = scalar_lea.hbm %s5657_s28, 64 }
 0x63e   : > { %v9830_v17 = vmul.f32 %v9731_v6, %v9826_v41  ;;  %v4847_v16 = vmul.f32 %v9826_v41, %v9448_v1  ;;  %v4740_v5 = vmul.f32 %v9674_v45, %v9793_v23  ;;  %p5659_p0 = scmp.ne.s32.totalorder %s5657_s28, %s5658_s5  ;;  %p5664_p4 = scmp.lt.s32.totalorder %s5662_s7, %s5658_s5 }
 0x63f   : > { %v9787_v55 = vadd.f32 %v4624_v11, %v4596_v22  ;;  %v4758_v15 = vsel %vm1961_vm5, %v4755_v39, %v4757_v38  ;;  %v4557_v22 = vadd.f32 %v4546_v36, %v4466_v48 }
 0x640   : > { %v4858_v2 = vrot.slane %v9830_v17, 2  ;;  %v4860_v6 = vrot.slane %v4847_v16, 2  ;;  %v4750_v30 = vrot.slane %v4740_v5, 2  ;;  %v4639_v16 = vmul.f32 %v9747_v49, %v9753_v31  ;;  %p5660_p1 = pnand %p5659_p0, %p5843_p5  ;;  %p5665_p7 = por %p5664_p4, %p5663_p3 }
 0x641   : > { %v4400_v5 = vadd.f32 %v9766_v29, %v9729_v35 }
 0x642   : > { %p5661_p2 = pneg %p5660_p1 }
 0x643   : > { %v4620_v24 = vpop.permute.xlu0 %4619  ;;  %v9789_v58 = vpop.permute.xlu2 %4722 }
 0x644   : > { %v9791_v34 = vpop.permute.xlu1 %4621  ;;  %p5666_p8 = pnand %p5665_p7, %p5661_p2 }
 0x64b   : > { %v4626_v20 = vpop.permute.xlu0 %4625  ;;  %v4729_v44 = vpop.permute.xlu2 %4728 }
 0x64c   : > { %v4634_v11 = vadd.f32 %v4626_v20, %v4597_v25  ;;  %v9806_v0 = vpop.permute.xlu1 %4685  ;;  %v4474_v25 = vmul.f32 %v9747_v49, %v9756_v19 }
 0x64e   : > { %v9811_v61 = vadd.f32 %v4758_v15, %v4634_v11  ;;  %v4751_v11 = vrot.slane %v9841_v14, 2  ;;  %v4861_v15 = vsel %vm1961_vm5, %v4858_v2, %v4860_v6  ;;  %v9871_v6 = vstv %s4944_s17 }
 0x653   : > { %v4690_v51 = vpop.permute.xlu0 %4689  ;;  %v9823_v63 = vpop.permute.xlu2 %4792 }
 0x654   : > { %v4692_v8 = vpop.permute.xlu1 %4691 }
 0x655   : > { %v4700_v33 = vadd.f32 %v4692_v8, %v4663_v9  ;;  %v4594_v9 = vadd.f32 %v9725_v27, %v4557_v22  ;;  %v4752_v27 = vsel %vm1961_vm5, %v4750_v30, %v4751_v11 }
 0x657   : > { %v4737_v38 = vadd.f32 %v4729_v44, %v4700_v33  ;;  %v4478_v44 = vadd.f32 %v4474_v25, %v9751_v18  ;;  %v4631_v52 = vadd.f32 %v4620_v24, %v4594_v9  ;;  %v4415_v24 = vadd.f32 %v4411_v50, %v9709_v40 }
 0x658   : > { %v4650_v9 = vrot.slane %v4639_v16, 1  ;;  %v9877_v25 = vstv %s4950_s18  ;;  %v4472_v40 = vmul.f32 %v9674_v45, %v9756_v19 }
 0x659   : > { %v9856_v37 = vadd.f32 %v4861_v15, %v4737_v38  ;;  %v4504_v48 = vadd.f32 %v9417_v21, %v4478_v44  ;;  %v4763_v8 = vadd.f32 %v4752_v27, %v4631_v52  ;;  %v4473_v38 = vmul.f32 %v9815_v54, %v9756_v19 }
 0x65a   : > { %v4441_v30 = vadd.f32 %v9373_v57, %v4415_v24  ;;  %v4476_v15 = vadd.f32 %v4472_v40, %v9744_v46  ;;  %v4638_v27 = vmul.f32 %v9815_v54, %v9753_v31  ;;  %v9894_v57 = vmul.f32 %v9747_v49, %v9826_v41 }
 0x65b   : > { %v9844_v42 = vpop.permute.xlu0 %4724  ;;  %v9846_v1 = vpop.permute.xlu2 %4893  ;;  %v4530_v21 = vadd.f32 %v9511_v4, %v4504_v48  ;;  %v4477_v29 = vadd.f32 %v4473_v38, %v4400_v5  ;;  %v4653_v4 = vsel %vm826_vm4, %v4650_v9, %v4652_v7  ;;  %v4742_v5 = vmul.f32 %v9747_v49, %v9793_v23 }
 0x65c   : > { %v4727_v20 = vpop.permute.xlu1 %4726  ;;  %v4467_v48 = vadd.f32 %v9466_v12, %v4441_v30 }
 0x65d   : > { %v4662_v44 = vadd.f32 %v4653_v4, %v4530_v21  ;;  %v4503_v16 = vadd.f32 %v9519_v60, %v4477_v29  ;;  %v4856_v60 = vrot.slane %v9894_v57, 2 }
 0x65f   : > { %v4699_v3 = vadd.f32 %v4690_v51, %v4662_v44  ;;  %v4648_v51 = vrot.slane %v4638_v27, 1  ;;  %v4859_v59 = vsel %vm1961_vm5, %v4856_v60, %v4858_v2  ;;  %v4753_v2 = vrot.slane %v4742_v5, 2 }
 0x661   : > { %v4736_v24 = vadd.f32 %v4727_v20, %v4699_v3  ;;  %v4529_v20 = vadd.f32 %v9444_v56, %v4503_v16  ;;  %v4651_v38 = vsel %vm826_vm4, %v4648_v51, %v4650_v9  ;;  %v4843_v9 = vmul.f32 %v9674_v45, %v9826_v41 }
 0x663   : > { %v4789_v18 = vpop.permute.xlu0 %4788  ;;  %v4826_v33 = vpop.permute.xlu2 %4825  ;;  %v4868_v21 = vadd.f32 %v4859_v59, %v4736_v24  ;;  %v4661_v23 = vadd.f32 %v4651_v38, %v4529_v20 }
 0x664   : > { %v4800_v36 = vadd.f32 %v4789_v18, %v4763_v8  ;;  %v9867_v22 = vpop.permute.xlu1 %4790  ;;  %v4637_v18 = vmul.f32 %v9674_v45, %v9753_v31 }
 0x666   : > { %v4837_v62 = vadd.f32 %v4826_v33, %v4800_v36  ;;  %v4502_v33 = vadd.f32 %v9335_v26, %v4476_v15  ;;  %v4647_v36 = vrot.slane %v4637_v18, 1  ;;  %v4972_v15 = vstv %s5349_s9 }
 0x668   : > { %v4946_v35 = vmul.f32 %v9871_v6, %v4837_v62  ;;  %v4649_v17 = vsel %vm826_vm4, %v4647_v36, %v4648_v51 }
 0x66a   : > { %v4952_v52 = vadd.f32 %v9877_v25, %v4946_v35  ;;  %v4966_v35 = vstv %s5348_s26 }
 0x66b   : > { %v4795_v19 = vpop.permute.xlu0 %4794  ;;  %v4832_v50 = vpop.permute.xlu2 %4831 }
 0x66c   : > { %v4956_v8 = vmax.f32 %v4952_v52, 0.0  ;;  %v4803_v7 = vadd.f32 %v4795_v19, %v9811_v61  ;;  %v9898_v46 = vpop.permute.xlu1 %4891  ;;  %v4548_v61 = vsel %vm826_vm4, %v4545_v28, %v4547_v43  ;;  %v4528_v43 = vadd.f32 %v9353_v47, %v4502_v33 }
 0x66d   : > { %v4558_v31 = vadd.f32 %v4548_v61, %v4467_v48  ;;  %v4844_v47 = vmul.f32 %v9815_v54, %v9826_v41  ;;  %v4756_v52 = vsel %vm1961_vm5, %v4753_v2, %v4755_v39  ;;  %v4698_v54 = vadd.f32 %v9782_v32, %v4661_v23 }
 0x66e   : > { %4961 = vst.msk [vmem:[%s9904_s16] sm:$0xff] %vm4960_vm9, %v4956_v8  ;;  %v4840_v12 = vadd.f32 %v4832_v50, %v4803_v7  ;;  %v4660_v29 = vadd.f32 %v4649_v17, %v4528_v43  ;;  %v4765_v19 = vadd.f32 %v4756_v52, %v9787_v55 }
 0x66f   : > { %v4595_v53 = vadd.f32 %v9780_v10, %v4558_v31  ;;  %v4854_v14 = vrot.slane %v4844_v47, 2  ;;  %v4735_v41 = vadd.f32 %v9844_v42, %v4698_v54 }
 0x670   : > { %v4949_v26 = vmul.f32 %v9871_v6, %v4840_v12  ;;  %v4697_v44 = vadd.f32 %v9806_v0, %v4660_v29  ;;  %v4802_v45 = vadd.f32 %v9823_v63, %v4765_v19  ;;  %v4853_v0 = vrot.slane %v4843_v9, 2 }
 0x671   : > { %v4632_v56 = vadd.f32 %v9791_v34, %v4595_v53  ;;  %v4754_v34 = vsel %vm1961_vm5, %v4751_v11, %v4753_v2  ;;  %v4857_v32 = vsel %vm1961_vm5, %v4854_v14, %v4856_v60 }
 0x672   : > { %v4955_v28 = vadd.f32 %v9877_v25, %v4949_v26  ;;  %v4734_v13 = vadd.f32 %v9789_v58, %v4697_v44  ;;  %v4855_v63 = vsel %vm1961_vm5, %v4853_v0, %v4854_v14 }
 0x673   : > { %v4896_v62 = vpop.permute.xlu0 %4895  ;;  %v4933_v10 = vpop.permute.xlu2 %4932  ;;  %v4764_v27 = vadd.f32 %v4754_v34, %v4632_v56 }
 0x674   : > { %v4959_v40 = vmax.f32 %v4955_v28, 0.0  ;;  %v4905_v30 = vadd.f32 %v4896_v62, %v4868_v21  ;;  %v4898_v49 = vpop.permute.xlu1 %4897  ;;  %v4866_v16 = vadd.f32 %v4855_v63, %v4734_v13 }
 0x675   : > { %v4801_v11 = vadd.f32 %v9867_v22, %v4764_v27  ;;  %v4867_v22 = vadd.f32 %v4857_v32, %v4735_v41 }
 0x676   : > { %4964 = vst.msk [vmem:[%s9904_s16 + $0x18] sm:$0xff] %vm4960_vm9, %v4959_v40  ;;  %v4942_v4 = vadd.f32 %v4933_v10, %v4905_v30  ;;  %v4903_v33 = vadd.f32 %v9898_v46, %v4866_v16 }
 0x677   : > { %v4904_v12 = vadd.f32 %v9846_v1, %v4867_v22  ;;  %v4906_v1 = vadd.f32 %v4898_v49, %v9856_v37 }
 0x678   : > { %v4969_v57 = vmul.f32 %v4966_v35, %v4942_v4 }
 0x67a   : > { %v4975_v50 = vadd.f32 %v4972_v15, %v4969_v57 }
 0x67b   : > { %v4828_v48 = vpop.permute.xlu0 %4827 }
 0x67c   : > { %v4979_v39 = vmax.f32 %v4975_v50, 0.0  ;;  %v4838_v3 = vadd.f32 %v4828_v48, %v4801_v11  ;;  %v4830_v8 = vpop.permute.xlu1 %4829 }
 0x67d   : > { %v4839_v7 = vadd.f32 %v4830_v8, %v4802_v45 }
 0x67e   : > { %5352 = vst.msk [vmem:[%s9904_s16 + $0x30] sm:$0xff] %vm4960_vm9, %v4979_v39  ;;  %v4947_v55 = vmul.f32 %v9871_v6, %v4838_v3 }
 0x67f   : > { %v4948_v42 = vmul.f32 %v9871_v6, %v4839_v7 }
 0x680   : > { %v4953_v58 = vadd.f32 %v9877_v25, %v4947_v55 }
 0x681   : > { %v4954_v18 = vadd.f32 %v9877_v25, %v4948_v42 }
 0x682   : > { %v4957_v24 = vmax.f32 %v4953_v58, 0.0 }
 0x683   : > { %v4958_v61 = vmax.f32 %v4954_v18, 0.0  ;;  %v4929_v60 = vpop.permute.xlu0 %4928 }
 0x684   : > { %4962 = vst.msk [vmem:[%s9904_s16 + $0x8] sm:$0xff] %vm4960_vm9, %v4957_v24  ;;  %v4940_v31 = vadd.f32 %v4929_v60, %v4903_v33  ;;  %v4931_v51 = vpop.permute.xlu1 %4930 }
 0x685   : > { %4963 = vst.msk [vmem:[%s9904_s16 + $0x10] sm:$0xff] %vm4960_vm9, %v4958_v61  ;;  %v4941_v6 = vadd.f32 %v4931_v51, %v4904_v12 }
 0x686   : > { %v4967_v26 = vmul.f32 %v4966_v35, %v4940_v31 }
 0x687   : > { %v4968_v20 = vmul.f32 %v4966_v35, %v4941_v6 }
 0x688   : > { %v4973_v25 = vadd.f32 %v4972_v15, %v4967_v26 }
 0x689   : > { %v4974_v36 = vadd.f32 %v4972_v15, %v4968_v20 }
 0x68a   : > { %v4977_v46 = vmax.f32 %v4973_v25, 0.0 }
 0x68b   : > { %v4978_v5 = vmax.f32 %v4974_v36, 0.0  ;;  %v4935_v59 = vpop.permute.xlu0 %4934 }
 0x68c   : > { %5350 = vst.msk [vmem:[%s9904_s16 + $0x20] sm:$0xff] %vm4960_vm9, %v4977_v46  ;;  %v4943_v53 = vadd.f32 %v4935_v59, %v4906_v1 }
 0x68d   : > { %5351 = vst.msk [vmem:[%s9904_s16 + $0x28] sm:$0xff] %vm4960_vm9, %v4978_v5 }
 0x68e   : > { %v4970_v43 = vmul.f32 %v4966_v35, %v4943_v53 }
 0x690   : > { %v4976_v28 = vadd.f32 %v4972_v15, %v4970_v43 }
 0x692   : > { %v4980_v37 = vmax.f32 %v4976_v28, 0.0 }
 0x694   : > { %5353 = vst.msk [vmem:[%s9904_s16 + $0x38] sm:$0xff] %vm4960_vm9, %v4980_v37 }
 0x695   : > { %5669 = shalt.err (!%p5666_p8)
}
 0x696   : > { %s5738_s20 = smov 128   ;;  %s5739_s16 = smov 8  }
 0x697   : > { %5410 = dma.vmem_to_hbm [thread:$0]  (%p5843_p5), %s5000_s19, 1024, %s5002_s25, %s4987_s15, %s5738_s20, %s5738_s20, %s5739_s16  }
 0x698 PF: > { %p5457_p9 = scmp.ge.s32.totalorder %s5724_s24, 2  ;;  %s5016_s29 = sand.u32 1, %s5712_s21  }
 0x699   : > { %s5017_s4 = scalar_lea.sflag [#allocation5], %s5016_s29 }
 0x69a   : > { %p5438_p10 = pnand %p5457_p9, %p5847_p6 }
 0x69c   : > { %p5439_p11 = pneg %p5438_p10 }
 0x69e   : > { %5707 = dma.done.wait (%p5439_p11), %s5017_s4, 1024  }
 0x69f   : > { %5709 = vsyncadd (%p5439_p11), %s5017_s4, 4294966272  ;;  %s10497_s23 = sld [smem:[#allocation25_spill]]  ;;  %p27_p12 = scmp.ge.s32.totalorder %s5830_s27, 4  }
 0x6a0   : > { %s10498_s30 = sld [smem:[#allocation26_spill]]  ;;  %s10499_s21 = smov %s5716_s22 }
 0x6a1   : > { %s10502_s24 = smov %s5830_s27 }
 0x6a2   :  { %29 = sbr.rel (!%p27_p12) target bundleno = 13 (0xd), region = 145 }
 0x6a5   : > { %s10500_s22 = smov %s10497_s23 }
 0x6a6   : > { %s10501_s23 = smov %s10498_s30 }
 0x6a7   :  { %5023 = vsyncpa [#allocation5], 1 }
 0x6a8   :  { %5025 = vsyncpa [#allocation5 + $0x1], 1 }
 0x6a9   :  { %5026 = vsyncpa [#allocation6], 1 }
 0x6aa   :  { %5028 = vsyncpa [#allocation6 + $0x1], 1 }
 0x6ab   :  { %5029 = vsyncpa [#allocation8], 1 }
 0x6ac   :  { %5030 = vsyncpa [#allocation11], 1 }
 0x6ad   :  { %5031 = vsyncpa [#allocation14], 1 }
 0x6ae   :  { %5032 = vsyncpa [#allocation17], 1 }

</bundles_post_ra>
